<compile_context>
chip_gen: v5e
topology: v5e:2x2
jax: 0.10.0
libtpu: 0.0.40
codegen_flags: <defaults>
</compile_context>

<pallas_src>
import functools
import math

import jax
import jax.numpy as jnp
from jax.experimental import pallas as pl
from jax.experimental.pallas import tpu as pltpu

D_IN = 512
D_HID = 2048
D_OUT = 512


def _round_up(a, b):
    return (a + b - 1) // b * b


def ffn_kernel(x_ref, w1_ref, b1_ref, w2_ref, b2_ref, o_ref, acc_ref, *, hc):
    # x_ref:  (tm, 512)  f32      w1_ref: (512, 2048) bf16   b1_ref: (1, 2048) f32
    # w2_ref: (2048, 512) bf16    b2_ref: (1, 512)    f32
    # o_ref:  (tm, 512)           acc_ref: (tm, 512)  f32 scratch
    x = x_ref[...].astype(jnp.bfloat16)

    # Fold the second bias into the accumulator init (one broadcast per tile).
    acc_ref[...] = jnp.broadcast_to(b2_ref[...], acc_ref.shape)

    n_chunks = D_HID // hc
    for c in range(n_chunks):  # static trip count (4 at hc=512); fully unrolled at trace time
        lo = c * hc
        w1c = w1_ref[:, lo:lo + hc]          # (512, hc)  bf16, tile-aligned slice
        b1c = b1_ref[:, lo:lo + hc]          # (1, hc)    f32
        w2c = w2_ref[lo:lo + hc, :]          # (hc, 512)  bf16

        h = jnp.dot(x, w1c, preferred_element_type=jnp.float32)   # MXU, f32 acc
        h = jnp.maximum(h + b1c, 0.0)                              # bias + ReLU in-register
        acc_ref[...] += jnp.dot(h.astype(jnp.bfloat16), w2c,
                                preferred_element_type=jnp.float32)

    o_ref[...] = acc_ref[...].astype(o_ref.dtype)


@functools.partial(jax.jit, static_argnames=("tm", "hc"))
def ffn_forward(x, w1, b1, w2, b2, *, tm=256, hc=512):
    # x: (..., 512) -> flatten leading dims into a token axis.
    lead_shape = x.shape[:-1]
    m = math.prod(lead_shape) if lead_shape else 1
    x2 = x.reshape(m, D_IN)

    # Effective token tile: large for throughput, clamped (and 8-aligned) for tiny inputs.
    tm_eff = min(tm, _round_up(max(m, 1), 8))
    m_pad = _round_up(m, tm_eff)
    if m_pad != m:
        x2 = jnp.pad(x2, ((0, m_pad - m), (0, 0)))

    # bf16 weights: 2x MXU throughput and half the weight DMA. Biases stay f32.
    w1b = w1.astype(jnp.bfloat16)
    w2b = w2.astype(jnp.bfloat16)
    b1_2d = b1.reshape(1, D_HID).astype(jnp.float32)
    b2_2d = b2.reshape(1, D_OUT).astype(jnp.float32)

    grid = (m_pad // tm_eff,)

    out = pl.pallas_call(
        functools.partial(ffn_kernel, hc=hc),
        out_shape=jax.ShapeDtypeStruct((m_pad, D_OUT), x.dtype),
        grid=grid,
        in_specs=[
            pl.BlockSpec((tm_eff, D_IN), lambda i: (i, 0)),      # x tile (streams)
            pl.BlockSpec((D_IN, D_HID), lambda i: (0, 0)),       # W1 (resident, bf16)
            pl.BlockSpec((1, D_HID), lambda i: (0, 0)),          # b1
            pl.BlockSpec((D_HID, D_OUT), lambda i: (0, 0)),      # W2 (resident, bf16)
            pl.BlockSpec((1, D_OUT), lambda i: (0, 0)),          # b2
        ],
        out_specs=pl.BlockSpec((tm_eff, D_OUT), lambda i: (i, 0)),
        scratch_shapes=[pltpu.VMEM((tm_eff, D_OUT), jnp.float32)],
        compiler_params=pltpu.CompilerParams(
            dimension_semantics=("parallel",),
            vmem_limit_bytes=32 << 20,   # fits v7x's 64 MiB physical VMEM with headroom
        ),
    )(x2, w1b, b1_2d, w2b, b2_2d)

    if m_pad != m:
        out = out[:m]
    return out.reshape(*lead_shape, D_OUT)


def init_params(key, dtype=jnp.float32):
    # Deterministic init mirroring nn.Linear's U(-1/sqrt(fan_in), 1/sqrt(fan_in)).
    k1, k2, k3, k4 = jax.random.split(key, 4)
    bound1 = 1.0 / (D_IN ** 0.5)
    bound2 = 1.0 / (D_HID ** 0.5)
    w1 = jax.random.uniform(k1, (D_IN, D_HID), dtype, -bound1, bound1)   # (in, out)
    b1 = jax.random.uniform(k2, (D_HID,), dtype, -bound1, bound1)
    w2 = jax.random.uniform(k3, (D_HID, D_OUT), dtype, -bound2, bound2)  # (in, out)
    b2 = jax.random.uniform(k4, (D_OUT,), dtype, -bound2, bound2)
    return w1, b1, w2, b2


if __name__ == "__main__":
    key = jax.random.PRNGKey(0)
    kx, kp = jax.random.split(key)

    # Small batch/seq; feature dims (512, 2048) are fixed by the module.
    B, S = 2, 8
    x = jax.random.normal(kx, (B, S, D_IN), dtype=jnp.float32)
    w1, b1, w2, b2 = init_params(kp)

    out = ffn_forward(x, w1, b1, w2, b2)
    out = jax.block_until_ready(out)
    assert out.shape == (B, S, D_OUT)

    x2 = x.reshape(-1, D_IN)

    # Matched-precision reference (bf16 matmuls, f32 accumulation) — same math as the kernel.
    h_ref = jnp.dot(x2.astype(jnp.bfloat16), w1.astype(jnp.bfloat16),
                    preferred_element_type=jnp.float32) + b1
    h_ref = jnp.maximum(h_ref, 0.0)
    ref_bf16 = jnp.dot(h_ref.astype(jnp.bfloat16), w2.astype(jnp.bfloat16),
                       preferred_element_type=jnp.float32) + b2
    ref_bf16 = ref_bf16.reshape(B, S, D_OUT)
    assert jnp.allclose(out, ref_bf16, atol=1e-2, rtol=1e-2)

    # Loose check against the full-f32 PyTorch-equivalent forward.
    ref_f32 = (jnp.maximum(x2 @ w1 + b1, 0.0) @ w2 + b2).reshape(B, S, D_OUT)
    assert jnp.allclose(out, ref_f32, atol=1e-1, rtol=1e-1)

    print("KERNEL_OK")
</pallas_src>

<mosaic_0001>
module attributes {stable_mosaic.version = 11 : i64} {
  func.func @ffn_kernel(%arg0: i32, %arg1: memref<16x512xf32, #tpu.memory_space<vmem>>, %arg2: memref<512x2048xbf16, #tpu.memory_space<vmem>>, %arg3: memref<1x2048xf32, #tpu.memory_space<vmem>>, %arg4: memref<2048x512xbf16, #tpu.memory_space<vmem>>, %arg5: memref<1x512xf32, #tpu.memory_space<vmem>>, %arg6: memref<16x512xf32, #tpu.memory_space<vmem>>, %arg7: memref<16x512xf32, #tpu.memory_space<vmem>>) attributes {dimension_semantics = [#tpu.dimension_semantics<parallel>], iteration_bounds = array<i64: 1>, scalar_prefetch = 0 : i64, scratch_operands = 1 : i64, tpu.core_type = #tpu.core_type<tc>, window_params = [{transform_indices = @transform_0, window_bounds = array<i64: 16, 512>}, {pipeline_mode = #tpu.pipeline_mode<synchronous>, transform_indices = @transform_1, window_bounds = array<i64: 512, 2048>}, {pipeline_mode = #tpu.pipeline_mode<synchronous>, transform_indices = @transform_2, window_bounds = array<i64: 1, 2048>}, {pipeline_mode = #tpu.pipeline_mode<synchronous>, transform_indices = @transform_3, window_bounds = array<i64: 2048, 512>}, {pipeline_mode = #tpu.pipeline_mode<synchronous>, transform_indices = @transform_4, window_bounds = array<i64: 1, 512>}, {transform_indices = @transform_5, window_bounds = array<i64: 16, 512>}]} {
    %c0 = arith.constant 0 : index
    %c0_0 = arith.constant 0 : index
    %0 = vector.load %arg1[%c0, %c0_0] : memref<16x512xf32, #tpu.memory_space<vmem>>, vector<16x512xf32>
    %1 = arith.truncf %0 : vector<16x512xf32> to vector<16x512xbf16>
    %c0_1 = arith.constant 0 : index
    %c0_2 = arith.constant 0 : index
    %2 = vector.load %arg5[%c0_1, %c0_2] : memref<1x512xf32, #tpu.memory_space<vmem>>, vector<1x512xf32>
    %3 = vector.shape_cast %2 : vector<1x512xf32> to vector<1x512xf32>
    %4 = vector.broadcast %3 : vector<1x512xf32> to vector<16x512xf32>
    %c0_3 = arith.constant 0 : index
    %c0_4 = arith.constant 0 : index
    %5 = vector.load %arg7[%c0_3, %c0_4] : memref<16x512xf32, #tpu.memory_space<vmem>>, vector<16x512xf32>
    tpu.vector_store %arg7[%c0_3, %c0_4], %4 {strides = array<i32>} : memref<16x512xf32, #tpu.memory_space<vmem>>, vector<16x512xf32>,
    %c0_5 = arith.constant 0 : index
    %c0_6 = arith.constant 0 : index
    %6 = vector.load %arg2[%c0_5, %c0_6] : memref<512x2048xbf16, #tpu.memory_space<vmem>>, vector<512x512xbf16>
    %c0_7 = arith.constant 0 : index
    %c0_8 = arith.constant 0 : index
    %7 = vector.load %arg3[%c0_7, %c0_8] : memref<1x2048xf32, #tpu.memory_space<vmem>>, vector<1x512xf32>
    %c0_9 = arith.constant 0 : index
    %c0_10 = arith.constant 0 : index
    %8 = vector.load %arg4[%c0_9, %c0_10] : memref<2048x512xbf16, #tpu.memory_space<vmem>>, vector<512x512xbf16>
    %cst = arith.constant dense<0.000000e+00> : vector<16x512xf32>
    %9 = tpu.matmul %1, %6, %cst {dimension_numbers = #tpu.dot_dimension_numbers<[1], [0], [0], [1], [0, 0, 1, 1], [], []>} : vector<16x512xbf16>, vector<512x512xbf16>, vector<16x512xf32> -> vector<16x512xf32>
    %10 = vector.broadcast %7 : vector<1x512xf32> to vector<16x512xf32>
    %11 = arith.addf %9, %10 : vector<16x512xf32>
    %cst_11 = arith.constant 0.000000e+00 : f32
    %12 = vector.broadcast %cst_11 : f32 to vector<16x512xf32>
    %13 = arith.maximumf %11, %12 : vector<16x512xf32>
    %c0_12 = arith.constant 0 : index
    %c0_13 = arith.constant 0 : index
    %14 = vector.load %arg7[%c0_12, %c0_13] : memref<16x512xf32, #tpu.memory_space<vmem>>, vector<16x512xf32>
    %15 = arith.truncf %13 : vector<16x512xf32> to vector<16x512xbf16>
    %cst_14 = arith.constant dense<0.000000e+00> : vector<16x512xf32>
    %16 = tpu.matmul %15, %8, %cst_14 {dimension_numbers = #tpu.dot_dimension_numbers<[1], [0], [0], [1], [0, 0, 1, 1], [], []>} : vector<16x512xbf16>, vector<512x512xbf16>, vector<16x512xf32> -> vector<16x512xf32>
    %17 = arith.addf %14, %16 : vector<16x512xf32>
    %c0_15 = arith.constant 0 : index
    %c0_16 = arith.constant 0 : index
    %18 = vector.load %arg7[%c0_15, %c0_16] : memref<16x512xf32, #tpu.memory_space<vmem>>, vector<16x512xf32>
    tpu.vector_store %arg7[%c0_15, %c0_16], %17 {strides = array<i32>} : memref<16x512xf32, #tpu.memory_space<vmem>>, vector<16x512xf32>,
    %c0_17 = arith.constant 0 : index
    %c512 = arith.constant 512 : index
    %19 = vector.load %arg2[%c0_17, %c512] : memref<512x2048xbf16, #tpu.memory_space<vmem>>, vector<512x512xbf16>
    %c0_18 = arith.constant 0 : index
    %c512_19 = arith.constant 512 : index
    %20 = vector.load %arg3[%c0_18, %c512_19] : memref<1x2048xf32, #tpu.memory_space<vmem>>, vector<1x512xf32>
    %c512_20 = arith.constant 512 : index
    %c0_21 = arith.constant 0 : index
    %21 = vector.load %arg4[%c512_20, %c0_21] : memref<2048x512xbf16, #tpu.memory_space<vmem>>, vector<512x512xbf16>
    %cst_22 = arith.constant dense<0.000000e+00> : vector<16x512xf32>
    %22 = tpu.matmul %1, %19, %cst_22 {dimension_numbers = #tpu.dot_dimension_numbers<[1], [0], [0], [1], [0, 0, 1, 1], [], []>} : vector<16x512xbf16>, vector<512x512xbf16>, vector<16x512xf32> -> vector<16x512xf32>
    %23 = vector.broadcast %20 : vector<1x512xf32> to vector<16x512xf32>
    %24 = arith.addf %22, %23 : vector<16x512xf32>
    %cst_23 = arith.constant 0.000000e+00 : f32
    %25 = vector.broadcast %cst_23 : f32 to vector<16x512xf32>
    %26 = arith.maximumf %24, %25 : vector<16x512xf32>
    %c0_24 = arith.constant 0 : index
    %c0_25 = arith.constant 0 : index
    %27 = vector.load %arg7[%c0_24, %c0_25] : memref<16x512xf32, #tpu.memory_space<vmem>>, vector<16x512xf32>
    %28 = arith.truncf %26 : vector<16x512xf32> to vector<16x512xbf16>
    %cst_26 = arith.constant dense<0.000000e+00> : vector<16x512xf32>
    %29 = tpu.matmul %28, %21, %cst_26 {dimension_numbers = #tpu.dot_dimension_numbers<[1], [0], [0], [1], [0, 0, 1, 1], [], []>} : vector<16x512xbf16>, vector<512x512xbf16>, vector<16x512xf32> -> vector<16x512xf32>
    %30 = arith.addf %27, %29 : vector<16x512xf32>
    %c0_27 = arith.constant 0 : index
    %c0_28 = arith.constant 0 : index
    %31 = vector.load %arg7[%c0_27, %c0_28] : memref<16x512xf32, #tpu.memory_space<vmem>>, vector<16x512xf32>
    tpu.vector_store %arg7[%c0_27, %c0_28], %30 {strides = array<i32>} : memref<16x512xf32, #tpu.memory_space<vmem>>, vector<16x512xf32>,
    %c0_29 = arith.constant 0 : index
    %c1024 = arith.constant 1024 : index
    %32 = vector.load %arg2[%c0_29, %c1024] : memref<512x2048xbf16, #tpu.memory_space<vmem>>, vector<512x512xbf16>
    %c0_30 = arith.constant 0 : index
    %c1024_31 = arith.constant 1024 : index
    %33 = vector.load %arg3[%c0_30, %c1024_31] : memref<1x2048xf32, #tpu.memory_space<vmem>>, vector<1x512xf32>
    %c1024_32 = arith.constant 1024 : index
    %c0_33 = arith.constant 0 : index
    %34 = vector.load %arg4[%c1024_32, %c0_33] : memref<2048x512xbf16, #tpu.memory_space<vmem>>, vector<512x512xbf16>
    %cst_34 = arith.constant dense<0.000000e+00> : vector<16x512xf32>
    %35 = tpu.matmul %1, %32, %cst_34 {dimension_numbers = #tpu.dot_dimension_numbers<[1], [0], [0], [1], [0, 0, 1, 1], [], []>} : vector<16x512xbf16>, vector<512x512xbf16>, vector<16x512xf32> -> vector<16x512xf32>
    %36 = vector.broadcast %33 : vector<1x512xf32> to vector<16x512xf32>
    %37 = arith.addf %35, %36 : vector<16x512xf32>
    %cst_35 = arith.constant 0.000000e+00 : f32
    %38 = vector.broadcast %cst_35 : f32 to vector<16x512xf32>
    %39 = arith.maximumf %37, %38 : vector<16x512xf32>
    %c0_36 = arith.constant 0 : index
    %c0_37 = arith.constant 0 : index
    %40 = vector.load %arg7[%c0_36, %c0_37] : memref<16x512xf32, #tpu.memory_space<vmem>>, vector<16x512xf32>
    %41 = arith.truncf %39 : vector<16x512xf32> to vector<16x512xbf16>
    %cst_38 = arith.constant dense<0.000000e+00> : vector<16x512xf32>
    %42 = tpu.matmul %41, %34, %cst_38 {dimension_numbers = #tpu.dot_dimension_numbers<[1], [0], [0], [1], [0, 0, 1, 1], [], []>} : vector<16x512xbf16>, vector<512x512xbf16>, vector<16x512xf32> -> vector<16x512xf32>
    %43 = arith.addf %40, %42 : vector<16x512xf32>
    %c0_39 = arith.constant 0 : index
    %c0_40 = arith.constant 0 : index
    %44 = vector.load %arg7[%c0_39, %c0_40] : memref<16x512xf32, #tpu.memory_space<vmem>>, vector<16x512xf32>
    tpu.vector_store %arg7[%c0_39, %c0_40], %43 {strides = array<i32>} : memref<16x512xf32, #tpu.memory_space<vmem>>, vector<16x512xf32>,
    %c0_41 = arith.constant 0 : index
    %c1536 = arith.constant 1536 : index
    %45 = vector.load %arg2[%c0_41, %c1536] : memref<512x2048xbf16, #tpu.memory_space<vmem>>, vector<512x512xbf16>
    %c0_42 = arith.constant 0 : index
    %c1536_43 = arith.constant 1536 : index
    %46 = vector.load %arg3[%c0_42, %c1536_43] : memref<1x2048xf32, #tpu.memory_space<vmem>>, vector<1x512xf32>
    %c1536_44 = arith.constant 1536 : index
    %c0_45 = arith.constant 0 : index
    %47 = vector.load %arg4[%c1536_44, %c0_45] : memref<2048x512xbf16, #tpu.memory_space<vmem>>, vector<512x512xbf16>
    %cst_46 = arith.constant dense<0.000000e+00> : vector<16x512xf32>
    %48 = tpu.matmul %1, %45, %cst_46 {dimension_numbers = #tpu.dot_dimension_numbers<[1], [0], [0], [1], [0, 0, 1, 1], [], []>} : vector<16x512xbf16>, vector<512x512xbf16>, vector<16x512xf32> -> vector<16x512xf32>
    %49 = vector.broadcast %46 : vector<1x512xf32> to vector<16x512xf32>
    %50 = arith.addf %48, %49 : vector<16x512xf32>
    %cst_47 = arith.constant 0.000000e+00 : f32
    %51 = vector.broadcast %cst_47 : f32 to vector<16x512xf32>
    %52 = arith.maximumf %50, %51 : vector<16x512xf32>
    %c0_48 = arith.constant 0 : index
    %c0_49 = arith.constant 0 : index
    %53 = vector.load %arg7[%c0_48, %c0_49] : memref<16x512xf32, #tpu.memory_space<vmem>>, vector<16x512xf32>
    %54 = arith.truncf %52 : vector<16x512xf32> to vector<16x512xbf16>
    %cst_50 = arith.constant dense<0.000000e+00> : vector<16x512xf32>
    %55 = tpu.matmul %54, %47, %cst_50 {dimension_numbers = #tpu.dot_dimension_numbers<[1], [0], [0], [1], [0, 0, 1, 1], [], []>} : vector<16x512xbf16>, vector<512x512xbf16>, vector<16x512xf32> -> vector<16x512xf32>
    %56 = arith.addf %53, %55 : vector<16x512xf32>
    %c0_51 = arith.constant 0 : index
    %c0_52 = arith.constant 0 : index
    %57 = vector.load %arg7[%c0_51, %c0_52] : memref<16x512xf32, #tpu.memory_space<vmem>>, vector<16x512xf32>
    tpu.vector_store %arg7[%c0_51, %c0_52], %56 {strides = array<i32>} : memref<16x512xf32, #tpu.memory_space<vmem>>, vector<16x512xf32>,
    %c0_53 = arith.constant 0 : index
    %c0_54 = arith.constant 0 : index
    %58 = vector.load %arg7[%c0_53, %c0_54] : memref<16x512xf32, #tpu.memory_space<vmem>>, vector<16x512xf32>
    %c0_55 = arith.constant 0 : index
    %c0_56 = arith.constant 0 : index
    %59 = vector.load %arg6[%c0_55, %c0_56] : memref<16x512xf32, #tpu.memory_space<vmem>>, vector<16x512xf32>
    tpu.vector_store %arg6[%c0_55, %c0_56], %58 {strides = array<i32>} : memref<16x512xf32, #tpu.memory_space<vmem>>, vector<16x512xf32>,
    return
  }
  func.func @transform_0(%arg0: i32) -> (i32, i32) {
    %c0_i32 = arith.constant 0 : i32
    %c0_i32_0 = arith.constant 0 : i32
    return %arg0, %c0_i32 : i32, i32
  }
  func.func @transform_1(%arg0: i32) -> (i32, i32) {
    %c0_i32 = arith.constant 0 : i32
    %c0_i32_0 = arith.constant 0 : i32
    %c0_i32_1 = arith.constant 0 : i32
    return %c0_i32, %c0_i32_0 : i32, i32
  }
  func.func @transform_2(%arg0: i32) -> (i32, i32) {
    %c0_i32 = arith.constant 0 : i32
    %c0_i32_0 = arith.constant 0 : i32
    %c0_i32_1 = arith.constant 0 : i32
    return %c0_i32, %c0_i32_0 : i32, i32
  }
  func.func @transform_3(%arg0: i32) -> (i32, i32) {
    %c0_i32 = arith.constant 0 : i32
    %c0_i32_0 = arith.constant 0 : i32
    %c0_i32_1 = arith.constant 0 : i32
    return %c0_i32, %c0_i32_0 : i32, i32
  }
  func.func @transform_4(%arg0: i32) -> (i32, i32) {
    %c0_i32 = arith.constant 0 : i32
    %c0_i32_0 = arith.constant 0 : i32
    %c0_i32_1 = arith.constant 0 : i32
    return %c0_i32, %c0_i32_0 : i32, i32
  }
  func.func @transform_5(%arg0: i32) -> (i32, i32) {
    %c0_i32 = arith.constant 0 : i32
    %c0_i32_0 = arith.constant 0 : i32
    return %arg0, %c0_i32 : i32, i32
  }
}

</mosaic_0001>

<bundles_post_ra>
// kernel: ffn_forward.1
= control target key start
LH: loop header
LB: loop body
LE: loop exit
PB: predicated region body
PF: predicated region fallthrough
CT: control target
= control target key end

     0   :  { %s20024_s0 = inlined_call_operand.vmem [shape: f32[16,512], index: 0, kind: input, shape index: {}]   ;;  %s20025_s1 = inlined_call_operand.vmem [shape: bf16[512,2048], index: 1, kind: input, shape index: {}]   ;;  %s20026_s2 = inlined_call_operand.vmem [shape: f32[1,2048], index: 2, kind: input, shape index: {}]   ;;  %s20027_s3 = inlined_call_operand.vmem [shape: bf16[2048,512], index: 3, kind: input, shape index: {}]   ;;  %s20028_s4 = inlined_call_operand.vmem [shape: f32[1,512], index: 4, kind: input, shape index: {}]   ;;  %s20029_s5 = inlined_call_operand.hbm [shape: f32[16,512], index: 5, kind: output, shape index: {}]  }
   0x1   :  { %v8319_v0 = vld [vmem:[%s20025_s1 + $0x380] sm:$0xf] }
   0x2   :  { %v12331_v1 = vld [vmem:[%s20025_s1 + $0x3bc] sm:$0xf0] }
   0x3   :  { %v8447_v2 = vld [vmem:[%s20025_s1 + $0x780] sm:$0xf]  ;;  %v8320_v3 = vor.u32 %v12331_v1, %v8319_v0 }
   0x4   :  { %v12363_v4 = vld [vmem:[%s20025_s1 + $0x7bc] sm:$0xf0] }
   0x5   :  { %v8575_v5 = vld [vmem:[%s20025_s1 + $0xb80] sm:$0xf]  ;;  %v8448_v7 = vor.u32 %v12363_v4, %v8447_v2  ;;  %957 = vmatpush.bf16.msra.mxu0 %v8320_v3 }
   0x6   :  { %v12395_v6 = vld [vmem:[%s20025_s1 + $0xbbc] sm:$0xf0] }
   0x7   :  { %v8576_v8 = vor.u32 %v12395_v6, %v8575_v5  ;;  %v8703_v9 = vld [vmem:[%s20025_s1 + $0xf80] sm:$0xf]  ;;  %971 = vmatpush.bf16.msra.mxu1 %v8448_v7 }
   0x8   :  { %v12427_v10 = vld [vmem:[%s20025_s1 + $0xfbc] sm:$0xf0] }
   0x9   :  { %v8303_v11 = vld [vmem:[%s20025_s1 + $0x300] sm:$0xf]  ;;  %v8704_v12 = vor.u32 %v12427_v10, %v8703_v9  ;;  %985 = vmatpush.bf16.msra.mxu2 %v8576_v8 }
   0xa   :  { %v12327_v13 = vld [vmem:[%s20025_s1 + $0x33c] sm:$0xf0] }
   0xb   :  { %v8431_v14 = vld [vmem:[%s20025_s1 + $0x700] sm:$0xf]  ;;  %v8304_v16 = vor.u32 %v12327_v13, %v8303_v11  ;;  %999 = vmatpush.bf16.msra.mxu3 %v8704_v12 }
   0xc   :  { %v12359_v15 = vld [vmem:[%s20025_s1 + $0x73c] sm:$0xf0] }
   0xd   :  { %v8432_v17 = vor.u32 %v12359_v15, %v8431_v14  ;;  %v8559_v18 = vld [vmem:[%s20025_s1 + $0xb00] sm:$0xf]  ;;  %958 = vmatpush.bf16.msra.mxu0 %v8304_v16 }
   0xe   :  { %v12391_v19 = vld [vmem:[%s20025_s1 + $0xb3c] sm:$0xf0] }
   0xf   :  { %v8687_v20 = vld [vmem:[%s20025_s1 + $0xf00] sm:$0xf]  ;;  %v8560_v21 = vor.u32 %v12391_v19, %v8559_v18  ;;  %972 = vmatpush.bf16.msra.mxu1 %v8432_v17 }
  0x10   :  { %v12423_v22 = vld [vmem:[%s20025_s1 + $0xf3c] sm:$0xf0] }
  0x11   :  { %v8287_v23 = vld [vmem:[%s20025_s1 + $0x280] sm:$0xf]  ;;  %v8688_v25 = vor.u32 %v12423_v22, %v8687_v20  ;;  %986 = vmatpush.bf16.msra.mxu2 %v8560_v21 }
  0x12   :  { %v12323_v24 = vld [vmem:[%s20025_s1 + $0x2bc] sm:$0xf0] }
  0x13   :  { %v8415_v26 = vld [vmem:[%s20025_s1 + $0x680] sm:$0xf]  ;;  %v8288_v29 = vor.u32 %v12323_v24, %v8287_v23  ;;  %1000 = vmatpush.bf16.msra.mxu3 %v8688_v25 }
  0x14   :  { %v12355_v27 = vld [vmem:[%s20025_s1 + $0x6bc] sm:$0xf0] }
  0x15   :  { %v8543_v28 = vld [vmem:[%s20025_s1 + $0xa80] sm:$0xf]  ;;  %v8416_v33 = vor.u32 %v12355_v27, %v8415_v26  ;;  %959 = vmatpush.bf16.msra.mxu0 %v8288_v29  ;;  %v12329_v27 = vld [vmem:[%s20025_s1 + $0x384] sm:$0xf] }
  0x16   :  { %v12387_v30 = vld [vmem:[%s20025_s1 + $0xabc] sm:$0xf0]  ;;  %v8321_v29 = vld [vmem:[%s20025_s1 + $0x3c0] sm:$0xf0] }
  0x17   :  { %v8671_v31 = vld [vmem:[%s20025_s1 + $0xe80] sm:$0xf]  ;;  %v8544_v34 = vor.u32 %v12387_v30, %v8543_v28  ;;  %973 = vmatpush.bf16.msra.mxu1 %v8416_v33  ;;  %v12361_v30 = vld [vmem:[%s20025_s1 + $0x784] sm:$0xf] }
  0x18   :  { %v12419_v32 = vld [vmem:[%s20025_s1 + $0xebc] sm:$0xf0]  ;;  %v8577_v33 = vld [vmem:[%s20025_s1 + $0xbc0] sm:$0xf0] }
  0x19   :  { %v8271_v35 = vld [vmem:[%s20025_s1 + $0x200] sm:$0xf]  ;;  %v8672_v38 = vor.u32 %v12419_v32, %v8671_v31  ;;  %987 = vmatpush.bf16.msra.mxu2 %v8544_v34  ;;  %v8449_v31 = vld [vmem:[%s20025_s1 + $0x7c0] sm:$0xf0] }
  0x1a   :  { %v12319_v36 = vld [vmem:[%s20025_s1 + $0x23c] sm:$0xf0]  ;;  %v12393_v32 = vld [vmem:[%s20025_s1 + $0xb84] sm:$0xf] }
  0x1b   :  { %v8399_v37 = vld [vmem:[%s20025_s1 + $0x600] sm:$0xf]  ;;  %v8272_v44 = vor.u32 %v12319_v36, %v8271_v35  ;;  %1001 = vmatpush.bf16.msra.mxu3 %v8672_v38  ;;  %v12425_v34 = vld [vmem:[%s20025_s1 + $0xf84] sm:$0xf]  ;;  %v27_v38 = vld [vmem:[%s20024_s0 + $0x30] sm:$0xff] }
  0x1c   :  { %v12351_v39 = vld [vmem:[%s20025_s1 + $0x63c] sm:$0xf0]  ;;  %v8705_v36 = vld [vmem:[%s20025_s1 + $0xfc0] sm:$0xf0] }
  0x1d   :  { %v8527_v40 = vld [vmem:[%s20025_s1 + $0xa00] sm:$0xf]  ;;  %v8400_v45 = vor.u32 %v12351_v39, %v8399_v37  ;;  %960 = vmatpush.bf16.msra.mxu0 %v8272_v44  ;;  %v23_v37 = vld [vmem:[%s20024_s0 + $0x10] sm:$0xff] }
  0x1e   :  { %v12383_v41 = vld [vmem:[%s20025_s1 + $0xa3c] sm:$0xf0] }
  0x1f   :  { %v8655_v42 = vld [vmem:[%s20025_s1 + $0xe00] sm:$0xf]  ;;  %v8528_v46 = vor.u32 %v12383_v41, %v8527_v40  ;;  %974 = vmatpush.bf16.msra.mxu1 %v8400_v45  ;;  %v8324_v45 = vor.u32 %v12329_v27, %v8321_v29  ;;  %v12313_v27 = vld [vmem:[%s20025_s1 + $0x184] sm:$0xf] }
  0x20   :  { %v12415_v43 = vld [vmem:[%s20025_s1 + $0xe3c] sm:$0xf0]  ;;  %v12345_v29 = vld [vmem:[%s20025_s1 + $0x584] sm:$0xf] }
  0x21   :  { %v8255_v47 = vld [vmem:[%s20025_s1 + $0x180] sm:$0xf]  ;;  %v8656_v50 = vor.u32 %v12415_v43, %v8655_v42  ;;  %988 = vmatpush.bf16.msra.mxu2 %v8528_v46  ;;  %v24_v43 = vld [vmem:[%s20024_s0 + $0x18] sm:$0xff] }
  0x22   :  { %v12315_v48 = vld [vmem:[%s20025_s1 + $0x1bc] sm:$0xf0]  ;;  %v28_v46 = vld [vmem:[%s20024_s0 + $0x38] sm:$0xff] }
  0x23   :  { %v8383_v49 = vld [vmem:[%s20025_s1 + $0x580] sm:$0xf]  ;;  %v8256_v56 = vor.u32 %v12315_v48, %v8255_v47  ;;  %1002 = vmatpush.bf16.msra.mxu3 %v8656_v50  ;;  %v12325_v47 = vld [vmem:[%s20025_s1 + $0x304] sm:$0xf]  ;;  %v8580_v50 = vor.u32 %v12393_v32, %v8577_v33 }
  0x24   :  { %v12347_v51 = vld [vmem:[%s20025_s1 + $0x5bc] sm:$0xf0]  ;;  %v8305_v48 = vld [vmem:[%s20025_s1 + $0x340] sm:$0xf0] }
  0x25   :  { %v8511_v52 = vld [vmem:[%s20025_s1 + $0x980] sm:$0xf]  ;;  %v8384_v57 = vor.u32 %v12347_v51, %v8383_v49  ;;  %961 = vmatpush.bf16.msra.mxu0 %v8256_v56  ;;  %v8452_v49 = vor.u32 %v12361_v30, %v8449_v31  ;;  %v12357_v51 = vld [vmem:[%s20025_s1 + $0x704] sm:$0xf] }
  0x26   :  { %v12379_v53 = vld [vmem:[%s20025_s1 + $0x9bc] sm:$0xf0]  ;;  %v8433_v56 = vld [vmem:[%s20025_s1 + $0x740] sm:$0xf0] }
  0x27   :  { %v8639_v54 = vld [vmem:[%s20025_s1 + $0xd80] sm:$0xf]  ;;  %v8512_v58 = vor.u32 %v12379_v53, %v8511_v52  ;;  %975 = vmatpush.bf16.msra.mxu1 %v8384_v57  ;;  %v22_v52 = vld [vmem:[%s20024_s0 + $0x8] sm:$0xff]  ;;  %v12389_v57 = vld [vmem:[%s20025_s1 + $0xb04] sm:$0xf] }
  0x28   :  { %v12411_v55 = vld [vmem:[%s20025_s1 + $0xdbc] sm:$0xf0]  ;;  %v26_v53 = vld [vmem:[%s20024_s0 + $0x28] sm:$0xff]  ;;  %v8385_v31 = vld [vmem:[%s20025_s1 + $0x5c0] sm:$0xf0] }
  0x29   :  { %v8239_v59 = vld [vmem:[%s20025_s1 + $0x100] sm:$0xf]  ;;  %v8640_v62 = vor.u32 %v12411_v55, %v8639_v54  ;;  %989 = vmatpush.bf16.msra.mxu2 %v8512_v58  ;;  %v8708_v54 = vor.u32 %v12425_v34, %v8705_v36  ;;  %v13636_v55 = vpack.c.bf16 %v27_v38, %v23_v37  ;;  %v8561_v58 = vld [vmem:[%s20025_s1 + $0xb40] sm:$0xf0]  ;;  %v8388_v37 = vor.u32 %v12345_v29, %v8385_v31  ;;  %v8439_v29 = vld [vmem:[%s20025_s1 + $0x708] sm:$0xf] }
  0x2a   :  { %v12311_v60 = vld [vmem:[%s20025_s1 + $0x13c] sm:$0xf0]  ;;  %v12377_v32 = vld [vmem:[%s20025_s1 + $0x984] sm:$0xf]  ;;  %v12360_v31 = vld [vmem:[%s20025_s1 + $0x744] sm:$0xf0] }
  0x2b   :  { %v8367_v61 = vld [vmem:[%s20025_s1 + $0x500] sm:$0xf]  ;;  %v8240_v4 = vor.u32 %v12311_v60, %v8239_v59  ;;  %1003 = vmatpush.bf16.msra.mxu3 %v8640_v62  ;;  %v13649_v60 = vpack.c.bf16 %v28_v46, %v24_v43  ;;  %v8689_v62 = vld [vmem:[%s20025_s1 + $0xf40] sm:$0xf0] }
  0x2c   :  { %v12343_v63 = vld [vmem:[%s20025_s1 + $0x53c] sm:$0xf0]  ;;  %v8513_v33 = vld [vmem:[%s20025_s1 + $0x9c0] sm:$0xf0] }
  0x2d   :  { %v8495_v0 = vld [vmem:[%s20025_s1 + $0x900] sm:$0xf]  ;;  %v8368_v6 = vor.u32 %v12343_v63, %v8367_v61  ;;  %962 = vmatpush.bf16.msra.mxu0 %v8240_v4  ;;  %v12421_v61 = vld [vmem:[%s20025_s1 + $0xf04] sm:$0xf]  ;;  %v8308_v63 = vor.u32 %v12325_v47, %v8305_v48  ;;  %v8516_v38 = vor.u32 %v12377_v32, %v8513_v33  ;;  %v8567_v32 = vld [vmem:[%s20025_s1 + $0xb08] sm:$0xf] }
  0x2e   :  { %v12375_v1 = vld [vmem:[%s20025_s1 + $0x93c] sm:$0xf0]  ;;  %v8289_v4 = vld [vmem:[%s20025_s1 + $0x2c0] sm:$0xf0]  ;;  %v12392_v33 = vld [vmem:[%s20025_s1 + $0xb44] sm:$0xf0] }
  0x2f   :  { %v8623_v2 = vld [vmem:[%s20025_s1 + $0xd00] sm:$0xf]  ;;  %v8496_v7 = vor.u32 %v12375_v1, %v8495_v0  ;;  %976 = vmatpush.bf16.msra.mxu1 %v8368_v6  ;;  %v13657_v0 = vpack.c.bf16 %v26_v53, %v22_v52  ;;  %v8436_v1 = vor.u32 %v12357_v51, %v8433_v56  ;;  %v8692_v6 = vor.u32 %v12421_v61, %v8689_v62  ;;  %v12409_v34 = vld [vmem:[%s20025_s1 + $0xd84] sm:$0xf] }
  0x30   :  { %v12407_v3 = vld [vmem:[%s20025_s1 + $0xd3c] sm:$0xf0]  ;;  %v8369_v43 = vld [vmem:[%s20025_s1 + $0x540] sm:$0xf0] }
  0x31   :  { %v8223_v5 = vld [vmem:[%s20025_s1 + $0x80] sm:$0xf]  ;;  %v8624_v11 = vor.u32 %v12407_v3, %v8623_v2  ;;  %990 = vmatpush.bf16.msra.mxu2 %v8496_v7  ;;  %v8564_v2 = vor.u32 %v12389_v57, %v8561_v58  ;;  %v12321_v3 = vld [vmem:[%s20025_s1 + $0x284] sm:$0xf] }
  0x32   :  { %v12307_v8 = vld [vmem:[%s20025_s1 + $0xbc] sm:$0xf0]  ;;  %v8417_v7 = vld [vmem:[%s20025_s1 + $0x6c0] sm:$0xf0] }
  0x33   :  { %v8351_v9 = vld [vmem:[%s20025_s1 + $0x480] sm:$0xf]  ;;  %v8224_v18 = vor.u32 %v12307_v8, %v8223_v5  ;;  %1004 = vmatpush.bf16.msra.mxu3 %v8624_v11  ;;  %v12353_v5 = vld [vmem:[%s20025_s1 + $0x684] sm:$0xf] }
  0x34   :  { %v12339_v10 = vld [vmem:[%s20025_s1 + $0x4bc] sm:$0xf0]  ;;  %v12385_v8 = vld [vmem:[%s20025_s1 + $0xa84] sm:$0xf] }
  0x35   :  { %v8479_v12 = vld [vmem:[%s20025_s1 + $0x880] sm:$0xf]  ;;  %v8352_v23 = vor.u32 %v12339_v10, %v8351_v9  ;;  %963 = vmatpush.bf16.msra.mxu0 %v8224_v18  ;;  %v8545_v9 = vld [vmem:[%s20025_s1 + $0xac0] sm:$0xf0] }
  0x36   :  { %v12371_v13 = vld [vmem:[%s20025_s1 + $0x8bc] sm:$0xf0]  ;;  %v12417_v10 = vld [vmem:[%s20025_s1 + $0xe84] sm:$0xf] }
  0x37   :  { %v8607_v14 = vld [vmem:[%s20025_s1 + $0xc80] sm:$0xf]  ;;  %v8480_v24 = vor.u32 %v12371_v13, %v8479_v12  ;;  %977 = vmatpush.bf16.msra.mxu1 %v8352_v23  ;;  %v8673_v11 = vld [vmem:[%s20025_s1 + $0xec0] sm:$0xf0]  ;;  %v8292_v12 = vor.u32 %v12321_v3, %v8289_v4  ;;  %v8420_v13 = vor.u32 %v12353_v5, %v8417_v7 }
  0x38   :  { %v12403_v15 = vld [vmem:[%s20025_s1 + $0xcbc] sm:$0xf0]  ;;  %v8676_v18 = vor.u32 %v12417_v10, %v8673_v11  ;;  %v8657_v23 = vld [vmem:[%s20025_s1 + $0xe40] sm:$0xf0] }
  0x39   :  { %v8207_v16 = vld [vmem:[%s20025_s1] sm:$0xf]  ;;  %v8608_v28 = vor.u32 %v12403_v15, %v8607_v14  ;;  %991 = vmatpush.bf16.msra.mxu2 %v8480_v24  ;;  %v8548_v14 = vor.u32 %v12385_v8, %v8545_v9  ;;  %v12317_v15 = vld [vmem:[%s20025_s1 + $0x204] sm:$0xf] }
  0x3a   :  { %v12303_v17 = vld [vmem:[%s20025_s1 + $0x3c] sm:$0xf0]  ;;  %v12405_v46 = vld [vmem:[%s20025_s1 + $0xd04] sm:$0xf] }
  0x3b   :  { %v8335_v19 = vld [vmem:[%s20025_s1 + $0x400] sm:$0xf]  ;;  %v8208_v35 = vor.u32 %v12303_v17, %v8207_v16  ;;  %1005 = vmatpush.bf16.msra.mxu3 %v8608_v28  ;;  %v8273_v16 = vld [vmem:[%s20025_s1 + $0x240] sm:$0xf0] }
  0x3c   :  { %v12335_v20 = vld [vmem:[%s20025_s1 + $0x43c] sm:$0xf0]  ;;  %v12349_v17 = vld [vmem:[%s20025_s1 + $0x604] sm:$0xf]  ;;  %v8276_v24 = vor.u32 %v12317_v15, %v8273_v16  ;;  %v12364_v16 = vld [vmem:[%s20025_s1 + $0x7c4] sm:$0xf0] }
  0x3d   :  { %v8463_v21 = vld [vmem:[%s20025_s1 + $0x800] sm:$0xf]  ;;  %v8336_v39 = vor.u32 %v12335_v20, %v8335_v19  ;;  %964 = vmatpush.bf16.msra.mxu0 %v8208_v35  ;;  %v8401_v19 = vld [vmem:[%s20025_s1 + $0x640] sm:$0xf0] }
  0x3e   :  { %v12367_v22 = vld [vmem:[%s20025_s1 + $0x83c] sm:$0xf0]  ;;  %v12381_v20 = vld [vmem:[%s20025_s1 + $0xa04] sm:$0xf] }
  0x3f   :  { %v8591_v25 = vld [vmem:[%s20025_s1 + $0xc00] sm:$0xf]  ;;  %v8464_v40 = vor.u32 %v12367_v22, %v8463_v21  ;;  %978 = vmatpush.bf16.msra.mxu1 %v8336_v39  ;;  %v8529_v21 = vld [vmem:[%s20025_s1 + $0xa40] sm:$0xf0] }
  0x40   :  { %v12399_v26 = vld [vmem:[%s20025_s1 + $0xc3c] sm:$0xf0]  ;;  %v12413_v22 = vld [vmem:[%s20025_s1 + $0xe04] sm:$0xf] }
  0x41   :  { %v21_v41 = vld [vmem:[%s20024_s0] sm:$0xff]  ;;  %v8592_v44 = vor.u32 %v12399_v26, %v8591_v25  ;;  %992 = vmatpush.bf16.msra.mxu2 %v8464_v40  ;;  %1013 = vmatpush.bf16.msrb.mxu0 %v8324_v45  ;;  %v8404_v25 = vor.u32 %v12349_v17, %v8401_v19  ;;  %v8532_v26 = vor.u32 %v12381_v20, %v8529_v21  ;;  %v8583_v17 = vld [vmem:[%s20025_s1 + $0xb88] sm:$0xf] }
  0x42   :  { %v25_v42 = vld [vmem:[%s20024_s0 + $0x20] sm:$0xff]  ;;  %979 = vmatmul.bf16.vlgmr.msra.gmra.mxu1 %v13657_v0  ;;  %v8660_v30 = vor.u32 %v12413_v22, %v8657_v23  ;;  %v8711_v21 = vld [vmem:[%s20025_s1 + $0xf88] sm:$0xf] }
  0x43   :  { %v13647_v59 = vpack.c.bf16 %v25_v42, %v21_v41  ;;  %1006 = vmatpush.bf16.msra.mxu3 %v8592_v44  ;;  %1027 = vmatpush.bf16.msrb.mxu1 %v8452_v49  ;;  %v8257_v28 = vld [vmem:[%s20025_s1 + $0x1c0] sm:$0xf0]  ;;  %v12428_v22 = vld [vmem:[%s20025_s1 + $0xfc4] sm:$0xf0] }
  0x44   :  { %993 = vmatmul.bf16.vlgmr.msra.gmra.mxu2 %v13636_v55  ;;  %v8641_v35 = vld [vmem:[%s20025_s1 + $0xdc0] sm:$0xf0]  ;;  %v8260_v36 = vor.u32 %v12313_v27, %v8257_v28  ;;  %v8311_v27 = vld [vmem:[%s20025_s1 + $0x308] sm:$0xf] }
  0x45   :  { %1041 = vmatpush.bf16.msrb.mxu2 %v8580_v50  ;;  %965 = vmatmul.bf16.vlgmr.msra.gmra.mxu0 %v13647_v59  ;;  %v12309_v39 = vld [vmem:[%s20025_s1 + $0x104] sm:$0xf]  ;;  %v8644_v42 = vor.u32 %v12409_v34, %v8641_v35  ;;  %v12328_v28 = vld [vmem:[%s20025_s1 + $0x344] sm:$0xf0] }
  0x46   :  { %1007 = vmatmul.bf16.vlgmr.msra.gmra.mxu3 %v13649_v60  ;;  %1014 = vmatpush.bf16.msrb.mxu0 %v8308_v63  ;;  %v8241_v40 = vld [vmem:[%s20025_s1 + $0x140] sm:$0xf0]  ;;  %v8695_v34 = vld [vmem:[%s20025_s1 + $0xf08] sm:$0xf] }
  0x47   :  { %1055 = vmatpush.bf16.msrb.mxu3 %v8708_v54  ;;  %1028 = vmatpush.bf16.msrb.mxu1 %v8436_v1  ;;  %v12341_v41 = vld [vmem:[%s20025_s1 + $0x504] sm:$0xf]  ;;  %v8244_v48 = vor.u32 %v12309_v39, %v8241_v40  ;;  %v12424_v35 = vld [vmem:[%s20025_s1 + $0xf44] sm:$0xf0] }
  0x48   :  { %v12373_v44 = vld [vmem:[%s20025_s1 + $0x904] sm:$0xf]  ;;  %v8372_v49 = vor.u32 %v12341_v41, %v8369_v43  ;;  %v8295_v39 = vld [vmem:[%s20025_s1 + $0x288] sm:$0xf] }
  0x49   :  { %1042 = vmatpush.bf16.msrb.mxu2 %v8564_v2  ;;  %v8497_v45 = vld [vmem:[%s20025_s1 + $0x940] sm:$0xf0]  ;;  %v12324_v40 = vld [vmem:[%s20025_s1 + $0x2c4] sm:$0xf0] }
  0x4a   :  { %1015 = vmatpush.bf16.msrb.mxu0 %v8292_v12  ;;  %v8625_v47 = vld [vmem:[%s20025_s1 + $0xd40] sm:$0xf0]  ;;  %v8500_v50 = vor.u32 %v12373_v44, %v8497_v45  ;;  %v8327_v12 = vld [vmem:[%s20025_s1 + $0x388] sm:$0xf] }
  0x4b   :  { %1056 = vmatpush.bf16.msrb.mxu3 %v8692_v6  ;;  %1029 = vmatpush.bf16.msrb.mxu1 %v8420_v13  ;;  %v12305_v51 = vld [vmem:[%s20025_s1 + $0x84] sm:$0xf]  ;;  %v8628_v54 = vor.u32 %v12405_v46, %v8625_v47  ;;  %v12332_v13 = vld [vmem:[%s20025_s1 + $0x3c4] sm:$0xf0] }
  0x4c   :  { %v8225_v52 = vld [vmem:[%s20025_s1 + $0xc0] sm:$0xf0]  ;;  %v8423_v41 = vld [vmem:[%s20025_s1 + $0x688] sm:$0xf] }
  0x4d   :  { %1043 = vmatpush.bf16.msrb.mxu2 %v8548_v14  ;;  %v12337_v53 = vld [vmem:[%s20025_s1 + $0x484] sm:$0xf]  ;;  %v8228_v63 = vor.u32 %v12305_v51, %v8225_v52  ;;  %v8455_v14 = vld [vmem:[%s20025_s1 + $0x788] sm:$0xf] }
  0x4e   :  { %1016 = vmatpush.bf16.msrb.mxu0 %v8276_v24  ;;  %v8353_v56 = vld [vmem:[%s20025_s1 + $0x4c0] sm:$0xf0]  ;;  %v8328_v24 = vor.u32 %v12332_v13, %v8327_v12  ;;  %v12356_v43 = vld [vmem:[%s20025_s1 + $0x6c4] sm:$0xf0] }
  0x4f   :  { %1057 = vmatpush.bf16.msrb.mxu3 %v8676_v18  ;;  %1030 = vmatpush.bf16.msrb.mxu1 %v8404_v25  ;;  %v12369_v57 = vld [vmem:[%s20025_s1 + $0x884] sm:$0xf]  ;;  %v8356_v3 = vor.u32 %v12337_v53, %v8353_v56  ;;  %v12396_v18 = vld [vmem:[%s20025_s1 + $0xbc4] sm:$0xf0]  ;;  %v8456_v25 = vor.u32 %v12364_v16, %v8455_v14 }
  0x50   :  { %v8481_v58 = vld [vmem:[%s20025_s1 + $0x8c0] sm:$0xf0]  ;;  %v8551_v44 = vld [vmem:[%s20025_s1 + $0xa88] sm:$0xf] }
  0x51   :  { %1044 = vmatpush.bf16.msrb.mxu2 %v8532_v26  ;;  %v12401_v61 = vld [vmem:[%s20025_s1 + $0xc84] sm:$0xf]  ;;  %v8484_v4 = vor.u32 %v12369_v57, %v8481_v58  ;;  %v8584_v26 = vor.u32 %v12396_v18, %v8583_v17  ;;  %v12388_v45 = vld [vmem:[%s20025_s1 + $0xac4] sm:$0xf0] }
  0x52   :  { %1017 = vmatpush.bf16.msrb.mxu0 %v8260_v36  ;;  %v8609_v62 = vld [vmem:[%s20025_s1 + $0xcc0] sm:$0xf0]  ;;  %v8312_v36 = vor.u32 %v12328_v28, %v8311_v27  ;;  %v8679_v46 = vld [vmem:[%s20025_s1 + $0xe88] sm:$0xf] }
  0x53   :  { %1058 = vmatpush.bf16.msrb.mxu3 %v8660_v30  ;;  %1031 = vmatpush.bf16.msrb.mxu1 %v8388_v37  ;;  %v12301_v1 = vld [vmem:[%s20025_s1 + $0x4] sm:$0xf]  ;;  %v8612_v8 = vor.u32 %v12401_v61, %v8609_v62  ;;  %v8712_v30 = vor.u32 %v12428_v22, %v8711_v21  ;;  %v8440_v37 = vor.u32 %v12360_v31, %v8439_v29  ;;  %v12420_v47 = vld [vmem:[%s20025_s1 + $0xec4] sm:$0xf0] }
  0x54   :  { %v8209_v2 = vld [vmem:[%s20025_s1 + $0x40] sm:$0xf0]  ;;  %v8279_v51 = vld [vmem:[%s20025_s1 + $0x208] sm:$0xf] }
  0x55   :  { %1045 = vmatpush.bf16.msrb.mxu2 %v8516_v38  ;;  %v12333_v5 = vld [vmem:[%s20025_s1 + $0x404] sm:$0xf]  ;;  %v8212_v15 = vor.u32 %v12301_v1, %v8209_v2  ;;  %v8568_v38 = vor.u32 %v12392_v33, %v8567_v32  ;;  %v12320_v52 = vld [vmem:[%s20025_s1 + $0x244] sm:$0xf0] }
  0x56   :  { %1018 = vmatpush.bf16.msrb.mxu0 %v8244_v48  ;;  %v8337_v6 = vld [vmem:[%s20025_s1 + $0x440] sm:$0xf0]  ;;  %v8296_v48 = vor.u32 %v12324_v40, %v8295_v39  ;;  %v8407_v53 = vld [vmem:[%s20025_s1 + $0x608] sm:$0xf] }
  0x57   :  { %1059 = vmatpush.bf16.msrb.mxu3 %v8644_v42  ;;  %1032 = vmatpush.bf16.msrb.mxu1 %v8372_v49  ;;  %v12365_v7 = vld [vmem:[%s20025_s1 + $0x804] sm:$0xf]  ;;  %v8340_v19 = vor.u32 %v12333_v5, %v8337_v6  ;;  %v8696_v42 = vor.u32 %v12424_v35, %v8695_v34  ;;  %v8424_v49 = vor.u32 %v12356_v43, %v8423_v41  ;;  %v12352_v56 = vld [vmem:[%s20025_s1 + $0x644] sm:$0xf0] }
  0x58   :  { %v8465_v9 = vld [vmem:[%s20025_s1 + $0x840] sm:$0xf0]  ;;  %v8535_v57 = vld [vmem:[%s20025_s1 + $0xa08] sm:$0xf]  ;;  %v8408_v1 = vor.u32 %v12352_v56, %v8407_v53 }
  0x59   :  { %1046 = vmatpush.bf16.msrb.mxu2 %v8500_v50  ;;  %v12397_v10 = vld [vmem:[%s20025_s1 + $0xc04] sm:$0xf]  ;;  %v8468_v20 = vor.u32 %v12365_v7, %v8465_v9  ;;  %v8552_v50 = vor.u32 %v12388_v45, %v8551_v44  ;;  %v12384_v58 = vld [vmem:[%s20025_s1 + $0xa44] sm:$0xf0] }
  0x5a   :  { %v8593_v11 = vld [vmem:[%s20025_s1 + $0xc40] sm:$0xf0]  ;;  %1019 = vmatpush.bf16.msrb.mxu0 %v8228_v63  ;;  %v8663_v61 = vld [vmem:[%s20025_s1 + $0xe08] sm:$0xf]  ;;  %v8280_v63 = vor.u32 %v12320_v52, %v8279_v51  ;;  %v8536_v2 = vor.u32 %v12384_v58, %v8535_v57 }
  0x5b   :  { %1060 = vmatpush.bf16.msrb.mxu3 %v8628_v54  ;;  %1033 = vmatpush.bf16.msrb.mxu1 %v8356_v3  ;;  %v8596_v23 = vor.u32 %v12397_v10, %v8593_v11  ;;  %v8680_v54 = vor.u32 %v12420_v47, %v8679_v46  ;;  %v12416_v62 = vld [vmem:[%s20025_s1 + $0xe44] sm:$0xf0] }
  0x5c   :  { %v8263_v3 = vld [vmem:[%s20025_s1 + $0x188] sm:$0xf]  ;;  %v8664_v6 = vor.u32 %v12416_v62, %v8663_v61 }
  0x5d   :  { %1047 = vmatpush.bf16.msrb.mxu2 %v8484_v4  ;;  %v12316_v4 = vld [vmem:[%s20025_s1 + $0x1c4] sm:$0xf0] }
  0x5e   :  { %1020 = vmatpush.bf16.msrb.mxu0 %v8212_v15  ;;  %v8391_v5 = vld [vmem:[%s20025_s1 + $0x588] sm:$0xf]  ;;  %v8264_v12 = vor.u32 %v12316_v4, %v8263_v3 }
  0x5f   :  { %1061 = vmatpush.bf16.msrb.mxu3 %v8612_v8  ;;  %1034 = vmatpush.bf16.msrb.mxu1 %v8340_v19  ;;  %v12348_v7 = vld [vmem:[%s20025_s1 + $0x5c4] sm:$0xf0] }
  0x60   :  { %v8519_v8 = vld [vmem:[%s20025_s1 + $0x988] sm:$0xf]  ;;  %v8392_v13 = vor.u32 %v12348_v7, %v8391_v5 }
  0x61   :  { %1048 = vmatpush.bf16.msrb.mxu2 %v8468_v20  ;;  %1021 = vmatmul.bf16.vlgmr.msrb.gmra.mxu0 %v13647_v59  ;;  %v12380_v9 = vld [vmem:[%s20025_s1 + $0x9c4] sm:$0xf0] }
  0x62   :  { %1069 = vmatpush.bf16.msra.mxu0 %v8328_v24  ;;  %1035 = vmatmul.bf16.vlgmr.msrb.gmra.mxu1 %v13657_v0  ;;  %v8647_v10 = vld [vmem:[%s20025_s1 + $0xd88] sm:$0xf]  ;;  %v8520_v14 = vor.u32 %v12380_v9, %v8519_v8 }
  0x63   :  { %1062 = vmatpush.bf16.msrb.mxu3 %v8596_v23  ;;  %1083 = vmatpush.bf16.msra.mxu1 %v8456_v25  ;;  %v12412_v11 = vld [vmem:[%s20025_s1 + $0xdc4] sm:$0xf0] }
  0x64   :  { %1049 = vmatmul.bf16.vlgmr.msrb.gmra.mxu2 %v13636_v55  ;;  %v8247_v15 = vld [vmem:[%s20025_s1 + $0x108] sm:$0xf]  ;;  %v8648_v18 = vor.u32 %v12412_v11, %v8647_v10 }
  0x65   :  { %1097 = vmatpush.bf16.msra.mxu2 %v8584_v26  ;;  %v12312_v16 = vld [vmem:[%s20025_s1 + $0x144] sm:$0xf0] }
  0x66   :  { %1063 = vmatmul.bf16.vlgmr.msrb.gmra.mxu3 %v13649_v60  ;;  %1070 = vmatpush.bf16.msra.mxu0 %v8312_v36  ;;  %v8375_v17 = vld [vmem:[%s20025_s1 + $0x508] sm:$0xf]  ;;  %v8248_v24 = vor.u32 %v12312_v16, %v8247_v15 }
  0x67   :  { %1111 = vmatpush.bf16.msra.mxu3 %v8712_v30  ;;  %1084 = vmatpush.bf16.msra.mxu1 %v8440_v37  ;;  %v12344_v19 = vld [vmem:[%s20025_s1 + $0x544] sm:$0xf0] }
  0x68   :  { %v8503_v20 = vld [vmem:[%s20025_s1 + $0x908] sm:$0xf]  ;;  %v8376_v25 = vor.u32 %v12344_v19, %v8375_v17 }
  0x69   :  { %1098 = vmatpush.bf16.msra.mxu2 %v8568_v38  ;;  %v12376_v21 = vld [vmem:[%s20025_s1 + $0x944] sm:$0xf0] }
  0x6a   :  { %1071 = vmatpush.bf16.msra.mxu0 %v8296_v48  ;;  %v8631_v22 = vld [vmem:[%s20025_s1 + $0xd08] sm:$0xf]  ;;  %v8504_v26 = vor.u32 %v12376_v21, %v8503_v20 }
  0x6b   :  { %1112 = vmatpush.bf16.msra.mxu3 %v8696_v42  ;;  %1085 = vmatpush.bf16.msra.mxu1 %v8424_v49  ;;  %v12408_v23 = vld [vmem:[%s20025_s1 + $0xd44] sm:$0xf0] }
  0x6c   :  { %v8231_v27 = vld [vmem:[%s20025_s1 + $0x88] sm:$0xf]  ;;  %v8632_v30 = vor.u32 %v12408_v23, %v8631_v22 }
  0x6d   :  { %1099 = vmatpush.bf16.msra.mxu2 %v8552_v50  ;;  %v12308_v28 = vld [vmem:[%s20025_s1 + $0xc4] sm:$0xf0] }
  0x6e   :  { %1072 = vmatpush.bf16.msra.mxu0 %v8280_v63  ;;  %v8359_v29 = vld [vmem:[%s20025_s1 + $0x488] sm:$0xf] }
  0x6f   :  { %1113 = vmatpush.bf16.msra.mxu3 %v8680_v54  ;;  %1086 = vmatpush.bf16.msra.mxu1 %v8408_v1  ;;  %v12340_v31 = vld [vmem:[%s20025_s1 + $0x4c4] sm:$0xf0] }
  0x70   :  { %v8487_v32 = vld [vmem:[%s20025_s1 + $0x888] sm:$0xf] }
  0x71   :  { %1100 = vmatpush.bf16.msra.mxu2 %v8536_v2  ;;  %v12372_v33 = vld [vmem:[%s20025_s1 + $0x8c4] sm:$0xf0] }
  0x72   :  { %1073 = vmatpush.bf16.msra.mxu0 %v8264_v12  ;;  %v8615_v34 = vld [vmem:[%s20025_s1 + $0xc88] sm:$0xf] }
  0x73   :  { %1114 = vmatpush.bf16.msra.mxu3 %v8664_v6  ;;  %1087 = vmatpush.bf16.msra.mxu1 %v8392_v13  ;;  %v12404_v35 = vld [vmem:[%s20025_s1 + $0xcc4] sm:$0xf0] }
  0x75   :  { %1101 = vmatpush.bf16.msra.mxu2 %v8520_v14 }
  0x77   :  { %1115 = vmatpush.bf16.msra.mxu3 %v8648_v18 }
  0x78   :  { %10 = vsyncpa [#allocation4], 0  ;;  %1074 = vmatpush.bf16.msra.mxu0 %v8248_v24  ;;  %v8232_v36 = vor.u32 %v12308_v28, %v8231_v27  ;;  %v8215_v37 = vld [vmem:[%s20025_s1 + $0x8] sm:$0xf]  ;;  %1088 = vmatpush.bf16.msra.mxu1 %v8376_v25  ;;  %v8360_v39 = vor.u32 %v12340_v31, %v8359_v29  ;;  %v8488_v40 = vor.u32 %v12372_v33, %v8487_v32  ;;  %v12330_v48 = vld [vmem:[%s20025_s1 + $0x38c] sm:$0xf] }
  0x79   :  { %v12304_v38 = vld [vmem:[%s20025_s1 + $0x44] sm:$0xf0]  ;;  %1102 = vmatpush.bf16.msra.mxu2 %v8504_v26  ;;  %v8616_v44 = vor.u32 %v12404_v35, %v8615_v34  ;;  %v8329_v49 = vld [vmem:[%s20025_s1 + $0x3c8] sm:$0xf0]  ;;  %s8193_s29 = sshll.u32 %s20029_s5, 4  ;;  %s13355_s30 = smov 512   ;;  %s8194_s29 = int_to_ptr.hbm [resolvable:$true] %s8193_s29 }
  0x7a   :  { %v8343_v41 = vld [vmem:[%s20025_s1 + $0x408] sm:$0xf]  ;;  %v12362_v50 = vld [vmem:[%s20025_s1 + $0x78c] sm:$0xf]  ;;  %v8216_v51 = vor.u32 %v12304_v38, %v8215_v37  ;;  %v8332_v63 = vor.u32 %v12330_v48, %v8329_v49  ;;  %s13356_s6 = smov 32  }
  0x7b   :  { %v12336_v42 = vld [vmem:[%s20025_s1 + $0x444] sm:$0xf0]  ;;  %1116 = vmatpush.bf16.msra.mxu3 %v8632_v30  ;;  %v8457_v52 = vld [vmem:[%s20025_s1 + $0x7c8] sm:$0xf0] }
  0x7c   :  { %v8471_v43 = vld [vmem:[%s20025_s1 + $0x808] sm:$0xf]  ;;  %1075 = vmatpush.bf16.msra.mxu0 %v8232_v36  ;;  %v12394_v53 = vld [vmem:[%s20025_s1 + $0xb8c] sm:$0xf]  ;;  %1089 = vmatpush.bf16.msra.mxu1 %v8360_v39  ;;  %v8344_v56 = vor.u32 %v12336_v42, %v8343_v41  ;;  %v8460_v1 = vor.u32 %v12362_v50, %v8457_v52 }
  0x7d   :  { %v12368_v45 = vld [vmem:[%s20025_s1 + $0x844] sm:$0xf0]  ;;  %v8585_v54 = vld [vmem:[%s20025_s1 + $0xbc8] sm:$0xf0]  ;;  %1103 = vmatpush.bf16.msra.mxu2 %v8488_v40 }
  0x7e   :  { %v8599_v46 = vld [vmem:[%s20025_s1 + $0xc08] sm:$0xf]  ;;  %v8472_v57 = vor.u32 %v12368_v45, %v8471_v43  ;;  %v12426_v58 = vld [vmem:[%s20025_s1 + $0xf8c] sm:$0xf]  ;;  %v8588_v2 = vor.u32 %v12394_v53, %v8585_v54 }
  0x7f   :  { %v12400_v47 = vld [vmem:[%s20025_s1 + $0xc44] sm:$0xf0]  ;;  %v8713_v61 = vld [vmem:[%s20025_s1 + $0xfc8] sm:$0xf0]  ;;  %1117 = vmatpush.bf16.msra.mxu3 %v8616_v44 }
  0x80   :  { %v8600_v62 = vor.u32 %v12400_v47, %v8599_v46  ;;  %v12326_v3 = vld [vmem:[%s20025_s1 + $0x30c] sm:$0xf]  ;;  %1076 = vmatpush.bf16.msra.mxu0 %v8216_v51  ;;  %v8716_v6 = vor.u32 %v12426_v58, %v8713_v61  ;;  %1090 = vmatpush.bf16.msra.mxu1 %v8344_v56 }
  0x81   :  { %v8313_v4 = vld [vmem:[%s20025_s1 + $0x348] sm:$0xf0]  ;;  %1104 = vmatpush.bf16.msra.mxu2 %v8472_v57 }
  0x82   :  { %v12358_v5 = vld [vmem:[%s20025_s1 + $0x70c] sm:$0xf]  ;;  %v8316_v12 = vor.u32 %v12326_v3, %v8313_v4 }
  0x83   :  { %v8441_v7 = vld [vmem:[%s20025_s1 + $0x748] sm:$0xf0]  ;;  %1118 = vmatpush.bf16.msra.mxu3 %v8600_v62  ;;  %1077 = vmatmul.bf16.vlgmr.msra.gmra.mxu0 %v13647_v59 }
  0x84   :  { %v12390_v8 = vld [vmem:[%s20025_s1 + $0xb0c] sm:$0xf]  ;;  %1125 = vmatpush.bf16.msrb.mxu0 %v8332_v63  ;;  %1139 = vmatpush.bf16.msrb.mxu1 %v8460_v1  ;;  %v8444_v13 = vor.u32 %v12358_v5, %v8441_v7 }
  0x85   :  { %v8569_v9 = vld [vmem:[%s20025_s1 + $0xb48] sm:$0xf0]  ;;  %1153 = vmatpush.bf16.msrb.mxu2 %v8588_v2  ;;  %1091 = vmatmul.bf16.vlgmr.msra.gmra.mxu1 %v13657_v0 }
  0x86   :  { %v12422_v10 = vld [vmem:[%s20025_s1 + $0xf0c] sm:$0xf]  ;;  %v8572_v14 = vor.u32 %v12390_v8, %v8569_v9  ;;  %1105 = vmatmul.bf16.vlgmr.msra.gmra.mxu2 %v13636_v55  ;;  %1119 = vmatmul.bf16.vlgmr.msra.gmra.mxu3 %v13649_v60 }
  0x87   :  { %v8697_v11 = vld [vmem:[%s20025_s1 + $0xf48] sm:$0xf0]  ;;  %1167 = vmatpush.bf16.msrb.mxu3 %v8716_v6 }
  0x88   :  { %v12322_v15 = vld [vmem:[%s20025_s1 + $0x28c] sm:$0xf]  ;;  %v8700_v18 = vor.u32 %v12422_v10, %v8697_v11  ;;  %1126 = vmatpush.bf16.msrb.mxu0 %v8316_v12  ;;  %1140 = vmatpush.bf16.msrb.mxu1 %v8444_v13 }
  0x89   :  { %v8297_v16 = vld [vmem:[%s20025_s1 + $0x2c8] sm:$0xf0]  ;;  %1154 = vmatpush.bf16.msrb.mxu2 %v8572_v14 }
  0x8a   :  { %v12354_v17 = vld [vmem:[%s20025_s1 + $0x68c] sm:$0xf]  ;;  %v8300_v24 = vor.u32 %v12322_v15, %v8297_v16 }
  0x8b   :  { %v8425_v19 = vld [vmem:[%s20025_s1 + $0x6c8] sm:$0xf0]  ;;  %1168 = vmatpush.bf16.msrb.mxu3 %v8700_v18 }
  0x8c   :  { %v12386_v20 = vld [vmem:[%s20025_s1 + $0xa8c] sm:$0xf]  ;;  %v8428_v25 = vor.u32 %v12354_v17, %v8425_v19  ;;  %1127 = vmatpush.bf16.msrb.mxu0 %v8300_v24  ;;  %v8831_v24 = vld [vmem:[%s20027_s3 + $0xe0] sm:$0xf] }
  0x8d   :  { %v8553_v21 = vld [vmem:[%s20025_s1 + $0xac8] sm:$0xf0] }
  0x8e   :  { %v12418_v22 = vld [vmem:[%s20025_s1 + $0xe8c] sm:$0xf]  ;;  %v8556_v26 = vor.u32 %v12386_v20, %v8553_v21  ;;  %1141 = vmatpush.bf16.msrb.mxu1 %v8428_v25  ;;  %v12459_v25 = vld [vmem:[%s20027_s3 + $0xec] sm:$0xf0] }
  0x8f   :  { %v8681_v23 = vld [vmem:[%s20025_s1 + $0xec8] sm:$0xf0] }
  0x90   :  { %v12318_v27 = vld [vmem:[%s20025_s1 + $0x20c] sm:$0xf]  ;;  %v8684_v30 = vor.u32 %v12418_v22, %v8681_v23  ;;  %1155 = vmatpush.bf16.msrb.mxu2 %v8556_v26 }
  0x91   :  { %v8281_v28 = vld [vmem:[%s20025_s1 + $0x248] sm:$0xf0] }
  0x92   :  { %v12350_v29 = vld [vmem:[%s20025_s1 + $0x60c] sm:$0xf]  ;;  %v8284_v36 = vor.u32 %v12318_v27, %v8281_v28  ;;  %1169 = vmatpush.bf16.msrb.mxu3 %v8684_v30  ;;  %v8832_v30 = vor.u32 %v12459_v25, %v8831_v24  ;;  %v12449_v25 = vld [vmem:[%s20027_s3 + $0xa4] sm:$0xf] }
  0x93   :  { %v8409_v31 = vld [vmem:[%s20025_s1 + $0x648] sm:$0xf0] }
  0x94   :  { %v12382_v32 = vld [vmem:[%s20025_s1 + $0xa0c] sm:$0xf]  ;;  %v8412_v37 = vor.u32 %v12350_v29, %v8409_v31  ;;  %1128 = vmatpush.bf16.msrb.mxu0 %v8284_v36  ;;  %v8959_v31 = vld [vmem:[%s20027_s3 + $0x1e0] sm:$0xf] }
  0x95   :  { %v8537_v33 = vld [vmem:[%s20025_s1 + $0xa48] sm:$0xf0]  ;;  %v8943_v36 = vld [vmem:[%s20027_s3 + $0x1c0] sm:$0xf] }
  0x96   :  { %v12414_v34 = vld [vmem:[%s20025_s1 + $0xe0c] sm:$0xf]  ;;  %v8540_v38 = vor.u32 %v12382_v32, %v8537_v33  ;;  %1142 = vmatpush.bf16.msrb.mxu1 %v8412_v37  ;;  %v12491_v32 = vld [vmem:[%s20027_s3 + $0x1ec] sm:$0xf0]  ;;  %v8815_v33 = vld [vmem:[%s20027_s3 + $0xc0] sm:$0xf] }
  0x97   :  { %v8665_v35 = vld [vmem:[%s20025_s1 + $0xe48] sm:$0xf0]  ;;  %v12487_v37 = vld [vmem:[%s20027_s3 + $0x1cc] sm:$0xf0] }
  0x98   :  { %v12314_v39 = vld [vmem:[%s20025_s1 + $0x18c] sm:$0xf]  ;;  %v8668_v42 = vor.u32 %v12414_v34, %v8665_v35  ;;  %1156 = vmatpush.bf16.msrb.mxu2 %v8540_v38  ;;  %v12455_v34 = vld [vmem:[%s20027_s3 + $0xcc] sm:$0xf0]  ;;  %v8960_v35 = vor.u32 %v12491_v32, %v8959_v31  ;;  %v12485_v32 = vld [vmem:[%s20027_s3 + $0x1c4] sm:$0xf] }
  0x99   :  { %v8265_v40 = vld [vmem:[%s20025_s1 + $0x1c8] sm:$0xf0]  ;;  %v8816_v38 = vor.u32 %v12455_v34, %v8815_v33  ;;  %v12519_v31 = vld [vmem:[%s20027_s3 + $0x2cc] sm:$0xf0]  ;;  %v8945_v34 = vld [vmem:[%s20027_s3 + $0x1d0] sm:$0xf0] }
  0x9a   :  { %v12346_v41 = vld [vmem:[%s20025_s1 + $0x58c] sm:$0xf]  ;;  %v8268_v48 = vor.u32 %v12314_v39, %v8265_v40  ;;  %1170 = vmatpush.bf16.msrb.mxu3 %v8668_v42  ;;  %v8799_v39 = vld [vmem:[%s20027_s3 + $0xa0] sm:$0xf]  ;;  %v12451_v40 = vld [vmem:[%s20027_s3 + $0xac] sm:$0xf0] }
  0x9b   :  { %v8393_v43 = vld [vmem:[%s20025_s1 + $0x5c8] sm:$0xf0]  ;;  %v8800_v42 = vor.u32 %v12451_v40, %v8799_v39  ;;  %v8785_v39 = vld [vmem:[%s20027_s3 + $0x90] sm:$0xf0] }
  0x9c   :  { %v12378_v44 = vld [vmem:[%s20025_s1 + $0x98c] sm:$0xf]  ;;  %v8396_v49 = vor.u32 %v12346_v41, %v8393_v43  ;;  %1129 = vmatpush.bf16.msrb.mxu0 %v8268_v48  ;;  %v8944_v41 = vor.u32 %v12487_v37, %v8943_v36  ;;  %v8783_v43 = vld [vmem:[%s20027_s3 + $0x80] sm:$0xf]  ;;  %v8948_v36 = vor.u32 %v12485_v32, %v8945_v34  ;;  %v8839_v32 = vld [vmem:[%s20027_s3 + $0xe8] sm:$0xf] }
  0x9d   :  { %v8521_v45 = vld [vmem:[%s20025_s1 + $0x9c8] sm:$0xf0]  ;;  %v8991_v34 = vld [vmem:[%s20027_s3 + $0x220] sm:$0xf] }
  0x9e   :  { %v12410_v46 = vld [vmem:[%s20025_s1 + $0xd8c] sm:$0xf]  ;;  %v8524_v50 = vor.u32 %v12378_v44, %v8521_v45  ;;  %1143 = vmatpush.bf16.msrb.mxu1 %v8396_v49  ;;  %v12447_v44 = vld [vmem:[%s20027_s3 + $0x8c] sm:$0xf0]  ;;  %v8927_v45 = vld [vmem:[%s20027_s3 + $0x1a0] sm:$0xf] }
  0x9f   :  { %v8649_v47 = vld [vmem:[%s20025_s1 + $0xdc8] sm:$0xf0]  ;;  %v8767_v49 = vld [vmem:[%s20027_s3 + $0x60] sm:$0xf] }
  0xa0   :  { %v12310_v51 = vld [vmem:[%s20025_s1 + $0x10c] sm:$0xf]  ;;  %v8652_v54 = vor.u32 %v12410_v46, %v8649_v47  ;;  %1157 = vmatpush.bf16.msrb.mxu2 %v8524_v50  ;;  %v12483_v46 = vld [vmem:[%s20027_s3 + $0x1ac] sm:$0xf0]  ;;  %v8784_v47 = vor.u32 %v12447_v44, %v8783_v43  ;;  %v12481_v44 = vld [vmem:[%s20027_s3 + $0x1a4] sm:$0xf] }
  0xa1   :  { %v8249_v52 = vld [vmem:[%s20025_s1 + $0x148] sm:$0xf0]  ;;  %v8928_v48 = vor.u32 %v12483_v46, %v8927_v45  ;;  %v12443_v50 = vld [vmem:[%s20027_s3 + $0x6c] sm:$0xf0]  ;;  %v12441_v46 = vld [vmem:[%s20027_s3 + $0x64] sm:$0xf] }
  0xa2   :  { %v12342_v53 = vld [vmem:[%s20025_s1 + $0x50c] sm:$0xf]  ;;  %v8252_v63 = vor.u32 %v12310_v51, %v8249_v52  ;;  %1171 = vmatpush.bf16.msrb.mxu3 %v8652_v54  ;;  %v8768_v51 = vor.u32 %v12443_v50, %v8767_v49  ;;  %v8911_v52 = vld [vmem:[%s20027_s3 + $0x180] sm:$0xf]  ;;  %v12515_v43 = vld [vmem:[%s20027_s3 + $0x2ac] sm:$0xf0] }
  0xa3   :  { %v8377_v56 = vld [vmem:[%s20025_s1 + $0x548] sm:$0xf0]  ;;  %v8751_v54 = vld [vmem:[%s20027_s3 + $0x40] sm:$0xf]  ;;  %v8929_v49 = vld [vmem:[%s20027_s3 + $0x1b0] sm:$0xf0] }
  0xa4   :  { %v12374_v57 = vld [vmem:[%s20025_s1 + $0x90c] sm:$0xf]  ;;  %v8380_v1 = vor.u32 %v12342_v53, %v8377_v56  ;;  %1130 = vmatpush.bf16.msrb.mxu0 %v8252_v63  ;;  %v12479_v53 = vld [vmem:[%s20027_s3 + $0x18c] sm:$0xf0]  ;;  %v8735_v63 = vld [vmem:[%s20027_s3 + $0x20] sm:$0xf] }
  0xa5   :  { %v8505_v58 = vld [vmem:[%s20025_s1 + $0x948] sm:$0xf0]  ;;  %v12439_v56 = vld [vmem:[%s20027_s3 + $0x4c] sm:$0xf0] }
  0xa6   :  { %v12406_v61 = vld [vmem:[%s20025_s1 + $0xd0c] sm:$0xf]  ;;  %v8508_v2 = vor.u32 %v12374_v57, %v8505_v58  ;;  %1144 = vmatpush.bf16.msrb.mxu1 %v8380_v1  ;;  %v8912_v57 = vor.u32 %v12479_v53, %v8911_v52  ;;  %v8752_v58 = vor.u32 %v12439_v56, %v8751_v54  ;;  %v12435_v1 = vld [vmem:[%s20027_s3 + $0x2c] sm:$0xf0]  ;;  %v8932_v52 = vor.u32 %v12481_v44, %v8929_v49  ;;  %v9039_v54 = vld [vmem:[%s20027_s3 + $0x280] sm:$0xf] }
  0xa7   :  { %v8633_v62 = vld [vmem:[%s20025_s1 + $0xd48] sm:$0xf0]  ;;  %v12511_v56 = vld [vmem:[%s20027_s3 + $0x28c] sm:$0xf0] }
  0xa8   :  { %v12306_v3 = vld [vmem:[%s20025_s1 + $0x8c] sm:$0xf]  ;;  %v8636_v6 = vor.u32 %v12406_v61, %v8633_v62  ;;  %1158 = vmatpush.bf16.msrb.mxu2 %v8508_v2  ;;  %v8895_v61 = vld [vmem:[%s20027_s3 + $0x160] sm:$0xf]  ;;  %v12475_v62 = vld [vmem:[%s20027_s3 + $0x16c] sm:$0xf0] }
  0xa9   :  { %v8233_v4 = vld [vmem:[%s20025_s1 + $0xc8] sm:$0xf0]  ;;  %v8896_v2 = vor.u32 %v12475_v62, %v8895_v61  ;;  %v12437_v61 = vld [vmem:[%s20027_s3 + $0x44] sm:$0xf]  ;;  %v8753_v62 = vld [vmem:[%s20027_s3 + $0x50] sm:$0xf0] }
  0xaa   :  { %v12338_v5 = vld [vmem:[%s20025_s1 + $0x48c] sm:$0xf]  ;;  %v8236_v12 = vor.u32 %v12306_v3, %v8233_v4  ;;  %1172 = vmatpush.bf16.msrb.mxu3 %v8636_v6  ;;  %v8736_v3 = vor.u32 %v12435_v1, %v8735_v63  ;;  %v8879_v4 = vld [vmem:[%s20027_s3 + $0x140] sm:$0xf]  ;;  %v9040_v63 = vor.u32 %v12511_v56, %v9039_v54  ;;  %v8913_v1 = vld [vmem:[%s20027_s3 + $0x190] sm:$0xf0] }
  0xab   :  { %v8361_v7 = vld [vmem:[%s20025_s1 + $0x4c8] sm:$0xf0]  ;;  %v8719_v6 = vld [vmem:[%s20027_s3] sm:$0xf] }
  0xac   :  { %v12370_v8 = vld [vmem:[%s20025_s1 + $0x88c] sm:$0xf]  ;;  %v8364_v14 = vor.u32 %v12338_v5, %v8361_v7  ;;  %1131 = vmatpush.bf16.msrb.mxu0 %v8236_v12  ;;  %v12471_v5 = vld [vmem:[%s20027_s3 + $0x14c] sm:$0xf0]  ;;  %v8863_v12 = vld [vmem:[%s20027_s3 + $0x120] sm:$0xf] }
  0xad   :  { %v8489_v9 = vld [vmem:[%s20025_s1 + $0x8c8] sm:$0xf0]  ;;  %v12431_v7 = vld [vmem:[%s20027_s3 + $0xc] sm:$0xf0]  ;;  %v9215_v56 = vld [vmem:[%s20027_s3 + $0x3e0] sm:$0xf] }
  0xae   :  { %v12402_v10 = vld [vmem:[%s20025_s1 + $0xc8c] sm:$0xf]  ;;  %v8492_v15 = vor.u32 %v12370_v8, %v8489_v9  ;;  %1145 = vmatpush.bf16.msrb.mxu1 %v8364_v14  ;;  %v8880_v8 = vor.u32 %v12471_v5, %v8879_v4  ;;  %v12457_v9 = vld [vmem:[%s20027_s3 + $0xe4] sm:$0xf]  ;;  %v8756_v5 = vor.u32 %v12437_v61, %v8753_v62  ;;  %v9089_v62 = vld [vmem:[%s20027_s3 + $0x2f0] sm:$0xf0] }
  0xaf   :  { %v8617_v11 = vld [vmem:[%s20025_s1 + $0xcc8] sm:$0xf0]  ;;  %v12521_v61 = vld [vmem:[%s20027_s3 + $0x2e4] sm:$0xf] }
  0xb0   :  { %v12302_v13 = vld [vmem:[%s20025_s1 + $0xc] sm:$0xf]  ;;  %v8620_v19 = vor.u32 %v12402_v10, %v8617_v11  ;;  %1159 = vmatpush.bf16.msrb.mxu2 %v8492_v15  ;;  %v8833_v10 = vld [vmem:[%s20027_s3 + $0xf0] sm:$0xf0]  ;;  %v8720_v11 = vor.u32 %v12431_v7, %v8719_v6  ;;  %v12453_v15 = vld [vmem:[%s20027_s3 + $0xc4] sm:$0xf] }
  0xb1   :  { %v8217_v16 = vld [vmem:[%s20025_s1 + $0x48] sm:$0xf0]  ;;  %v8836_v14 = vor.u32 %v12457_v9, %v8833_v10  ;;  %v9023_v6 = vld [vmem:[%s20027_s3 + $0x260] sm:$0xf]  ;;  %v12507_v7 = vld [vmem:[%s20027_s3 + $0x26c] sm:$0xf0] }
  0xb2   :  { %v12334_v17 = vld [vmem:[%s20025_s1 + $0x40c] sm:$0xf]  ;;  %v8220_v26 = vor.u32 %v12302_v13, %v8217_v16  ;;  %1173 = vmatpush.bf16.msrb.mxu3 %v8620_v19  ;;  %v12467_v13 = vld [vmem:[%s20027_s3 + $0x12c] sm:$0xf0] }
  0xb3   :  { %v8345_v18 = vld [vmem:[%s20025_s1 + $0x448] sm:$0xf0]  ;;  %v8864_v16 = vor.u32 %v12467_v13, %v8863_v12  ;;  %v12463_v19 = vld [vmem:[%s20027_s3 + $0x10c] sm:$0xf0]  ;;  %v8737_v12 = vld [vmem:[%s20027_s3 + $0x30] sm:$0xf0]  ;;  %v9024_v13 = vor.u32 %v12507_v7, %v9023_v6 }
  0xb4   :  { %v12366_v20 = vld [vmem:[%s20025_s1 + $0x80c] sm:$0xf]  ;;  %v8348_v27 = vor.u32 %v12334_v17, %v8345_v18  ;;  %1132 = vmatpush.bf16.msrb.mxu0 %v8220_v26  ;;  %v8817_v17 = vld [vmem:[%s20027_s3 + $0xd0] sm:$0xf0]  ;;  %v8847_v18 = vld [vmem:[%s20027_s3 + $0x100] sm:$0xf] }
  0xb5   :  { %v8473_v21 = vld [vmem:[%s20025_s1 + $0x848] sm:$0xf0]  ;;  %v8820_v24 = vor.u32 %v12453_v15, %v8817_v17  ;;  %v8801_v26 = vld [vmem:[%s20027_s3 + $0xb0] sm:$0xf0]  ;;  %v12452_v6 = vld [vmem:[%s20027_s3 + $0xb4] sm:$0xf0] }
  0xb6   :  { %v12398_v22 = vld [vmem:[%s20025_s1 + $0xc0c] sm:$0xf]  ;;  %v8476_v28 = vor.u32 %v12366_v20, %v8473_v21  ;;  %1146 = vmatpush.bf16.msrb.mxu1 %v8348_v27  ;;  %v8848_v20 = vor.u32 %v12463_v19, %v8847_v18  ;;  %v9087_v21 = vld [vmem:[%s20027_s3 + $0x2e0] sm:$0xf]  ;;  %v8804_v37 = vor.u32 %v12449_v25, %v8801_v26  ;;  %v8721_v25 = vld [vmem:[%s20027_s3 + $0x10] sm:$0xf0] }
  0xb7   :  { %v8601_v23 = vld [vmem:[%s20025_s1 + $0xc48] sm:$0xf0]  ;;  %1133 = vmatmul.bf16.vlgmr.msrb.gmra.mxu0 %v13647_v59 }
  0xb8   :  { %v8604_v29 = vor.u32 %v12398_v22, %v8601_v23  ;;  %1160 = vmatpush.bf16.msrb.mxu2 %v8476_v28  ;;  %1841 = vmatpush.bf16.msra.mxu0 %v8832_v30  ;;  %v12523_v22 = vld [vmem:[%s20027_s3 + $0x2ec] sm:$0xf0]  ;;  %v12489_v23 = vld [vmem:[%s20027_s3 + $0x1e4] sm:$0xf]  ;;  %v8961_v28 = vld [vmem:[%s20027_s3 + $0x1f0] sm:$0xf0] }
  0xb9   :  { %1147 = vmatmul.bf16.vlgmr.msrb.gmra.mxu1 %v13657_v0  ;;  %v9088_v27 = vor.u32 %v12523_v22, %v9087_v21  ;;  %v9071_v30 = vld [vmem:[%s20027_s3 + $0x2c0] sm:$0xf]  ;;  %v12503_v21 = vld [vmem:[%s20027_s3 + $0x24c] sm:$0xf0]  ;;  %v12469_v22 = vld [vmem:[%s20027_s3 + $0x144] sm:$0xf] }
  0xba   :  { %1174 = vmatpush.bf16.msrb.mxu3 %v8604_v29  ;;  %1855 = vmatpush.bf16.msra.mxu1 %v8960_v35  ;;  %v8964_v29 = vor.u32 %v12489_v23, %v8961_v28  ;;  %v9072_v33 = vor.u32 %v12519_v31, %v9071_v30  ;;  %v14344_v35 = vld [vmem:[%s20026_s2] sm:$0xf] }
  0xbb   :  { %1161 = vmatmul.bf16.vlgmr.msrb.gmra.mxu2 %v13636_v55  ;;  %v309_v40 = vperm.slane %v14344_v35, 0 }
  0xbc   :  { %1842 = vmatpush.bf16.msra.mxu0 %v8816_v38  ;;  %1869 = vmatpush.bf16.msra.mxu2 %v9088_v27  ;;  %v12445_v38 = vld [vmem:[%s20027_s3 + $0x84] sm:$0xf]  ;;  %v8881_v27 = vld [vmem:[%s20027_s3 + $0x150] sm:$0xf0] }
  0xbd   :  { %1175 = vmatmul.bf16.vlgmr.msrb.gmra.mxu3 %v13649_v60 }
  0xbe   :  { %1856 = vmatpush.bf16.msra.mxu1 %v8944_v41  ;;  %v8788_v41 = vor.u32 %v12445_v38, %v8785_v39 }
  0xc0   :  { %1843 = vmatpush.bf16.msra.mxu0 %v8800_v42  ;;  %1870 = vmatpush.bf16.msra.mxu2 %v9072_v33  ;;  %v9055_v42 = vld [vmem:[%s20027_s3 + $0x2a0] sm:$0xf] }
  0xc2   :  { %1857 = vmatpush.bf16.msra.mxu1 %v8928_v48  ;;  %v966_v45 = vpop.f32.mrf.mxu0  ;;  %v9056_v48 = vor.u32 %v12515_v43, %v9055_v42  ;;  %v8865_v42 = vld [vmem:[%s20027_s3 + $0x130] sm:$0xf0] }
  0xc3   :  { %v967_v50 = vadd.f32 %v966_v45, %v309_v40  ;;  %v8975_v45 = vld [vmem:[%s20027_s3 + $0x200] sm:$0xf] }
  0xc4   :  { %1844 = vmatpush.bf16.msra.mxu0 %v8784_v47  ;;  %v8769_v47 = vld [vmem:[%s20027_s3 + $0x70] sm:$0xf0]  ;;  %1871 = vmatpush.bf16.msra.mxu2 %v9056_v48  ;;  %v8823_v48 = vld [vmem:[%s20027_s3 + $0xc8] sm:$0xf] }
  0xc5   :  { %v8772_v53 = vor.u32 %v12441_v46, %v8769_v47  ;;  %v12495_v46 = vld [vmem:[%s20027_s3 + $0x20c] sm:$0xf0] }
  0xc6   :  { %1858 = vmatpush.bf16.msra.mxu1 %v8912_v57  ;;  %v12477_v57 = vld [vmem:[%s20027_s3 + $0x184] sm:$0xf]  ;;  %v8976_v49 = vor.u32 %v12495_v46, %v8975_v45 }
  0xc8   :  { %1845 = vmatpush.bf16.msra.mxu0 %v8768_v51  ;;  %v980_v51 = vpop.f32.mrf.mxu1  ;;  %1872 = vmatpush.bf16.msra.mxu2 %v9040_v63  ;;  %v9092_v63 = vor.u32 %v12521_v61, %v9089_v62  ;;  %v9009_v61 = vld [vmem:[%s20027_s3 + $0x250] sm:$0xf0] }
  0xc9   :  { %v1008_v4 = vpop.f32.mrf.mxu3 }
  0xca   :  { %1859 = vmatpush.bf16.msra.mxu1 %v8896_v2  ;;  %v994_v2 = vpop.f32.mrf.mxu2  ;;  %v968_v10 = vpop.f32.mrf.mxu0 }
  0xcb   :  { %v969_v15 = vadd.f32 %v968_v10, %v309_v40  ;;  %v12460_v40 = vld [vmem:[%s20027_s3 + $0xf4] sm:$0xf0]  ;;  %v310_v10 = vperm.slane %v14344_v35, 1 }
  0xcc   :  { %1846 = vmatpush.bf16.msra.mxu0 %v8752_v58  ;;  %v981_v58 = vadd.f32 %v980_v51, %v967_v50  ;;  %1873 = vmatpush.bf16.msra.mxu2 %v9024_v13  ;;  %v8840_v47 = vor.u32 %v12460_v40, %v8839_v32  ;;  %v12461_v50 = vld [vmem:[%s20027_s3 + $0x104] sm:$0xf]  ;;  %v8849_v51 = vld [vmem:[%s20027_s3 + $0x110] sm:$0xf0]  ;;  %v12448_v13 = vld [vmem:[%s20027_s3 + $0x94] sm:$0xf0] }
  0xcd   :  { %v8852_v54 = vor.u32 %v12461_v50, %v8849_v51  ;;  %v12539_v40 = vld [vmem:[%s20027_s3 + $0x36c] sm:$0xf0]  ;;  %v8743_v50 = vld [vmem:[%s20027_s3 + $0x28] sm:$0xf]  ;;  %v12436_v51 = vld [vmem:[%s20027_s3 + $0x34] sm:$0xf0] }
  0xce   :  { %1860 = vmatpush.bf16.msra.mxu1 %v8880_v8  ;;  %v12473_v8 = vld [vmem:[%s20027_s3 + $0x164] sm:$0xf]  ;;  %v995_v9 = vadd.f32 %v994_v2, %v981_v58  ;;  %v9199_v2 = vld [vmem:[%s20027_s3 + $0x3c0] sm:$0xf] }
  0xd0   :  { %1847 = vmatpush.bf16.msra.mxu0 %v8736_v3  ;;  %v8916_v3 = vor.u32 %v12477_v57, %v8913_v1  ;;  %v1009_v23 = vadd.f32 %v1008_v4, %v995_v9  ;;  %v12555_v57 = vld [vmem:[%s20027_s3 + $0x3ec] sm:$0xf0]  ;;  %v12517_v4 = vld [vmem:[%s20027_s3 + $0x2c4] sm:$0xf] }
  0xd1   :  { %v1010_v31 = vpop.f32.mrf.mxu3  ;;  %v9216_v58 = vor.u32 %v12555_v57, %v9215_v56 }
  0xd2   :  { %1861 = vmatpush.bf16.msra.mxu1 %v8864_v16  ;;  %v982_v16 = vpop.f32.mrf.mxu1  ;;  %v996_v28 = vpop.f32.mrf.mxu2  ;;  %v1181_v38 = vmax.f32 %v1009_v23, 0.0 }
  0xd3   :  { %v983_v18 = vadd.f32 %v982_v16, %v969_v15  ;;  %1883 = vmatpush.bf16.msra.mxu3 %v9216_v58  ;;  %v12547_v15 = vld [vmem:[%s20027_s3 + $0x3ac] sm:$0xf0]  ;;  %v12513_v16 = vld [vmem:[%s20027_s3 + $0x2a4] sm:$0xf] }
  0xd4   :  { %1848 = vmatpush.bf16.msra.mxu0 %v8720_v11  ;;  %v12433_v11 = vld [vmem:[%s20027_s3 + $0x24] sm:$0xf] }
  0xd5   :  { %v8740_v19 = vor.u32 %v12433_v11, %v8737_v12  ;;  %v997_v30 = vadd.f32 %v996_v28, %v983_v18  ;;  %v8791_v12 = vld [vmem:[%s20027_s3 + $0x88] sm:$0xf]  ;;  %v9057_v18 = vld [vmem:[%s20027_s3 + $0x2b0] sm:$0xf0]  ;;  %v12509_v28 = vld [vmem:[%s20027_s3 + $0x284] sm:$0xf] }
  0xd6   :  { %1862 = vmatpush.bf16.msra.mxu1 %v8848_v20  ;;  %v9007_v20 = vld [vmem:[%s20027_s3 + $0x240] sm:$0xf]  ;;  %v8792_v23 = vor.u32 %v12448_v13, %v8791_v12  ;;  %v12501_v58 = vld [vmem:[%s20027_s3 + $0x244] sm:$0xf]  ;;  %v8993_v13 = vld [vmem:[%s20027_s3 + $0x230] sm:$0xf0] }
  0xd7   :  { %v9008_v26 = vor.u32 %v12503_v21, %v9007_v20  ;;  %v1011_v39 = vadd.f32 %v1010_v31, %v997_v30  ;;  %v9060_v20 = vor.u32 %v12513_v16, %v9057_v18  ;;  %v9041_v30 = vld [vmem:[%s20027_s3 + $0x290] sm:$0xf0]  ;;  %v8967_v16 = vld [vmem:[%s20027_s3 + $0x1e8] sm:$0xf] }
  0xd8   :  { %1897 = vmatpush.bf16.msrb.mxu0 %v8836_v14  ;;  %v8897_v14 = vld [vmem:[%s20027_s3 + $0x170] sm:$0xf0]  ;;  %v9044_v32 = vor.u32 %v12509_v28, %v9041_v30  ;;  %v12493_v28 = vld [vmem:[%s20027_s3 + $0x204] sm:$0xf] }
  0xd9   :  { %v8900_v17 = vor.u32 %v12473_v8, %v8897_v14  ;;  %1874 = vmatpush.bf16.msra.mxu2 %v9008_v26  ;;  %v1185_v44 = vmax.f32 %v1011_v39, 0.0  ;;  %v9073_v8 = vld [vmem:[%s20027_s3 + $0x2d0] sm:$0xf0]  ;;  %v9183_v14 = vld [vmem:[%s20027_s3 + $0x3a0] sm:$0xf] }
  0xda   :  { %1911 = vmatpush.bf16.msrb.mxu1 %v8964_v29  ;;  %v8884_v29 = vor.u32 %v12469_v22, %v8881_v27  ;;  %v9076_v9 = vor.u32 %v12517_v4, %v9073_v8  ;;  %v9167_v26 = vld [vmem:[%s20027_s3 + $0x380] sm:$0xf]  ;;  %v12543_v27 = vld [vmem:[%s20027_s3 + $0x38c] sm:$0xf0]  ;;  %v12432_v4 = vld [vmem:[%s20027_s3 + $0x14] sm:$0xf0] }
  0xdb   :  { %v9151_v39 = vld [vmem:[%s20027_s3 + $0x360] sm:$0xf]  ;;  %v12531_v8 = vld [vmem:[%s20027_s3 + $0x32c] sm:$0xf0] }
  0xdc   :  { %1898 = vmatpush.bf16.msrb.mxu0 %v8820_v24  ;;  %v12429_v24 = vld [vmem:[%s20027_s3 + $0x4] sm:$0xf] }
  0xdd   :  { %v8724_v33 = vor.u32 %v12429_v24, %v8721_v25  ;;  %v8775_v24 = vld [vmem:[%s20027_s3 + $0x68] sm:$0xf]  ;;  %v12444_v25 = vld [vmem:[%s20027_s3 + $0x74] sm:$0xf0] }
  0xde   :  { %1912 = vmatpush.bf16.msrb.mxu1 %v8948_v36  ;;  %v12499_v36 = vld [vmem:[%s20027_s3 + $0x22c] sm:$0xf0] }
  0xdf   :  { %v1036_v22 = vpop.f32.mrf.mxu1 }
  0xe0   :  { %1899 = vmatpush.bf16.msrb.mxu0 %v8804_v37  ;;  %v12465_v37 = vld [vmem:[%s20027_s3 + $0x124] sm:$0xf] }
  0xe1   :  { %v8868_v43 = vor.u32 %v12465_v37, %v8865_v42  ;;  %v12440_v37 = vld [vmem:[%s20027_s3 + $0x54] sm:$0xf0]  ;;  %v9152_v42 = vor.u32 %v12539_v40, %v9151_v39 }
  0xe2   :  { %1913 = vmatpush.bf16.msrb.mxu1 %v8932_v52  ;;  %v14458_v52 = vpack.c.bf16 %v1185_v44, %v1181_v38 }
  0xe4   :  { %1900 = vmatpush.bf16.msrb.mxu0 %v8788_v41  ;;  %v8992_v41 = vor.u32 %v12499_v36, %v8991_v34  ;;  %v8776_v34 = vor.u32 %v12444_v25, %v8775_v24  ;;  %v8759_v36 = vld [vmem:[%s20027_s3 + $0x48] sm:$0xf]  ;;  %v12527_v24 = vld [vmem:[%s20027_s3 + $0x30c] sm:$0xf0] }
  0xe5   :  { %1849 = vmatmul.bf16.vlgmr.msra.gmra.mxu0 %v14458_v52 }
  0xe6   :  { %1914 = vmatpush.bf16.msrb.mxu1 %v8916_v3  ;;  %1875 = vmatpush.bf16.msra.mxu2 %v8992_v41  ;;  %v12551_v3 = vld [vmem:[%s20027_s3 + $0x3cc] sm:$0xf0]  ;;  %v12505_v41 = vld [vmem:[%s20027_s3 + $0x264] sm:$0xf] }
  0xe7   :  { %v9200_v7 = vor.u32 %v12551_v3, %v9199_v2  ;;  %v8744_v2 = vor.u32 %v12436_v51, %v8743_v50  ;;  %v8727_v3 = vld [vmem:[%s20027_s3 + $0x8] sm:$0xf]  ;;  %v8793_v51 = vld [vmem:[%s20027_s3 + $0x98] sm:$0xf0] }
  0xe8   :  { %1901 = vmatpush.bf16.msrb.mxu0 %v8772_v53  ;;  %v12456_v53 = vld [vmem:[%s20027_s3 + $0xd4] sm:$0xf0] }
  0xe9   :  { %v8824_v1 = vor.u32 %v12456_v53, %v8823_v48  ;;  %1884 = vmatpush.bf16.msra.mxu3 %v9200_v7  ;;  %v1064_v38 = vpop.f32.mrf.mxu3  ;;  %v1038_v48 = vpop.f32.mrf.mxu1  ;;  %v9135_v53 = vld [vmem:[%s20027_s3 + $0x340] sm:$0xf] }
  0xea   :  { %1915 = vmatpush.bf16.msrb.mxu1 %v8900_v17  ;;  %1876 = vmatpush.bf16.msra.mxu2 %v8976_v49  ;;  %v9184_v17 = vor.u32 %v12547_v15, %v9183_v14  ;;  %v8760_v49 = vor.u32 %v12440_v37, %v8759_v36  ;;  %v9119_v7 = vld [vmem:[%s20027_s3 + $0x320] sm:$0xf]  ;;  %v9217_v36 = vld [vmem:[%s20027_s3 + $0x3f0] sm:$0xf0] }
  0xeb   :  { %v9120_v12 = vor.u32 %v12531_v8, %v9119_v7  ;;  %v8903_v7 = vld [vmem:[%s20027_s3 + $0x168] sm:$0xf]  ;;  %v12476_v8 = vld [vmem:[%s20027_s3 + $0x174] sm:$0xf0] }
  0xec   :  { %1902 = vmatpush.bf16.msrb.mxu0 %v8756_v5  ;;  %v8807_v5 = vld [vmem:[%s20027_s3 + $0xa8] sm:$0xf] }
  0xed   :  { %v8808_v11 = vor.u32 %v12452_v6, %v8807_v5  ;;  %1885 = vmatpush.bf16.msra.mxu3 %v9184_v17  ;;  %v12492_v17 = vld [vmem:[%s20027_s3 + $0x1f4] sm:$0xf0] }
  0xee   :  { %1916 = vmatpush.bf16.msrb.mxu1 %v8884_v29  ;;  %1925 = vmatpush.bf16.msrb.mxu2 %v9092_v63  ;;  %v9168_v29 = vor.u32 %v12543_v27, %v9167_v26  ;;  %v9012_v63 = vor.u32 %v12501_v58, %v9009_v61  ;;  %v8968_v25 = vor.u32 %v12492_v17, %v8967_v16  ;;  %v8825_v26 = vld [vmem:[%s20027_s3 + $0xd8] sm:$0xf0]  ;;  %v12537_v16 = vld [vmem:[%s20027_s3 + $0x364] sm:$0xf]  ;;  %v9153_v17 = vld [vmem:[%s20027_s3 + $0x370] sm:$0xf0] }
  0xf0   :  { %1903 = vmatpush.bf16.msrb.mxu0 %v8740_v19  ;;  %v1022_v19 = vpop.f32.mrf.mxu0 }
  0xf1   :  { %v1023_v21 = vadd.f32 %v1022_v19, %v310_v10  ;;  %1886 = vmatpush.bf16.msra.mxu3 %v9168_v29  ;;  %v1066_v6 = vpop.f32.mrf.mxu3  ;;  %v8728_v19 = vor.u32 %v12432_v4, %v8727_v3  ;;  %v8977_v29 = vld [vmem:[%s20027_s3 + $0x210] sm:$0xf0]  ;;  %v8777_v4 = vld [vmem:[%s20027_s3 + $0x78] sm:$0xf0] }
  0xf2   :  { %1917 = vmatpush.bf16.msrb.mxu1 %v8868_v43  ;;  %1926 = vmatpush.bf16.msrb.mxu2 %v9076_v9  ;;  %v9025_v43 = vld [vmem:[%s20027_s3 + $0x270] sm:$0xf0]  ;;  %v12497_v9 = vld [vmem:[%s20027_s3 + $0x224] sm:$0xf] }
  0xf3   :  { %v1037_v31 = vadd.f32 %v1036_v22, %v1023_v21  ;;  %v9028_v46 = vor.u32 %v12505_v41, %v9025_v43  ;;  %v8996_v18 = vor.u32 %v12497_v9, %v8993_v13  ;;  %v8809_v41 = vld [vmem:[%s20027_s3 + $0xb8] sm:$0xf0]  ;;  %v9201_v43 = vld [vmem:[%s20027_s3 + $0x3d0] sm:$0xf0] }
  0xf4   :  { %1904 = vmatpush.bf16.msrb.mxu0 %v8724_v33  ;;  %v1050_v33 = vpop.f32.mrf.mxu2 }
  0xf5   :  { %v1051_v44 = vadd.f32 %v1050_v33, %v1037_v31  ;;  %1887 = vmatpush.bf16.msra.mxu3 %v9152_v42  ;;  %v8951_v31 = vld [vmem:[%s20027_s3 + $0x1c8] sm:$0xf]  ;;  %v8980_v33 = vor.u32 %v12493_v28, %v8977_v29  ;;  %v12549_v42 = vld [vmem:[%s20027_s3 + $0x3c4] sm:$0xf]  ;;  %v8745_v29 = vld [vmem:[%s20027_s3 + $0x38] sm:$0xf0] }
  0xf6   :  { %1918 = vmatpush.bf16.msrb.mxu1 %v8852_v54  ;;  %1927 = vmatpush.bf16.msrb.mxu2 %v9060_v20  ;;  %v12535_v54 = vld [vmem:[%s20027_s3 + $0x34c] sm:$0xf0]  ;;  %v12454_v20 = vld [vmem:[%s20027_s3 + $0xcc] sm:$0xf] }
  0xf7   :  { %1905 = vmatmul.bf16.vlgmr.msrb.gmra.mxu0 %v14458_v52  ;;  %v9136_v57 = vor.u32 %v12535_v54, %v9135_v53  ;;  %v1065_v62 = vadd.f32 %v1064_v38, %v1051_v44  ;;  %v8828_v37 = vor.u32 %v12454_v20, %v8825_v26  ;;  %v12450_v38 = vld [vmem:[%s20027_s3 + $0xac] sm:$0xf]  ;;  %v8935_v44 = vld [vmem:[%s20027_s3 + $0x1a8] sm:$0xf]  ;;  %v12545_v53 = vld [vmem:[%s20027_s3 + $0x3a4] sm:$0xf] }
  0xf8   :  { %1953 = vmatpush.bf16.msra.mxu0 %v8840_v47  ;;  %v1024_v45 = vpop.f32.mrf.mxu0  ;;  %v9185_v54 = vld [vmem:[%s20027_s3 + $0x3b0] sm:$0xf0]  ;;  %v12472_v20 = vld [vmem:[%s20027_s3 + $0x154] sm:$0xf0] }
  0xf9   :  { %v1025_v47 = vadd.f32 %v1024_v45, %v310_v10  ;;  %1888 = vmatpush.bf16.msra.mxu3 %v9136_v57  ;;  %v12458_v10 = vld [vmem:[%s20027_s3 + $0xec] sm:$0xf]  ;;  %v1182_v14 = vmax.f32 %v1065_v62, 0.0  ;;  %v12484_v45 = vld [vmem:[%s20027_s3 + $0x1b4] sm:$0xf0]  ;;  %v9188_v58 = vor.u32 %v12545_v53, %v9185_v54 }
  0xfa   :  { %1928 = vmatpush.bf16.msrb.mxu2 %v9044_v32  ;;  %v12488_v32 = vld [vmem:[%s20027_s3 + $0x1d4] sm:$0xf0]  ;;  %v8936_v50 = vor.u32 %v12484_v45, %v8935_v44  ;;  %v12529_v44 = vld [vmem:[%s20027_s3 + $0x324] sm:$0xf]  ;;  %v9121_v45 = vld [vmem:[%s20027_s3 + $0x330] sm:$0xf0] }
  0xfb   :  { %v1039_v56 = vadd.f32 %v1038_v48, %v1025_v47  ;;  %v8952_v40 = vor.u32 %v12488_v32, %v8951_v31  ;;  %v311_v47 = vperm.slane %v14344_v35, 2  ;;  %v8812_v48 = vor.u32 %v12450_v38, %v8809_v41  ;;  %v12480_v57 = vld [vmem:[%s20027_s3 + $0x194] sm:$0xf0]  ;;  %v12533_v31 = vld [vmem:[%s20027_s3 + $0x344] sm:$0xf] }
  0xfc   :  { %1954 = vmatpush.bf16.msra.mxu0 %v8824_v1  ;;  %v1052_v1 = vpop.f32.mrf.mxu2  ;;  %v9137_v32 = vld [vmem:[%s20027_s3 + $0x350] sm:$0xf0]  ;;  %v9124_v53 = vor.u32 %v12529_v44, %v9121_v45 }
  0xfd   :  { %v1053_v5 = vadd.f32 %v1052_v1, %v1039_v56  ;;  %1889 = vmatpush.bf16.msra.mxu3 %v9120_v12  ;;  %v8919_v56 = vld [vmem:[%s20027_s3 + $0x188] sm:$0xf]  ;;  %v12438_v12 = vld [vmem:[%s20027_s3 + $0x4c] sm:$0xf] }
  0xfe   :  { %1929 = vmatpush.bf16.msrb.mxu2 %v9028_v46  ;;  %v9204_v46 = vor.u32 %v12549_v42, %v9201_v43  ;;  %v8920_v3 = vor.u32 %v12480_v57, %v8919_v56  ;;  %v8729_v43 = vld [vmem:[%s20027_s3 + $0x18] sm:$0xf0] }
  0xff   :  { %v1067_v15 = vadd.f32 %v1066_v6, %v1053_v5  ;;  %v12541_v5 = vld [vmem:[%s20027_s3 + $0x384] sm:$0xf]  ;;  %v9169_v6 = vld [vmem:[%s20027_s3 + $0x390] sm:$0xf0] }
 0x100   :  { %1955 = vmatpush.bf16.msra.mxu0 %v8808_v11  ;;  %v8841_v11 = vld [vmem:[%s20027_s3 + $0xf8] sm:$0xf0]  ;;  %v1078_v61 = vpop.f32.mrf.mxu0  ;;  %v9172_v9 = vor.u32 %v12541_v5, %v9169_v6  ;;  %v12486_v5 = vld [vmem:[%s20027_s3 + $0x1cc] sm:$0xf] }
 0x101   :  { %v1186_v21 = vmax.f32 %v1067_v15, 0.0  ;;  %v8844_v22 = vor.u32 %v12458_v10, %v8841_v11  ;;  %v1079_v1 = vadd.f32 %v1078_v61, %v311_v47  ;;  %v8761_v15 = vld [vmem:[%s20027_s3 + $0x58] sm:$0xf0]  ;;  %v12524_v61 = vld [vmem:[%s20027_s3 + $0x2f4] sm:$0xf0] }
 0x102   :  { %1930 = vmatpush.bf16.msrb.mxu2 %v9012_v63  ;;  %v12442_v63 = vld [vmem:[%s20027_s3 + $0x6c] sm:$0xf]  ;;  %v8953_v6 = vld [vmem:[%s20027_s3 + $0x1d8] sm:$0xf0] }
 0x103   :  { %v14616_v30 = vpack.c.bf16 %v1186_v21, %v1182_v14  ;;  %v8780_v11 = vor.u32 %v12442_v63, %v8777_v4  ;;  %v8904_v14 = vor.u32 %v12476_v8, %v8903_v7  ;;  %v9156_v21 = vor.u32 %v12537_v16, %v9153_v17  ;;  %v12525_v63 = vld [vmem:[%s20027_s3 + $0x304] sm:$0xf]  ;;  %v9079_v8 = vld [vmem:[%s20027_s3 + $0x2c8] sm:$0xf]  ;;  %v12516_v16 = vld [vmem:[%s20027_s3 + $0x2b4] sm:$0xf0] }
 0x104   :  { %1956 = vmatpush.bf16.msra.mxu0 %v8792_v23  ;;  %v9103_v23 = vld [vmem:[%s20027_s3 + $0x300] sm:$0xf] }
 0x105   :  { %v9104_v27 = vor.u32 %v12527_v24, %v9103_v23  ;;  %1863 = vmatmul.bf16.vlgmr.msra.gmra.mxu1 %v14616_v30  ;;  %v8764_v24 = vor.u32 %v12438_v12, %v8761_v15  ;;  %v9063_v15 = vld [vmem:[%s20027_s3 + $0x2a8] sm:$0xf] }
 0x106   :  { %1931 = vmatpush.bf16.msrb.mxu2 %v8996_v18  ;;  %1967 = vmatpush.bf16.msra.mxu1 %v8968_v25  ;;  %v12434_v25 = vld [vmem:[%s20027_s3 + $0x2c] sm:$0xf]  ;;  %v9064_v17 = vor.u32 %v12516_v16, %v9063_v15 }
 0x107   :  { %1890 = vmatpush.bf16.msra.mxu3 %v9104_v27  ;;  %v12518_v16 = vld [vmem:[%s20027_s3 + $0x2cc] sm:$0xf] }
 0x108   :  { %1957 = vmatpush.bf16.msra.mxu0 %v8776_v34  ;;  %v12553_v34 = vld [vmem:[%s20027_s3 + $0x3e4] sm:$0xf]  ;;  %v1080_v23 = vpop.f32.mrf.mxu0 }
 0x109   :  { %v9220_v39 = vor.u32 %v12553_v34, %v9217_v36  ;;  %v1106_v13 = vpop.f32.mrf.mxu2  ;;  %v1120_v18 = vpop.f32.mrf.mxu3  ;;  %v1081_v26 = vadd.f32 %v1080_v23, %v311_v47  ;;  %v12468_v34 = vld [vmem:[%s20027_s3 + $0x134] sm:$0xf0] }
 0x10a   :  { %1932 = vmatpush.bf16.msrb.mxu2 %v8980_v33  ;;  %1968 = vmatpush.bf16.msra.mxu1 %v8952_v40  ;;  %v8871_v33 = vld [vmem:[%s20027_s3 + $0x128] sm:$0xf]  ;;  %v12430_v40 = vld [vmem:[%s20027_s3 + $0xc] sm:$0xf]  ;;  %v12512_v23 = vld [vmem:[%s20027_s3 + $0x294] sm:$0xf0] }
 0x10b   :  { %1939 = vmatpush.bf16.msrb.mxu3 %v9220_v39  ;;  %v8748_v39 = vor.u32 %v12434_v25, %v8745_v29  ;;  %v8872_v42 = vor.u32 %v12468_v34, %v8871_v33  ;;  %v8732_v57 = vor.u32 %v12430_v40, %v8729_v43  ;;  %v9031_v29 = vld [vmem:[%s20027_s3 + $0x268] sm:$0xf] }
 0x10c   :  { %1958 = vmatpush.bf16.msra.mxu0 %v8760_v49  ;;  %v12446_v49 = vld [vmem:[%s20027_s3 + $0x8c] sm:$0xf] }
 0x10d   :  { %v8796_v62 = vor.u32 %v12446_v49, %v8793_v51  ;;  %v12464_v49 = vld [vmem:[%s20027_s3 + $0x114] sm:$0xf0]  ;;  %v8969_v51 = vld [vmem:[%s20027_s3 + $0x1f8] sm:$0xf0] }
 0x10e   :  { %1969 = vmatpush.bf16.msra.mxu1 %v8936_v50  ;;  %v12490_v50 = vld [vmem:[%s20027_s3 + $0x1ec] sm:$0xf] }
 0x10f   :  { %1940 = vmatpush.bf16.msrb.mxu3 %v9204_v46 }
 0x110   :  { %1959 = vmatpush.bf16.msra.mxu0 %v8744_v2  ;;  %v1092_v2 = vpop.f32.mrf.mxu1 }
 0x111   :  { %v1093_v10 = vadd.f32 %v1092_v2, %v1079_v1  ;;  %v1108_v41 = vpop.f32.mrf.mxu2  ;;  %v1122_v47 = vpop.f32.mrf.mxu3  ;;  %v9105_v1 = vld [vmem:[%s20027_s3 + $0x310] sm:$0xf0] }
 0x112   :  { %1970 = vmatpush.bf16.msra.mxu1 %v8920_v3  ;;  %v8972_v3 = vor.u32 %v12490_v50, %v8969_v51  ;;  %v12500_v50 = vld [vmem:[%s20027_s3 + $0x234] sm:$0xf0] }
 0x113   :  { %1941 = vmatpush.bf16.msrb.mxu3 %v9188_v58  ;;  %v9095_v58 = vld [vmem:[%s20027_s3 + $0x2e8] sm:$0xf] }
 0x114   :  { %1960 = vmatpush.bf16.msra.mxu0 %v8728_v19  ;;  %v8887_v19 = vld [vmem:[%s20027_s3 + $0x148] sm:$0xf]  ;;  %v9096_v4 = vor.u32 %v12524_v61, %v9095_v58  ;;  %v12462_v58 = vld [vmem:[%s20027_s3 + $0x10c] sm:$0xf]  ;;  %v8857_v61 = vld [vmem:[%s20027_s3 + $0x118] sm:$0xf0] }
 0x115   :  { %1919 = vmatmul.bf16.vlgmr.msrb.gmra.mxu1 %v14616_v30  ;;  %v8888_v28 = vor.u32 %v12472_v20, %v8887_v19  ;;  %v8921_v19 = vld [vmem:[%s20027_s3 + $0x198] sm:$0xf0]  ;;  %v312_v20 = vperm.slane %v14344_v35, 3 }
 0x116   :  { %1971 = vmatpush.bf16.msra.mxu1 %v8904_v14  ;;  %v8937_v14 = vld [vmem:[%s20027_s3 + $0x1b8] sm:$0xf0] }
 0x117   :  { %1961 = vmatmul.bf16.vlgmr.msra.gmra.mxu0 %v14458_v52  ;;  %1942 = vmatpush.bf16.msrb.mxu3 %v9172_v9  ;;  %v12520_v9 = vld [vmem:[%s20027_s3 + $0x2d4] sm:$0xf0]  ;;  %v8905_v35 = vld [vmem:[%s20027_s3 + $0x178] sm:$0xf0] }
 0x118   :  { %2009 = vmatpush.bf16.msrb.mxu0 %v8844_v22  ;;  %v1107_v22 = vadd.f32 %v1106_v13, %v1093_v10  ;;  %v1094_v27 = vpop.f32.mrf.mxu1  ;;  %v9108_v10 = vor.u32 %v12525_v63, %v9105_v1  ;;  %v9080_v12 = vor.u32 %v12520_v9, %v9079_v8  ;;  %v12482_v13 = vld [vmem:[%s20027_s3 + $0x1ac] sm:$0xf]  ;;  %v8983_v1 = vld [vmem:[%s20027_s3 + $0x208] sm:$0xf]  ;;  %v8860_v8 = vor.u32 %v12462_v58, %v8857_v61 }
 0x119   :  { %v1095_v36 = vadd.f32 %v1094_v27, %v1081_v26  ;;  %v12474_v27 = vld [vmem:[%s20027_s3 + $0x16c] sm:$0xf]  ;;  %v9223_v9 = vld [vmem:[%s20027_s3 + $0x3e8] sm:$0xf] }
 0x11a   :  { %v1121_v38 = vadd.f32 %v1120_v18, %v1107_v22  ;;  %1972 = vmatpush.bf16.msra.mxu1 %v8888_v28  ;;  %v12478_v18 = vld [vmem:[%s20027_s3 + $0x18c] sm:$0xf]  ;;  %v9047_v22 = vld [vmem:[%s20027_s3 + $0x288] sm:$0xf] }
 0x11b   :  { %1943 = vmatpush.bf16.msrb.mxu3 %v9156_v21  ;;  %v1109_v46 = vadd.f32 %v1108_v41, %v1095_v36  ;;  %v9048_v26 = vor.u32 %v12512_v23, %v9047_v22  ;;  %v12470_v36 = vld [vmem:[%s20027_s3 + $0x14c] sm:$0xf]  ;;  %v9015_v41 = vld [vmem:[%s20027_s3 + $0x248] sm:$0xf]  ;;  %v9065_v23 = vld [vmem:[%s20027_s3 + $0x2b8] sm:$0xf0] }
 0x11c   :  { %2010 = vmatpush.bf16.msrb.mxu0 %v8828_v37  ;;  %v9140_v37 = vor.u32 %v12533_v31, %v9137_v32  ;;  %v1183_v54 = vmax.f32 %v1121_v38, 0.0  ;;  %v12508_v31 = vld [vmem:[%s20027_s3 + $0x274] sm:$0xf0]  ;;  %v8908_v32 = vor.u32 %v12474_v27, %v8905_v35  ;;  %v12514_v22 = vld [vmem:[%s20027_s3 + $0x2ac] sm:$0xf] }
 0x11d   :  { %v1123_v56 = vadd.f32 %v1122_v47, %v1109_v46  ;;  %v9032_v34 = vor.u32 %v12508_v31, %v9031_v29  ;;  %v12466_v46 = vld [vmem:[%s20027_s3 + $0x12c] sm:$0xf]  ;;  %v8873_v47 = vld [vmem:[%s20027_s3 + $0x138] sm:$0xf0]  ;;  %v12544_v29 = vld [vmem:[%s20027_s3 + $0x394] sm:$0xf0] }
 0x11e   :  { %1973 = vmatpush.bf16.msra.mxu1 %v8872_v42  ;;  %v12504_v42 = vld [vmem:[%s20027_s3 + $0x254] sm:$0xf0]  ;;  %v12510_v27 = vld [vmem:[%s20027_s3 + $0x28c] sm:$0xf]  ;;  %v9049_v35 = vld [vmem:[%s20027_s3 + $0x298] sm:$0xf0] }
 0x11f   :  { %1944 = vmatpush.bf16.msrb.mxu3 %v9140_v37  ;;  %v1187_v2 = vmax.f32 %v1123_v56, 0.0  ;;  %v8889_v37 = vld [vmem:[%s20027_s3 + $0x158] sm:$0xf0]  ;;  %v9016_v45 = vor.u32 %v12504_v42, %v9015_v41  ;;  %v9052_v31 = vor.u32 %v12510_v27, %v9049_v35  ;;  %v9143_v42 = vld [vmem:[%s20027_s3 + $0x348] sm:$0xf] }
 0x120   :  { %2011 = vmatpush.bf16.msrb.mxu0 %v8812_v48  ;;  %v8855_v48 = vld [vmem:[%s20027_s3 + $0x108] sm:$0xf]  ;;  %v8892_v44 = vor.u32 %v12470_v36, %v8889_v37  ;;  %v12540_v37 = vld [vmem:[%s20027_s3 + $0x374] sm:$0xf0]  ;;  %v9017_v41 = vld [vmem:[%s20027_s3 + $0x258] sm:$0xf0] }
 0x121   :  { %v14766_v7 = vpack.c.bf16 %v1187_v2, %v1183_v54  ;;  %v8876_v54 = vor.u32 %v12466_v46, %v8873_v47  ;;  %v12496_v2 = vld [vmem:[%s20027_s3 + $0x214] sm:$0xf0]  ;;  %v9159_v36 = vld [vmem:[%s20027_s3 + $0x368] sm:$0xf]  ;;  %v12587_v46 = vld [vmem:[%s20025_s1 + $0x3cc] sm:$0xf0] }
 0x122   :  { %v9111_v61 = vld [vmem:[%s20027_s3 + $0x308] sm:$0xf]  ;;  %v9295_v27 = vld [vmem:[%s20025_s1 + $0x210] sm:$0xf] }
 0x123   :  { %1945 = vmatpush.bf16.msrb.mxu3 %v9124_v53  ;;  %1877 = vmatmul.bf16.vlgmr.msra.gmra.mxu2 %v14766_v7  ;;  %v12575_v35 = vld [vmem:[%s20025_s1 + $0x24c] sm:$0xf0] }
 0x124   :  { %2012 = vmatpush.bf16.msrb.mxu0 %v8796_v62  ;;  %v8856_v62 = vor.u32 %v12464_v49, %v8855_v48  ;;  %1981 = vmatpush.bf16.msra.mxu2 %v9096_v4  ;;  %v8999_v49 = vld [vmem:[%s20027_s3 + $0x228] sm:$0xf]  ;;  %v12522_v4 = vld [vmem:[%s20027_s3 + $0x2ec] sm:$0xf] }
 0x126   :  { %1974 = vmatpush.bf16.msra.mxu1 %v8856_v62 }
 0x127   :  { %1946 = vmatpush.bf16.msrb.mxu3 %v9108_v10  ;;  %v12556_v10 = vld [vmem:[%s20027_s3 + $0x3f4] sm:$0xf0] }
 0x128   :  { %2013 = vmatpush.bf16.msrb.mxu0 %v8780_v11  ;;  %v8956_v11 = vor.u32 %v12486_v5, %v8953_v6  ;;  %1982 = vmatpush.bf16.msra.mxu2 %v9080_v12  ;;  %v9097_v5 = vld [vmem:[%s20027_s3 + $0x2f8] sm:$0xf0]  ;;  %v9224_v15 = vor.u32 %v12556_v10, %v9223_v9  ;;  %v9455_v9 = vld [vmem:[%s20025_s1 + $0x710] sm:$0xf] }
 0x129   :  { %1975 = vmatmul.bf16.vlgmr.msra.gmra.mxu1 %v14616_v30  ;;  %v12615_v10 = vld [vmem:[%s20025_s1 + $0x74c] sm:$0xf0] }
 0x12a   :  { %2023 = vmatpush.bf16.msrb.mxu1 %v8972_v3 }
 0x12c   :  { %2014 = vmatpush.bf16.msrb.mxu0 %v8764_v24  ;;  %v8924_v24 = vor.u32 %v12478_v18, %v8921_v19  ;;  %1983 = vmatpush.bf16.msra.mxu2 %v9064_v17  ;;  %v9207_v18 = vld [vmem:[%s20027_s3 + $0x3c8] sm:$0xf]  ;;  %v12552_v19 = vld [vmem:[%s20027_s3 + $0x3d4] sm:$0xf0] }
 0x12e   :  { %2024 = vmatpush.bf16.msrb.mxu1 %v8956_v11  ;;  %v8984_v11 = vor.u32 %v12496_v2, %v8983_v1  ;;  %v12583_v1 = vld [vmem:[%s20025_s1 + $0x34c] sm:$0xf0] }
 0x130   :  { %2015 = vmatpush.bf16.msrb.mxu0 %v8748_v39  ;;  %1984 = vmatpush.bf16.msra.mxu2 %v9048_v26 }
 0x133   :  { %1933 = vmatmul.bf16.vlgmr.msrb.gmra.mxu2 %v14766_v7 }
 0x134   :  { %2016 = vmatpush.bf16.msrb.mxu0 %v8732_v57  ;;  %v1134_v21 = vpop.f32.mrf.mxu0  ;;  %1985 = vmatpush.bf16.msra.mxu2 %v9032_v34  ;;  %v9000_v57 = vor.u32 %v12500_v50, %v8999_v49  ;;  %v9033_v34 = vld [vmem:[%s20027_s3 + $0x278] sm:$0xf0]  ;;  %v12498_v49 = vld [vmem:[%s20027_s3 + $0x22c] sm:$0xf] }
 0x135   :  { %v1135_v28 = vadd.f32 %v1134_v21, %v312_v20  ;;  %v9208_v21 = vor.u32 %v12552_v19, %v9207_v18  ;;  %v9001_v50 = vld [vmem:[%s20027_s3 + $0x238] sm:$0xf0]  ;;  %v9583_v19 = vld [vmem:[%s20025_s1 + $0xb10] sm:$0xf] }
 0x136   :  { %v1148_v25 = vpop.f32.mrf.mxu1  ;;  %v9004_v58 = vor.u32 %v12498_v49, %v9001_v50  ;;  %v9177_v49 = vld [vmem:[%s20027_s3 + $0x398] sm:$0xf0] }
 0x137   :  { %2017 = vmatmul.bf16.vlgmr.msrb.gmra.mxu0 %v14458_v52  ;;  %v8940_v52 = vor.u32 %v12482_v13, %v8937_v14  ;;  %v1149_v38 = vadd.f32 %v1148_v25, %v1135_v28  ;;  %v9100_v14 = vor.u32 %v12522_v4, %v9097_v5  ;;  %v12548_v25 = vld [vmem:[%s20027_s3 + $0x3b4] sm:$0xf0]  ;;  %v9175_v28 = vld [vmem:[%s20027_s3 + $0x388] sm:$0xf]  ;;  %v8985_v4 = vld [vmem:[%s20027_s3 + $0x218] sm:$0xf0] }
 0x138   :  { %1986 = vmatpush.bf16.msra.mxu2 %v9016_v45  ;;  %v9343_v45 = vld [vmem:[%s20025_s1 + $0x390] sm:$0xf] }
 0x139   :  { %2025 = vmatpush.bf16.msrb.mxu1 %v8940_v52  ;;  %v9081_v52 = vld [vmem:[%s20027_s3 + $0x2d8] sm:$0xf0]  ;;  %v9599_v5 = vld [vmem:[%s20025_s1 + $0xb90] sm:$0xf] }
 0x13c   :  { %v1136_v40 = vpop.f32.mrf.mxu0  ;;  %1987 = vmatpush.bf16.msra.mxu2 %v9000_v57 }
 0x13d   :  { %2026 = vmatpush.bf16.msrb.mxu1 %v8924_v24  ;;  %v1137_v43 = vadd.f32 %v1136_v40, %v312_v20  ;;  %v9084_v20 = vor.u32 %v12518_v16, %v9081_v52  ;;  %v9191_v24 = vld [vmem:[%s20027_s3 + $0x3a8] sm:$0xf]  ;;  %v12502_v40 = vld [vmem:[%s20027_s3 + $0x24c] sm:$0xf]  ;;  %v12579_v16 = vld [vmem:[%s20025_s1 + $0x2cc] sm:$0xf0] }
 0x13e   :  { %v1162_v33 = vpop.f32.mrf.mxu2  ;;  %v1150_v51 = vpop.f32.mrf.mxu1  ;;  %v9192_v26 = vor.u32 %v12548_v25, %v9191_v24  ;;  %v12611_v24 = vld [vmem:[%s20025_s1 + $0x6cc] sm:$0xf0]  ;;  %v12550_v25 = vld [vmem:[%s20027_s3 + $0x3cc] sm:$0xf] }
 0x13f   :  { %v1163_v48 = vadd.f32 %v1162_v33, %v1149_v38  ;;  %v1151_v53 = vadd.f32 %v1150_v51, %v1137_v43  ;;  %v12506_v33 = vld [vmem:[%s20027_s3 + $0x26c] sm:$0xf]  ;;  %v12536_v43 = vld [vmem:[%s20027_s3 + $0x354] sm:$0xf0]  ;;  %v9344_v51 = vor.u32 %v12587_v46, %v9343_v45  ;;  %v12639_v46 = vld [vmem:[%s20025_s1 + $0xa4c] sm:$0xf0] }
 0x140   :  { %v1176_v39 = vpop.f32.mrf.mxu3  ;;  %1988 = vmatpush.bf16.msra.mxu2 %v8984_v11  ;;  %v9036_v38 = vor.u32 %v12506_v33, %v9033_v34  ;;  %v9144_v47 = vor.u32 %v12536_v43, %v9143_v42  ;;  %v12554_v11 = vld [vmem:[%s20027_s3 + $0x3ec] sm:$0xf]  ;;  %v12643_v34 = vld [vmem:[%s20025_s1 + $0xacc] sm:$0xf0] }
 0x141   :  { %2027 = vmatpush.bf16.msrb.mxu1 %v8908_v32  ;;  %v1177_v62 = vadd.f32 %v1176_v39, %v1163_v48  ;;  %v9176_v32 = vor.u32 %v12544_v29, %v9175_v28  ;;  %v9160_v39 = vor.u32 %v12540_v37, %v9159_v36  ;;  %v9127_v48 = vld [vmem:[%s20027_s3 + $0x328] sm:$0xf]  ;;  %2987 = vmatpush.bf16.msra.mxu0 %v9344_v51  ;;  %v12546_v28 = vld [vmem:[%s20027_s3 + $0x3ac] sm:$0xf]  ;;  %v9423_v36 = vld [vmem:[%s20025_s1 + $0x610] sm:$0xf] }
 0x142   :  { %v12607_v37 = vld [vmem:[%s20025_s1 + $0x64c] sm:$0xf0] }
 0x143   :  { %v1184_v12 = vmax.f32 %v1177_v62, 0.0  ;;  %1989 = vmatmul.bf16.vlgmr.msra.gmra.mxu2 %v14766_v7  ;;  %v12528_v62 = vld [vmem:[%s20027_s3 + $0x314] sm:$0xf0]  ;;  %v9263_v51 = vld [vmem:[%s20025_s1 + $0x110] sm:$0xf] }
 0x144   :  { %2037 = vmatpush.bf16.msrb.mxu2 %v9100_v14  ;;  %v9112_v52 = vor.u32 %v12528_v62, %v9111_v61  ;;  %v12635_v62 = vld [vmem:[%s20025_s1 + $0x9cc] sm:$0xf0] }
 0x145   :  { %2028 = vmatpush.bf16.msrb.mxu1 %v8892_v44  ;;  %v9020_v44 = vor.u32 %v12502_v40, %v9017_v41  ;;  %v9279_v40 = vld [vmem:[%s20025_s1 + $0x190] sm:$0xf] }
 0x146   :  { %v1164_v56 = vpop.f32.mrf.mxu2  ;;  %v12571_v41 = vld [vmem:[%s20025_s1 + $0x1cc] sm:$0xf0] }
 0x147   :  { %v1165_v63 = vadd.f32 %v1164_v56, %v1151_v53  ;;  %v12532_v53 = vld [vmem:[%s20027_s3 + $0x334] sm:$0xf0]  ;;  %v12619_v56 = vld [vmem:[%s20025_s1 + $0x7cc] sm:$0xf0]  ;;  %v9280_v42 = vor.u32 %v12571_v41, %v9279_v40 }
 0x148   :  { %v1178_v3 = vpop.f32.mrf.mxu3  ;;  %2038 = vmatpush.bf16.msrb.mxu2 %v9084_v20  ;;  %v9128_v2 = vor.u32 %v12532_v53, %v9127_v48  ;;  %v12603_v48 = vld [vmem:[%s20025_s1 + $0x5cc] sm:$0xf0] }
 0x149   :  { %v1179_v6 = vadd.f32 %v1178_v3, %v1165_v63  ;;  %2029 = vmatpush.bf16.msrb.mxu1 %v8876_v54  ;;  %v9471_v54 = vld [vmem:[%s20025_s1 + $0x790] sm:$0xf]  ;;  %v12494_v3 = vld [vmem:[%s20027_s3 + $0x20c] sm:$0xf] }
 0x14a   :  { %v9472_v57 = vor.u32 %v12619_v56, %v9471_v54  ;;  %v9327_v63 = vld [vmem:[%s20025_s1 + $0x310] sm:$0xf]  ;;  %v8988_v14 = vor.u32 %v12494_v3, %v8985_v4  ;;  %v12538_v56 = vld [vmem:[%s20027_s3 + $0x36c] sm:$0xf] }
 0x14b   :  { %v1188_v13 = vmax.f32 %v1179_v6, 0.0  ;;  %v9328_v6 = vor.u32 %v12583_v1, %v9327_v63  ;;  %v12567_v53 = vld [vmem:[%s20025_s1 + $0x14c] sm:$0xf0] }
 0x14c   :  { %v9264_v54 = vor.u32 %v12567_v53, %v9263_v51  ;;  %v9391_v63 = vld [vmem:[%s20025_s1 + $0x510] sm:$0xf]  ;;  %v12577_v51 = vld [vmem:[%s20025_s1 + $0x294] sm:$0xf] }
 0x14d   :  { %v14869_v17 = vpack.c.bf16 %v1188_v13, %v1184_v12  ;;  %2030 = vmatpush.bf16.msrb.mxu1 %v8860_v8  ;;  %v12651_v8 = vld [vmem:[%s20025_s1 + $0xbcc] sm:$0xf0]  ;;  %v9225_v12 = vld [vmem:[%s20027_s3 + $0x3f8] sm:$0xf0]  ;;  %2988 = vmatpush.bf16.msra.mxu0 %v9328_v6  ;;  %v9456_v13 = vor.u32 %v12615_v10, %v9455_v9  ;;  %v9313_v53 = vld [vmem:[%s20025_s1 + $0x2d0] sm:$0xf0] }
 0x14e   :  { %v9600_v18 = vor.u32 %v12651_v8, %v9599_v5  ;;  %v12599_v1 = vld [vmem:[%s20025_s1 + $0x54c] sm:$0xf0] }
 0x14f   :  { %1891 = vmatmul.bf16.vlgmr.msra.gmra.mxu3 %v14869_v17  ;;  %v9392_v3 = vor.u32 %v12599_v1, %v9391_v63  ;;  %v9247_v4 = vld [vmem:[%s20025_s1 + $0x90] sm:$0xf]  ;;  %v12609_v63 = vld [vmem:[%s20025_s1 + $0x694] sm:$0xf] }
 0x150   :  { %1995 = vmatpush.bf16.msra.mxu3 %v9224_v15  ;;  %2031 = vmatmul.bf16.vlgmr.msrb.gmra.mxu1 %v14616_v30  ;;  %v9068_v30 = vor.u32 %v12514_v22, %v9065_v23  ;;  %v9311_v15 = vld [vmem:[%s20025_s1 + $0x290] sm:$0xf]  ;;  %v9441_v1 = vld [vmem:[%s20025_s1 + $0x6d0] sm:$0xf0] }
 0x151   :  { %3001 = vmatpush.bf16.msra.mxu1 %v9472_v57  ;;  %v9312_v20 = vor.u32 %v12579_v16, %v9311_v15  ;;  %v12647_v22 = vld [vmem:[%s20025_s1 + $0xb4c] sm:$0xf0]  ;;  %v9145_v15 = vld [vmem:[%s20027_s3 + $0x358] sm:$0xf0] }
 0x152   :  { %2039 = vmatpush.bf16.msrb.mxu2 %v9068_v30  ;;  %v9439_v23 = vld [vmem:[%s20025_s1 + $0x690] sm:$0xf]  ;;  %v9209_v30 = vld [vmem:[%s20027_s3 + $0x3d8] sm:$0xf0]  ;;  %v9584_v29 = vor.u32 %v12647_v22, %v9583_v19  ;;  %v12530_v19 = vld [vmem:[%s20027_s3 + $0x32c] sm:$0xf] }
 0x153   :  { %2989 = vmatpush.bf16.msra.mxu0 %v9312_v20  ;;  %v9212_v33 = vor.u32 %v12550_v25, %v9209_v30  ;;  %v12563_v5 = vld [vmem:[%s20025_s1 + $0xcc] sm:$0xf0] }
 0x154   :  { %1996 = vmatpush.bf16.msra.mxu3 %v9208_v21  ;;  %v9228_v21 = vor.u32 %v12554_v11, %v9225_v12  ;;  %v9248_v6 = vor.u32 %v12563_v5, %v9247_v4  ;;  %v9519_v9 = vld [vmem:[%s20025_s1 + $0x910] sm:$0xf]  ;;  %v9444_v4 = vor.u32 %v12609_v63, %v9441_v1 }
 0x155   :  { %3002 = vmatpush.bf16.msra.mxu1 %v9456_v13  ;;  %v12631_v11 = vld [vmem:[%s20025_s1 + $0x94c] sm:$0xf0] }
 0x156   :  { %2040 = vmatpush.bf16.msrb.mxu2 %v9052_v31  ;;  %v9567_v31 = vld [vmem:[%s20025_s1 + $0xa90] sm:$0xf]  ;;  %v9520_v20 = vor.u32 %v12631_v11, %v9519_v9  ;;  %v12641_v11 = vld [vmem:[%s20025_s1 + $0xa94] sm:$0xf] }
 0x157   :  { %v9568_v43 = vor.u32 %v12643_v34, %v9567_v31  ;;  %v9375_v12 = vld [vmem:[%s20025_s1 + $0x490] sm:$0xf]  ;;  %v12617_v31 = vld [vmem:[%s20025_s1 + $0x794] sm:$0xf]  ;;  %v12526_v34 = vld [vmem:[%s20027_s3 + $0x30c] sm:$0xf] }
 0x158   :  { %1997 = vmatpush.bf16.msra.mxu3 %v9192_v26  ;;  %v9440_v26 = vor.u32 %v12611_v24, %v9439_v23  ;;  %v12595_v13 = vld [vmem:[%s20025_s1 + $0x4cc] sm:$0xf0]  ;;  %v12585_v23 = vld [vmem:[%s20025_s1 + $0x394] sm:$0xf] }
 0x159   :  { %v9376_v16 = vor.u32 %v12595_v13, %v9375_v12  ;;  %v9345_v24 = vld [vmem:[%s20025_s1 + $0x3d0] sm:$0xf0]  ;;  %v12627_v30 = vld [vmem:[%s20025_s1 + $0x8cc] sm:$0xf0] }
 0x15a   :  { %2041 = vmatpush.bf16.msrb.mxu2 %v9036_v38  ;;  %3003 = vmatpush.bf16.msra.mxu1 %v9440_v26  ;;  %v9193_v38 = vld [vmem:[%s20027_s3 + $0x3b8] sm:$0xf0]  ;;  %v9348_v26 = vor.u32 %v12585_v23, %v9345_v24  ;;  %v9487_v41 = vld [vmem:[%s20025_s1 + $0x810] sm:$0xf]  ;;  %v12637_v23 = vld [vmem:[%s20025_s1 + $0xa14] sm:$0xf] }
 0x15b   :  { %v9196_v45 = vor.u32 %v12546_v28, %v9193_v38  ;;  %v9129_v28 = vld [vmem:[%s20027_s3 + $0x338] sm:$0xf0]  ;;  %v12581_v38 = vld [vmem:[%s20025_s1 + $0x314] sm:$0xf]  ;;  %v9695_v9 = vld [vmem:[%s20025_s1 + $0xe90] sm:$0xf] }
 0x15c   :  { %1998 = vmatpush.bf16.msra.mxu3 %v9176_v32  ;;  %v9296_v32 = vor.u32 %v12575_v35, %v9295_v27  ;;  %v9359_v27 = vld [vmem:[%s20025_s1 + $0x410] sm:$0xf]  ;;  %v9132_v40 = vor.u32 %v12530_v19, %v9129_v28  ;;  %v12569_v19 = vld [vmem:[%s20025_s1 + $0x194] sm:$0xf] }
 0x15d   :  { %v12591_v35 = vld [vmem:[%s20025_s1 + $0x44c] sm:$0xf0] }
 0x15e   :  { %2042 = vmatpush.bf16.msrb.mxu2 %v9020_v44  ;;  %2990 = vmatpush.bf16.msra.mxu0 %v9296_v32  ;;  %v9551_v44 = vld [vmem:[%s20025_s1 + $0xa10] sm:$0xf]  ;;  %v9473_v32 = vld [vmem:[%s20025_s1 + $0x7d0] sm:$0xf0] }
 0x15f   :  { %1947 = vmatmul.bf16.vlgmr.msrb.gmra.mxu3 %v14869_v17  ;;  %v9552_v57 = vor.u32 %v12639_v46, %v9551_v44  ;;  %v9601_v44 = vld [vmem:[%s20025_s1 + $0xbd0] sm:$0xf0]  ;;  %v9631_v63 = vld [vmem:[%s20025_s1 + $0xc90] sm:$0xf] }
 0x160   :  { %1999 = vmatpush.bf16.msra.mxu3 %v9160_v39  ;;  %v9424_v39 = vor.u32 %v12607_v37, %v9423_v36  ;;  %v9113_v36 = vld [vmem:[%s20027_s3 + $0x318] sm:$0xf0]  ;;  %v9457_v46 = vld [vmem:[%s20025_s1 + $0x750] sm:$0xf0] }
 0x162   :  { %2043 = vmatpush.bf16.msrb.mxu2 %v9004_v58  ;;  %3004 = vmatpush.bf16.msra.mxu1 %v9424_v39  ;;  %v9535_v58 = vld [vmem:[%s20025_s1 + $0x990] sm:$0xf]  ;;  %v9329_v39 = vld [vmem:[%s20025_s1 + $0x350] sm:$0xf0]  ;;  %v1850_v5 = vpop.f32.mrf.mxu0 }
 0x163   :  { %2991 = vmatpush.bf16.msra.mxu0 %v9280_v42  ;;  %v9536_v8 = vor.u32 %v12635_v62, %v9535_v58  ;;  %v12623_v42 = vld [vmem:[%s20025_s1 + $0x84c] sm:$0xf0]  ;;  %v9316_v58 = vor.u32 %v12577_v51, %v9313_v53  ;;  %v9585_v62 = vld [vmem:[%s20025_s1 + $0xb50] sm:$0xf0] }
 0x164   :  { %2000 = vmatpush.bf16.msra.mxu3 %v9144_v47  ;;  %v9407_v47 = vld [vmem:[%s20025_s1 + $0x590] sm:$0xf]  ;;  %v12593_v51 = vld [vmem:[%s20025_s1 + $0x494] sm:$0xf] }
 0x165   :  { %v9408_v50 = vor.u32 %v12603_v48, %v9407_v47  ;;  %v9727_v47 = vld [vmem:[%s20025_s1 + $0xf90] sm:$0xf]  ;;  %v9377_v53 = vld [vmem:[%s20025_s1 + $0x4d0] sm:$0xf0] }
 0x166   :  { %2044 = vmatpush.bf16.msrb.mxu2 %v8988_v14  ;;  %v12534_v14 = vld [vmem:[%s20027_s3 + $0x34c] sm:$0xf]  ;;  %v12683_v48 = vld [vmem:[%s20025_s1 + $0xfcc] sm:$0xf0] }
 0x167   :  { %3005 = vmatpush.bf16.msra.mxu1 %v9408_v50  ;;  %2992 = vmatpush.bf16.msra.mxu0 %v9264_v54  ;;  %v9148_v25 = vor.u32 %v12534_v14, %v9145_v15  ;;  %v9488_v50 = vor.u32 %v12623_v42, %v9487_v41  ;;  %v9116_v54 = vor.u32 %v12526_v34, %v9113_v36  ;;  %v9569_v14 = vld [vmem:[%s20025_s1 + $0xad0] sm:$0xf0]  ;;  %v9663_v42 = vld [vmem:[%s20025_s1 + $0xd90] sm:$0xf] }
 0x168   :  { %2001 = vmatpush.bf16.msra.mxu3 %v9128_v2  ;;  %v9161_v2 = vld [vmem:[%s20027_s3 + $0x378] sm:$0xf0]  ;;  %v12605_v15 = vld [vmem:[%s20025_s1 + $0x614] sm:$0xf] }
 0x169   :  { %2045 = vmatmul.bf16.vlgmr.msrb.gmra.mxu2 %v14766_v7  ;;  %v12542_v7 = vld [vmem:[%s20027_s3 + $0x38c] sm:$0xf]  ;;  %v9164_v10 = vor.u32 %v12538_v56, %v9161_v2  ;;  %v9711_v2 = vld [vmem:[%s20025_s1 + $0xf10] sm:$0xf]  ;;  %v12633_v34 = vld [vmem:[%s20025_s1 + $0x994] sm:$0xf] }
 0x16a   :  { %3015 = vmatpush.bf16.msra.mxu2 %v9600_v18  ;;  %v9180_v61 = vor.u32 %v12542_v7, %v9177_v49  ;;  %v12559_v18 = vld [vmem:[%s20025_s1 + $0x4c] sm:$0xf0]  ;;  %v12649_v7 = vld [vmem:[%s20025_s1 + $0xb94] sm:$0xf] }
 0x16b   :  { %3006 = vmatpush.bf16.msra.mxu1 %v9392_v3  ;;  %2993 = vmatpush.bf16.msra.mxu0 %v9248_v6  ;;  %v9604_v56 = vor.u32 %v12649_v7, %v9601_v44  ;;  %v12679_v3 = vld [vmem:[%s20025_s1 + $0xf4c] sm:$0xf0]  ;;  %v12573_v6 = vld [vmem:[%s20025_s1 + $0x214] sm:$0xf] }
 0x16c   :  { %2002 = vmatpush.bf16.msra.mxu3 %v9112_v52  ;;  %v9231_v52 = vld [vmem:[%s20025_s1 + $0x10] sm:$0xf]  ;;  %v9712_v13 = vor.u32 %v12679_v3, %v9711_v2  ;;  %v9393_v41 = vld [vmem:[%s20025_s1 + $0x550] sm:$0xf0] }
 0x16d   :  { %v9232_v22 = vor.u32 %v12559_v18, %v9231_v52  ;;  %v12675_v52 = vld [vmem:[%s20025_s1 + $0xecc] sm:$0xf0]  ;;  %v12561_v44 = vld [vmem:[%s20025_s1 + $0x94] sm:$0xf] }
 0x16e   :  { %3016 = vmatpush.bf16.msra.mxu2 %v9584_v29  ;;  %v9360_v29 = vor.u32 %v12591_v35, %v9359_v27  ;;  %v9696_v24 = vor.u32 %v12675_v52, %v9695_v9  ;;  %v12671_v27 = vld [vmem:[%s20025_s1 + $0xe4c] sm:$0xf0]  ;;  %v12625_v2 = vld [vmem:[%s20025_s1 + $0x894] sm:$0xf] }
 0x16f   :  { %2003 = vmatmul.bf16.vlgmr.msra.gmra.mxu3 %v14869_v17  ;;  %3007 = vmatpush.bf16.msra.mxu1 %v9376_v16  ;;  %v9425_v16 = vld [vmem:[%s20025_s1 + $0x650] sm:$0xf0]  ;;  %v12667_v7 = vld [vmem:[%s20025_s1 + $0xdcc] sm:$0xf0] }
 0x170   :  { %2051 = vmatpush.bf16.msrb.mxu3 %v9228_v21  ;;  %v9503_v21 = vld [vmem:[%s20025_s1 + $0x890] sm:$0xf]  ;;  %2994 = vmatpush.bf16.msra.mxu0 %v9232_v22  ;;  %v9428_v18 = vor.u32 %v12605_v15, %v9425_v16  ;;  %v9572_v22 = vor.u32 %v12641_v11, %v9569_v14  ;;  %v9361_v11 = vld [vmem:[%s20025_s1 + $0x450] sm:$0xf0]  ;;  %v9479_v14 = vld [vmem:[%s20025_s1 + $0x798] sm:$0xf] }
 0x171   :  { %v9504_v37 = vor.u32 %v12627_v30, %v9503_v21  ;;  %v12601_v30 = vld [vmem:[%s20025_s1 + $0x594] sm:$0xf]  ;;  %v12620_v15 = vld [vmem:[%s20025_s1 + $0x7d4] sm:$0xf0] }
 0x172   :  { %3017 = vmatpush.bf16.msra.mxu2 %v9568_v43  ;;  %v9332_v43 = vor.u32 %v12581_v38, %v9329_v39  ;;  %v9537_v39 = vld [vmem:[%s20025_s1 + $0x9d0] sm:$0xf0]  ;;  %v9480_v52 = vor.u32 %v12620_v15, %v9479_v14  ;;  %v9415_v14 = vld [vmem:[%s20025_s1 + $0x598] sm:$0xf] }
 0x173   :  { %3008 = vmatpush.bf16.msra.mxu1 %v9360_v29  ;;  %2995 = vmatmul.bf16.vlgmr.msra.gmra.mxu0 %v13647_v59  ;;  %v12565_v29 = vld [vmem:[%s20025_s1 + $0x114] sm:$0xf]  ;;  %v12604_v15 = vld [vmem:[%s20025_s1 + $0x5d4] sm:$0xf0] }
 0x174   :  { %2052 = vmatpush.bf16.msrb.mxu3 %v9212_v33  ;;  %3043 = vmatpush.bf16.msrb.mxu0 %v9348_v26  ;;  %v9476_v33 = vor.u32 %v12617_v31, %v9473_v32  ;;  %v9679_v26 = vld [vmem:[%s20025_s1 + $0xe10] sm:$0xf]  ;;  %v9265_v31 = vld [vmem:[%s20025_s1 + $0x150] sm:$0xf0] }
 0x175   :  { %v9268_v36 = vor.u32 %v12565_v29, %v9265_v31  ;;  %v9680_v38 = vor.u32 %v12671_v27, %v9679_v26  ;;  %v12652_v26 = vld [vmem:[%s20025_s1 + $0xbd4] sm:$0xf0]  ;;  %v12681_v29 = vld [vmem:[%s20025_s1 + $0xf94] sm:$0xf] }
 0x176   :  { %3018 = vmatpush.bf16.msra.mxu2 %v9552_v57  ;;  %3009 = vmatmul.bf16.vlgmr.msra.gmra.mxu1 %v13657_v0  ;;  %v12645_v57 = vld [vmem:[%s20025_s1 + $0xb14] sm:$0xf]  ;;  %v9463_v27 = vld [vmem:[%s20025_s1 + $0x718] sm:$0xf] }
 0x177   :  { %3057 = vmatpush.bf16.msrb.mxu1 %v9476_v33  ;;  %v9729_v31 = vld [vmem:[%s20025_s1 + $0xfd0] sm:$0xf0] }
 0x178   :  { %2053 = vmatpush.bf16.msrb.mxu3 %v9196_v45  ;;  %v12613_v45 = vld [vmem:[%s20025_s1 + $0x714] sm:$0xf]  ;;  %3044 = vmatpush.bf16.msrb.mxu0 %v9332_v43 }
 0x179   :  { %v9460_v49 = vor.u32 %v12613_v45, %v9457_v46  ;;  %v9249_v45 = vld [vmem:[%s20025_s1 + $0xd0] sm:$0xf0]  ;;  %v9540_v46 = vor.u32 %v12633_v34, %v9537_v39  ;;  %v12580_v39 = vld [vmem:[%s20025_s1 + $0x2d4] sm:$0xf0] }
 0x17a   :  { %3019 = vmatpush.bf16.msra.mxu2 %v9536_v8  ;;  %v9297_v8 = vld [vmem:[%s20025_s1 + $0x250] sm:$0xf0] }
 0x17b   :  { %3058 = vmatpush.bf16.msrb.mxu1 %v9460_v49  ;;  %v9300_v12 = vor.u32 %v12573_v6, %v9297_v8  ;;  %v9664_v49 = vor.u32 %v12667_v7, %v9663_v42  ;;  %v9505_v8 = vld [vmem:[%s20025_s1 + $0x8d0] sm:$0xf0]  ;;  %v9591_v42 = vld [vmem:[%s20025_s1 + $0xb18] sm:$0xf] }
 0x17c   :  { %2054 = vmatpush.bf16.msrb.mxu3 %v9180_v61  ;;  %v9728_v61 = vor.u32 %v12683_v48, %v9727_v47  ;;  %3045 = vmatpush.bf16.msrb.mxu0 %v9316_v58  ;;  %v12629_v47 = vld [vmem:[%s20025_s1 + $0x914] sm:$0xf]  ;;  %v9252_v48 = vor.u32 %v12561_v44, %v9249_v45  ;;  %v12648_v44 = vld [vmem:[%s20025_s1 + $0xb54] sm:$0xf0] }
 0x17d   :  { %v9447_v45 = vld [vmem:[%s20025_s1 + $0x698] sm:$0xf] }
 0x17e   :  { %3020 = vmatpush.bf16.msra.mxu2 %v9520_v20  ;;  %v9281_v20 = vld [vmem:[%s20025_s1 + $0x1d0] sm:$0xf0] }
 0x17f   :  { %3059 = vmatpush.bf16.msrb.mxu1 %v9444_v4  ;;  %v9284_v21 = vor.u32 %v12569_v19, %v9281_v20  ;;  %v9351_v4 = vld [vmem:[%s20025_s1 + $0x398] sm:$0xf]  ;;  %v12655_v19 = vld [vmem:[%s20025_s1 + $0xc4c] sm:$0xf0]  ;;  %v9508_v20 = vor.u32 %v12625_v2, %v9505_v8 }
 0x180   :  { %2055 = vmatpush.bf16.msrb.mxu3 %v9164_v10  ;;  %v9588_v10 = vor.u32 %v12645_v57, %v9585_v62  ;;  %3046 = vmatpush.bf16.msrb.mxu0 %v9300_v12  ;;  %v9380_v57 = vor.u32 %v12593_v51, %v9377_v53  ;;  %v9233_v62 = vld [vmem:[%s20025_s1 + $0x50] sm:$0xf0]  ;;  %v12659_v12 = vld [vmem:[%s20025_s1 + $0xccc] sm:$0xf0]  ;;  %v12576_v51 = vld [vmem:[%s20025_s1 + $0x254] sm:$0xf0] }
 0x181   :  { %v12608_v2 = vld [vmem:[%s20025_s1 + $0x654] sm:$0xf0] }
 0x182   :  { %3021 = vmatpush.bf16.msra.mxu2 %v9504_v37  ;;  %v1864_v28 = vpop.f32.mrf.mxu1  ;;  %v15270_v37 = vpop.f32.mrf.mxu0  ;;  %v12572_v8 = vld [vmem:[%s20025_s1 + $0x1d4] sm:$0xf0] }
 0x183   :  { %3060 = vmatpush.bf16.msrb.mxu1 %v9428_v18  ;;  %v15265_v32 = vadd.f32 %v1864_v28, %v1850_v5  ;;  %v12588_v5 = vld [vmem:[%s20025_s1 + $0x3d4] sm:$0xf0]  ;;  %v9615_v18 = vld [vmem:[%s20025_s1 + $0xc10] sm:$0xf] }
 0x184   :  { %2056 = vmatpush.bf16.msrb.mxu3 %v9148_v25  ;;  %v9553_v25 = vld [vmem:[%s20025_s1 + $0xa50] sm:$0xf0]  ;;  %3047 = vmatpush.bf16.msrb.mxu0 %v9284_v21  ;;  %v9352_v9 = vor.u32 %v12588_v5, %v9351_v4  ;;  %v9335_v21 = vld [vmem:[%s20025_s1 + $0x318] sm:$0xf] }
 0x185   :  { %v9556_v33 = vor.u32 %v12637_v23, %v9553_v25  ;;  %v9632_v23 = vor.u32 %v12659_v12, %v9631_v63  ;;  %v9489_v25 = vld [vmem:[%s20025_s1 + $0x850] sm:$0xf0]  ;;  %v12644_v63 = vld [vmem:[%s20025_s1 + $0xad4] sm:$0xf0] }
 0x186   :  { %3022 = vmatpush.bf16.msra.mxu2 %v9488_v50  ;;  %v9521_v50 = vld [vmem:[%s20025_s1 + $0x950] sm:$0xf0] }
 0x187   :  { %v9524_v1 = vor.u32 %v12629_v47, %v9521_v50  ;;  %v12677_v47 = vld [vmem:[%s20025_s1 + $0xf14] sm:$0xf]  ;;  %v9303_v50 = vld [vmem:[%s20025_s1 + $0x218] sm:$0xf] }
 0x188   :  { %2057 = vmatpush.bf16.msrb.mxu3 %v9132_v40  ;;  %v12597_v40 = vld [vmem:[%s20025_s1 + $0x514] sm:$0xf]  ;;  %3048 = vmatpush.bf16.msrb.mxu0 %v9268_v36 }
 0x189   :  { %3023 = vmatmul.bf16.vlgmr.msra.gmra.mxu2 %v13636_v55  ;;  %v9396_v43 = vor.u32 %v12597_v40, %v9393_v41  ;;  %v9616_v40 = vor.u32 %v12655_v19, %v9615_v18  ;;  %v9697_v4 = vld [vmem:[%s20025_s1 + $0xed0] sm:$0xf0]  ;;  %v9416_v18 = vor.u32 %v12604_v15, %v9415_v14  ;;  %v9271_v19 = vld [vmem:[%s20025_s1 + $0x118] sm:$0xf]  ;;  %v12582_v14 = vld [vmem:[%s20025_s1 + $0x31c] sm:$0xf] }
 0x18a   :  { %3071 = vmatpush.bf16.msrb.mxu2 %v9604_v56  ;;  %v12663_v56 = vld [vmem:[%s20025_s1 + $0xd4c] sm:$0xf0]  ;;  %v15311_v58 = vpop.f32.mrf.mxu1  ;;  %v1906_v16 = vpop.f32.mrf.mxu0  ;;  %v9337_v15 = vld [vmem:[%s20025_s1 + $0x358] sm:$0xf0] }
 0x18c   :  { %2058 = vmatpush.bf16.msrb.mxu3 %v9116_v54  ;;  %v9647_v54 = vld [vmem:[%s20025_s1 + $0xd10] sm:$0xf]  ;;  %3049 = vmatpush.bf16.msrb.mxu0 %v9252_v48  ;;  %v9713_v48 = vld [vmem:[%s20025_s1 + $0xf50] sm:$0xf0] }
 0x18d   :  { %v9648_v6 = vor.u32 %v12663_v56, %v9647_v54  ;;  %v12673_v54 = vld [vmem:[%s20025_s1 + $0xe94] sm:$0xf]  ;;  %v9592_v56 = vor.u32 %v12648_v44, %v9591_v42  ;;  %v12632_v42 = vld [vmem:[%s20025_s1 + $0x954] sm:$0xf0] }
 0x18e   :  { %3072 = vmatpush.bf16.msrb.mxu2 %v9588_v10  ;;  %v12589_v10 = vld [vmem:[%s20025_s1 + $0x414] sm:$0xf]  ;;  %v9700_v12 = vor.u32 %v12673_v54, %v9697_v4  ;;  %v12592_v4 = vld [vmem:[%s20025_s1 + $0x454] sm:$0xf0] }
 0x18f   :  { %2059 = vmatmul.bf16.vlgmr.msrb.gmra.mxu3 %v14869_v17  ;;  %v9409_v17 = vld [vmem:[%s20025_s1 + $0x5d0] sm:$0xf0] }
 0x190   :  { %3029 = vmatpush.bf16.msra.mxu3 %v9728_v61  ;;  %v9412_v35 = vor.u32 %v12601_v30, %v9409_v17  ;;  %v12557_v61 = vld [vmem:[%s20025_s1 + $0x14] sm:$0xf]  ;;  %v9607_v30 = vld [vmem:[%s20025_s1 + $0xb98] sm:$0xf] }
 0x191   :  { %v9236_v3 = vor.u32 %v12557_v61, %v9233_v62  ;;  %v9608_v41 = vor.u32 %v12652_v26, %v9607_v30  ;;  %v9304_v61 = vor.u32 %v12576_v51, %v9303_v50  ;;  %v9716_v62 = vor.u32 %v12677_v47, %v9713_v48  ;;  %v9399_v30 = vld [vmem:[%s20025_s1 + $0x518] sm:$0xf]  ;;  %v12657_v51 = vld [vmem:[%s20025_s1 + $0xc94] sm:$0xf] }
 0x192   :  { %3073 = vmatpush.bf16.msrb.mxu2 %v9572_v22  ;;  %3061 = vmatpush.bf16.msrb.mxu1 %v9412_v35  ;;  %v12584_v22 = vld [vmem:[%s20025_s1 + $0x354] sm:$0xf0]  ;;  %v1920_v28 = vpop.f32.mrf.mxu1  ;;  %v15419_v53 = vpop.f32.mrf.mxu0 }
 0x193   :  { %3050 = vmatpush.bf16.msrb.mxu0 %v9236_v3  ;;  %v9336_v17 = vor.u32 %v12584_v22, %v9335_v21  ;;  %v12616_v35 = vld [vmem:[%s20025_s1 + $0x754] sm:$0xf0]  ;;  %v15386_v34 = vadd.f32 %v1920_v28, %v1906_v16  ;;  %v12669_v16 = vld [vmem:[%s20025_s1 + $0xe14] sm:$0xf] }
 0x194   :  { %3030 = vmatpush.bf16.msra.mxu3 %v9712_v13  ;;  %v9364_v13 = vor.u32 %v12589_v10, %v9361_v11  ;;  %v9559_v11 = vld [vmem:[%s20025_s1 + $0xa18] sm:$0xf]  ;;  %v9665_v28 = vld [vmem:[%s20025_s1 + $0xdd0] sm:$0xf0] }
 0x195   :  { %v9543_v22 = vld [vmem:[%s20025_s1 + $0x998] sm:$0xf] }
 0x196   :  { %3074 = vmatpush.bf16.msrb.mxu2 %v9556_v33  ;;  %3062 = vmatpush.bf16.msrb.mxu1 %v9396_v43  ;;  %v9464_v33 = vor.u32 %v12616_v35, %v9463_v27  ;;  %v9732_v43 = vor.u32 %v12681_v29, %v9729_v31  ;;  %v12665_v35 = vld [vmem:[%s20025_s1 + $0xd94] sm:$0xf]  ;;  %v12560_v50 = vld [vmem:[%s20025_s1 + $0x54] sm:$0xf0] }
 0x197   :  { %3099 = vmatpush.bf16.msra.mxu0 %v9352_v9 }
 0x198   :  { %3031 = vmatpush.bf16.msra.mxu3 %v9696_v24  ;;  %v12621_v24 = vld [vmem:[%s20025_s1 + $0x814] sm:$0xf]  ;;  %3051 = vmatmul.bf16.vlgmr.msrb.gmra.mxu0 %v13647_v59 }
 0x199   :  { %v9492_v36 = vor.u32 %v12621_v24, %v9489_v25  ;;  %v12636_v25 = vld [vmem:[%s20025_s1 + $0x9d4] sm:$0xf0] }
 0x19a   :  { %3075 = vmatpush.bf16.msrb.mxu2 %v9540_v46  ;;  %3063 = vmatpush.bf16.msrb.mxu1 %v9380_v57  ;;  %v12612_v46 = vld [vmem:[%s20025_s1 + $0x6d4] sm:$0xf0]  ;;  %v15436_v3 = vpop.f32.mrf.mxu1  ;;  %v1962_v26 = vpop.f32.mrf.mxu0 }
 0x19b   :  { %3100 = vmatpush.bf16.msra.mxu0 %v9336_v17  ;;  %v9575_v57 = vld [vmem:[%s20025_s1 + $0xa98] sm:$0xf] }
 0x19c   :  { %3032 = vmatpush.bf16.msra.mxu3 %v9680_v38  ;;  %v9319_v38 = vld [vmem:[%s20025_s1 + $0x298] sm:$0xf]  ;;  %v9576_v10 = vor.u32 %v12644_v63, %v9575_v57  ;;  %v12586_v57 = vld [vmem:[%s20025_s1 + $0x39c] sm:$0xf] }
 0x19d   :  { %v9320_v7 = vor.u32 %v12580_v39, %v9319_v38  ;;  %v12600_v17 = vld [vmem:[%s20025_s1 + $0x554] sm:$0xf0]  ;;  %v9544_v38 = vor.u32 %v12636_v25, %v9543_v22  ;;  %v9609_v22 = vld [vmem:[%s20025_s1 + $0xbd8] sm:$0xf0] }
 0x19e   :  { %3076 = vmatpush.bf16.msrb.mxu2 %v9524_v1  ;;  %3064 = vmatpush.bf16.msrb.mxu1 %v9364_v13  ;;  %v9431_v1 = vld [vmem:[%s20025_s1 + $0x618] sm:$0xf]  ;;  %v9400_v29 = vor.u32 %v12600_v17, %v9399_v30 }
 0x19f   :  { %3101 = vmatpush.bf16.msra.mxu0 %v9320_v7  ;;  %v9432_v5 = vor.u32 %v12608_v2, %v9431_v1  ;;  %v12640_v13 = vld [vmem:[%s20025_s1 + $0xa54] sm:$0xf0] }
 0x1a0   :  { %3033 = vmatpush.bf16.msra.mxu3 %v9664_v49  ;;  %v9448_v49 = vor.u32 %v12612_v46, %v9447_v45  ;;  %v9560_v21 = vor.u32 %v12640_v13, %v9559_v11  ;;  %v9527_v39 = vld [vmem:[%s20025_s1 + $0x918] sm:$0xf]  ;;  %v12661_v45 = vld [vmem:[%s20025_s1 + $0xd14] sm:$0xf] }
 0x1a1   :  { %3065 = vmatmul.bf16.vlgmr.msrb.gmra.mxu1 %v13657_v0  ;;  %v9383_v7 = vld [vmem:[%s20025_s1 + $0x498] sm:$0xf]  ;;  %v9649_v46 = vld [vmem:[%s20025_s1 + $0xd50] sm:$0xf0]  ;;  %v9528_v54 = vor.u32 %v12632_v42, %v9527_v39  ;;  %v9593_v39 = vld [vmem:[%s20025_s1 + $0xb58] sm:$0xf0] }
 0x1a2   :  { %3113 = vmatpush.bf16.msra.mxu1 %v9480_v52  ;;  %3077 = vmatpush.bf16.msrb.mxu2 %v9508_v20  ;;  %v9681_v52 = vld [vmem:[%s20025_s1 + $0xe50] sm:$0xf0]  ;;  %v12568_v20 = vld [vmem:[%s20025_s1 + $0x154] sm:$0xf0] }
 0x1a3   :  { %3102 = vmatpush.bf16.msra.mxu0 %v9304_v61  ;;  %v9684_v24 = vor.u32 %v12669_v16, %v9681_v52  ;;  %v9353_v61 = vld [vmem:[%s20025_s1 + $0x3d8] sm:$0xf0]  ;;  %v12628_v63 = vld [vmem:[%s20025_s1 + $0x8d4] sm:$0xf0]  ;;  %v12653_v11 = vld [vmem:[%s20025_s1 + $0xc14] sm:$0xf] }
 0x1a4   :  { %3034 = vmatpush.bf16.msra.mxu3 %v9648_v6  ;;  %v9287_v6 = vld [vmem:[%s20025_s1 + $0x198] sm:$0xf]  ;;  %v9356_v1 = vor.u32 %v12586_v57, %v9353_v61  ;;  %v9433_v57 = vld [vmem:[%s20025_s1 + $0x658] sm:$0xf0]  ;;  %v15641_v61 = vpop.f32.mrf.mxu0 }
 0x1a5   :  { %v9288_v9 = vor.u32 %v12572_v8, %v9287_v6  ;;  %v9367_v2 = vld [vmem:[%s20025_s1 + $0x418] sm:$0xf]  ;;  %v12618_v8 = vld [vmem:[%s20025_s1 + $0x79c] sm:$0xf] }
 0x1a6   :  { %3114 = vmatpush.bf16.msra.mxu1 %v9464_v33  ;;  %3078 = vmatpush.bf16.msrb.mxu2 %v9492_v36  ;;  %v1976_v27 = vpop.f32.mrf.mxu1  ;;  %v9255_v33 = vld [vmem:[%s20025_s1 + $0x98] sm:$0xf]  ;;  %v1878_v44 = vpop.f32.mrf.mxu2  ;;  %v9368_v6 = vor.u32 %v12592_v4, %v9367_v2  ;;  %v12570_v4 = vld [vmem:[%s20025_s1 + $0x19c] sm:$0xf] }
 0x1a7   :  { %3103 = vmatpush.bf16.msra.mxu0 %v9288_v9  ;;  %v15491_v31 = vadd.f32 %v1976_v27, %v1962_v26  ;;  %v12564_v36 = vld [vmem:[%s20025_s1 + $0xd4] sm:$0xf0]  ;;  %v15518_v48 = vadd.f32 %v1878_v44, %v15265_v32  ;;  %v9481_v9 = vld [vmem:[%s20025_s1 + $0x7d8] sm:$0xf0] }
 0x1a8   :  { %3035 = vmatpush.bf16.msra.mxu3 %v9632_v23  ;;  %v9272_v23 = vor.u32 %v12568_v20, %v9271_v19  ;;  %v9495_v52 = vld [vmem:[%s20025_s1 + $0x818] sm:$0xf]  ;;  %v12650_v19 = vld [vmem:[%s20025_s1 + $0xb9c] sm:$0xf]  ;;  %v9340_v20 = vor.u32 %v12582_v14, %v9337_v15 }
 0x1a9   :  { %3079 = vmatmul.bf16.vlgmr.msrb.gmra.mxu2 %v13636_v55  ;;  %v9735_v25 = vld [vmem:[%s20025_s1 + $0xf98] sm:$0xf]  ;;  %v12578_v27 = vld [vmem:[%s20025_s1 + $0x29c] sm:$0xf] }
 0x1aa   :  { %3127 = vmatpush.bf16.msra.mxu2 %v9608_v41  ;;  %3115 = vmatpush.bf16.msra.mxu1 %v9448_v49  ;;  %v9668_v41 = vor.u32 %v12665_v35, %v9665_v28  ;;  %v9239_v49 = vld [vmem:[%s20025_s1 + $0x18] sm:$0xf]  ;;  %v9321_v35 = vld [vmem:[%s20025_s1 + $0x2d8] sm:$0xf0] }
 0x1ab   :  { %3104 = vmatpush.bf16.msra.mxu0 %v9272_v23  ;;  %v9240_v32 = vor.u32 %v12560_v50, %v9239_v49  ;;  %v12614_v23 = vld [vmem:[%s20025_s1 + $0x71c] sm:$0xf]  ;;  %v12684_v30 = vld [vmem:[%s20025_s1 + $0xfd4] sm:$0xf0] }
 0x1ac   :  { %3036 = vmatpush.bf16.msra.mxu3 %v9616_v40  ;;  %v9256_v40 = vor.u32 %v12564_v36, %v9255_v33  ;;  %v12646_v33 = vld [vmem:[%s20025_s1 + $0xb1c] sm:$0xf]  ;;  %v9324_v36 = vor.u32 %v12578_v27, %v9321_v35  ;;  %v9719_v42 = vld [vmem:[%s20025_s1 + $0xf18] sm:$0xf] }
 0x1ad   :  { %v12574_v44 = vld [vmem:[%s20025_s1 + $0x21c] sm:$0xf]  ;;  %v12672_v14 = vld [vmem:[%s20025_s1 + $0xe54] sm:$0xf0] }
 0x1ae   :  { %3128 = vmatpush.bf16.msra.mxu2 %v9592_v56  ;;  %3116 = vmatpush.bf16.msra.mxu1 %v9432_v5  ;;  %v9511_v56 = vld [vmem:[%s20025_s1 + $0x898] sm:$0xf]  ;;  %v9633_v5 = vld [vmem:[%s20025_s1 + $0xcd0] sm:$0xf0]  ;;  %v12642_v49 = vld [vmem:[%s20025_s1 + $0xa9c] sm:$0xf] }
 0x1af   :  { %3037 = vmatmul.bf16.vlgmr.msra.gmra.mxu3 %v13649_v60  ;;  %3105 = vmatpush.bf16.msra.mxu0 %v9256_v40  ;;  %v9512_v13 = vor.u32 %v12628_v63, %v9511_v56  ;;  %v9636_v16 = vor.u32 %v12657_v51, %v9633_v5  ;;  %v12610_v40 = vld [vmem:[%s20025_s1 + $0x69c] sm:$0xf]  ;;  %v12668_v35 = vld [vmem:[%s20025_s1 + $0xdd4] sm:$0xf0] }
 0x1b0   :  { %3085 = vmatpush.bf16.msrb.mxu3 %v9732_v43  ;;  %v12596_v43 = vld [vmem:[%s20025_s1 + $0x4d4] sm:$0xf0]  ;;  %v9577_v56 = vld [vmem:[%s20025_s1 + $0xad8] sm:$0xf0] }
 0x1b1   :  { %v9384_v47 = vor.u32 %v12596_v43, %v9383_v7  ;;  %v12680_v7 = vld [vmem:[%s20025_s1 + $0xf54] sm:$0xf0]  ;;  %v9289_v5 = vld [vmem:[%s20025_s1 + $0x1d8] sm:$0xf0] }
 0x1b2   :  { %3129 = vmatpush.bf16.msra.mxu2 %v9576_v10  ;;  %3117 = vmatpush.bf16.msra.mxu1 %v9416_v18  ;;  %v9484_v10 = vor.u32 %v12618_v8, %v9481_v9  ;;  %v12624_v18 = vld [vmem:[%s20025_s1 + $0x854] sm:$0xf0]  ;;  %v12638_v8 = vld [vmem:[%s20025_s1 + $0xa1c] sm:$0xf] }
 0x1b3   :  { %3106 = vmatpush.bf16.msra.mxu0 %v9240_v32  ;;  %v9496_v26 = vor.u32 %v12624_v18, %v9495_v52  ;;  %v12606_v32 = vld [vmem:[%s20025_s1 + $0x61c] sm:$0xf]  ;;  %v9671_v18 = vld [vmem:[%s20025_s1 + $0xd98] sm:$0xf] }
 0x1b4   :  { %3086 = vmatpush.bf16.msrb.mxu3 %v9716_v62  ;;  %v9652_v62 = vor.u32 %v12661_v45, %v9649_v46  ;;  %v9305_v45 = vld [vmem:[%s20025_s1 + $0x258] sm:$0xf0]  ;;  %v9703_v46 = vld [vmem:[%s20025_s1 + $0xe98] sm:$0xf]  ;;  %v9436_v2 = vor.u32 %v12606_v32, %v9433_v57 }
 0x1b5   :  { %v9308_v50 = vor.u32 %v12574_v44, %v9305_v45  ;;  %v9273_v52 = vld [vmem:[%s20025_s1 + $0x158] sm:$0xf0]  ;;  %v9655_v44 = vld [vmem:[%s20025_s1 + $0xd18] sm:$0xf] }
 0x1b6   :  { %3130 = vmatpush.bf16.msra.mxu2 %v9560_v21  ;;  %3118 = vmatpush.bf16.msra.mxu1 %v9400_v29  ;;  %v15577_v21 = vpop.f32.mrf.mxu2  ;;  %v9612_v29 = vor.u32 %v12650_v19, %v9609_v22  ;;  %v12664_v45 = vld [vmem:[%s20025_s1 + $0xd54] sm:$0xf0] }
 0x1b7   :  { %3155 = vmatpush.bf16.msrb.mxu0 %v9356_v1  ;;  %v12676_v1 = vld [vmem:[%s20025_s1 + $0xed4] sm:$0xf0] }
 0x1b8   :  { %3087 = vmatpush.bf16.msrb.mxu3 %v9700_v12  ;;  %v9617_v12 = vld [vmem:[%s20025_s1 + $0xc50] sm:$0xf0]  ;;  %3107 = vmatmul.bf16.vlgmr.msra.gmra.mxu0 %v13647_v59  ;;  %v9704_v9 = vor.u32 %v12676_v1, %v9703_v46  ;;  %v9656_v1 = vor.u32 %v12664_v45, %v9655_v44  ;;  %v9807_v44 = vld [vmem:[%s20027_s3 + $0x480] sm:$0xf] }
 0x1b9   :  { %v9620_v28 = vor.u32 %v12653_v11, %v9617_v12  ;;  %v12602_v11 = vld [vmem:[%s20025_s1 + $0x59c] sm:$0xf] }
 0x1ba   :  { %3131 = vmatpush.bf16.msra.mxu2 %v9544_v38  ;;  %3119 = vmatpush.bf16.msra.mxu1 %v9384_v47  ;;  %v9736_v38 = vor.u32 %v12684_v30, %v9735_v25  ;;  %v9596_v47 = vor.u32 %v12646_v33, %v9593_v39  ;;  %v9417_v12 = vld [vmem:[%s20025_s1 + $0x5d8] sm:$0xf0] }
 0x1bb   :  { %3156 = vmatpush.bf16.msrb.mxu0 %v9340_v20  ;;  %v9420_v15 = vor.u32 %v12602_v11, %v9417_v12  ;;  %v12634_v20 = vld [vmem:[%s20025_s1 + $0x99c] sm:$0xf]  ;;  %v9623_v12 = vld [vmem:[%s20025_s1 + $0xc18] sm:$0xf] }
 0x1bc   :  { %3088 = vmatpush.bf16.msrb.mxu3 %v9684_v24  ;;  %v9465_v24 = vld [vmem:[%s20025_s1 + $0x758] sm:$0xf0] }
 0x1bd   :  { %v9468_v17 = vor.u32 %v12614_v23, %v9465_v24  ;;  %v9545_v25 = vld [vmem:[%s20025_s1 + $0x9d8] sm:$0xf0] }
 0x1be   :  { %3132 = vmatpush.bf16.msra.mxu2 %v9528_v54  ;;  %3120 = vmatpush.bf16.msra.mxu1 %v9368_v6  ;;  %v1934_v51 = vpop.f32.mrf.mxu2  ;;  %v9720_v54 = vor.u32 %v12680_v7, %v9719_v42  ;;  %v9580_v6 = vor.u32 %v12642_v49, %v9577_v56  ;;  %v12598_v30 = vld [vmem:[%s20025_s1 + $0x51c] sm:$0xf]  ;;  %v9548_v39 = vor.u32 %v12634_v20, %v9545_v25  ;;  %v12715_v25 = vld [vmem:[%s20027_s3 + $0x4ec] sm:$0xf0] }
 0x1bf   :  { %3157 = vmatpush.bf16.msrb.mxu0 %v9324_v36  ;;  %v15646_v63 = vadd.f32 %v1934_v51, %v15386_v34  ;;  %v9292_v34 = vor.u32 %v12570_v4, %v9289_v5  ;;  %v9257_v33 = vld [vmem:[%s20025_s1 + $0xd8] sm:$0xf0] }
 0x1c0   :  { %3089 = vmatpush.bf16.msrb.mxu3 %v9668_v41  ;;  %v9449_v41 = vld [vmem:[%s20025_s1 + $0x6d8] sm:$0xf0] }
 0x1c1   :  { %3121 = vmatmul.bf16.vlgmr.msra.gmra.mxu1 %v13657_v0  ;;  %v9452_v43 = vor.u32 %v12610_v40, %v9449_v41  ;;  %v12630_v40 = vld [vmem:[%s20025_s1 + $0x91c] sm:$0xf]  ;;  %v9672_v41 = vor.u32 %v12668_v35, %v9671_v18 }
 0x1c2   :  { %3169 = vmatpush.bf16.msrb.mxu1 %v9484_v10  ;;  %3133 = vmatpush.bf16.msra.mxu2 %v9512_v13  ;;  %v9561_v10 = vld [vmem:[%s20025_s1 + $0xa58] sm:$0xf0]  ;;  %v9687_v13 = vld [vmem:[%s20025_s1 + $0xe18] sm:$0xf] }
 0x1c3   :  { %3158 = vmatpush.bf16.msrb.mxu0 %v9308_v50  ;;  %v9564_v19 = vor.u32 %v12638_v8, %v9561_v10  ;;  %v9688_v24 = vor.u32 %v12672_v14, %v9687_v13  ;;  %v9529_v42 = vld [vmem:[%s20025_s1 + $0x958] sm:$0xf0]  ;;  %v12656_v13 = vld [vmem:[%s20025_s1 + $0xc54] sm:$0xf0] }
 0x1c4   :  { %3090 = vmatpush.bf16.msrb.mxu3 %v9652_v62  ;;  %v15643_v62 = vpop.f32.mrf.mxu1  ;;  %v12594_v7 = vld [vmem:[%s20025_s1 + $0x49c] sm:$0xf]  ;;  %v9624_v18 = vor.u32 %v12656_v13, %v9623_v12 }
 0x1c5   :  { %v12558_v49 = vld [vmem:[%s20025_s1 + $0x1c] sm:$0xf] }
 0x1c6   :  { %3170 = vmatpush.bf16.msrb.mxu1 %v9468_v17  ;;  %3134 = vmatpush.bf16.msra.mxu2 %v9496_v26  ;;  %v15689_v23 = vpop.f32.mrf.mxu2  ;;  %v9401_v17 = vld [vmem:[%s20025_s1 + $0x558] sm:$0xf0]  ;;  %v2018_v26 = vpop.f32.mrf.mxu0 }
 0x1c7   :  { %3159 = vmatpush.bf16.msrb.mxu0 %v9292_v34  ;;  %v9241_v50 = vld [vmem:[%s20025_s1 + $0x58] sm:$0xf0]  ;;  %v9639_v34 = vld [vmem:[%s20025_s1 + $0xc98] sm:$0xf] }
 0x1c8   :  { %3091 = vmatpush.bf16.msrb.mxu3 %v9636_v16  ;;  %v12566_v16 = vld [vmem:[%s20025_s1 + $0x11c] sm:$0xf]  ;;  %v9244_v32 = vor.u32 %v12558_v49, %v9241_v50 }
 0x1c9   :  { %3135 = vmatmul.bf16.vlgmr.msra.gmra.mxu2 %v13636_v55  ;;  %v9276_v22 = vor.u32 %v12566_v16, %v9273_v52  ;;  %v12626_v56 = vld [vmem:[%s20025_s1 + $0x89c] sm:$0xf] }
 0x1ca   :  { %3183 = vmatpush.bf16.msrb.mxu2 %v9612_v29  ;;  %3171 = vmatpush.bf16.msrb.mxu1 %v9452_v43  ;;  %v12562_v29 = vld [vmem:[%s20025_s1 + $0x9c] sm:$0xf] }
 0x1cb   :  { %3160 = vmatpush.bf16.msrb.mxu0 %v9276_v22  ;;  %v9385_v43 = vld [vmem:[%s20025_s1 + $0x4d8] sm:$0xf0] }
 0x1cc   :  { %3092 = vmatpush.bf16.msrb.mxu3 %v9620_v28  ;;  %v9404_v28 = vor.u32 %v12598_v30, %v9401_v17  ;;  %v9388_v46 = vor.u32 %v12594_v7, %v9385_v43  ;;  %v9369_v4 = vld [vmem:[%s20025_s1 + $0x458] sm:$0xf0]  ;;  %v9839_v17 = vld [vmem:[%s20027_s3 + $0x4c0] sm:$0xf] }
 0x1cd   :  { %v2032_v27 = vpop.f32.mrf.mxu1  ;;  %v12622_v11 = vld [vmem:[%s20025_s1 + $0x81c] sm:$0xf] }
 0x1ce   :  { %3184 = vmatpush.bf16.msrb.mxu2 %v9596_v47  ;;  %3172 = vmatpush.bf16.msrb.mxu1 %v9436_v2  ;;  %v15709_v36 = vadd.f32 %v2032_v27, %v2018_v26  ;;  %v1990_v57 = vpop.f32.mrf.mxu2  ;;  %v9513_v2 = vld [vmem:[%s20025_s1 + $0x8d8] sm:$0xf0]  ;;  %v12711_v26 = vld [vmem:[%s20027_s3 + $0x4cc] sm:$0xf0] }
 0x1cf   :  { %3093 = vmatmul.bf16.vlgmr.msrb.gmra.mxu3 %v13649_v60  ;;  %v15751_v5 = vadd.f32 %v1990_v57, %v15491_v31  ;;  %v9497_v31 = vld [vmem:[%s20025_s1 + $0x858] sm:$0xf0] }
 0x1d0   :  { %3141 = vmatpush.bf16.msra.mxu3 %v9736_v38  ;;  %v9260_v38 = vor.u32 %v12562_v29, %v9257_v33  ;;  %v9737_v16 = vld [vmem:[%s20025_s1 + $0xfd8] sm:$0xf0]  ;;  %v9500_v52 = vor.u32 %v12622_v11, %v9497_v31  ;;  %v9775_v11 = vld [vmem:[%s20027_s3 + $0x440] sm:$0xf]  ;;  %v12695_v31 = vld [vmem:[%s20027_s3 + $0x44c] sm:$0xf0] }
 0x1d1   :  { %v12678_v20 = vld [vmem:[%s20025_s1 + $0xf1c] sm:$0xf]  ;;  %v9776_v13 = vor.u32 %v12695_v31, %v9775_v11  ;;  %v9903_v11 = vld [vmem:[%s20027_s3 + $0x540] sm:$0xf]  ;;  %v12727_v31 = vld [vmem:[%s20027_s3 + $0x54c] sm:$0xf0] }
 0x1d2   :  { %3185 = vmatpush.bf16.msrb.mxu2 %v9580_v6  ;;  %3173 = vmatpush.bf16.msrb.mxu1 %v9420_v15  ;;  %v1892_v47 = vpop.f32.mrf.mxu3  ;;  %v12660_v6 = vld [vmem:[%s20025_s1 + $0xcd4] sm:$0xf0]  ;;  %v12682_v15 = vld [vmem:[%s20025_s1 + $0xf9c] sm:$0xf] }
 0x1d3   :  { %3161 = vmatpush.bf16.msrb.mxu0 %v9260_v38  ;;  %v15736_v51 = vadd.f32 %v1892_v47, %v15518_v48  ;;  %v12590_v48 = vld [vmem:[%s20025_s1 + $0x41c] sm:$0xf]  ;;  %v9640_v10 = vor.u32 %v12660_v6, %v9639_v34  ;;  %v9823_v38 = vld [vmem:[%s20027_s3 + $0x4a0] sm:$0xf] }
 0x1d4   :  { %3142 = vmatpush.bf16.msra.mxu3 %v9720_v54  ;;  %v9532_v54 = vor.u32 %v12630_v40, %v9529_v42  ;;  %v9372_v8 = vor.u32 %v12590_v48, %v9369_v4  ;;  %v9721_v22 = vld [vmem:[%s20025_s1 + $0xf58] sm:$0xf0] }
 0x1d5   :  { %v9724_v27 = vor.u32 %v12678_v20, %v9721_v22  ;;  %v12674_v35 = vld [vmem:[%s20025_s1 + $0xe9c] sm:$0xf]  ;;  %v9743_v20 = vld [vmem:[%s20027_s3 + $0x400] sm:$0xf]  ;;  %v12687_v22 = vld [vmem:[%s20027_s3 + $0x40c] sm:$0xf0] }
 0x1d6   :  { %3186 = vmatpush.bf16.msrb.mxu2 %v9564_v19  ;;  %3174 = vmatpush.bf16.msrb.mxu1 %v9404_v28  ;;  %v9740_v19 = vor.u32 %v12682_v15, %v9737_v16  ;;  %v9840_v28 = vor.u32 %v12711_v26, %v9839_v17  ;;  %v9705_v33 = vld [vmem:[%s20025_s1 + $0xed8] sm:$0xf0]  ;;  %v15828_v45 = vpop.f32.mrf.mxu2  ;;  %v12713_v17 = vld [vmem:[%s20027_s3 + $0x4e4] sm:$0xf]  ;;  %v9857_v26 = vld [vmem:[%s20027_s3 + $0x4f0] sm:$0xf0] }
 0x1d7   :  { %3162 = vmatpush.bf16.msrb.mxu0 %v9244_v32  ;;  %v12670_v42 = vld [vmem:[%s20025_s1 + $0xe1c] sm:$0xf] }
 0x1d8   :  { %3143 = vmatpush.bf16.msra.mxu3 %v9704_v9  ;;  %v9516_v9 = vor.u32 %v12626_v56, %v9513_v2  ;;  %v9689_v43 = vld [vmem:[%s20025_s1 + $0xe58] sm:$0xf0]  ;;  %v12699_v2 = vld [vmem:[%s20027_s3 + $0x46c] sm:$0xf0] }
 0x1d9   :  { %v12666_v50 = vld [vmem:[%s20025_s1 + $0xd9c] sm:$0xf] }
 0x1da   :  { %3187 = vmatpush.bf16.msrb.mxu2 %v9548_v39  ;;  %3175 = vmatpush.bf16.msrb.mxu1 %v9388_v46  ;;  %v15772_v14 = vpop.f32.mrf.mxu3  ;;  %v12707_v39 = vld [vmem:[%s20027_s3 + $0x4ac] sm:$0xf0]  ;;  %v9692_v46 = vor.u32 %v12670_v42, %v9689_v43  ;;  %v12662_v32 = vld [vmem:[%s20025_s1 + $0xd1c] sm:$0xf]  ;;  %v9951_v42 = vld [vmem:[%s20027_s3 + $0x5a0] sm:$0xf] }
 0x1db   :  { %3163 = vmatmul.bf16.vlgmr.msrb.gmra.mxu0 %v13647_v59  ;;  %v9824_v7 = vor.u32 %v12707_v39, %v9823_v38  ;;  %v9657_v57 = vld [vmem:[%s20025_s1 + $0xd58] sm:$0xf0]  ;;  %v9841_v38 = vld [vmem:[%s20027_s3 + $0x4d0] sm:$0xf0]  ;;  %v12705_v43 = vld [vmem:[%s20027_s3 + $0x4a4] sm:$0xf] }
 0x1dc   :  { %3144 = vmatpush.bf16.msra.mxu3 %v9688_v24  ;;  %v9855_v24 = vld [vmem:[%s20027_s3 + $0x4e0] sm:$0xf]  ;;  %v9660_v34 = vor.u32 %v12662_v32, %v9657_v57  ;;  %v12658_v6 = vld [vmem:[%s20025_s1 + $0xc9c] sm:$0xf] }
 0x1dd   :  { %v9856_v30 = vor.u32 %v12715_v25, %v9855_v24  ;;  %v12654_v15 = vld [vmem:[%s20025_s1 + $0xc1c] sm:$0xf]  ;;  %v9983_v24 = vld [vmem:[%s20027_s3 + $0x5e0] sm:$0xf]  ;;  %v9744_v25 = vor.u32 %v12687_v22, %v9743_v20  ;;  %v9761_v22 = vld [vmem:[%s20027_s3 + $0x430] sm:$0xf0] }
 0x1de   :  { %3188 = vmatpush.bf16.msrb.mxu2 %v9532_v54  ;;  %3176 = vmatpush.bf16.msrb.mxu1 %v9372_v8  ;;  %v9673_v54 = vld [vmem:[%s20025_s1 + $0xdd8] sm:$0xf0] }
 0x1df   :  { %3871 = vmatpush.bf16.msra.mxu0 %v9856_v30  ;;  %v9676_v56 = vor.u32 %v12666_v50, %v9673_v54  ;;  %v9625_v16 = vld [vmem:[%s20025_s1 + $0xc58] sm:$0xf0]  ;;  %v12747_v30 = vld [vmem:[%s20027_s3 + $0x5ec] sm:$0xf0]  ;;  %v12701_v54 = vld [vmem:[%s20027_s3 + $0x484] sm:$0xf] }
 0x1e0   :  { %3145 = vmatpush.bf16.msra.mxu3 %v9672_v41  ;;  %v9708_v41 = vor.u32 %v12674_v35, %v9705_v33  ;;  %v9860_v35 = vor.u32 %v12713_v17, %v9857_v26  ;;  %v12709_v33 = vld [vmem:[%s20027_s3 + $0x4c4] sm:$0xf]  ;;  %v12735_v50 = vld [vmem:[%s20027_s3 + $0x58c] sm:$0xf0]  ;;  %v15987_v26 = vpop.f32.mrf.mxu1 }
 0x1e1   :  { %3177 = vmatmul.bf16.vlgmr.msrb.gmra.mxu1 %v13657_v0  ;;  %v12685_v17 = vld [vmem:[%s20027_s3 + $0x404] sm:$0xf] }
 0x1e2   :  { %3189 = vmatpush.bf16.msrb.mxu2 %v9516_v9  ;;  %v1948_v29 = vpop.f32.mrf.mxu3 }
 0x1e3   :  { %v15813_v40 = vadd.f32 %v1948_v29, %v15646_v63  ;;  %3872 = vmatpush.bf16.msra.mxu0 %v9840_v28  ;;  %v12703_v63 = vld [vmem:[%s20027_s3 + $0x48c] sm:$0xf0]  ;;  %v9967_v28 = vld [vmem:[%s20027_s3 + $0x5c0] sm:$0xf] }
 0x1e4   :  { %3146 = vmatpush.bf16.msra.mxu3 %v9656_v1  ;;  %v9808_v47 = vor.u32 %v12703_v63, %v9807_v44  ;;  %v9791_v1 = vld [vmem:[%s20027_s3 + $0x460] sm:$0xf]  ;;  %v12743_v29 = vld [vmem:[%s20027_s3 + $0x5cc] sm:$0xf0]  ;;  %v9825_v44 = vld [vmem:[%s20027_s3 + $0x4b0] sm:$0xf0] }
 0x1e5   :  { %v9792_v48 = vor.u32 %v12699_v2, %v9791_v1  ;;  %v9968_v39 = vor.u32 %v12743_v29, %v9967_v28  ;;  %v9919_v2 = vld [vmem:[%s20027_s3 + $0x560] sm:$0xf]  ;;  %v12779_v29 = vld [vmem:[%s20027_s3 + $0x6ec] sm:$0xf0] }
 0x1e6   :  { %3190 = vmatpush.bf16.msrb.mxu2 %v9500_v52  ;;  %v9759_v52 = vld [vmem:[%s20027_s3 + $0x420] sm:$0xf] }
 0x1e7   :  { %3873 = vmatpush.bf16.msra.mxu0 %v9824_v7  ;;  %v12739_v7 = vld [vmem:[%s20027_s3 + $0x5ac] sm:$0xf0]  ;;  %v10111_v28 = vld [vmem:[%s20027_s3 + $0x6e0] sm:$0xf] }
 0x1e8   :  { %3147 = vmatpush.bf16.msra.mxu3 %v9640_v10  ;;  %v9641_v10 = vld [vmem:[%s20025_s1 + $0xcd8] sm:$0xf0]  ;;  %v9952_v63 = vor.u32 %v12739_v7, %v9951_v42 }
 0x1e9   :  { %3191 = vmatmul.bf16.vlgmr.msrb.gmra.mxu2 %v13636_v55 }
 0x1ea   :  { %v15830_v49 = vpop.f32.mrf.mxu3 }
 0x1eb   :  { %3874 = vmatpush.bf16.msra.mxu0 %v9808_v47  ;;  %v9935_v47 = vld [vmem:[%s20027_s3 + $0x580] sm:$0xf] }
 0x1ec   :  { %3148 = vmatpush.bf16.msra.mxu3 %v9624_v18  ;;  %v2046_v4 = vpop.f32.mrf.mxu2  ;;  %v9936_v32 = vor.u32 %v12735_v50, %v9935_v47  ;;  %v16018_v47 = vld [vmem:[%s20026_s2 + $0x4] sm:$0xf] }
 0x1ed   :  { %v15854_v8 = vadd.f32 %v2046_v4, %v15709_v36  ;;  %v9644_v36 = vor.u32 %v12658_v6, %v9641_v10  ;;  %v12697_v4 = vld [vmem:[%s20027_s3 + $0x464] sm:$0xf]  ;;  %v9793_v6 = vld [vmem:[%s20027_s3 + $0x470] sm:$0xf0] }
 0x1ef   :  { %3149 = vmatmul.bf16.vlgmr.msra.gmra.mxu3 %v13649_v60  ;;  %3875 = vmatpush.bf16.msra.mxu0 %v9792_v48  ;;  %v12731_v48 = vld [vmem:[%s20027_s3 + $0x56c] sm:$0xf0] }
 0x1f0   :  { %3197 = vmatpush.bf16.msrb.mxu3 %v9740_v19  ;;  %v9628_v19 = vor.u32 %v12654_v15, %v9625_v16  ;;  %v9904_v15 = vor.u32 %v12727_v31, %v9903_v11  ;;  %v9777_v16 = vld [vmem:[%s20027_s3 + $0x450] sm:$0xf0] }
 0x1f2   :  { %v2004_v9 = vpop.f32.mrf.mxu3 }
 0x1f3   :  { %v15866_v12 = vadd.f32 %v2004_v9, %v15751_v5  ;;  %3876 = vmatpush.bf16.msra.mxu0 %v9776_v13  ;;  %v12691_v5 = vld [vmem:[%s20027_s3 + $0x42c] sm:$0xf0]  ;;  %v9796_v9 = vor.u32 %v12697_v4, %v9793_v6  ;;  %v12693_v13 = vld [vmem:[%s20027_s3 + $0x444] sm:$0xf]  ;;  %v9953_v6 = vld [vmem:[%s20027_s3 + $0x5b0] sm:$0xf0] }
 0x1f4   :  { %3198 = vmatpush.bf16.msrb.mxu3 %v9724_v27  ;;  %v9760_v18 = vor.u32 %v12691_v5, %v9759_v52  ;;  %v9984_v27 = vor.u32 %v12747_v30, %v9983_v24  ;;  %v9780_v52 = vor.u32 %v12693_v13, %v9777_v16  ;;  %v9887_v5 = vld [vmem:[%s20027_s3 + $0x520] sm:$0xf]  ;;  %v12719_v30 = vld [vmem:[%s20027_s3 + $0x50c] sm:$0xf0]  ;;  %v16004_v7 = vpop.f32.mrf.mxu2  ;;  %v12733_v16 = vld [vmem:[%s20027_s3 + $0x584] sm:$0xf] }
 0x1f5   :  { %v10063_v13 = vld [vmem:[%s20027_s3 + $0x680] sm:$0xf] }
 0x1f6   :  { %3885 = vmatpush.bf16.msra.mxu1 %v9984_v27 }
 0x1f7   :  { %3877 = vmatpush.bf16.msra.mxu0 %v9760_v18  ;;  %v12723_v18 = vld [vmem:[%s20027_s3 + $0x52c] sm:$0xf0] }
 0x1f8   :  { %3199 = vmatpush.bf16.msrb.mxu3 %v9708_v41  ;;  %v9844_v41 = vor.u32 %v12709_v33, %v9841_v38  ;;  %v9888_v20 = vor.u32 %v12723_v18, %v9887_v5  ;;  %v10112_v38 = vor.u32 %v12779_v29, %v10111_v28  ;;  %v9937_v5 = vld [vmem:[%s20027_s3 + $0x590] sm:$0xf0] }
 0x1fa   :  { %3886 = vmatpush.bf16.msra.mxu1 %v9968_v39  ;;  %v15935_v1 = vpop.f32.mrf.mxu3  ;;  %v12745_v39 = vld [vmem:[%s20027_s3 + $0x5e4] sm:$0xf]  ;;  %3899 = vmatpush.bf16.msra.mxu2 %v10112_v38  ;;  %v10031_v38 = vld [vmem:[%s20027_s3 + $0x640] sm:$0xf] }
 0x1fb   :  { %3878 = vmatpush.bf16.msra.mxu0 %v9744_v25  ;;  %v9871_v25 = vld [vmem:[%s20027_s3 + $0x500] sm:$0xf] }
 0x1fc   :  { %3200 = vmatpush.bf16.msrb.mxu3 %v9692_v46  ;;  %v9828_v46 = vor.u32 %v12705_v43, %v9825_v44  ;;  %v9872_v27 = vor.u32 %v12719_v30, %v9871_v25  ;;  %v10095_v44 = vld [vmem:[%s20027_s3 + $0x6c0] sm:$0xf]  ;;  %v12763_v25 = vld [vmem:[%s20027_s3 + $0x66c] sm:$0xf0]  ;;  %v12729_v30 = vld [vmem:[%s20027_s3 + $0x564] sm:$0xf] }
 0x1fe   :  { %3887 = vmatpush.bf16.msra.mxu1 %v9952_v63  ;;  %v12775_v63 = vld [vmem:[%s20027_s3 + $0x6cc] sm:$0xf0] }
 0x1ff   :  { %3927 = vmatpush.bf16.msrb.mxu0 %v9860_v35  ;;  %v9745_v35 = vld [vmem:[%s20027_s3 + $0x410] sm:$0xf0]  ;;  %v10096_v50 = vor.u32 %v12775_v63, %v10095_v44 }
 0x200   :  { %3201 = vmatpush.bf16.msrb.mxu3 %v9676_v56  ;;  %v9809_v56 = vld [vmem:[%s20027_s3 + $0x490] sm:$0xf0]  ;;  %v9748_v33 = vor.u32 %v12685_v17, %v9745_v35 }
 0x201   :  { %v9812_v57 = vor.u32 %v12701_v54, %v9809_v56  ;;  %v9969_v54 = vld [vmem:[%s20027_s3 + $0x5d0] sm:$0xf0]  ;;  %3900 = vmatpush.bf16.msra.mxu2 %v10096_v50 }
 0x202   :  { %3888 = vmatpush.bf16.msra.mxu1 %v9936_v32  ;;  %v2339_v32 = vperm.slane %v16018_v47, 0  ;;  %v9921_v35 = vld [vmem:[%s20027_s3 + $0x570] sm:$0xf0] }
 0x203   :  { %3928 = vmatpush.bf16.msrb.mxu0 %v9844_v41  ;;  %v9985_v41 = vld [vmem:[%s20027_s3 + $0x5f0] sm:$0xf0]  ;;  %v9924_v28 = vor.u32 %v12729_v30, %v9921_v35  ;;  %v12777_v30 = vld [vmem:[%s20027_s3 + $0x6e4] sm:$0xf]  ;;  %v9847_v35 = vld [vmem:[%s20027_s3 + $0x4c8] sm:$0xf] }
 0x204   :  { %3202 = vmatpush.bf16.msrb.mxu3 %v9660_v34  ;;  %v9920_v34 = vor.u32 %v12731_v48, %v9919_v2  ;;  %v9988_v42 = vor.u32 %v12745_v39, %v9985_v41  ;;  %v10079_v2 = vld [vmem:[%s20027_s3 + $0x6a0] sm:$0xf]  ;;  %v12771_v48 = vld [vmem:[%s20027_s3 + $0x6ac] sm:$0xf0]  ;;  %v12725_v41 = vld [vmem:[%s20027_s3 + $0x544] sm:$0xf] }
 0x205   :  { %v10080_v4 = vor.u32 %v12771_v48, %v10079_v2  ;;  %v12759_v39 = vld [vmem:[%s20027_s3 + $0x64c] sm:$0xf0]  ;;  %v9905_v44 = vld [vmem:[%s20027_s3 + $0x550] sm:$0xf0] }
 0x206   :  { %3889 = vmatpush.bf16.msra.mxu1 %v9920_v34  ;;  %v12737_v34 = vld [vmem:[%s20027_s3 + $0x5a4] sm:$0xf]  ;;  %v9889_v48 = vld [vmem:[%s20027_s3 + $0x530] sm:$0xf0] }
 0x207   :  { %3929 = vmatpush.bf16.msrb.mxu0 %v9828_v46  ;;  %v12741_v46 = vld [vmem:[%s20027_s3 + $0x5c4] sm:$0xf]  ;;  %3901 = vmatpush.bf16.msra.mxu2 %v10080_v4 }
 0x208   :  { %3203 = vmatpush.bf16.msrb.mxu3 %v9644_v36  ;;  %v9972_v56 = vor.u32 %v12741_v46, %v9969_v54  ;;  %v9908_v46 = vor.u32 %v12725_v41, %v9905_v44  ;;  %v12773_v41 = vld [vmem:[%s20027_s3 + $0x6c4] sm:$0xf] }
 0x20a   :  { %3890 = vmatpush.bf16.msra.mxu1 %v9904_v15  ;;  %v12767_v15 = vld [vmem:[%s20027_s3 + $0x68c] sm:$0xf0] }
 0x20b   :  { %3930 = vmatpush.bf16.msrb.mxu0 %v9812_v57  ;;  %v3010_v57 = vpop.f32.mrf.mxu1 }
 0x20c   :  { %3204 = vmatpush.bf16.msrb.mxu3 %v9628_v19  ;;  %v15973_v19 = vpop.f32.mrf.mxu0  ;;  %v3024_v31 = vpop.f32.mrf.mxu2 }
 0x20e   :  { %3891 = vmatpush.bf16.msra.mxu1 %v9888_v20 }
 0x20f   :  { %3205 = vmatmul.bf16.vlgmr.msrb.gmra.mxu3 %v13649_v60  ;;  %3931 = vmatpush.bf16.msrb.mxu0 %v9796_v9  ;;  %v9956_v9 = vor.u32 %v12737_v34, %v9953_v6 }
 0x212   :  { %v2060_v10 = vpop.f32.mrf.mxu3  ;;  %3892 = vmatpush.bf16.msra.mxu1 %v9872_v27 }
 0x213   :  { %v15959_v36 = vadd.f32 %v2060_v10, %v15854_v8  ;;  %3932 = vmatpush.bf16.msrb.mxu0 %v9780_v52  ;;  %v12689_v8 = vld [vmem:[%s20027_s3 + $0x424] sm:$0xf]  ;;  %v10064_v52 = vor.u32 %v12767_v15, %v10063_v13  ;;  %v3012_v17 = vpop.f32.mrf.mxu1  ;;  %v9999_v13 = vld [vmem:[%s20027_s3 + $0x600] sm:$0xf]  ;;  %v12751_v15 = vld [vmem:[%s20027_s3 + $0x60c] sm:$0xf0] }
 0x214   :  { %v9764_v24 = vor.u32 %v12689_v8, %v9761_v22  ;;  %v2996_v43 = vpop.f32.mrf.mxu0  ;;  %v9940_v8 = vor.u32 %v12733_v16, %v9937_v5  ;;  %v3026_v63 = vpop.f32.mrf.mxu2  ;;  %v12717_v16 = vld [vmem:[%s20027_s3 + $0x504] sm:$0xf]  ;;  %v9873_v5 = vld [vmem:[%s20027_s3 + $0x510] sm:$0xf0] }
 0x215   :  { %v2997_v11 = vadd.f32 %v2996_v43, %v2339_v32  ;;  %3902 = vmatpush.bf16.msra.mxu2 %v10064_v52  ;;  %v10032_v43 = vor.u32 %v12759_v39, %v10031_v38  ;;  %v10000_v52 = vor.u32 %v12751_v15, %v9999_v13  ;;  %v10223_v38 = vld [vmem:[%s20027_s3 + $0x7c0] sm:$0xf]  ;;  %v12807_v39 = vld [vmem:[%s20027_s3 + $0x7cc] sm:$0xf0] }
 0x216   :  { %3941 = vmatpush.bf16.msrb.mxu1 %v9988_v42  ;;  %v10191_v15 = vld [vmem:[%s20027_s3 + $0x780] sm:$0xf] }
 0x217   :  { %3933 = vmatpush.bf16.msrb.mxu0 %v9764_v24  ;;  %v3011_v20 = vadd.f32 %v3010_v57, %v2997_v11  ;;  %v10047_v24 = vld [vmem:[%s20027_s3 + $0x660] sm:$0xf]  ;;  %v12721_v57 = vld [vmem:[%s20027_s3 + $0x524] sm:$0xf]  ;;  %v12716_v11 = vld [vmem:[%s20027_s3 + $0x4f4] sm:$0xf0] }
 0x218   :  { %v10048_v27 = vor.u32 %v12763_v25, %v10047_v24  ;;  %v9892_v4 = vor.u32 %v12721_v57, %v9889_v48  ;;  %v12803_v57 = vld [vmem:[%s20027_s3 + $0x7ac] sm:$0xf0]  ;;  %v12769_v48 = vld [vmem:[%s20027_s3 + $0x6a4] sm:$0xf] }
 0x219   :  { %v3025_v29 = vadd.f32 %v3024_v31, %v3011_v20  ;;  %v10239_v20 = vld [vmem:[%s20027_s3 + $0x7e0] sm:$0xf] }
 0x21a   :  { %3942 = vmatpush.bf16.msrb.mxu1 %v9972_v56  ;;  %v16036_v10 = vpop.f32.mrf.mxu3  ;;  %3903 = vmatpush.bf16.msra.mxu2 %v10048_v27  ;;  %v10015_v56 = vld [vmem:[%s20027_s3 + $0x620] sm:$0xf] }
 0x21b   :  { %3934 = vmatpush.bf16.msrb.mxu0 %v9748_v33  ;;  %20034 = vst [vmem:[#allocation6_spill] sm:$0xff] %v16036_v10  ;;  %v11001_v10 = vld [vmem:[%s20027_s3 + $0x9d8] sm:$0xf0] }
 0x21c   :  { %v2998_v18 = vpop.f32.mrf.mxu0 }
 0x21d   :  { %v2999_v22 = vadd.f32 %v2998_v18, %v2339_v32  ;;  %v12755_v32 = vld [vmem:[%s20027_s3 + $0x62c] sm:$0xf0] }
 0x21e   :  { %3943 = vmatpush.bf16.msrb.mxu1 %v9956_v9  ;;  %3904 = vmatpush.bf16.msra.mxu2 %v10032_v43  ;;  %v10016_v2 = vor.u32 %v12755_v32, %v10015_v56  ;;  %v9863_v9 = vld [vmem:[%s20027_s3 + $0x4e8] sm:$0xf]  ;;  %v10097_v43 = vld [vmem:[%s20027_s3 + $0x6d0] sm:$0xf0]  ;;  %v3066_v56 = vpop.f32.mrf.mxu1  ;;  %v10207_v32 = vld [vmem:[%s20027_s3 + $0x7a0] sm:$0xf] }
 0x21f   :  { %v3013_v42 = vadd.f32 %v3012_v17, %v2999_v22  ;;  %v12811_v22 = vld [vmem:[%s20027_s3 + $0x7ec] sm:$0xf0]  ;;  %v9864_v24 = vor.u32 %v12716_v11, %v9863_v9  ;;  %v10113_v17 = vld [vmem:[%s20027_s3 + $0x6f0] sm:$0xf0]  ;;  %v9815_v9 = vld [vmem:[%s20027_s3 + $0x488] sm:$0xf] }
 0x220   :  { %v10240_v25 = vor.u32 %v12811_v22, %v10239_v20  ;;  %v12704_v11 = vld [vmem:[%s20027_s3 + $0x494] sm:$0xf0] }
 0x221   :  { %v3027_v54 = vadd.f32 %v3026_v63, %v3013_v42  ;;  %v10224_v42 = vor.u32 %v12807_v39, %v10223_v38  ;;  %v2340_v63 = vperm.slane %v16018_v47, 1  ;;  %v9816_v22 = vor.u32 %v12704_v11, %v9815_v9  ;;  %v10049_v39 = vld [vmem:[%s20027_s3 + $0x670] sm:$0xf0]  ;;  %v9767_v9 = vld [vmem:[%s20027_s3 + $0x428] sm:$0xf] }
 0x222   :  { %3944 = vmatpush.bf16.msrb.mxu1 %v9940_v8  ;;  %3905 = vmatpush.bf16.msra.mxu2 %v10016_v2  ;;  %v9876_v8 = vor.u32 %v12717_v16, %v9873_v5  ;;  %v10208_v2 = vor.u32 %v12803_v57, %v10207_v32  ;;  %v12799_v16 = vld [vmem:[%s20027_s3 + $0x78c] sm:$0xf0]  ;;  %v12692_v11 = vld [vmem:[%s20027_s3 + $0x434] sm:$0xf0] }
 0x223   :  { %3913 = vmatpush.bf16.msra.mxu3 %v10240_v25  ;;  %v10192_v5 = vor.u32 %v12799_v16, %v10191_v15  ;;  %v9799_v25 = vld [vmem:[%s20027_s3 + $0x468] sm:$0xf]  ;;  %v12787_v15 = vld [vmem:[%s20027_s3 + $0x72c] sm:$0xf0]  ;;  %v12753_v16 = vld [vmem:[%s20027_s3 + $0x624] sm:$0xf] }
 0x226   :  { %3945 = vmatpush.bf16.msrb.mxu1 %v9924_v28  ;;  %3906 = vmatpush.bf16.msra.mxu2 %v10000_v52  ;;  %v12712_v28 = vld [vmem:[%s20027_s3 + $0x4d4] sm:$0xf0]  ;;  %v12765_v52 = vld [vmem:[%s20027_s3 + $0x684] sm:$0xf] }
 0x227   :  { %v9848_v44 = vor.u32 %v12712_v28, %v9847_v35  ;;  %3914 = vmatpush.bf16.msra.mxu3 %v10224_v42  ;;  %v10175_v35 = vld [vmem:[%s20027_s3 + $0x760] sm:$0xf]  ;;  %v12795_v28 = vld [vmem:[%s20027_s3 + $0x76c] sm:$0xf0]  ;;  %v9783_v42 = vld [vmem:[%s20027_s3 + $0x448] sm:$0xf] }
 0x228   :  { %v10176_v38 = vor.u32 %v12795_v28, %v10175_v35  ;;  %v12714_v35 = vld [vmem:[%s20027_s3 + $0x4ec] sm:$0xf]  ;;  %v9865_v28 = vld [vmem:[%s20027_s3 + $0x4f8] sm:$0xf0] }
 0x22a   :  { %3946 = vmatpush.bf16.msrb.mxu1 %v9908_v46  ;;  %v9831_v46 = vld [vmem:[%s20027_s3 + $0x4a8] sm:$0xf] }
 0x22b   :  { %3915 = vmatpush.bf16.msra.mxu3 %v10208_v2  ;;  %v10033_v2 = vld [vmem:[%s20027_s3 + $0x650] sm:$0xf0] }
 0x22c   :  { %v3080_v13 = vpop.f32.mrf.mxu2 }
 0x22e   :  { %3947 = vmatpush.bf16.msrb.mxu1 %v9892_v4  ;;  %v10081_v4 = vld [vmem:[%s20027_s3 + $0x6b0] sm:$0xf0] }
 0x22f   :  { %3916 = vmatpush.bf16.msra.mxu3 %v10192_v5 }
 0x232   :  { %v3038_v33 = vpop.f32.mrf.mxu3  ;;  %3948 = vmatpush.bf16.msrb.mxu1 %v9876_v8 }
 0x233   :  { %v3039_v50 = vadd.f32 %v3038_v33, %v3025_v29  ;;  %v3052_v29 = vpop.f32.mrf.mxu0  ;;  %v10116_v33 = vor.u32 %v12777_v30, %v10113_v17  ;;  %v12700_v30 = vld [vmem:[%s20027_s3 + $0x474] sm:$0xf0]  ;;  %3917 = vmatpush.bf16.msra.mxu3 %v10176_v38  ;;  %v12783_v38 = vld [vmem:[%s20027_s3 + $0x70c] sm:$0xf0] }
 0x235   :  { %v3211_v34 = vmax.f32 %v3039_v50, 0.0  ;;  %3955 = vmatpush.bf16.msrb.mxu2 %v10116_v33  ;;  %v10100_v50 = vor.u32 %v12773_v41, %v10097_v43  ;;  %v3068_v33 = vpop.f32.mrf.mxu1  ;;  %v9800_v41 = vor.u32 %v12700_v30, %v9799_v25  ;;  %v12696_v43 = vld [vmem:[%s20027_s3 + $0x454] sm:$0xf0] }
 0x239   :  { %3956 = vmatpush.bf16.msrb.mxu2 %v10100_v50  ;;  %v10159_v50 = vld [vmem:[%s20027_s3 + $0x740] sm:$0xf] }
 0x23a   :  { %v3040_v6 = vpop.f32.mrf.mxu3 }
 0x23b   :  { %v3041_v31 = vadd.f32 %v3040_v6, %v3027_v54  ;;  %v12708_v54 = vld [vmem:[%s20027_s3 + $0x4b4] sm:$0xf0]  ;;  %v3054_v8 = vpop.f32.mrf.mxu0 }
 0x23c   :  { %v9832_v6 = vor.u32 %v12708_v54, %v9831_v46  ;;  %v3055_v17 = vadd.f32 %v3054_v8, %v2340_v63  ;;  %v12791_v54 = vld [vmem:[%s20027_s3 + $0x74c] sm:$0xf0]  ;;  %v9768_v8 = vor.u32 %v12692_v11, %v9767_v9  ;;  %v12805_v9 = vld [vmem:[%s20027_s3 + $0x7c4] sm:$0xf]  ;;  %v10225_v11 = vld [vmem:[%s20027_s3 + $0x7d0] sm:$0xf0] }
 0x23d   :  { %v3215_v18 = vmax.f32 %v3041_v31, 0.0  ;;  %v3053_v31 = vadd.f32 %v3052_v29, %v2340_v63  ;;  %v12761_v29 = vld [vmem:[%s20027_s3 + $0x664] sm:$0xf]  ;;  %v10160_v57 = vor.u32 %v12791_v54, %v10159_v50  ;;  %v9868_v50 = vor.u32 %v12714_v35, %v9865_v28  ;;  %v9975_v54 = vld [vmem:[%s20027_s3 + $0x5c8] sm:$0xf] }
 0x23e   :  { %v3069_v32 = vadd.f32 %v3068_v33, %v3055_v17  ;;  %v10127_v33 = vld [vmem:[%s20027_s3 + $0x700] sm:$0xf]  ;;  %v12736_v28 = vld [vmem:[%s20027_s3 + $0x594] sm:$0xf0] }
 0x23f   :  { %v16116_v27 = vpack.c.bf16 %v3215_v18, %v3211_v34  ;;  %v10084_v34 = vor.u32 %v12769_v48, %v10081_v4  ;;  %v10065_v18 = vld [vmem:[%s20027_s3 + $0x690] sm:$0xf0]  ;;  %v3082_v48 = vpop.f32.mrf.mxu2  ;;  %3918 = vmatpush.bf16.msra.mxu3 %v10160_v57 }
 0x240   :  { %v10068_v20 = vor.u32 %v12765_v52, %v10065_v18  ;;  %v9751_v52 = vld [vmem:[%s20027_s3 + $0x408] sm:$0xf]  ;;  %v10017_v18 = vld [vmem:[%s20027_s3 + $0x630] sm:$0xf0] }
 0x241   :  { %3879 = vmatmul.bf16.vlgmr.msra.gmra.mxu0 %v16116_v27  ;;  %3957 = vmatpush.bf16.msrb.mxu2 %v10084_v34  ;;  %v9784_v34 = vor.u32 %v12696_v43, %v9783_v42  ;;  %v10020_v25 = vor.u32 %v12753_v16, %v10017_v18  ;;  %v10001_v42 = vld [vmem:[%s20027_s3 + $0x610] sm:$0xf0]  ;;  %v12740_v16 = vld [vmem:[%s20027_s3 + $0x5b4] sm:$0xf0]  ;;  %v3122_v18 = vpop.f32.mrf.mxu1 }
 0x242   :  { %3983 = vmatpush.bf16.msra.mxu0 %v9864_v24  ;;  %v3067_v24 = vadd.f32 %v3066_v56, %v3053_v31  ;;  %v12757_v56 = vld [vmem:[%s20027_s3 + $0x644] sm:$0xf]  ;;  %v3083_v31 = vadd.f32 %v3082_v48, %v3069_v32  ;;  %v10241_v32 = vld [vmem:[%s20027_s3 + $0x7f0] sm:$0xf0]  ;;  %v12710_v48 = vld [vmem:[%s20027_s3 + $0x4cc] sm:$0xf] }
 0x243   :  { %v10036_v4 = vor.u32 %v12757_v56, %v10033_v2  ;;  %v12809_v56 = vld [vmem:[%s20027_s3 + $0x7e4] sm:$0xf]  ;;  %v12744_v2 = vld [vmem:[%s20027_s3 + $0x5d4] sm:$0xf0] }
 0x244   :  { %v3081_v63 = vadd.f32 %v3080_v13, %v3067_v24  ;;  %v10143_v13 = vld [vmem:[%s20027_s3 + $0x720] sm:$0xf]  ;;  %v12748_v24 = vld [vmem:[%s20027_s3 + $0x5f4] sm:$0xf0] }
 0x245   :  { %3958 = vmatpush.bf16.msrb.mxu2 %v10068_v20  ;;  %v10144_v5 = vor.u32 %v12787_v15, %v10143_v13  ;;  %v12688_v20 = vld [vmem:[%s20027_s3 + $0x414] sm:$0xf0]  ;;  %v9959_v15 = vld [vmem:[%s20027_s3 + $0x5a8] sm:$0xf] }
 0x246   :  { %3984 = vmatpush.bf16.msra.mxu0 %v9848_v44  ;;  %v10052_v44 = vor.u32 %v12761_v29, %v10049_v39  ;;  %v12749_v39 = vld [vmem:[%s20027_s3 + $0x604] sm:$0xf] }
 0x247   :  { %3919 = vmatpush.bf16.msra.mxu3 %v10144_v5  ;;  %v9833_v5 = vld [vmem:[%s20027_s3 + $0x4b8] sm:$0xf0] }
 0x249   :  { %3959 = vmatpush.bf16.msrb.mxu2 %v10052_v44  ;;  %v9752_v44 = vor.u32 %v12688_v20, %v9751_v52  ;;  %v12706_v52 = vld [vmem:[%s20027_s3 + $0x4ac] sm:$0xf]  ;;  %v2341_v20 = vperm.slane %v16018_v47, 2 }
 0x24a   :  { %3985 = vmatpush.bf16.msra.mxu0 %v9832_v6 }
 0x24c   :  { %v3136_v35 = vpop.f32.mrf.mxu2 }
 0x24d   :  { %3960 = vmatpush.bf16.msrb.mxu2 %v10036_v4  ;;  %v9849_v4 = vld [vmem:[%s20027_s3 + $0x4d8] sm:$0xf0] }
 0x24e   :  { %3986 = vmatpush.bf16.msra.mxu0 %v9816_v22  ;;  %v9991_v22 = vld [vmem:[%s20027_s3 + $0x5e8] sm:$0xf]  ;;  %v9852_v13 = vor.u32 %v12710_v48, %v9849_v4  ;;  %v3124_v4 = vpop.f32.mrf.mxu1 }
 0x251   :  { %3935 = vmatmul.bf16.vlgmr.msrb.gmra.mxu0 %v16116_v27  ;;  %3961 = vmatpush.bf16.msrb.mxu2 %v10020_v25  ;;  %v9960_v25 = vor.u32 %v12740_v16, %v9959_v15  ;;  %v12728_v15 = vld [vmem:[%s20027_s3 + $0x554] sm:$0xf0]  ;;  %v12694_v16 = vld [vmem:[%s20027_s3 + $0x44c] sm:$0xf] }
 0x252   :  { %v3094_v46 = vpop.f32.mrf.mxu3  ;;  %3987 = vmatpush.bf16.msra.mxu0 %v9800_v41  ;;  %v10128_v41 = vor.u32 %v12783_v38, %v10127_v33  ;;  %v9817_v33 = vld [vmem:[%s20027_s3 + $0x498] sm:$0xf0] }
 0x253   :  { %v3095_v6 = vadd.f32 %v3094_v46, %v3081_v63  ;;  %v10004_v63 = vor.u32 %v12749_v39, %v10001_v42  ;;  %v9992_v46 = vor.u32 %v12748_v24, %v9991_v22  ;;  %v12801_v22 = vld [vmem:[%s20027_s3 + $0x7a4] sm:$0xf]  ;;  %v10209_v24 = vld [vmem:[%s20027_s3 + $0x7b0] sm:$0xf0] }
 0x254   :  { %3920 = vmatpush.bf16.msra.mxu3 %v10128_v41  ;;  %v10212_v38 = vor.u32 %v12801_v22, %v10209_v24  ;;  %v12797_v41 = vld [vmem:[%s20027_s3 + $0x784] sm:$0xf]  ;;  %v10193_v42 = vld [vmem:[%s20027_s3 + $0x790] sm:$0xf0]  ;;  %v3138_v24 = vpop.f32.mrf.mxu2 }
 0x255   :  { %v3212_v30 = vmax.f32 %v3095_v6, 0.0  ;;  %v10244_v6 = vor.u32 %v12809_v56, %v10241_v32  ;;  %3962 = vmatpush.bf16.msrb.mxu2 %v10004_v63  ;;  %v9801_v56 = vld [vmem:[%s20027_s3 + $0x478] sm:$0xf0]  ;;  %v10196_v32 = vor.u32 %v12797_v41, %v10193_v42  ;;  %v10161_v22 = vld [vmem:[%s20027_s3 + $0x750] sm:$0xf0] }
 0x256   :  { %3988 = vmatpush.bf16.msra.mxu0 %v9784_v34  ;;  %v3108_v34 = vpop.f32.mrf.mxu0  ;;  %v12785_v41 = vld [vmem:[%s20027_s3 + $0x724] sm:$0xf]  ;;  %v10145_v42 = vld [vmem:[%s20027_s3 + $0x730] sm:$0xf0] }
 0x257   :  { %v3109_v39 = vadd.f32 %v3108_v34, %v2341_v20  ;;  %v12793_v34 = vld [vmem:[%s20027_s3 + $0x764] sm:$0xf] }
 0x258   :  { %3969 = vmatpush.bf16.msrb.mxu3 %v10244_v6  ;;  %v10177_v6 = vld [vmem:[%s20027_s3 + $0x770] sm:$0xf0] }
 0x25a   :  { %v3096_v17 = vpop.f32.mrf.mxu3  ;;  %3989 = vmatpush.bf16.msra.mxu0 %v9768_v8  ;;  %v10228_v8 = vor.u32 %v12805_v9, %v10225_v11 }
 0x25b   :  { %v3097_v29 = vadd.f32 %v3096_v17, %v3083_v31  ;;  %v9976_v31 = vor.u32 %v12744_v2, %v9975_v54  ;;  %v9943_v17 = vld [vmem:[%s20027_s3 + $0x588] sm:$0xf]  ;;  %v12698_v54 = vld [vmem:[%s20027_s3 + $0x46c] sm:$0xf]  ;;  %v3123_v2 = vadd.f32 %v3122_v18, %v3109_v39 }
 0x25c   :  { %3970 = vmatpush.bf16.msrb.mxu3 %v10228_v8  ;;  %v9804_v11 = vor.u32 %v12698_v54, %v9801_v56  ;;  %v12686_v54 = vld [vmem:[%s20027_s3 + $0x40c] sm:$0xf]  ;;  %v9753_v56 = vld [vmem:[%s20027_s3 + $0x418] sm:$0xf0] }
 0x25d   :  { %v3216_v43 = vmax.f32 %v3097_v29, 0.0  ;;  %v12702_v29 = vld [vmem:[%s20027_s3 + $0x48c] sm:$0xf]  ;;  %v3137_v18 = vadd.f32 %v3136_v35, %v3123_v2  ;;  %v12724_v35 = vld [vmem:[%s20027_s3 + $0x534] sm:$0xf0]  ;;  %v10148_v2 = vor.u32 %v12785_v41, %v10145_v42  ;;  %v2342_v41 = vperm.slane %v16018_v47, 3 }
 0x25e   :  { %3990 = vmatpush.bf16.msra.mxu0 %v9752_v44  ;;  %v9944_v44 = vor.u32 %v12736_v28, %v9943_v17  ;;  %v9820_v63 = vor.u32 %v12702_v29, %v9817_v33  ;;  %v9895_v17 = vld [vmem:[%s20027_s3 + $0x528] sm:$0xf]  ;;  %v12690_v28 = vld [vmem:[%s20027_s3 + $0x42c] sm:$0xf]  ;;  %v9769_v29 = vld [vmem:[%s20027_s3 + $0x438] sm:$0xf0] }
 0x25f   :  { %v16268_v57 = vpack.c.bf16 %v3216_v43, %v3212_v30  ;;  %v9836_v30 = vor.u32 %v12706_v52, %v9833_v5  ;;  %v3110_v43 = vpop.f32.mrf.mxu0  ;;  %v9785_v52 = vld [vmem:[%s20027_s3 + $0x458] sm:$0xf0]  ;;  %v10180_v5 = vor.u32 %v12793_v34, %v10177_v6  ;;  %v12746_v34 = vld [vmem:[%s20027_s3 + $0x5ec] sm:$0xf]  ;;  %v12768_v47 = vld [vmem:[%s20027_s3 + $0x694] sm:$0xf0] }
 0x260   :  { %3971 = vmatpush.bf16.msrb.mxu3 %v10212_v38  ;;  %v3111_v48 = vadd.f32 %v3110_v43, %v2341_v20  ;;  %v12789_v20 = vld [vmem:[%s20027_s3 + $0x744] sm:$0xf]  ;;  %v9896_v43 = vor.u32 %v12724_v35, %v9895_v17  ;;  %v9993_v6 = vld [vmem:[%s20027_s3 + $0x5f8] sm:$0xf0] }
 0x261   :  { %3893 = vmatmul.bf16.vlgmr.msra.gmra.mxu1 %v16268_v57  ;;  %3991 = vmatmul.bf16.vlgmr.msra.gmra.mxu0 %v16116_v27  ;;  %v10164_v33 = vor.u32 %v12789_v20, %v10161_v22  ;;  %v9977_v20 = vld [vmem:[%s20027_s3 + $0x5d8] sm:$0xf0] }
 0x262   :  { %3997 = vmatpush.bf16.msra.mxu1 %v9992_v46  ;;  %4039 = vmatpush.bf16.msrb.mxu0 %v9868_v50  ;;  %v9927_v46 = vld [vmem:[%s20027_s3 + $0x568] sm:$0xf]  ;;  %v12732_v50 = vld [vmem:[%s20027_s3 + $0x574] sm:$0xf0]  ;;  %v3125_v8 = vadd.f32 %v3124_v4, %v3111_v48 }
 0x263   :  { %v9928_v9 = vor.u32 %v12732_v50, %v9927_v46  ;;  %v12720_v46 = vld [vmem:[%s20027_s3 + $0x514] sm:$0xf0] }
 0x264   :  { %3972 = vmatpush.bf16.msrb.mxu3 %v10196_v32  ;;  %v3139_v39 = vadd.f32 %v3138_v24, %v3125_v8  ;;  %v10119_v32 = vld [vmem:[%s20027_s3 + $0x6e8] sm:$0xf]  ;;  %v12742_v8 = vld [vmem:[%s20027_s3 + $0x5cc] sm:$0xf] }
 0x265   :  { %v10103_v24 = vld [vmem:[%s20027_s3 + $0x6c8] sm:$0xf]  ;;  %v9980_v17 = vor.u32 %v12742_v8, %v9977_v20  ;;  %v12760_v8 = vld [vmem:[%s20027_s3 + $0x654] sm:$0xf0] }
 0x266   :  { %3998 = vmatpush.bf16.msra.mxu1 %v9976_v31  ;;  %4040 = vmatpush.bf16.msrb.mxu0 %v9852_v13  ;;  %v9911_v31 = vld [vmem:[%s20027_s3 + $0x548] sm:$0xf] }
 0x268   :  { %3973 = vmatpush.bf16.msrb.mxu3 %v10180_v5 }
 0x26a   :  { %3999 = vmatpush.bf16.msra.mxu1 %v9960_v25  ;;  %4041 = vmatpush.bf16.msrb.mxu0 %v9836_v30  ;;  %v9912_v25 = vor.u32 %v12728_v15, %v9911_v31  ;;  %v9788_v30 = vor.u32 %v12694_v16, %v9785_v52  ;;  %v10129_v31 = vld [vmem:[%s20027_s3 + $0x710] sm:$0xf0]  ;;  %v9756_v16 = vor.u32 %v12686_v54, %v9753_v56 }
 0x26b   :  { %v9996_v52 = vor.u32 %v12746_v34, %v9993_v6  ;;  %v12764_v34 = vld [vmem:[%s20027_s3 + $0x674] sm:$0xf0] }
 0x26c   :  { %3974 = vmatpush.bf16.msrb.mxu3 %v10164_v33  ;;  %v10087_v33 = vld [vmem:[%s20027_s3 + $0x6a8] sm:$0xf] }
 0x26e   :  { %4000 = vmatpush.bf16.msra.mxu1 %v9944_v44  ;;  %4042 = vmatpush.bf16.msrb.mxu0 %v9820_v63  ;;  %v9772_v44 = vor.u32 %v12690_v28, %v9769_v29  ;;  %v9879_v63 = vld [vmem:[%s20027_s3 + $0x508] sm:$0xf]  ;;  %v12738_v28 = vld [vmem:[%s20027_s3 + $0x5ac] sm:$0xf]  ;;  %v9961_v29 = vld [vmem:[%s20027_s3 + $0x5b8] sm:$0xf0] }
 0x26f   :  { %v9880_v15 = vor.u32 %v12720_v46, %v9879_v63  ;;  %v9964_v42 = vor.u32 %v12738_v28, %v9961_v29  ;;  %v10071_v63 = vld [vmem:[%s20027_s3 + $0x688] sm:$0xf]  ;;  %v3192_v46 = vpop.f32.mrf.mxu2  ;;  %v12756_v29 = vld [vmem:[%s20027_s3 + $0x634] sm:$0xf0] }
 0x270   :  { %3975 = vmatpush.bf16.msrb.mxu3 %v10148_v2  ;;  %v12730_v2 = vld [vmem:[%s20027_s3 + $0x56c] sm:$0xf]  ;;  %v10023_v28 = vld [vmem:[%s20027_s3 + $0x628] sm:$0xf] }
 0x271   :  { %3949 = vmatmul.bf16.vlgmr.msrb.gmra.mxu1 %v16268_v57 }
 0x272   :  { %v3150_v13 = vpop.f32.mrf.mxu3  ;;  %4001 = vmatpush.bf16.msra.mxu1 %v9928_v9  ;;  %4043 = vmatpush.bf16.msrb.mxu0 %v9804_v11  ;;  %v12780_v9 = vld [vmem:[%s20027_s3 + $0x6f4] sm:$0xf0]  ;;  %v12781_v11 = vld [vmem:[%s20027_s3 + $0x704] sm:$0xf] }
 0x273   :  { %v3151_v38 = vadd.f32 %v3150_v13, %v3137_v18  ;;  %v10120_v18 = vor.u32 %v12780_v9, %v10119_v32  ;;  %v10132_v22 = vor.u32 %v12781_v11, %v10129_v31  ;;  %v10072_v32 = vor.u32 %v12768_v47, %v10071_v63  ;;  %v12752_v47 = vld [vmem:[%s20027_s3 + $0x614] sm:$0xf0] }
 0x275   :  { %v3213_v48 = vmax.f32 %v3151_v38, 0.0  ;;  %3976 = vmatpush.bf16.msrb.mxu3 %v10132_v22  ;;  %v12772_v38 = vld [vmem:[%s20027_s3 + $0x6b4] sm:$0xf0] }
 0x276   :  { %4002 = vmatpush.bf16.msra.mxu1 %v9912_v25  ;;  %4044 = vmatpush.bf16.msrb.mxu0 %v9788_v30  ;;  %v12776_v25 = vld [vmem:[%s20027_s3 + $0x6d4] sm:$0xf0]  ;;  %v3164_v30 = vpop.f32.mrf.mxu0 }
 0x277   :  { %v10104_v35 = vor.u32 %v12776_v25, %v10103_v24  ;;  %v3194_v25 = vpop.f32.mrf.mxu2 }
 0x27a   :  { %v3152_v50 = vpop.f32.mrf.mxu3  ;;  %4003 = vmatpush.bf16.msra.mxu1 %v9896_v43  ;;  %4045 = vmatpush.bf16.msrb.mxu0 %v9772_v44  ;;  %v10088_v43 = vor.u32 %v12772_v38, %v10087_v33  ;;  %v9945_v44 = vld [vmem:[%s20027_s3 + $0x598] sm:$0xf0] }
 0x27b   :  { %v3153_v4 = vadd.f32 %v3152_v50, %v3139_v39  ;;  %v3178_v39 = vpop.f32.mrf.mxu1  ;;  %v3165_v50 = vadd.f32 %v3164_v30, %v2342_v41 }
 0x27d   :  { %v3217_v13 = vmax.f32 %v3153_v4, 0.0  ;;  %v10055_v4 = vld [vmem:[%s20027_s3 + $0x668] sm:$0xf]  ;;  %v3179_v6 = vadd.f32 %v3178_v39, %v3165_v50  ;;  %v12812_v50 = vld [vmem:[%s20027_s3 + $0x7f4] sm:$0xf0] }
 0x27e   :  { %4004 = vmatpush.bf16.msra.mxu1 %v9880_v15  ;;  %4046 = vmatpush.bf16.msrb.mxu0 %v9756_v16  ;;  %v3166_v56 = vpop.f32.mrf.mxu0  ;;  %v10056_v15 = vor.u32 %v12764_v34, %v10055_v4  ;;  %v12726_v16 = vld [vmem:[%s20027_s3 + $0x54c] sm:$0xf] }
 0x27f   :  { %v16409_v5 = vpack.c.bf16 %v3217_v13, %v3213_v48  ;;  %v9929_v48 = vld [vmem:[%s20027_s3 + $0x578] sm:$0xf0]  ;;  %v3167_v9 = vadd.f32 %v3166_v56, %v2342_v41  ;;  %v3193_v20 = vadd.f32 %v3192_v46, %v3179_v6  ;;  %v10247_v46 = vld [vmem:[%s20027_s3 + $0x7e8] sm:$0xf] }
 0x280   :  { %v9932_v11 = vor.u32 %v12730_v2, %v9929_v48  ;;  %v10121_v56 = vld [vmem:[%s20027_s3 + $0x6f8] sm:$0xf0]  ;;  %v10248_v34 = vor.u32 %v12812_v50, %v10247_v46  ;;  %v10151_v50 = vld [vmem:[%s20027_s3 + $0x728] sm:$0xf] }
 0x281   :  { %3907 = vmatmul.bf16.vlgmr.msra.gmra.mxu2 %v16409_v5  ;;  %4047 = vmatmul.bf16.vlgmr.msrb.gmra.mxu0 %v16116_v27  ;;  %v12734_v27 = vld [vmem:[%s20027_s3 + $0x58c] sm:$0xf] }
 0x282   :  { %4053 = vmatpush.bf16.msrb.mxu1 %v9996_v52  ;;  %4011 = vmatpush.bf16.msra.mxu2 %v10120_v18  ;;  %v9948_v54 = vor.u32 %v12734_v27, %v9945_v44  ;;  %v9913_v52 = vld [vmem:[%s20027_s3 + $0x558] sm:$0xf0]  ;;  %v10039_v18 = vld [vmem:[%s20027_s3 + $0x648] sm:$0xf]  ;;  %v12718_v27 = vld [vmem:[%s20027_s3 + $0x50c] sm:$0xf] }
 0x283   :  { %4005 = vmatmul.bf16.vlgmr.msra.gmra.mxu1 %v16268_v57  ;;  %v3180_v31 = vpop.f32.mrf.mxu1  ;;  %v9916_v24 = vor.u32 %v12726_v16, %v9913_v52  ;;  %v10040_v30 = vor.u32 %v12760_v8, %v10039_v18  ;;  %v9881_v44 = vld [vmem:[%s20027_s3 + $0x518] sm:$0xf0]  ;;  %v10215_v18 = vld [vmem:[%s20027_s3 + $0x7a8] sm:$0xf]  ;;  %v12804_v8 = vld [vmem:[%s20027_s3 + $0x7b4] sm:$0xf0] }
 0x284   :  { %v3181_v22 = vadd.f32 %v3180_v31, %v3167_v9  ;;  %v9884_v48 = vor.u32 %v12718_v27, %v9881_v44  ;;  %v12808_v31 = vld [vmem:[%s20027_s3 + $0x7d4] sm:$0xf0]  ;;  %v10167_v27 = vld [vmem:[%s20027_s3 + $0x748] sm:$0xf] }
 0x285   :  { %v12792_v44 = vld [vmem:[%s20027_s3 + $0x754] sm:$0xf0] }
 0x286   :  { %4054 = vmatpush.bf16.msrb.mxu1 %v9980_v17  ;;  %4012 = vmatpush.bf16.msra.mxu2 %v10104_v35  ;;  %v12722_v17 = vld [vmem:[%s20027_s3 + $0x52c] sm:$0xf]  ;;  %v9897_v35 = vld [vmem:[%s20027_s3 + $0x538] sm:$0xf0]  ;;  %v3195_v33 = vadd.f32 %v3194_v25, %v3181_v22  ;;  %v10168_v46 = vor.u32 %v12792_v44, %v10167_v27 }
 0x287   :  { %v9900_v39 = vor.u32 %v12722_v17, %v9897_v35  ;;  %v10089_v22 = vld [vmem:[%s20027_s3 + $0x6b8] sm:$0xf0]  ;;  %v12766_v17 = vld [vmem:[%s20027_s3 + $0x68c] sm:$0xf] }
 0x288   :  { %v10073_v35 = vld [vmem:[%s20027_s3 + $0x698] sm:$0xf0] }
 0x289   :  { %v10233_v44 = vld [vmem:[%s20027_s3 + $0x7d8] sm:$0xf0] }
 0x28a   :  { %4055 = vmatpush.bf16.msrb.mxu1 %v9964_v42  ;;  %4013 = vmatpush.bf16.msra.mxu2 %v10088_v43  ;;  %v10024_v42 = vor.u32 %v12756_v29, %v10023_v28  ;;  %v10007_v43 = vld [vmem:[%s20027_s3 + $0x608] sm:$0xf]  ;;  %v10076_v29 = vor.u32 %v12766_v17, %v10073_v35  ;;  %v10249_v17 = vld [vmem:[%s20027_s3 + $0x7f8] sm:$0xf0] }
 0x28b   :  { %v10008_v4 = vor.u32 %v12752_v47, %v10007_v43  ;;  %v10041_v47 = vld [vmem:[%s20027_s3 + $0x658] sm:$0xf0] }
 0x28e   :  { %4056 = vmatpush.bf16.msrb.mxu1 %v9948_v54  ;;  %4014 = vmatpush.bf16.msra.mxu2 %v10072_v32  ;;  %v12778_v54 = vld [vmem:[%s20027_s3 + $0x6ec] sm:$0xf] }
 0x28f   :  { %v10124_v9 = vor.u32 %v12778_v54, %v10121_v56  ;;  %v10367_v54 = vld [vmem:[%s20025_s1 + $0x3a0] sm:$0xf] }
 0x290   :  { %v12843_v56 = vld [vmem:[%s20025_s1 + $0x3dc] sm:$0xf0] }
 0x291   :  { %3963 = vmatmul.bf16.vlgmr.msrb.gmra.mxu2 %v16409_v5 }
 0x292   :  { %v3206_v13 = vpop.f32.mrf.mxu3  ;;  %4057 = vmatpush.bf16.msrb.mxu1 %v9932_v11  ;;  %4015 = vmatpush.bf16.msra.mxu2 %v10056_v15  ;;  %v10231_v11 = vld [vmem:[%s20027_s3 + $0x7c8] sm:$0xf]  ;;  %v10105_v15 = vld [vmem:[%s20027_s3 + $0x6d8] sm:$0xf0] }
 0x293   :  { %v3207_v38 = vadd.f32 %v3206_v13, %v3193_v20  ;;  %v12774_v13 = vld [vmem:[%s20027_s3 + $0x6cc] sm:$0xf]  ;;  %v10232_v16 = vor.u32 %v12808_v31, %v10231_v11  ;;  %v10025_v11 = vld [vmem:[%s20027_s3 + $0x638] sm:$0xf0] }
 0x294   :  { %v10108_v52 = vor.u32 %v12774_v13, %v10105_v15  ;;  %v12770_v20 = vld [vmem:[%s20027_s3 + $0x6ac] sm:$0xf]  ;;  %v10135_v13 = vld [vmem:[%s20027_s3 + $0x708] sm:$0xf] }
 0x295   :  { %v3214_v32 = vmax.f32 %v3207_v38, 0.0  ;;  %v10092_v25 = vor.u32 %v12770_v20, %v10089_v22  ;;  %v12796_v38 = vld [vmem:[%s20027_s3 + $0x774] sm:$0xf0]  ;;  %v12750_v20 = vld [vmem:[%s20027_s3 + $0x60c] sm:$0xf] }
 0x296   :  { %4058 = vmatpush.bf16.msrb.mxu1 %v9916_v24  ;;  %4016 = vmatpush.bf16.msra.mxu2 %v10040_v30  ;;  %v10216_v24 = vor.u32 %v12804_v8, %v10215_v18  ;;  %v10199_v30 = vld [vmem:[%s20027_s3 + $0x788] sm:$0xf]  ;;  %v12839_v18 = vld [vmem:[%s20025_s1 + $0x35c] sm:$0xf0] }
 0x29a   :  { %v3208_v41 = vpop.f32.mrf.mxu3  ;;  %4059 = vmatpush.bf16.msrb.mxu1 %v9900_v39  ;;  %4017 = vmatpush.bf16.msra.mxu2 %v10024_v42  ;;  %v12762_v39 = vld [vmem:[%s20027_s3 + $0x66c] sm:$0xf] }
 0x29b   :  { %v3209_v63 = vadd.f32 %v3208_v41, %v3195_v33  ;;  %v10183_v33 = vld [vmem:[%s20027_s3 + $0x768] sm:$0xf]  ;;  %v10057_v41 = vld [vmem:[%s20027_s3 + $0x678] sm:$0xf0] }
 0x29c   :  { %v10184_v42 = vor.u32 %v12796_v38, %v10183_v33  ;;  %v10060_v43 = vor.u32 %v12762_v39, %v10057_v41  ;;  %v10335_v38 = vld [vmem:[%s20025_s1 + $0x2a0] sm:$0xf] }
 0x29d   :  { %v3218_v2 = vmax.f32 %v3209_v63, 0.0  ;;  %v12758_v63 = vld [vmem:[%s20027_s3 + $0x64c] sm:$0xf]  ;;  %v12835_v39 = vld [vmem:[%s20025_s1 + $0x2dc] sm:$0xf0] }
 0x29e   :  { %4060 = vmatpush.bf16.msrb.mxu1 %v9884_v48  ;;  %4018 = vmatpush.bf16.msra.mxu2 %v10008_v4  ;;  %v10368_v48 = vor.u32 %v12843_v56, %v10367_v54  ;;  %v10495_v4 = vld [vmem:[%s20025_s1 + $0x7a0] sm:$0xf]  ;;  %v10336_v27 = vor.u32 %v12835_v39, %v10335_v38  ;;  %v12794_v39 = vld [vmem:[%s20027_s3 + $0x76c] sm:$0xf] }
 0x29f   :  { %v16512_v6 = vpack.c.bf16 %v3218_v2, %v3214_v32  ;;  %v10044_v32 = vor.u32 %v12758_v63, %v10041_v47  ;;  %v12788_v2 = vld [vmem:[%s20027_s3 + $0x734] sm:$0xf0]  ;;  %v10463_v47 = vld [vmem:[%s20025_s1 + $0x6a0] sm:$0xf] }
 0x2a0   :  { %5017 = vmatpush.bf16.msra.mxu0 %v10368_v48  ;;  %v10152_v15 = vor.u32 %v12788_v2, %v10151_v50  ;;  %v10607_v50 = vld [vmem:[%s20025_s1 + $0xb20] sm:$0xf] }
 0x2a1   :  { %3921 = vmatmul.bf16.vlgmr.msra.gmra.mxu3 %v16512_v6  ;;  %4061 = vmatmul.bf16.vlgmr.msrb.gmra.mxu1 %v16268_v57  ;;  %v12800_v57 = vld [vmem:[%s20027_s3 + $0x794] sm:$0xf0]  ;;  %v12903_v54 = vld [vmem:[%s20025_s1 + $0xb5c] sm:$0xf0] }
 0x2a2   :  { %4025 = vmatpush.bf16.msra.mxu3 %v10248_v34  ;;  %4067 = vmatpush.bf16.msrb.mxu2 %v10124_v9  ;;  %v10200_v28 = vor.u32 %v12800_v57, %v10199_v30  ;;  %v12875_v34 = vld [vmem:[%s20025_s1 + $0x7dc] sm:$0xf0]  ;;  %v12754_v9 = vld [vmem:[%s20027_s3 + $0x62c] sm:$0xf]  ;;  %v10009_v30 = vld [vmem:[%s20027_s3 + $0x618] sm:$0xf0] }
 0x2a3   :  { %4019 = vmatmul.bf16.vlgmr.msra.gmra.mxu2 %v16409_v5  ;;  %v10496_v31 = vor.u32 %v12875_v34, %v10495_v4  ;;  %v10028_v8 = vor.u32 %v12754_v9, %v10025_v11  ;;  %v12810_v57 = vld [vmem:[%s20027_s3 + $0x7ec] sm:$0xf]  ;;  %v10012_v41 = vor.u32 %v12750_v20, %v10009_v30  ;;  %v12831_v2 = vld [vmem:[%s20025_s1 + $0x25c] sm:$0xf0]  ;;  %v10217_v34 = vld [vmem:[%s20027_s3 + $0x7b8] sm:$0xf0]  ;;  %v10608_v11 = vor.u32 %v12903_v54, %v10607_v50 }
 0x2a4   :  { %v12802_v4 = vld [vmem:[%s20027_s3 + $0x7ac] sm:$0xf]  ;;  %v10271_v50 = vld [vmem:[%s20025_s1 + $0xa0] sm:$0xf] }
 0x2a5   :  { %5031 = vmatpush.bf16.msra.mxu1 %v10496_v31  ;;  %v10591_v31 = vld [vmem:[%s20025_s1 + $0xaa0] sm:$0xf] }
 0x2a6   :  { %4026 = vmatpush.bf16.msra.mxu3 %v10232_v16  ;;  %4068 = vmatpush.bf16.msrb.mxu2 %v10108_v52  ;;  %v12784_v16 = vld [vmem:[%s20027_s3 + $0x714] sm:$0xf0]  ;;  %v10351_v52 = vld [vmem:[%s20025_s1 + $0x320] sm:$0xf] }
 0x2a7   :  { %v10352_v22 = vor.u32 %v12839_v18, %v10351_v52  ;;  %v10136_v33 = vor.u32 %v12784_v16, %v10135_v13  ;;  %v10447_v13 = vld [vmem:[%s20025_s1 + $0x620] sm:$0xf] }
 0x2a8   :  { %v12899_v16 = vld [vmem:[%s20025_s1 + $0xadc] sm:$0xf0] }
 0x2a9   :  { %5018 = vmatpush.bf16.msra.mxu0 %v10352_v22  ;;  %v10303_v18 = vld [vmem:[%s20025_s1 + $0x1a0] sm:$0xf]  ;;  %v10220_v22 = vor.u32 %v12802_v4, %v10217_v34  ;;  %v10592_v30 = vor.u32 %v12899_v16, %v10591_v31 }
 0x2aa   :  { %4027 = vmatpush.bf16.msra.mxu3 %v10216_v24  ;;  %4069 = vmatpush.bf16.msrb.mxu2 %v10092_v25  ;;  %v10479_v24 = vld [vmem:[%s20025_s1 + $0x720] sm:$0xf] }
 0x2ab   :  { %v12871_v25 = vld [vmem:[%s20025_s1 + $0x75c] sm:$0xf0] }
 0x2ac   :  { %v10480_v35 = vor.u32 %v12871_v25, %v10479_v24  ;;  %v12798_v24 = vld [vmem:[%s20027_s3 + $0x78c] sm:$0xf]  ;;  %v10201_v25 = vld [vmem:[%s20027_s3 + $0x798] sm:$0xf0]  ;;  %v12819_v54 = vld [vmem:[%s20025_s1 + $0xdc] sm:$0xf0] }
 0x2ad   :  { %5019 = vmatpush.bf16.msra.mxu0 %v10336_v27  ;;  %v10204_v38 = vor.u32 %v12798_v24, %v10201_v25  ;;  %v10559_v27 = vld [vmem:[%s20025_s1 + $0x9a0] sm:$0xf]  ;;  %v10369_v24 = vld [vmem:[%s20025_s1 + $0x3e0] sm:$0xf0] }
 0x2ae   :  { %4028 = vmatpush.bf16.msra.mxu3 %v10200_v28  ;;  %4070 = vmatpush.bf16.msrb.mxu2 %v10076_v29  ;;  %v10623_v28 = vld [vmem:[%s20025_s1 + $0xba0] sm:$0xf] }
 0x2af   :  { %v12907_v29 = vld [vmem:[%s20025_s1 + $0xbdc] sm:$0xf0]  ;;  %5032 = vmatpush.bf16.msra.mxu1 %v10480_v35 }
 0x2b0   :  { %v10624_v63 = vor.u32 %v12907_v29, %v10623_v28  ;;  %v12895_v35 = vld [vmem:[%s20025_s1 + $0xa5c] sm:$0xf0] }
 0x2b1   :  { %3977 = vmatmul.bf16.vlgmr.msrb.gmra.mxu3 %v16512_v6  ;;  %v10287_v29 = vld [vmem:[%s20025_s1 + $0x120] sm:$0xf] }
 0x2b2   :  { %4029 = vmatpush.bf16.msra.mxu3 %v10184_v42  ;;  %4071 = vmatpush.bf16.msrb.mxu2 %v10060_v43  ;;  %v10252_v42 = vor.u32 %v12810_v57, %v10249_v17  ;;  %v12806_v43 = vld [vmem:[%s20027_s3 + $0x7cc] sm:$0xf]  ;;  %v10431_v57 = vld [vmem:[%s20025_s1 + $0x5a0] sm:$0xf] }
 0x2b3   :  { %v10236_v48 = vor.u32 %v12806_v43, %v10233_v44  ;;  %v10575_v17 = vld [vmem:[%s20025_s1 + $0xa20] sm:$0xf] }
 0x2b4   :  { %v10576_v43 = vor.u32 %v12895_v35, %v10575_v17  ;;  %v10415_v44 = vld [vmem:[%s20025_s1 + $0x520] sm:$0xf]  ;;  %v12873_v17 = vld [vmem:[%s20025_s1 + $0x7a4] sm:$0xf] }
 0x2b5   :  { %v10399_v34 = vld [vmem:[%s20025_s1 + $0x4a0] sm:$0xf] }
 0x2b6   :  { %4030 = vmatpush.bf16.msra.mxu3 %v10168_v46  ;;  %4072 = vmatpush.bf16.msrb.mxu2 %v10044_v32  ;;  %v12867_v46 = vld [vmem:[%s20025_s1 + $0x6dc] sm:$0xf0] }
 0x2b7   :  { %v10464_v56 = vor.u32 %v12867_v46, %v10463_v47  ;;  %v10319_v32 = vld [vmem:[%s20025_s1 + $0x220] sm:$0xf] }
 0x2b8   :  { %v10320_v9 = vor.u32 %v12831_v2, %v10319_v32  ;;  %v12891_v47 = vld [vmem:[%s20025_s1 + $0x9dc] sm:$0xf0]  ;;  %v12790_v2 = vld [vmem:[%s20027_s3 + $0x74c] sm:$0xf] }
 0x2b9   :  { %5033 = vmatpush.bf16.msra.mxu1 %v10464_v56  ;;  %v10272_v56 = vor.u32 %v12819_v54, %v10271_v50  ;;  %v10560_v4 = vor.u32 %v12891_v47, %v10559_v27  ;;  %v12887_v31 = vld [vmem:[%s20025_s1 + $0x95c] sm:$0xf0]  ;;  %v10353_v27 = vld [vmem:[%s20025_s1 + $0x360] sm:$0xf0] }
 0x2ba   :  { %4031 = vmatpush.bf16.msra.mxu3 %v10152_v15  ;;  %4073 = vmatpush.bf16.msrb.mxu2 %v10028_v8  ;;  %v12863_v15 = vld [vmem:[%s20025_s1 + $0x65c] sm:$0xf0] }
 0x2bb   :  { %5020 = vmatpush.bf16.msra.mxu0 %v10320_v9  ;;  %v10448_v52 = vor.u32 %v12863_v15, %v10447_v13  ;;  %v12827_v8 = vld [vmem:[%s20025_s1 + $0x1dc] sm:$0xf0]  ;;  %v12786_v15 = vld [vmem:[%s20027_s3 + $0x72c] sm:$0xf] }
 0x2bc   :  { %v10304_v20 = vor.u32 %v12827_v8, %v10303_v18  ;;  %v12851_v9 = vld [vmem:[%s20025_s1 + $0x4dc] sm:$0xf0]  ;;  %v10153_v8 = vld [vmem:[%s20027_s3 + $0x738] sm:$0xf0] }
 0x2bd   :  { %5034 = vmatpush.bf16.msra.mxu1 %v10448_v52  ;;  %v10400_v13 = vor.u32 %v12851_v9, %v10399_v34  ;;  %v10255_v16 = vld [vmem:[%s20025_s1 + $0x20] sm:$0xf]  ;;  %v12833_v9 = vld [vmem:[%s20025_s1 + $0x2a4] sm:$0xf] }
 0x2be   :  { %4032 = vmatpush.bf16.msra.mxu3 %v10136_v33  ;;  %4074 = vmatpush.bf16.msrb.mxu2 %v10012_v41  ;;  %v12823_v33 = vld [vmem:[%s20025_s1 + $0x15c] sm:$0xf0]  ;;  %v10185_v41 = vld [vmem:[%s20027_s3 + $0x778] sm:$0xf0] }
 0x2bf   :  { %5021 = vmatpush.bf16.msra.mxu0 %v10304_v20  ;;  %v10188_v32 = vor.u32 %v12794_v39, %v10185_v41  ;;  %v12815_v52 = vld [vmem:[%s20025_s1 + $0x5c] sm:$0xf0]  ;;  %v10156_v41 = vor.u32 %v12786_v15, %v10153_v8  ;;  %v12865_v8 = vld [vmem:[%s20025_s1 + $0x6a4] sm:$0xf] }
 0x2c0   :  { %v10256_v20 = vor.u32 %v12815_v52, %v10255_v16  ;;  %v10527_v35 = vld [vmem:[%s20025_s1 + $0x8a0] sm:$0xf] }
 0x2c1   :  { %4033 = vmatmul.bf16.vlgmr.msra.gmra.mxu3 %v16512_v6  ;;  %4075 = vmatmul.bf16.vlgmr.msrb.gmra.mxu2 %v16409_v5  ;;  %v12859_v5 = vld [vmem:[%s20025_s1 + $0x5dc] sm:$0xf0] }
 0x2c2   :  { %4081 = vmatpush.bf16.msrb.mxu3 %v10252_v42  ;;  %5045 = vmatpush.bf16.msra.mxu2 %v10624_v63  ;;  %v10432_v28 = vor.u32 %v12859_v5, %v10431_v57  ;;  %v10288_v42 = vor.u32 %v12823_v33, %v10287_v29  ;;  %v12855_v63 = vld [vmem:[%s20025_s1 + $0x55c] sm:$0xf0]  ;;  %v10497_v33 = vld [vmem:[%s20025_s1 + $0x7e0] sm:$0xf0] }
 0x2c3   :  { %v10416_v46 = vor.u32 %v12855_v63, %v10415_v44  ;;  %v10383_v57 = vld [vmem:[%s20025_s1 + $0x420] sm:$0xf]  ;;  %v10500_v39 = vor.u32 %v12873_v17, %v10497_v33 }
 0x2c4   :  { %5035 = vmatpush.bf16.msra.mxu1 %v10432_v28  ;;  %5022 = vmatpush.bf16.msra.mxu0 %v10288_v42  ;;  %v12847_v5 = vld [vmem:[%s20025_s1 + $0x45c] sm:$0xf0]  ;;  %v10137_v42 = vld [vmem:[%s20027_s3 + $0x718] sm:$0xf0] }
 0x2c5   :  { %v12883_v28 = vld [vmem:[%s20025_s1 + $0x8dc] sm:$0xf0]  ;;  %v10384_v29 = vor.u32 %v12847_v5, %v10383_v57  ;;  %v10321_v57 = vld [vmem:[%s20025_s1 + $0x260] sm:$0xf0]  ;;  %v3880_v5 = vpop.f32.mrf.mxu0 }
 0x2c6   :  { %4082 = vmatpush.bf16.msrb.mxu3 %v10236_v48  ;;  %5046 = vmatpush.bf16.msra.mxu2 %v10608_v11  ;;  %v10169_v48 = vld [vmem:[%s20027_s3 + $0x758] sm:$0xf0]  ;;  %v10543_v11 = vld [vmem:[%s20025_s1 + $0x920] sm:$0xf]  ;;  %v10528_v47 = vor.u32 %v12883_v28, %v10527_v35 }
 0x2c7   :  { %v10172_v18 = vor.u32 %v12790_v2, %v10169_v48  ;;  %v10544_v25 = vor.u32 %v12887_v31, %v10543_v11  ;;  %v10751_v44 = vld [vmem:[%s20025_s1 + $0xfa0] sm:$0xf]  ;;  %v12905_v2 = vld [vmem:[%s20025_s1 + $0xba4] sm:$0xf] }
 0x2c8   :  { %5036 = vmatpush.bf16.msra.mxu1 %v10416_v46  ;;  %5023 = vmatpush.bf16.msra.mxu0 %v10272_v56  ;;  %v12939_v63 = vld [vmem:[%s20025_s1 + $0xfdc] sm:$0xf0]  ;;  %v12869_v56 = vld [vmem:[%s20025_s1 + $0x724] sm:$0xf] }
 0x2c9   :  { %v10511_v46 = vld [vmem:[%s20025_s1 + $0x820] sm:$0xf]  ;;  %v10625_v48 = vld [vmem:[%s20025_s1 + $0xbe0] sm:$0xf0]  ;;  %v10752_v31 = vor.u32 %v12939_v63, %v10751_v44 }
 0x2ca   :  { %4083 = vmatpush.bf16.msrb.mxu3 %v10220_v22  ;;  %5047 = vmatpush.bf16.msra.mxu2 %v10592_v30  ;;  %v12841_v22 = vld [vmem:[%s20025_s1 + $0x3a4] sm:$0xf]  ;;  %v12879_v54 = vld [vmem:[%s20025_s1 + $0x85c] sm:$0xf0] }
 0x2cb   :  { %v10372_v30 = vor.u32 %v12841_v22, %v10369_v24  ;;  %v10337_v11 = vld [vmem:[%s20025_s1 + $0x2e0] sm:$0xf0]  ;;  %v10512_v15 = vor.u32 %v12879_v54, %v10511_v46  ;;  %v12935_v52 = vld [vmem:[%s20025_s1 + $0xf5c] sm:$0xf0] }
 0x2cc   :  { %5037 = vmatpush.bf16.msra.mxu1 %v10400_v13  ;;  %5024 = vmatpush.bf16.msra.mxu0 %v10256_v20  ;;  %v10735_v13 = vld [vmem:[%s20025_s1 + $0xf20] sm:$0xf]  ;;  %v10340_v16 = vor.u32 %v12833_v9, %v10337_v11  ;;  %v10465_v20 = vld [vmem:[%s20025_s1 + $0x6e0] sm:$0xf0] }
 0x2cd   :  { %v12901_v22 = vld [vmem:[%s20025_s1 + $0xb24] sm:$0xf]  ;;  %v10736_v17 = vor.u32 %v12935_v52, %v10735_v13  ;;  %v10719_v35 = vld [vmem:[%s20025_s1 + $0xea0] sm:$0xf] }
 0x2ce   :  { %4084 = vmatpush.bf16.msrb.mxu3 %v10204_v38  ;;  %5048 = vmatpush.bf16.msra.mxu2 %v10576_v43  ;;  %v12782_v38 = vld [vmem:[%s20027_s3 + $0x70c] sm:$0xf]  ;;  %v12837_v43 = vld [vmem:[%s20025_s1 + $0x324] sm:$0xf]  ;;  %v12931_v28 = vld [vmem:[%s20025_s1 + $0xedc] sm:$0xf0] }
 0x2cf   :  { %v10356_v50 = vor.u32 %v12837_v43, %v10353_v27  ;;  %5025 = vmatmul.bf16.vlgmr.msra.gmra.mxu0 %v13647_v59  ;;  %v10140_v34 = vor.u32 %v12782_v38, %v10137_v42  ;;  %v10609_v24 = vld [vmem:[%s20025_s1 + $0xb60] sm:$0xf0]  ;;  %v12927_v46 = vld [vmem:[%s20025_s1 + $0xe5c] sm:$0xf0] }
 0x2d0   :  { %5073 = vmatpush.bf16.msrb.mxu0 %v10372_v30  ;;  %5038 = vmatpush.bf16.msra.mxu1 %v10384_v29  ;;  %v12829_v30 = vld [vmem:[%s20025_s1 + $0x224] sm:$0xf]  ;;  %v10612_v33 = vor.u32 %v12901_v22, %v10609_v24 }
 0x2d1   :  { %v10324_v29 = vor.u32 %v12829_v30, %v10321_v57  ;;  %v12897_v38 = vld [vmem:[%s20025_s1 + $0xaa4] sm:$0xf] }
 0x2d2   :  { %4085 = vmatpush.bf16.msrb.mxu3 %v10188_v32  ;;  %5049 = vmatpush.bf16.msra.mxu2 %v10560_v4  ;;  %v10481_v32 = vld [vmem:[%s20025_s1 + $0x760] sm:$0xf0] }
 0x2d3   :  { %v10484_v4 = vor.u32 %v12869_v56, %v10481_v32  ;;  %5039 = vmatmul.bf16.vlgmr.msra.gmra.mxu1 %v13657_v0  ;;  %v10593_v42 = vld [vmem:[%s20025_s1 + $0xae0] sm:$0xf0] }
 0x2d4   :  { %5087 = vmatpush.bf16.msrb.mxu1 %v10500_v39  ;;  %5074 = vmatpush.bf16.msrb.mxu0 %v10356_v50  ;;  %v12861_v39 = vld [vmem:[%s20025_s1 + $0x624] sm:$0xf]  ;;  %v10596_v50 = vor.u32 %v12897_v38, %v10593_v42 }
 0x2d5   :  { %v12825_v27 = vld [vmem:[%s20025_s1 + $0x1a4] sm:$0xf] }
 0x2d6   :  { %4086 = vmatpush.bf16.msrb.mxu3 %v10172_v18  ;;  %5050 = vmatpush.bf16.msra.mxu2 %v10544_v25  ;;  %v10628_v18 = vor.u32 %v12905_v2, %v10625_v48  ;;  %v10468_v25 = vor.u32 %v12865_v8, %v10465_v20  ;;  %v10305_v44 = vld [vmem:[%s20025_s1 + $0x1e0] sm:$0xf0]  ;;  %v16928_v20 = vpop.f32.mrf.mxu0 }
 0x2d7   :  { %v10308_v63 = vor.u32 %v12825_v27, %v10305_v44  ;;  %v12857_v54 = vld [vmem:[%s20025_s1 + $0x5a4] sm:$0xf] }
 0x2d8   :  { %5088 = vmatpush.bf16.msrb.mxu1 %v10484_v4  ;;  %5075 = vmatpush.bf16.msrb.mxu0 %v10340_v16  ;;  %v10433_v56 = vld [vmem:[%s20025_s1 + $0x5e0] sm:$0xf0]  ;;  %v12923_v16 = vld [vmem:[%s20025_s1 + $0xddc] sm:$0xf0] }
 0x2d9   :  { %v12893_v32 = vld [vmem:[%s20025_s1 + $0xa24] sm:$0xf]  ;;  %v10436_v48 = vor.u32 %v12857_v54, %v10433_v56  ;;  %v12844_v54 = vld [vmem:[%s20025_s1 + $0x3e4] sm:$0xf0] }
 0x2da   :  { %4087 = vmatpush.bf16.msrb.mxu3 %v10156_v41  ;;  %5051 = vmatpush.bf16.msra.mxu2 %v10528_v47  ;;  %v10449_v41 = vld [vmem:[%s20025_s1 + $0x660] sm:$0xf0]  ;;  %v10720_v47 = vor.u32 %v12931_v28, %v10719_v35  ;;  %v12919_v28 = vld [vmem:[%s20025_s1 + $0xd5c] sm:$0xf0] }
 0x2db   :  { %v10452_v43 = vor.u32 %v12861_v39, %v10449_v41  ;;  %v10577_v2 = vld [vmem:[%s20025_s1 + $0xa60] sm:$0xf0] }
 0x2dc   :  { %5089 = vmatpush.bf16.msrb.mxu1 %v10468_v25  ;;  %5076 = vmatpush.bf16.msrb.mxu0 %v10324_v29  ;;  %v12821_v4 = vld [vmem:[%s20025_s1 + $0x124] sm:$0xf]  ;;  %v10580_v52 = vor.u32 %v12893_v32, %v10577_v2 }
 0x2dd   :  { %v10417_v8 = vld [vmem:[%s20025_s1 + $0x560] sm:$0xf0] }
 0x2de   :  { %4088 = vmatpush.bf16.msrb.mxu3 %v10140_v34  ;;  %5052 = vmatpush.bf16.msra.mxu2 %v10512_v15  ;;  %v10289_v34 = vld [vmem:[%s20025_s1 + $0x160] sm:$0xf0]  ;;  %v3894_v9 = vpop.f32.mrf.mxu1 }
 0x2df   :  { %v10292_v13 = vor.u32 %v12821_v4, %v10289_v34  ;;  %v16917_v15 = vadd.f32 %v3894_v9, %v3880_v5  ;;  %v12889_v22 = vld [vmem:[%s20025_s1 + $0x9a4] sm:$0xf] }
 0x2e0   :  { %5090 = vmatpush.bf16.msrb.mxu1 %v10452_v43  ;;  %5077 = vmatpush.bf16.msrb.mxu0 %v10308_v63  ;;  %v10561_v24 = vld [vmem:[%s20025_s1 + $0x9e0] sm:$0xf0]  ;;  %v10655_v43 = vld [vmem:[%s20025_s1 + $0xca0] sm:$0xf] }
 0x2e1   :  { %4089 = vmatmul.bf16.vlgmr.msrb.gmra.mxu3 %v16512_v6  ;;  %5053 = vmatmul.bf16.vlgmr.msra.gmra.mxu2 %v13636_v55  ;;  %v10703_v6 = vld [vmem:[%s20025_s1 + $0xe20] sm:$0xf]  ;;  %v12817_v30 = vld [vmem:[%s20025_s1 + $0xa4] sm:$0xf]  ;;  %v10564_v29 = vor.u32 %v12889_v22, %v10561_v24  ;;  %v10359_v22 = vld [vmem:[%s20025_s1 + $0x328] sm:$0xf] }
 0x2e2   :  { %5059 = vmatpush.bf16.msra.mxu3 %v10752_v31  ;;  %5101 = vmatpush.bf16.msrb.mxu2 %v10628_v18  ;;  %v10704_v11 = vor.u32 %v12927_v46, %v10703_v6  ;;  %v10687_v31 = vld [vmem:[%s20025_s1 + $0xda0] sm:$0xf]  ;;  %v12853_v18 = vld [vmem:[%s20025_s1 + $0x524] sm:$0xf]  ;;  %v12840_v24 = vld [vmem:[%s20025_s1 + $0x364] sm:$0xf0] }
 0x2e3   :  { %v10420_v25 = vor.u32 %v12853_v18, %v10417_v8  ;;  %v10273_v57 = vld [vmem:[%s20025_s1 + $0xe0] sm:$0xf0]  ;;  %v10688_v5 = vor.u32 %v12923_v16, %v10687_v31  ;;  %v12915_v6 = vld [vmem:[%s20025_s1 + $0xcdc] sm:$0xf0]  ;;  %v12876_v31 = vld [vmem:[%s20025_s1 + $0x7e4] sm:$0xf0] }
 0x2e4   :  { %5091 = vmatpush.bf16.msrb.mxu1 %v10436_v48  ;;  %5078 = vmatpush.bf16.msrb.mxu0 %v10292_v13  ;;  %v10276_v35 = vor.u32 %v12817_v30, %v10273_v57  ;;  %v10401_v38 = vld [vmem:[%s20025_s1 + $0x4e0] sm:$0xf0]  ;;  %v10639_v13 = vld [vmem:[%s20025_s1 + $0xc20] sm:$0xf]  ;;  %v10656_v18 = vor.u32 %v12915_v6, %v10655_v43  ;;  %v10360_v57 = vor.u32 %v12840_v24, %v10359_v22  ;;  %v10343_v43 = vld [vmem:[%s20025_s1 + $0x2a8] sm:$0xf] }
 0x2e5   :  { %v12885_v39 = vld [vmem:[%s20025_s1 + $0x924] sm:$0xf]  ;;  %v12911_v8 = vld [vmem:[%s20025_s1 + $0xc5c] sm:$0xf0]  ;;  %v10599_v22 = vld [vmem:[%s20025_s1 + $0xaa8] sm:$0xf] }
 0x2e6   :  { %5060 = vmatpush.bf16.msra.mxu3 %v10736_v17  ;;  %5102 = vmatpush.bf16.msrb.mxu2 %v10612_v33  ;;  %v10671_v17 = vld [vmem:[%s20025_s1 + $0xd20] sm:$0xf]  ;;  %v12849_v33 = vld [vmem:[%s20025_s1 + $0x4a4] sm:$0xf]  ;;  %v16969_v63 = vpop.f32.mrf.mxu1  ;;  %v10455_v24 = vld [vmem:[%s20025_s1 + $0x628] sm:$0xf] }
 0x2e7   :  { %v10545_v41 = vld [vmem:[%s20025_s1 + $0x960] sm:$0xf0]  ;;  %v10404_v42 = vor.u32 %v12849_v33, %v10401_v38  ;;  %v10631_v38 = vld [vmem:[%s20025_s1 + $0xba8] sm:$0xf] }
 0x2e8   :  { %5092 = vmatpush.bf16.msrb.mxu1 %v10420_v25  ;;  %5079 = vmatpush.bf16.msrb.mxu0 %v10276_v35  ;;  %v12813_v27 = vld [vmem:[%s20025_s1 + $0x24] sm:$0xf]  ;;  %v10548_v56 = vor.u32 %v12885_v39, %v10545_v41  ;;  %v12908_v39 = vld [vmem:[%s20025_s1 + $0xbe4] sm:$0xf0] }
 0x2e9   :  { %v10257_v44 = vld [vmem:[%s20025_s1 + $0x60] sm:$0xf0] }
 0x2ea   :  { %5061 = vmatpush.bf16.msra.mxu3 %v10720_v47  ;;  %5103 = vmatpush.bf16.msrb.mxu2 %v10596_v50  ;;  %v10672_v47 = vor.u32 %v12919_v28, %v10671_v17  ;;  %v10260_v46 = vor.u32 %v12813_v27, %v10257_v44  ;;  %v10375_v50 = vld [vmem:[%s20025_s1 + $0x3a8] sm:$0xf]  ;;  %v12881_v32 = vld [vmem:[%s20025_s1 + $0x8a4] sm:$0xf] }
 0x2eb   :  { %v10376_v2 = vor.u32 %v12844_v54, %v10375_v50  ;;  %v12845_v48 = vld [vmem:[%s20025_s1 + $0x424] sm:$0xf]  ;;  %v12872_v17 = vld [vmem:[%s20025_s1 + $0x764] sm:$0xf0] }
 0x2ec   :  { %5093 = vmatpush.bf16.msrb.mxu1 %v10404_v42  ;;  %v10385_v4 = vld [vmem:[%s20025_s1 + $0x460] sm:$0xf0]  ;;  %5080 = vmatpush.bf16.msrb.mxu0 %v10260_v46  ;;  %v10640_v42 = vor.u32 %v12911_v8, %v10639_v13  ;;  %v12836_v27 = vld [vmem:[%s20025_s1 + $0x2e4] sm:$0xf0] }
 0x2ed   :  { %v10529_v34 = vld [vmem:[%s20025_s1 + $0x8e0] sm:$0xf0]  ;;  %v10388_v9 = vor.u32 %v12845_v48, %v10385_v4  ;;  %v10344_v50 = vor.u32 %v12836_v27, %v10343_v43  ;;  %v10615_v48 = vld [vmem:[%s20025_s1 + $0xb28] sm:$0xf] }
 0x2ee   :  { %5062 = vmatpush.bf16.msra.mxu3 %v10704_v11  ;;  %5104 = vmatpush.bf16.msrb.mxu2 %v10580_v52  ;;  %v10503_v11 = vld [vmem:[%s20025_s1 + $0x7a8] sm:$0xf]  ;;  %v3936_v52 = vpop.f32.mrf.mxu0  ;;  %v12937_v25 = vld [vmem:[%s20025_s1 + $0xfa4] sm:$0xf]  ;;  %v10532_v30 = vor.u32 %v12881_v32, %v10529_v34  ;;  %v3950_v41 = vpop.f32.mrf.mxu1 }
 0x2ef   :  { %v10504_v16 = vor.u32 %v12876_v31, %v10503_v11  ;;  %v10753_v35 = vld [vmem:[%s20025_s1 + $0xfe0] sm:$0xf0]  ;;  %5081 = vmatmul.bf16.vlgmr.msrb.gmra.mxu0 %v13647_v59  ;;  %v17042_v44 = vadd.f32 %v3950_v41, %v3936_v52  ;;  %v10471_v32 = vld [vmem:[%s20025_s1 + $0x6a8] sm:$0xf] }
 0x2f0   :  { %5129 = vmatpush.bf16.msra.mxu0 %v10376_v2  ;;  %5094 = vmatpush.bf16.msrb.mxu1 %v10388_v9  ;;  %v12877_v28 = vld [vmem:[%s20025_s1 + $0x824] sm:$0xf]  ;;  %v12868_v2 = vld [vmem:[%s20025_s1 + $0x6e4] sm:$0xf0] }
 0x2f1   :  { %v12933_v6 = vld [vmem:[%s20025_s1 + $0xf24] sm:$0xf]  ;;  %v12904_v4 = vld [vmem:[%s20025_s1 + $0xb64] sm:$0xf0]  ;;  %v10472_v34 = vor.u32 %v12868_v2, %v10471_v32 }
 0x2f2   :  { %5063 = vmatpush.bf16.msra.mxu3 %v10688_v5  ;;  %5105 = vmatpush.bf16.msrb.mxu2 %v10564_v29  ;;  %v10487_v5 = vld [vmem:[%s20025_s1 + $0x728] sm:$0xf]  ;;  %v10513_v29 = vld [vmem:[%s20025_s1 + $0x860] sm:$0xf0]  ;;  %v10616_v8 = vor.u32 %v12904_v4, %v10615_v48 }
 0x2f3   :  { %v10488_v33 = vor.u32 %v12872_v17, %v10487_v5  ;;  %5095 = vmatmul.bf16.vlgmr.msrb.gmra.mxu1 %v13657_v0  ;;  %v10516_v46 = vor.u32 %v12877_v28, %v10513_v29  ;;  %v10737_v54 = vld [vmem:[%s20025_s1 + $0xf60] sm:$0xf0]  ;;  %v10327_v9 = vld [vmem:[%s20025_s1 + $0x228] sm:$0xf] }
 0x2f4   :  { %5143 = vmatpush.bf16.msra.mxu1 %v10504_v16  ;;  %5130 = vmatpush.bf16.msra.mxu0 %v10360_v57  ;;  %v12832_v11 = vld [vmem:[%s20025_s1 + $0x264] sm:$0xf0]  ;;  %v10740_v31 = vor.u32 %v12933_v6, %v10737_v54  ;;  %v12929_v13 = vld [vmem:[%s20025_s1 + $0xea4] sm:$0xf] }
 0x2f5   :  { %v10721_v16 = vld [vmem:[%s20025_s1 + $0xee0] sm:$0xf0]  ;;  %v10328_v52 = vor.u32 %v12832_v11, %v10327_v9  ;;  %v10311_v5 = vld [vmem:[%s20025_s1 + $0x1a8] sm:$0xf] }
 0x2f6   :  { %5064 = vmatpush.bf16.msra.mxu3 %v10672_v47  ;;  %5106 = vmatpush.bf16.msrb.mxu2 %v10548_v56  ;;  %v10756_v47 = vor.u32 %v12937_v25, %v10753_v35  ;;  %v10632_v56 = vor.u32 %v12908_v39, %v10631_v38  ;;  %v12864_v25 = vld [vmem:[%s20025_s1 + $0x664] sm:$0xf0]  ;;  %v17095_v35 = vpop.f32.mrf.mxu1  ;;  %v10724_v29 = vor.u32 %v12929_v13, %v10721_v16  ;;  %v10705_v38 = vld [vmem:[%s20025_s1 + $0xe60] sm:$0xf0] }
 0x2f7   :  { %v10456_v57 = vor.u32 %v12864_v25, %v10455_v24  ;;  %v12828_v17 = vld [vmem:[%s20025_s1 + $0x1e4] sm:$0xf0]  ;;  %v12921_v54 = vld [vmem:[%s20025_s1 + $0xda4] sm:$0xf] }
 0x2f8   :  { %5144 = vmatpush.bf16.msra.mxu1 %v10488_v33  ;;  %5131 = vmatpush.bf16.msra.mxu0 %v10344_v50  ;;  %v10312_v28 = vor.u32 %v12828_v17, %v10311_v5  ;;  %v12925_v33 = vld [vmem:[%s20025_s1 + $0xe24] sm:$0xf]  ;;  %v10439_v41 = vld [vmem:[%s20025_s1 + $0x5a8] sm:$0xf] }
 0x2f9   :  { %v10583_v43 = vld [vmem:[%s20025_s1 + $0xa28] sm:$0xf]  ;;  %v10708_v50 = vor.u32 %v12925_v33, %v10705_v38  ;;  %v10689_v32 = vld [vmem:[%s20025_s1 + $0xde0] sm:$0xf0] }
 0x2fa   :  { %5065 = vmatpush.bf16.msra.mxu3 %v10656_v18  ;;  %5107 = vmatpush.bf16.msrb.mxu2 %v10532_v30  ;;  %v17074_v18 = vpop.f32.mrf.mxu0  ;;  %v12900_v30 = vld [vmem:[%s20025_s1 + $0xae4] sm:$0xf0]  ;;  %v12917_v24 = vld [vmem:[%s20025_s1 + $0xd24] sm:$0xf] }
 0x2fb   :  { %v10600_v39 = vor.u32 %v12900_v30, %v10599_v22  ;;  %v12896_v27 = vld [vmem:[%s20025_s1 + $0xa64] sm:$0xf0]  ;;  %v10692_v22 = vor.u32 %v12921_v54, %v10689_v32  ;;  %v10673_v30 = vld [vmem:[%s20025_s1 + $0xd60] sm:$0xf0] }
 0x2fc   :  { %5145 = vmatpush.bf16.msra.mxu1 %v10472_v34  ;;  %5132 = vmatpush.bf16.msra.mxu0 %v10328_v52  ;;  %v10295_v6 = vld [vmem:[%s20025_s1 + $0x128] sm:$0xf]  ;;  %v10584_v2 = vor.u32 %v12896_v27, %v10583_v43  ;;  %v10676_v27 = vor.u32 %v12917_v24, %v10673_v30 }
 0x2fd   :  { %v10423_v48 = vld [vmem:[%s20025_s1 + $0x528] sm:$0xf] }
 0x2fe   :  { %5066 = vmatpush.bf16.msra.mxu3 %v10640_v42  ;;  %5108 = vmatpush.bf16.msrb.mxu2 %v10516_v46  ;;  %v12860_v42 = vld [vmem:[%s20025_s1 + $0x5e4] sm:$0xf0] }
 0x2ff   :  { %v12824_v46 = vld [vmem:[%s20025_s1 + $0x164] sm:$0xf0] }
 0x300   :  { %5146 = vmatpush.bf16.msra.mxu1 %v10456_v57  ;;  %5133 = vmatpush.bf16.msra.mxu0 %v10312_v28  ;;  %v12856_v4 = vld [vmem:[%s20025_s1 + $0x564] sm:$0xf0]  ;;  %v4006_v13 = vpop.f32.mrf.mxu1 }
 0x301   :  { %5067 = vmatmul.bf16.vlgmr.msra.gmra.mxu3 %v13649_v60  ;;  %5109 = vmatmul.bf16.vlgmr.msrb.gmra.mxu2 %v13636_v55  ;;  %v10567_v34 = vld [vmem:[%s20025_s1 + $0x9a8] sm:$0xf]  ;;  %v10424_v11 = vor.u32 %v12856_v4, %v10423_v48 }
 0x302   :  { %5115 = vmatpush.bf16.msrb.mxu3 %v10756_v47  ;;  %5157 = vmatpush.bf16.msra.mxu2 %v10632_v56  ;;  %v10440_v47 = vor.u32 %v12860_v42, %v10439_v41  ;;  %v10296_v56 = vor.u32 %v12824_v46, %v10295_v6  ;;  %v12892_v9 = vld [vmem:[%s20025_s1 + $0x9e4] sm:$0xf0]  ;;  %v12842_v46 = vld [vmem:[%s20025_s1 + $0x3ac] sm:$0xf] }
 0x303   :  { %v10279_v16 = vld [vmem:[%s20025_s1 + $0xa8] sm:$0xf]  ;;  %v10568_v57 = vor.u32 %v12892_v9, %v10567_v34  ;;  %v12874_v34 = vld [vmem:[%s20025_s1 + $0x7ac] sm:$0xf] }
 0x304   :  { %5147 = vmatpush.bf16.msra.mxu1 %v10440_v47  ;;  %5134 = vmatpush.bf16.msra.mxu0 %v10296_v56  ;;  %v12820_v52 = vld [vmem:[%s20025_s1 + $0xe4] sm:$0xf0]  ;;  %v3908_v38 = vpop.f32.mrf.mxu2  ;;  %v10657_v47 = vld [vmem:[%s20025_s1 + $0xce0] sm:$0xf0]  ;;  %v10505_v9 = vld [vmem:[%s20025_s1 + $0x7e8] sm:$0xf0] }
 0x305   :  { %v10280_v25 = vor.u32 %v12820_v52, %v10279_v16  ;;  %v10407_v5 = vld [vmem:[%s20025_s1 + $0x4a8] sm:$0xf]  ;;  %v17176_v43 = vadd.f32 %v3908_v38, %v16917_v15  ;;  %v10641_v16 = vld [vmem:[%s20025_s1 + $0xc60] sm:$0xf0]  ;;  %v12838_v52 = vld [vmem:[%s20025_s1 + $0x32c] sm:$0xf] }
 0x306   :  { %5116 = vmatpush.bf16.msrb.mxu3 %v10740_v31  ;;  %5158 = vmatpush.bf16.msra.mxu2 %v10616_v8  ;;  %v3992_v31 = vpop.f32.mrf.mxu0  ;;  %v12852_v17 = vld [vmem:[%s20025_s1 + $0x4e4] sm:$0xf0]  ;;  %v12906_v38 = vld [vmem:[%s20025_s1 + $0xbac] sm:$0xf] }
 0x307   :  { %v17146_v8 = vadd.f32 %v4006_v13, %v3992_v31  ;;  %v10551_v28 = vld [vmem:[%s20025_s1 + $0x928] sm:$0xf]  ;;  %v10408_v33 = vor.u32 %v12852_v17, %v10407_v5  ;;  %v10508_v31 = vor.u32 %v12874_v34, %v10505_v9  ;;  %v12830_v9 = vld [vmem:[%s20025_s1 + $0x22c] sm:$0xf] }
 0x308   :  { %5148 = vmatpush.bf16.msra.mxu1 %v10424_v11  ;;  %5135 = vmatpush.bf16.msra.mxu0 %v10280_v25  ;;  %v10263_v41 = vld [vmem:[%s20025_s1 + $0x28] sm:$0xf]  ;;  %v12909_v11 = vld [vmem:[%s20025_s1 + $0xc24] sm:$0xf] }
 0x309   :  { %v12816_v42 = vld [vmem:[%s20025_s1 + $0x64] sm:$0xf0] }
 0x30a   :  { %5117 = vmatpush.bf16.msrb.mxu3 %v10724_v29  ;;  %5159 = vmatpush.bf16.msra.mxu2 %v10600_v39  ;;  %v12888_v29 = vld [vmem:[%s20025_s1 + $0x964] sm:$0xf0]  ;;  %v12913_v39 = vld [vmem:[%s20025_s1 + $0xca4] sm:$0xf]  ;;  %v10264_v6 = vor.u32 %v12816_v42, %v10263_v41  ;;  %v10644_v42 = vor.u32 %v12909_v11, %v10641_v16  ;;  %v10329_v11 = vld [vmem:[%s20025_s1 + $0x268] sm:$0xf0] }
 0x30b   :  { %v10552_v54 = vor.u32 %v12888_v29, %v10551_v28  ;;  %v10535_v15 = vld [vmem:[%s20025_s1 + $0x8a8] sm:$0xf]  ;;  %v10660_v13 = vor.u32 %v12913_v39, %v10657_v47  ;;  %v12870_v28 = vld [vmem:[%s20025_s1 + $0x72c] sm:$0xf] }
 0x30c   :  { %5149 = vmatpush.bf16.msra.mxu1 %v10408_v33  ;;  %v10391_v32 = vld [vmem:[%s20025_s1 + $0x428] sm:$0xf]  ;;  %5136 = vmatpush.bf16.msra.mxu0 %v10264_v6  ;;  %v10489_v29 = vld [vmem:[%s20025_s1 + $0x768] sm:$0xf0]  ;;  %v17236_v33 = vpop.f32.mrf.mxu2 }
 0x30d   :  { %v12884_v48 = vld [vmem:[%s20025_s1 + $0x8e4] sm:$0xf0]  ;;  %v10633_v39 = vld [vmem:[%s20025_s1 + $0xbe8] sm:$0xf0]  ;;  %v10492_v41 = vor.u32 %v12870_v28, %v10489_v29 }
 0x30e   :  { %5118 = vmatpush.bf16.msrb.mxu3 %v10708_v50  ;;  %5160 = vmatpush.bf16.msra.mxu2 %v10584_v2  ;;  %v10377_v50 = vld [vmem:[%s20025_s1 + $0x3e8] sm:$0xf0]  ;;  %v12848_v2 = vld [vmem:[%s20025_s1 + $0x464] sm:$0xf0]  ;;  %v10536_v30 = vor.u32 %v12884_v48, %v10535_v15 }
 0x30f   :  { %v10380_v56 = vor.u32 %v12842_v46, %v10377_v50  ;;  %v10392_v4 = vor.u32 %v12848_v2, %v10391_v32  ;;  %v10759_v24 = vld [vmem:[%s20025_s1 + $0xfa8] sm:$0xf]  ;;  %5137 = vmatmul.bf16.vlgmr.msra.gmra.mxu0 %v13647_v59  ;;  %v10345_v47 = vld [vmem:[%s20025_s1 + $0x2e8] sm:$0xf0] }
 0x310   :  { %v12940_v25 = vld [vmem:[%s20025_s1 + $0xfe4] sm:$0xf0]  ;;  %v12866_v32 = vld [vmem:[%s20025_s1 + $0x6ac] sm:$0xf] }
 0x311   :  { %5185 = vmatpush.bf16.msrb.mxu0 %v10380_v56  ;;  %5150 = vmatpush.bf16.msra.mxu1 %v10392_v4  ;;  %v12880_v17 = vld [vmem:[%s20025_s1 + $0x864] sm:$0xf0]  ;;  %v10760_v6 = vor.u32 %v12940_v25, %v10759_v24  ;;  %v10636_v56 = vor.u32 %v12906_v38, %v10633_v39  ;;  %v10473_v2 = vld [vmem:[%s20025_s1 + $0x6e8] sm:$0xf0]  ;;  %v17300_v38 = vpop.f32.mrf.mxu0  ;;  %v17302_v39 = vpop.f32.mrf.mxu1 }
 0x312   :  { %5119 = vmatpush.bf16.msrb.mxu3 %v10692_v22  ;;  %5161 = vmatpush.bf16.msra.mxu2 %v10568_v57  ;;  %v10361_v22 = vld [vmem:[%s20025_s1 + $0x368] sm:$0xf0]  ;;  %v10519_v57 = vld [vmem:[%s20025_s1 + $0x828] sm:$0xf]  ;;  %v10476_v34 = vor.u32 %v12866_v32, %v10473_v2 }
 0x313   :  { %v10364_v5 = vor.u32 %v12838_v52, %v10361_v22  ;;  %v10743_v46 = vld [vmem:[%s20025_s1 + $0xf28] sm:$0xf]  ;;  %v10520_v50 = vor.u32 %v12880_v17, %v10519_v57  ;;  %v12902_v48 = vld [vmem:[%s20025_s1 + $0xb2c] sm:$0xf]  ;;  %v10332_v52 = vor.u32 %v12830_v9, %v10329_v11 }
 0x314   :  { %5151 = vmatmul.bf16.vlgmr.msra.gmra.mxu1 %v13657_v0  ;;  %v12936_v15 = vld [vmem:[%s20025_s1 + $0xf64] sm:$0xf0]  ;;  %v10617_v4 = vld [vmem:[%s20025_s1 + $0xb68] sm:$0xf0]  ;;  %v3964_v57 = vpop.f32.mrf.mxu2 }
 0x315   :  { %5199 = vmatpush.bf16.msrb.mxu1 %v10508_v31  ;;  %5186 = vmatpush.bf16.msrb.mxu0 %v10364_v5  ;;  %v10744_v31 = vor.u32 %v12936_v15, %v10743_v46  ;;  %v12932_v16 = vld [vmem:[%s20025_s1 + $0xee4] sm:$0xf0]  ;;  %v10620_v22 = vor.u32 %v12902_v48, %v10617_v4  ;;  %v12898_v24 = vld [vmem:[%s20025_s1 + $0xaac] sm:$0xf]  ;;  %v17335_v48 = vld [vmem:[%s20028_s4] sm:$0xf] }
 0x316   :  { %5120 = vmatpush.bf16.msrb.mxu3 %v10676_v27  ;;  %5162 = vmatpush.bf16.msra.mxu2 %v10552_v54  ;;  %v12834_v27 = vld [vmem:[%s20025_s1 + $0x2ac] sm:$0xf]  ;;  %v12924_v9 = vld [vmem:[%s20025_s1 + $0xde4] sm:$0xf0] }
 0x317   :  { %v10348_v54 = vor.u32 %v12834_v27, %v10345_v47  ;;  %v12862_v25 = vld [vmem:[%s20025_s1 + $0x62c] sm:$0xf]  ;;  %v10711_v47 = vld [vmem:[%s20025_s1 + $0xe28] sm:$0xf] }
 0x318   :  { %v10601_v5 = vld [vmem:[%s20025_s1 + $0xae8] sm:$0xf0] }
 0x319   :  { %5200 = vmatpush.bf16.msrb.mxu1 %v10492_v41  ;;  %5187 = vmatpush.bf16.msrb.mxu0 %v10348_v54  ;;  %v12826_v28 = vld [vmem:[%s20025_s1 + $0x1ac] sm:$0xf]  ;;  %v17305_v41 = vadd.f32 %v3964_v57, %v17042_v44  ;;  %v10604_v46 = vor.u32 %v12898_v24, %v10601_v5  ;;  %v20033_v5 = vperm.slane %v17335_v48, 0 }
 0x31a   :  { %5121 = vmatpush.bf16.msrb.mxu3 %v10660_v13  ;;  %5163 = vmatpush.bf16.msra.mxu2 %v10536_v30  ;;  %v10727_v13 = vld [vmem:[%s20025_s1 + $0xea8] sm:$0xf]  ;;  %v10457_v30 = vld [vmem:[%s20025_s1 + $0x668] sm:$0xf0] }
 0x31b   :  { %v10460_v17 = vor.u32 %v12862_v25, %v10457_v30  ;;  %v10313_v29 = vld [vmem:[%s20025_s1 + $0x1e8] sm:$0xf0]  ;;  %v10728_v27 = vor.u32 %v12932_v16, %v10727_v13 }
 0x31c   :  { %v12858_v44 = vld [vmem:[%s20025_s1 + $0x5ac] sm:$0xf] }
 0x31d   :  { %5201 = vmatpush.bf16.msrb.mxu1 %v10476_v34  ;;  %5188 = vmatpush.bf16.msrb.mxu0 %v10332_v52  ;;  %v12894_v54 = vld [vmem:[%s20025_s1 + $0xa2c] sm:$0xf]  ;;  %v10695_v34 = vld [vmem:[%s20025_s1 + $0xda8] sm:$0xf] }
 0x31e   :  { %5122 = vmatpush.bf16.msrb.mxu3 %v10644_v42  ;;  %5164 = vmatpush.bf16.msra.mxu2 %v10520_v50  ;;  %v10316_v42 = vor.u32 %v12826_v28, %v10313_v29  ;;  %v10441_v50 = vld [vmem:[%s20025_s1 + $0x5e8] sm:$0xf0]  ;;  %v4062_v28 = vpop.f32.mrf.mxu1 }
 0x31f   :  { %v10585_v15 = vld [vmem:[%s20025_s1 + $0xa68] sm:$0xf0] }
 0x320   :  { %v12822_v32 = vld [vmem:[%s20025_s1 + $0x12c] sm:$0xf] }
 0x321   :  { %5123 = vmatmul.bf16.vlgmr.msrb.gmra.mxu3 %v13649_v60  ;;  %5165 = vmatmul.bf16.vlgmr.msra.gmra.mxu2 %v13636_v55  ;;  %v10297_v2 = vld [vmem:[%s20025_s1 + $0x168] sm:$0xf0] }
 0x322   :  { %5171 = vmatpush.bf16.msra.mxu3 %v10760_v6  ;;  %5213 = vmatpush.bf16.msrb.mxu2 %v10636_v56  ;;  %v12928_v6 = vld [vmem:[%s20025_s1 + $0xe64] sm:$0xf0]  ;;  %v10444_v56 = vor.u32 %v12858_v44, %v10441_v50  ;;  %v10300_v11 = vor.u32 %v12822_v32, %v10297_v2  ;;  %v12890_v13 = vld [vmem:[%s20025_s1 + $0x9ac] sm:$0xf]  ;;  %v2065_v2 = vadd.f32 %v15736_v51, %v20033_v5 }
 0x323   :  { %5202 = vmatpush.bf16.msrb.mxu1 %v10460_v17  ;;  %5189 = vmatpush.bf16.msrb.mxu0 %v10316_v42  ;;  %v10712_v4 = vor.u32 %v12928_v6, %v10711_v47  ;;  %v12854_v16 = vld [vmem:[%s20025_s1 + $0x52c] sm:$0xf]  ;;  %v4048_v17 = vpop.f32.mrf.mxu0  ;;  %v10679_v47 = vld [vmem:[%s20025_s1 + $0xd28] sm:$0xf] }
 0x324   :  { %v10425_v52 = vld [vmem:[%s20025_s1 + $0x568] sm:$0xf0]  ;;  %v17364_v42 = vadd.f32 %v4062_v28, %v4048_v17  ;;  %v12920_v6 = vld [vmem:[%s20025_s1 + $0xd64] sm:$0xf0] }
 0x325   :  { %v10569_v24 = vld [vmem:[%s20025_s1 + $0x9e8] sm:$0xf0]  ;;  %v10428_v25 = vor.u32 %v12854_v16, %v10425_v52  ;;  %v12916_v51 = vld [vmem:[%s20025_s1 + $0xce4] sm:$0xf0] }
 0x326   :  { %5172 = vmatpush.bf16.msra.mxu3 %v10744_v31  ;;  %5214 = vmatpush.bf16.msrb.mxu2 %v10620_v22  ;;  %v10588_v31 = vor.u32 %v12894_v54, %v10585_v15  ;;  %v17352_v22 = vpop.f32.mrf.mxu2  ;;  %v12818_v30 = vld [vmem:[%s20025_s1 + $0xac] sm:$0xf]  ;;  %v3922_v54 = vpop.f32.mrf.mxu3  ;;  %v10999_v5 = vld [vmem:[%s20027_s3 + $0x9c8] sm:$0xf] }
 0x327   :  { %5203 = vmatpush.bf16.msrb.mxu1 %v10444_v56  ;;  %5190 = vmatpush.bf16.msrb.mxu0 %v10300_v11  ;;  %v10281_v57 = vld [vmem:[%s20025_s1 + $0xe8] sm:$0xf0]  ;;  %v10680_v11 = vor.u32 %v12920_v6, %v10679_v47  ;;  %v12912_v47 = vld [vmem:[%s20025_s1 + $0xc64] sm:$0xf0] }
 0x328   :  { %v10284_v29 = vor.u32 %v12818_v30, %v10281_v57  ;;  %v12850_v44 = vld [vmem:[%s20025_s1 + $0x4ac] sm:$0xf] }
 0x329   :  { %v10409_v50 = vld [vmem:[%s20025_s1 + $0x4e8] sm:$0xf0] }
 0x32a   :  { %5173 = vmatpush.bf16.msra.mxu3 %v10728_v27  ;;  %5215 = vmatpush.bf16.msrb.mxu2 %v10604_v46  ;;  %v10696_v27 = vor.u32 %v12924_v9, %v10695_v34  ;;  %v10572_v46 = vor.u32 %v12890_v13, %v10569_v24  ;;  %v12886_v15 = vld [vmem:[%s20025_s1 + $0x92c] sm:$0xf]  ;;  %v10412_v32 = vor.u32 %v12850_v44, %v10409_v50 }
 0x32b   :  { %5204 = vmatpush.bf16.msrb.mxu1 %v10428_v25  ;;  %v10553_v56 = vld [vmem:[%s20025_s1 + $0x968] sm:$0xf0]  ;;  %5191 = vmatpush.bf16.msrb.mxu0 %v10284_v29 }
 0x32c   :  { %v12814_v34 = vld [vmem:[%s20025_s1 + $0x2c] sm:$0xf] }
 0x32d   :  { %v10265_v9 = vld [vmem:[%s20025_s1 + $0x68] sm:$0xf0] }
 0x32e   :  { %5174 = vmatpush.bf16.msra.mxu3 %v10712_v4  ;;  %5216 = vmatpush.bf16.msrb.mxu2 %v10588_v31  ;;  %v3923_v4 = vadd.f32 %v3922_v54, %v17176_v43  ;;  %v10663_v31 = vld [vmem:[%s20025_s1 + $0xca8] sm:$0xf]  ;;  %v10268_v13 = vor.u32 %v12814_v34, %v10265_v9  ;;  %v10556_v43 = vor.u32 %v12886_v15, %v10553_v56  ;;  %v12846_v52 = vld [vmem:[%s20025_s1 + $0x42c] sm:$0xf]  ;;  %v4020_v25 = vpop.f32.mrf.mxu2  ;;  %v17426_v44 = vpop.f32.mrf.mxu3  ;;  %v20032_v34 = vperm.slane %v17335_v48, 1 }
 0x32f   :  { %5205 = vmatpush.bf16.msrb.mxu1 %v10412_v32  ;;  %v10393_v24 = vld [vmem:[%s20025_s1 + $0x468] sm:$0xf0]  ;;  %v17415_v28 = vadd.f32 %v4020_v25, %v17146_v8  ;;  %v10664_v29 = vor.u32 %v12916_v51, %v10663_v31  ;;  %v10879_v9 = vld [vmem:[%s20027_s3 + $0x8e0] sm:$0xf]  ;;  %v12967_v51 = vld [vmem:[%s20027_s3 + $0x8cc] sm:$0xf0] }
 0x330   :  { %v17397_v16 = vadd.f32 %v3923_v4, %v2065_v2  ;;  %v12882_v30 = vld [vmem:[%s20025_s1 + $0x8ac] sm:$0xf]  ;;  %5192 = vmatpush.bf16.msrb.mxu0 %v10268_v13  ;;  %v10396_v17 = vor.u32 %v12846_v52, %v10393_v24  ;;  %v10863_v13 = vld [vmem:[%s20027_s3 + $0x8c0] sm:$0xf] }
 0x331   :  { %v10537_v57 = vld [vmem:[%s20025_s1 + $0x8e8] sm:$0xf0] }
 0x332   :  { %5175 = vmatpush.bf16.msra.mxu3 %v10696_v27  ;;  %5217 = vmatpush.bf16.msrb.mxu2 %v10572_v46  ;;  %v10647_v27 = vld [vmem:[%s20025_s1 + $0xc28] sm:$0xf]  ;;  %v12938_v6 = vld [vmem:[%s20025_s1 + $0xfac] sm:$0xf]  ;;  %v10540_v46 = vor.u32 %v12882_v30, %v10537_v57  ;;  %v10864_v30 = vor.u32 %v12967_v51, %v10863_v13  ;;  %v2066_v57 = vadd.f32 %v15813_v40, %v20032_v34  ;;  %v20031_v13 = vperm.slane %v17335_v48, 2 }
 0x333   :  { %5206 = vmatpush.bf16.msrb.mxu1 %v10396_v17  ;;  %v10761_v8 = vld [vmem:[%s20025_s1 + $0xfe8] sm:$0xf0]  ;;  %5193 = vmatmul.bf16.vlgmr.msrb.gmra.mxu0 %v13647_v59  ;;  %v10648_v15 = vor.u32 %v12912_v47, %v10647_v27  ;;  %v12963_v27 = vld [vmem:[%s20027_s3 + $0x8ac] sm:$0xf0]  ;;  %v10815_v51 = vld [vmem:[%s20027_s3 + $0x860] sm:$0xf] }
 0x334   :  { %v12878_v50 = vld [vmem:[%s20025_s1 + $0x82c] sm:$0xf]  ;;  %v10764_v56 = vor.u32 %v12938_v6, %v10761_v8  ;;  %v10831_v8 = vld [vmem:[%s20027_s3 + $0x880] sm:$0xf]  ;;  %v12956_v34 = vld [vmem:[%s20027_s3 + $0x874] sm:$0xf0] }
 0x335   :  { %v10521_v54 = vld [vmem:[%s20025_s1 + $0x868] sm:$0xf0] }
 0x336   :  { %5176 = vmatpush.bf16.msra.mxu3 %v10680_v11  ;;  %5218 = vmatpush.bf16.msrb.mxu2 %v10556_v43  ;;  %v10524_v32 = vor.u32 %v12878_v50, %v10521_v54  ;;  %v12934_v2 = vld [vmem:[%s20025_s1 + $0xf2c] sm:$0xf]  ;;  %v12971_v11 = vld [vmem:[%s20027_s3 + $0x8ec] sm:$0xf0]  ;;  %v3978_v52 = vpop.f32.mrf.mxu3 }
 0x337   :  { %5207 = vmatmul.bf16.vlgmr.msrb.gmra.mxu1 %v13657_v0  ;;  %v10745_v4 = vld [vmem:[%s20025_s1 + $0xf68] sm:$0xf0]  ;;  %v10880_v31 = vor.u32 %v12971_v11, %v10879_v9  ;;  %v3979_v17 = vadd.f32 %v3978_v52, %v17305_v41  ;;  %v12959_v50 = vld [vmem:[%s20027_s3 + $0x88c] sm:$0xf0] }
 0x338   :  { %v10748_v43 = vor.u32 %v12934_v2, %v10745_v4  ;;  %v12930_v24 = vld [vmem:[%s20025_s1 + $0xeac] sm:$0xf]  ;;  %v10832_v2 = vor.u32 %v12959_v50, %v10831_v8  ;;  %v17498_v4 = vpop.f32.mrf.mxu2 }
 0x339   :  { %v10729_v25 = vld [vmem:[%s20025_s1 + $0xee8] sm:$0xf0]  ;;  %5901 = vmatpush.bf16.msra.mxu0 %v10880_v31  ;;  %v17476_v47 = vadd.f32 %v3979_v17, %v2066_v57  ;;  %v10799_v17 = vld [vmem:[%s20027_s3 + $0x840] sm:$0xf] }
 0x33a   :  { %5177 = vmatpush.bf16.msra.mxu3 %v10664_v29  ;;  %5219 = vmatpush.bf16.msrb.mxu2 %v10540_v46  ;;  %v10847_v29 = vld [vmem:[%s20027_s3 + $0x8a0] sm:$0xf]  ;;  %v10732_v6 = vor.u32 %v12930_v24, %v10729_v25  ;;  %v12926_v40 = vld [vmem:[%s20025_s1 + $0xe2c] sm:$0xf] }
 0x33b   :  { %v10713_v41 = vld [vmem:[%s20025_s1 + $0xe68] sm:$0xf0]  ;;  %v10848_v46 = vor.u32 %v12963_v27, %v10847_v29  ;;  %v12951_v29 = vld [vmem:[%s20027_s3 + $0x84c] sm:$0xf0]  ;;  %v2067_v27 = vadd.f32 %v15866_v12, %v20031_v13  ;;  %v10783_v12 = vld [vmem:[%s20027_s3 + $0x820] sm:$0xf] }
 0x33c   :  { %v10716_v54 = vor.u32 %v12926_v40, %v10713_v41  ;;  %v12918_v11 = vld [vmem:[%s20025_s1 + $0xd2c] sm:$0xf]  ;;  %v10800_v41 = vor.u32 %v12951_v29, %v10799_v17  ;;  %v12965_v17 = vld [vmem:[%s20027_s3 + $0x8c4] sm:$0xf]  ;;  %v10865_v29 = vld [vmem:[%s20027_s3 + $0x8d0] sm:$0xf0] }
 0x33d   :  { %5902 = vmatpush.bf16.msra.mxu0 %v10864_v30  ;;  %v10681_v31 = vld [vmem:[%s20025_s1 + $0xd68] sm:$0xf0]  ;;  %v10823_v13 = vld [vmem:[%s20027_s3 + $0x868] sm:$0xf] }
 0x33e   :  { %5178 = vmatpush.bf16.msra.mxu3 %v10648_v15  ;;  %5220 = vmatpush.bf16.msrb.mxu2 %v10524_v32  ;;  %v17490_v15 = vpop.f32.mrf.mxu3  ;;  %v10697_v32 = vld [vmem:[%s20025_s1 + $0xde8] sm:$0xf0]  ;;  %v10684_v24 = vor.u32 %v12918_v11, %v10681_v31  ;;  %v11007_v11 = vld [vmem:[%s20027_s3 + $0x9e0] sm:$0xf] }
 0x33f   :  { %v12914_v25 = vld [vmem:[%s20025_s1 + $0xcac] sm:$0xf] }
 0x340   :  { %v10665_v57 = vld [vmem:[%s20025_s1 + $0xce8] sm:$0xf0] }
 0x341   :  { %5179 = vmatmul.bf16.vlgmr.msra.gmra.mxu3 %v13649_v60  ;;  %5221 = vmatmul.bf16.vlgmr.msrb.gmra.mxu2 %v13636_v55  ;;  %v10668_v50 = vor.u32 %v12914_v25, %v10665_v57  ;;  %v12999_v57 = vld [vmem:[%s20027_s3 + $0x9cc] sm:$0xf0] }
 0x342   :  { %5227 = vmatpush.bf16.msrb.mxu3 %v10764_v56  ;;  %v12922_v56 = vld [vmem:[%s20025_s1 + $0xdac] sm:$0xf]  ;;  %5903 = vmatpush.bf16.msra.mxu0 %v10848_v46 }
 0x343   :  { %v10700_v9 = vor.u32 %v12922_v56, %v10697_v32  ;;  %v10649_v56 = vld [vmem:[%s20025_s1 + $0xc68] sm:$0xf0] }
 0x346   :  { %5228 = vmatpush.bf16.msrb.mxu3 %v10748_v43  ;;  %5904 = vmatpush.bf16.msra.mxu0 %v10832_v2  ;;  %v12955_v43 = vld [vmem:[%s20027_s3 + $0x86c] sm:$0xf0]  ;;  %v4034_v30 = vpop.f32.mrf.mxu3  ;;  %v10767_v2 = vld [vmem:[%s20027_s3 + $0x800] sm:$0xf] }
 0x347   :  { %v10816_v52 = vor.u32 %v12955_v43, %v10815_v51  ;;  %v4035_v40 = vadd.f32 %v4034_v30, %v17415_v28  ;;  %v13003_v51 = vld [vmem:[%s20027_s3 + $0x9ec] sm:$0xf0]  ;;  %v12969_v43 = vld [vmem:[%s20027_s3 + $0x8e4] sm:$0xf]  ;;  %v10991_v30 = vld [vmem:[%s20027_s3 + $0x9c0] sm:$0xf] }
 0x349   :  { %v17532_v8 = vadd.f32 %v4035_v40, %v2067_v27  ;;  %v10992_v27 = vor.u32 %v12999_v57, %v10991_v30  ;;  %v10975_v40 = vld [vmem:[%s20027_s3 + $0x9a0] sm:$0xf]  ;;  %v10817_v30 = vld [vmem:[%s20027_s3 + $0x870] sm:$0xf0] }
 0x34a   :  { %5229 = vmatpush.bf16.msrb.mxu3 %v10732_v6  ;;  %5905 = vmatpush.bf16.msra.mxu0 %v10816_v52  ;;  %v4076_v6 = vpop.f32.mrf.mxu2  ;;  %v10881_v52 = vld [vmem:[%s20027_s3 + $0x8f0] sm:$0xf0] }
 0x34b   :  { %v17530_v46 = vadd.f32 %v4076_v6, %v17364_v42  ;;  %v12947_v42 = vld [vmem:[%s20027_s3 + $0x82c] sm:$0xf0]  ;;  %v10884_v25 = vor.u32 %v12969_v43, %v10881_v52  ;;  %v10868_v6 = vor.u32 %v12965_v17, %v10865_v29  ;;  %v10943_v43 = vld [vmem:[%s20027_s3 + $0x960] sm:$0xf] }
 0x34c   :  { %v10784_v28 = vor.u32 %v12947_v42, %v10783_v12  ;;  %v10959_v42 = vld [vmem:[%s20027_s3 + $0x980] sm:$0xf]  ;;  %v12987_v52 = vld [vmem:[%s20027_s3 + $0x96c] sm:$0xf0] }
 0x34d   :  { %v10927_v29 = vld [vmem:[%s20027_s3 + $0x940] sm:$0xf] }
 0x34e   :  { %5230 = vmatpush.bf16.msrb.mxu3 %v10716_v54  ;;  %v12910_v54 = vld [vmem:[%s20025_s1 + $0xc2c] sm:$0xf]  ;;  %5906 = vmatpush.bf16.msra.mxu0 %v10800_v41  ;;  %v12995_v41 = vld [vmem:[%s20027_s3 + $0x9ac] sm:$0xf0] }
 0x34f   :  { %v10652_v32 = vor.u32 %v12910_v54, %v10649_v56  ;;  %v10849_v54 = vld [vmem:[%s20027_s3 + $0x8b0] sm:$0xf0]  ;;  %v10976_v56 = vor.u32 %v12995_v41, %v10975_v40 }
 0x352   :  { %5231 = vmatpush.bf16.msrb.mxu3 %v10700_v9  ;;  %5907 = vmatpush.bf16.msra.mxu0 %v10784_v28  ;;  %v12943_v9 = vld [vmem:[%s20027_s3 + $0x80c] sm:$0xf0] }
 0x353   :  { %v10768_v31 = vor.u32 %v12943_v9, %v10767_v2  ;;  %v12991_v28 = vld [vmem:[%s20027_s3 + $0x98c] sm:$0xf0]  ;;  %v10833_v2 = vld [vmem:[%s20027_s3 + $0x890] sm:$0xf0] }
 0x354   :  { %v10960_v9 = vor.u32 %v12991_v28, %v10959_v42  ;;  %v17634_v42 = vpop.f32.mrf.mxu0  ;;  %v10911_v28 = vld [vmem:[%s20027_s3 + $0x920] sm:$0xf] }
 0x356   :  { %5232 = vmatpush.bf16.msrb.mxu3 %v10684_v24  ;;  %v11008_v24 = vor.u32 %v13003_v51, %v11007_v11  ;;  %5908 = vmatpush.bf16.msra.mxu0 %v10768_v31  ;;  %v17601_v11 = vpop.f32.mrf.mxu3  ;;  %v20030_v51 = vperm.slane %v17335_v48, 3 }
 0x358   :  { %5915 = vmatpush.bf16.msra.mxu1 %v11008_v24  ;;  %v12953_v24 = vld [vmem:[%s20027_s3 + $0x864] sm:$0xf]  ;;  %v2068_v40 = vadd.f32 %v15959_v36, %v20030_v51  ;;  %v12979_v36 = vld [vmem:[%s20027_s3 + $0x92c] sm:$0xf0] }
 0x359   :  { %v10820_v57 = vor.u32 %v12953_v24, %v10817_v30  ;;  %v12941_v24 = vld [vmem:[%s20027_s3 + $0x804] sm:$0xf]  ;;  %v10769_v30 = vld [vmem:[%s20027_s3 + $0x810] sm:$0xf0] }
 0x35a   :  { %5233 = vmatpush.bf16.msrb.mxu3 %v10668_v50  ;;  %5957 = vmatpush.bf16.msrb.mxu0 %v10884_v25  ;;  %v12961_v50 = vld [vmem:[%s20027_s3 + $0x8a4] sm:$0xf]  ;;  %v10944_v25 = vor.u32 %v12987_v52, %v10943_v43  ;;  %v10895_v43 = vld [vmem:[%s20027_s3 + $0x900] sm:$0xf]  ;;  %v12975_v52 = vld [vmem:[%s20027_s3 + $0x90c] sm:$0xf0] }
 0x35b   :  { %v10852_v12 = vor.u32 %v12961_v50, %v10849_v54  ;;  %v10801_v54 = vld [vmem:[%s20027_s3 + $0x850] sm:$0xf0] }
 0x35c   :  { %5916 = vmatpush.bf16.msra.mxu1 %v10992_v27  ;;  %v12983_v27 = vld [vmem:[%s20027_s3 + $0x94c] sm:$0xf0] }
 0x35d   :  { %v10928_v50 = vor.u32 %v12983_v27, %v10927_v29  ;;  %v10772_v29 = vor.u32 %v12941_v24, %v10769_v30  ;;  %v11103_v24 = vld [vmem:[%s20027_s3 + $0xaa0] sm:$0xf] }
 0x35e   :  { %5234 = vmatpush.bf16.msrb.mxu3 %v10652_v32  ;;  %5958 = vmatpush.bf16.msrb.mxu0 %v10868_v6  ;;  %v12957_v32 = vld [vmem:[%s20027_s3 + $0x884] sm:$0xf] }
 0x35f   :  { %v10836_v31 = vor.u32 %v12957_v32, %v10833_v2  ;;  %v12949_v6 = vld [vmem:[%s20027_s3 + $0x844] sm:$0xf]  ;;  %v10912_v32 = vor.u32 %v12979_v36, %v10911_v28  ;;  %v10785_v2 = vld [vmem:[%s20027_s3 + $0x830] sm:$0xf0]  ;;  %v13031_v28 = vld [vmem:[%s20027_s3 + $0xacc] sm:$0xf0] }
 0x360   :  { %5917 = vmatpush.bf16.msra.mxu1 %v10976_v56  ;;  %v10804_v56 = vor.u32 %v12949_v6, %v10801_v54  ;;  %v13001_v6 = vld [vmem:[%s20027_s3 + $0x9e4] sm:$0xf]  ;;  %v5026_v54 = vpop.f32.mrf.mxu0 }
 0x361   :  { %5235 = vmatmul.bf16.vlgmr.msrb.gmra.mxu3 %v13649_v60  ;;  %v12997_v36 = vld [vmem:[%s20027_s3 + $0x9c4] sm:$0xf] }
 0x362   :  { %5959 = vmatpush.bf16.msrb.mxu0 %v10852_v12 }
 0x364   :  { %5918 = vmatpush.bf16.msra.mxu1 %v10960_v9  ;;  %v4090_v17 = vpop.f32.mrf.mxu3 }
 0x365   :  { %v4091_v41 = vadd.f32 %v4090_v17, %v17530_v46  ;;  %v12945_v46 = vld [vmem:[%s20027_s3 + $0x824] sm:$0xf]  ;;  %v13035_v17 = vld [vmem:[%s20027_s3 + $0xaec] sm:$0xf0] }
 0x366   :  { %5960 = vmatpush.bf16.msrb.mxu0 %v10836_v31  ;;  %v10788_v9 = vor.u32 %v12945_v46, %v10785_v2  ;;  %v17648_v31 = vpop.f32.mrf.mxu1  ;;  %v17688_v46 = vld [vmem:[%s20026_s2 + $0x8] sm:$0xf]  ;;  %v10993_v2 = vld [vmem:[%s20027_s3 + $0x9d0] sm:$0xf0] }
 0x367   :  { %v17632_v12 = vadd.f32 %v4091_v41, %v2068_v40  ;;  %20035 = vst [vmem:[#allocation7_spill] sm:$0xff] %v17648_v31  ;;  %v11009_v40 = vld [vmem:[%s20027_s3 + $0x9f0] sm:$0xf0] }
 0x368   :  { %5919 = vmatpush.bf16.msra.mxu1 %v10944_v25  ;;  %v10896_v25 = vor.u32 %v12975_v52, %v10895_v43  ;;  %v11012_v41 = vor.u32 %v13001_v6, %v11009_v40  ;;  %v4369_v43 = vperm.slane %v17688_v46, 0 }
 0x36a   :  { %5961 = vmatpush.bf16.msrb.mxu0 %v10820_v57  ;;  %v11135_v57 = vld [vmem:[%s20027_s3 + $0xae0] sm:$0xf]  ;;  %v5027_v6 = vadd.f32 %v5026_v54, %v4369_v43  ;;  %v10961_v54 = vld [vmem:[%s20027_s3 + $0x990] sm:$0xf0] }
 0x36b   :  { %v11136_v27 = vor.u32 %v13035_v17, %v11135_v57  ;;  %v12993_v57 = vld [vmem:[%s20027_s3 + $0x9a4] sm:$0xf]  ;;  %v10977_v17 = vld [vmem:[%s20027_s3 + $0x9b0] sm:$0xf0] }
 0x36c   :  { %5920 = vmatpush.bf16.msra.mxu1 %v10928_v50  ;;  %v17674_v50 = vpop.f32.mrf.mxu2 }
 0x36d   :  { %20036 = vst [vmem:[#allocation8_spill] sm:$0xff] %v17674_v50  ;;  %5929 = vmatpush.bf16.msra.mxu2 %v11136_v27  ;;  %v17706_v27 = vpop.f32.mrf.mxu3 }
 0x36e   :  { %5962 = vmatpush.bf16.msrb.mxu0 %v10804_v56  ;;  %v11119_v56 = vld [vmem:[%s20027_s3 + $0xac0] sm:$0xf]  ;;  %v5040_v52 = vpop.f32.mrf.mxu1  ;;  %20037 = vst [vmem:[#allocation9_spill] sm:$0xff] %v17706_v27  ;;  %v13065_v27 = vld [vmem:[%s20027_s3 + $0xbe4] sm:$0xf] }
 0x370   :  { %5921 = vmatpush.bf16.msra.mxu1 %v10912_v32  ;;  %v11120_v32 = vor.u32 %v13031_v28, %v11119_v56  ;;  %v13023_v56 = vld [vmem:[%s20027_s3 + $0xa8c] sm:$0xf0]  ;;  %v12989_v28 = vld [vmem:[%s20027_s3 + $0x984] sm:$0xf] }
 0x372   :  { %5963 = vmatpush.bf16.msrb.mxu0 %v10788_v9  ;;  %v10996_v9 = vor.u32 %v12997_v36, %v10993_v2  ;;  %5930 = vmatpush.bf16.msra.mxu2 %v11120_v32  ;;  %v5028_v32 = vpop.f32.mrf.mxu0  ;;  %v10964_v2 = vor.u32 %v12989_v28, %v10961_v54  ;;  %v13015_v28 = vld [vmem:[%s20027_s3 + $0xa4c] sm:$0xf0] }
 0x374   :  { %5922 = vmatpush.bf16.msra.mxu1 %v10896_v25  ;;  %v13027_v25 = vld [vmem:[%s20027_s3 + $0xaac] sm:$0xf0]  ;;  %v5054_v40 = vpop.f32.mrf.mxu2 }
 0x375   :  { %v11104_v30 = vor.u32 %v13027_v25, %v11103_v24  ;;  %v5029_v24 = vadd.f32 %v5028_v32, %v4369_v43  ;;  %v11071_v25 = vld [vmem:[%s20027_s3 + $0xa60] sm:$0xf] }
 0x376   :  { %5964 = vmatpush.bf16.msrb.mxu0 %v10772_v29  ;;  %v10980_v29 = vor.u32 %v12993_v57, %v10977_v17  ;;  %v12985_v57 = vld [vmem:[%s20027_s3 + $0x964] sm:$0xf]  ;;  %v5042_v17 = vpop.f32.mrf.mxu1 }
 0x377   :  { %5931 = vmatpush.bf16.msra.mxu2 %v11104_v30  ;;  %v13019_v30 = vld [vmem:[%s20027_s3 + $0xa6c] sm:$0xf0]  ;;  %v5043_v54 = vadd.f32 %v5042_v17, %v5029_v24  ;;  %v12977_v17 = vld [vmem:[%s20027_s3 + $0x924] sm:$0xf] }
 0x378   :  { %5971 = vmatpush.bf16.msrb.mxu1 %v11012_v41  ;;  %v11087_v41 = vld [vmem:[%s20027_s3 + $0xa80] sm:$0xf]  ;;  %v13011_v24 = vld [vmem:[%s20027_s3 + $0xa2c] sm:$0xf0] }
 0x379   :  { %v11088_v36 = vor.u32 %v13023_v56, %v11087_v41  ;;  %v11055_v56 = vld [vmem:[%s20027_s3 + $0xa40] sm:$0xf] }
 0x37a   :  { %v11056_v32 = vor.u32 %v13015_v28, %v11055_v56  ;;  %v10887_v56 = vld [vmem:[%s20027_s3 + $0x8e8] sm:$0xf]  ;;  %v12972_v28 = vld [vmem:[%s20027_s3 + $0x8f4] sm:$0xf0] }
 0x37b   :  { %5932 = vmatpush.bf16.msra.mxu2 %v11088_v36  ;;  %v12981_v36 = vld [vmem:[%s20027_s3 + $0x944] sm:$0xf] }
 0x37c   :  { %5972 = vmatpush.bf16.msrb.mxu1 %v10996_v9  ;;  %v5041_v9 = vadd.f32 %v5040_v52, %v5027_v6  ;;  %v10945_v52 = vld [vmem:[%s20027_s3 + $0x970] sm:$0xf0] }
 0x37d   :  { %v10948_v43 = vor.u32 %v12985_v57, %v10945_v52  ;;  %v11039_v57 = vld [vmem:[%s20027_s3 + $0xa20] sm:$0xf]  ;;  %v10913_v52 = vld [vmem:[%s20027_s3 + $0x930] sm:$0xf0] }
 0x37e   :  { %v5055_v6 = vadd.f32 %v5054_v40, %v5041_v9  ;;  %v10929_v40 = vld [vmem:[%s20027_s3 + $0x950] sm:$0xf0] }
 0x37f   :  { %v10932_v9 = vor.u32 %v12981_v36, %v10929_v40  ;;  %v12973_v40 = vld [vmem:[%s20027_s3 + $0x904] sm:$0xf] }
 0x380   :  { %5973 = vmatpush.bf16.msrb.mxu1 %v10980_v29  ;;  %v11072_v29 = vor.u32 %v13019_v30, %v11071_v25 }
 0x382   :  { %5933 = vmatpush.bf16.msra.mxu2 %v11072_v29  ;;  %v11040_v29 = vor.u32 %v13011_v24, %v11039_v57  ;;  %v11263_v57 = vld [vmem:[%s20027_s3 + $0xbe0] sm:$0xf]  ;;  %v13067_v24 = vld [vmem:[%s20027_s3 + $0xbec] sm:$0xf0] }
 0x384   :  { %5974 = vmatpush.bf16.msrb.mxu1 %v10964_v2  ;;  %v5068_v41 = vpop.f32.mrf.mxu3  ;;  %v5056_v2 = vpop.f32.mrf.mxu2 }
 0x385   :  { %v5069_v25 = vadd.f32 %v5068_v41, %v5055_v6  ;;  %v5057_v30 = vadd.f32 %v5056_v2, %v5043_v54  ;;  %v11023_v54 = vld [vmem:[%s20027_s3 + $0xa00] sm:$0xf] }
 0x386   :  { %5934 = vmatpush.bf16.msra.mxu2 %v11056_v32  ;;  %v13007_v32 = vld [vmem:[%s20027_s3 + $0xa0c] sm:$0xf0] }
 0x387   :  { %v5241_v6 = vmax.f32 %v5069_v25, 0.0  ;;  %v11024_v2 = vor.u32 %v13007_v32, %v11023_v54  ;;  %v11247_v32 = vld [vmem:[%s20027_s3 + $0xbc0] sm:$0xf] }
 0x388   :  { %5975 = vmatpush.bf16.msrb.mxu1 %v10948_v43  ;;  %v10916_v43 = vor.u32 %v12977_v17, %v10913_v52  ;;  %v10888_v17 = vor.u32 %v12972_v28, %v10887_v56  ;;  %v13033_v52 = vld [vmem:[%s20027_s3 + $0xae4] sm:$0xf]  ;;  %v12968_v56 = vld [vmem:[%s20027_s3 + $0x8d4] sm:$0xf0]  ;;  %v5082_v28 = vpop.f32.mrf.mxu0 }
 0x38a   :  { %5935 = vmatpush.bf16.msra.mxu2 %v11040_v29  ;;  %v11264_v29 = vor.u32 %v13067_v24, %v11263_v57  ;;  %v10855_v57 = vld [vmem:[%s20027_s3 + $0x8a8] sm:$0xf] }
 0x38c   :  { %5976 = vmatpush.bf16.msrb.mxu1 %v10932_v9  ;;  %v5070_v41 = vpop.f32.mrf.mxu3  ;;  %v10897_v9 = vld [vmem:[%s20027_s3 + $0x910] sm:$0xf0]  ;;  %5943 = vmatpush.bf16.msra.mxu3 %v11264_v29  ;;  %v12964_v29 = vld [vmem:[%s20027_s3 + $0x8b4] sm:$0xf0] }
 0x38d   :  { %v5071_v36 = vadd.f32 %v5070_v41, %v5057_v30  ;;  %v10900_v30 = vor.u32 %v12973_v40, %v10897_v9  ;;  %v13029_v40 = vld [vmem:[%s20027_s3 + $0xac4] sm:$0xf]  ;;  %v11121_v9 = vld [vmem:[%s20027_s3 + $0xad0] sm:$0xf0] }
 0x38e   :  { %5936 = vmatpush.bf16.msra.mxu2 %v11024_v2  ;;  %v11124_v24 = vor.u32 %v13029_v40, %v11121_v9  ;;  %v10839_v40 = vld [vmem:[%s20027_s3 + $0x888] sm:$0xf] }
 0x38f   :  { %v5245_v25 = vmax.f32 %v5071_v36, 0.0  ;;  %v10871_v36 = vld [vmem:[%s20027_s3 + $0x8c8] sm:$0xf] }
 0x390   :  { %5977 = vmatpush.bf16.msrb.mxu1 %v10916_v43  ;;  %v11137_v43 = vld [vmem:[%s20027_s3 + $0xaf0] sm:$0xf0] }
 0x391   :  { %v17786_v41 = vpack.c.bf16 %v5245_v25, %v5241_v6  ;;  %v11140_v54 = vor.u32 %v13033_v52, %v11137_v43  ;;  %v13063_v6 = vld [vmem:[%s20027_s3 + $0xbcc] sm:$0xf0]  ;;  %v10872_v25 = vor.u32 %v12968_v56, %v10871_v36  ;;  %v5096_v52 = vpop.f32.mrf.mxu1  ;;  %v11231_v43 = vld [vmem:[%s20027_s3 + $0xba0] sm:$0xf]  ;;  %v13025_v56 = vld [vmem:[%s20027_s3 + $0xaa4] sm:$0xf] }
 0x392   :  { %v11248_v2 = vor.u32 %v13063_v6, %v11247_v32  ;;  %v10856_v6 = vor.u32 %v12964_v29, %v10855_v57  ;;  %v11089_v29 = vld [vmem:[%s20027_s3 + $0xa90] sm:$0xf0] }
 0x393   :  { %5909 = vmatmul.bf16.vlgmr.msra.gmra.mxu0 %v17786_v41  ;;  %5985 = vmatpush.bf16.msrb.mxu2 %v11140_v54  ;;  %v11105_v54 = vld [vmem:[%s20027_s3 + $0xab0] sm:$0xf0] }
 0x394   :  { %5978 = vmatpush.bf16.msrb.mxu1 %v10900_v30  ;;  %6013 = vmatpush.bf16.msra.mxu0 %v10888_v17  ;;  %v4370_v30 = vperm.slane %v17688_v46, 1  ;;  %v13059_v17 = vld [vmem:[%s20027_s3 + $0xbac] sm:$0xf0]  ;;  %v11108_v32 = vor.u32 %v13025_v56, %v11105_v54 }
 0x395   :  { %5944 = vmatpush.bf16.msra.mxu3 %v11248_v2  ;;  %v11232_v36 = vor.u32 %v13059_v17, %v11231_v43  ;;  %v12960_v2 = vld [vmem:[%s20027_s3 + $0x894] sm:$0xf0]  ;;  %v5110_v43 = vpop.f32.mrf.mxu2  ;;  %v11215_v17 = vld [vmem:[%s20027_s3 + $0xb80] sm:$0xf] }
 0x396   :  { %v5083_v9 = vadd.f32 %v5082_v28, %v4370_v30  ;;  %v5084_v28 = vpop.f32.mrf.mxu0  ;;  %v10840_v54 = vor.u32 %v12960_v2, %v10839_v40  ;;  %v10824_v2 = vor.u32 %v12956_v34, %v10823_v13  ;;  %v13013_v34 = vld [vmem:[%s20027_s3 + $0xa44] sm:$0xf] }
 0x397   :  { %5986 = vmatpush.bf16.msrb.mxu2 %v11124_v24  ;;  %v13055_v24 = vld [vmem:[%s20027_s3 + $0xb8c] sm:$0xf0] }
 0x398   :  { %6014 = vmatpush.bf16.msra.mxu0 %v10872_v25  ;;  %v13021_v25 = vld [vmem:[%s20027_s3 + $0xa84] sm:$0xf]  ;;  %v11216_v57 = vor.u32 %v13055_v24, %v11215_v17  ;;  %v5097_v51 = vadd.f32 %v5096_v52, %v5083_v9  ;;  %v11199_v17 = vld [vmem:[%s20027_s3 + $0xb60] sm:$0xf]  ;;  %v10807_v9 = vld [vmem:[%s20027_s3 + $0x848] sm:$0xf] }
 0x399   :  { %5945 = vmatpush.bf16.msra.mxu3 %v11232_v36  ;;  %v11092_v56 = vor.u32 %v13021_v25, %v11089_v29  ;;  %v5085_v36 = vadd.f32 %v5084_v28, %v4370_v30  ;;  %v13017_v52 = vld [vmem:[%s20027_s3 + $0xa64] sm:$0xf]  ;;  %v11073_v30 = vld [vmem:[%s20027_s3 + $0xa70] sm:$0xf0]  ;;  %v12952_v24 = vld [vmem:[%s20027_s3 + $0x854] sm:$0xf0] }
 0x39a   :  { %v11076_v25 = vor.u32 %v13017_v52, %v11073_v30  ;;  %v11183_v28 = vld [vmem:[%s20027_s3 + $0xb40] sm:$0xf]  ;;  %v10791_v30 = vld [vmem:[%s20027_s3 + $0x828] sm:$0xf] }
 0x39b   :  { %5987 = vmatpush.bf16.msrb.mxu2 %v11108_v32  ;;  %v13051_v32 = vld [vmem:[%s20027_s3 + $0xb6c] sm:$0xf0] }
 0x39c   :  { %6015 = vmatpush.bf16.msra.mxu0 %v10856_v6  ;;  %v5098_v6 = vpop.f32.mrf.mxu1  ;;  %v11200_v40 = vor.u32 %v13051_v32, %v11199_v17  ;;  %v10808_v32 = vor.u32 %v12952_v24, %v10807_v9  ;;  %v13009_v9 = vld [vmem:[%s20027_s3 + $0xa24] sm:$0xf]  ;;  %v10775_v24 = vld [vmem:[%s20027_s3 + $0x808] sm:$0xf] }
 0x39d   :  { %5946 = vmatpush.bf16.msra.mxu3 %v11216_v57  ;;  %v5111_v57 = vadd.f32 %v5110_v43, %v5097_v51  ;;  %v5099_v13 = vadd.f32 %v5098_v6, %v5085_v36  ;;  %v11057_v51 = vld [vmem:[%s20027_s3 + $0xa50] sm:$0xf0]  ;;  %v5112_v43 = vpop.f32.mrf.mxu2  ;;  %v12948_v36 = vld [vmem:[%s20027_s3 + $0x834] sm:$0xf0] }
 0x39e   :  { %v11060_v17 = vor.u32 %v13013_v34, %v11057_v51  ;;  %v13004_v34 = vld [vmem:[%s20027_s3 + $0x9f4] sm:$0xf0] }
 0x39f   :  { %5988 = vmatpush.bf16.msrb.mxu2 %v11092_v56  ;;  %v13047_v56 = vld [vmem:[%s20027_s3 + $0xb4c] sm:$0xf0]  ;;  %v5113_v6 = vadd.f32 %v5112_v43, %v5099_v13  ;;  %v12970_v43 = vld [vmem:[%s20027_s3 + $0x8ec] sm:$0xf] }
 0x3a0   :  { %6016 = vmatpush.bf16.msra.mxu0 %v10840_v54  ;;  %v11184_v54 = vor.u32 %v13047_v56, %v11183_v28  ;;  %v12944_v28 = vld [vmem:[%s20027_s3 + $0x814] sm:$0xf0]  ;;  %v11015_v56 = vld [vmem:[%s20027_s3 + $0x9e8] sm:$0xf] }
 0x3a1   :  { %5947 = vmatpush.bf16.msra.mxu3 %v11200_v40  ;;  %v11167_v40 = vld [vmem:[%s20027_s3 + $0xb20] sm:$0xf] }
 0x3a3   :  { %5965 = vmatmul.bf16.vlgmr.msrb.gmra.mxu0 %v17786_v41  ;;  %5989 = vmatpush.bf16.msrb.mxu2 %v11076_v25 }
 0x3a4   :  { %v5124_v29 = vpop.f32.mrf.mxu3  ;;  %6017 = vmatpush.bf16.msra.mxu0 %v10824_v2  ;;  %v13043_v2 = vld [vmem:[%s20027_s3 + $0xb2c] sm:$0xf0] }
 0x3a5   :  { %v5125_v52 = vadd.f32 %v5124_v29, %v5111_v57  ;;  %5948 = vmatpush.bf16.msra.mxu3 %v11184_v54  ;;  %v11168_v25 = vor.u32 %v13043_v2, %v11167_v40  ;;  %v11041_v57 = vld [vmem:[%s20027_s3 + $0xa30] sm:$0xf0]  ;;  %v10792_v29 = vor.u32 %v12948_v36, %v10791_v30  ;;  %v11151_v30 = vld [vmem:[%s20027_s3 + $0xb00] sm:$0xf]  ;;  %v13039_v36 = vld [vmem:[%s20027_s3 + $0xb0c] sm:$0xf0] }
 0x3a6   :  { %v11044_v13 = vor.u32 %v13009_v9, %v11041_v57  ;;  %v11152_v40 = vor.u32 %v13039_v36, %v11151_v30  ;;  %v11025_v2 = vld [vmem:[%s20027_s3 + $0xa10] sm:$0xf0]  ;;  %v10776_v9 = vor.u32 %v12944_v28, %v10775_v24  ;;  %v11016_v57 = vor.u32 %v13004_v34, %v11015_v56  ;;  %v13000_v24 = vld [vmem:[%s20027_s3 + $0x9d4] sm:$0xf0]  ;;  %v10873_v28 = vld [vmem:[%s20027_s3 + $0x8d8] sm:$0xf0]  ;;  %v5138_v56 = vpop.f32.mrf.mxu0 }
 0x3a7   :  { %5990 = vmatpush.bf16.msrb.mxu2 %v11060_v17  ;;  %v5242_v54 = vmax.f32 %v5125_v52, 0.0  ;;  %v10889_v17 = vld [vmem:[%s20027_s3 + $0x8f8] sm:$0xf0]  ;;  %v13005_v52 = vld [vmem:[%s20027_s3 + $0xa04] sm:$0xf] }
 0x3a8   :  { %6018 = vmatpush.bf16.msra.mxu0 %v10808_v32  ;;  %v12996_v36 = vld [vmem:[%s20027_s3 + $0x9b4] sm:$0xf0] }
 0x3a9   :  { %5949 = vmatpush.bf16.msra.mxu3 %v11168_v25  ;;  %v11028_v25 = vor.u32 %v13005_v52, %v11025_v2  ;;  %v12962_v52 = vld [vmem:[%s20027_s3 + $0x8ac] sm:$0xf]  ;;  %v5152_v2 = vpop.f32.mrf.mxu1 }
 0x3ab   :  { %5991 = vmatpush.bf16.msrb.mxu2 %v11044_v13  ;;  %v11265_v13 = vld [vmem:[%s20027_s3 + $0xbf0] sm:$0xf0] }
 0x3ac   :  { %v5126_v51 = vpop.f32.mrf.mxu3  ;;  %6019 = vmatpush.bf16.msra.mxu0 %v10792_v29  ;;  %v12966_v29 = vld [vmem:[%s20027_s3 + $0x8cc] sm:$0xf]  ;;  %v11268_v34 = vor.u32 %v13065_v27, %v11265_v13  ;;  %v10983_v27 = vld [vmem:[%s20027_s3 + $0x9a8] sm:$0xf] }
 0x3ad   :  { %v5127_v32 = vadd.f32 %v5126_v51, %v5113_v6  ;;  %v10892_v51 = vor.u32 %v12970_v43, %v10889_v17  ;;  %5950 = vmatpush.bf16.msra.mxu3 %v11152_v40  ;;  %v11249_v43 = vld [vmem:[%s20027_s3 + $0xbd0] sm:$0xf0]  ;;  %v11000_v17 = vor.u32 %v13000_v24, %v10999_v5  ;;  %v10857_v40 = vld [vmem:[%s20027_s3 + $0x8b8] sm:$0xf0]  ;;  %v10967_v13 = vld [vmem:[%s20027_s3 + $0x988] sm:$0xf]  ;;  %v5166_v24 = vpop.f32.mrf.mxu2 }
 0x3af   :  { %v5246_v6 = vmax.f32 %v5127_v32, 0.0  ;;  %5992 = vmatpush.bf16.msrb.mxu2 %v11028_v25  ;;  %v10876_v32 = vor.u32 %v12966_v29, %v10873_v28  ;;  %v11233_v25 = vld [vmem:[%s20027_s3 + $0xbb0] sm:$0xf0]  ;;  %v12992_v29 = vld [vmem:[%s20027_s3 + $0x994] sm:$0xf0] }
 0x3b0   :  { %6020 = vmatpush.bf16.msra.mxu0 %v10776_v9  ;;  %v13057_v9 = vld [vmem:[%s20027_s3 + $0xba4] sm:$0xf]  ;;  %v12958_v28 = vld [vmem:[%s20027_s3 + $0x88c] sm:$0xf] }
 0x3b1   :  { %v17938_v30 = vpack.c.bf16 %v5246_v6, %v5242_v54  ;;  %v13061_v54 = vld [vmem:[%s20027_s3 + $0xbc4] sm:$0xf]  ;;  %5999 = vmatpush.bf16.msrb.mxu3 %v11268_v34  ;;  %v4371_v6 = vperm.slane %v17688_v46, 2  ;;  %v10841_v34 = vld [vmem:[%s20027_s3 + $0x898] sm:$0xf0] }
 0x3b2   :  { %v11252_v5 = vor.u32 %v13061_v54, %v11249_v43  ;;  %v11236_v54 = vor.u32 %v13057_v9, %v11233_v25  ;;  %v10825_v9 = vld [vmem:[%s20027_s3 + $0x878] sm:$0xf0] }
 0x3b3   :  { %5923 = vmatmul.bf16.vlgmr.msra.gmra.mxu1 %v17938_v30  ;;  %6021 = vmatmul.bf16.vlgmr.msra.gmra.mxu0 %v17786_v41  ;;  %v5139_v43 = vadd.f32 %v5138_v56, %v4371_v6  ;;  %v12988_v56 = vld [vmem:[%s20027_s3 + $0x974] sm:$0xf0] }
 0x3b4   :  { %6027 = vmatpush.bf16.msra.mxu1 %v11016_v57  ;;  %6069 = vmatpush.bf16.msrb.mxu0 %v10892_v51  ;;  %v10984_v57 = vor.u32 %v12996_v36, %v10983_v27  ;;  %v10860_v51 = vor.u32 %v12962_v52, %v10857_v40  ;;  %v5140_v27 = vpop.f32.mrf.mxu0  ;;  %v10968_v36 = vor.u32 %v12992_v29, %v10967_v13  ;;  %v10951_v40 = vld [vmem:[%s20027_s3 + $0x968] sm:$0xf]  ;;  %v5154_v13 = vpop.f32.mrf.mxu1  ;;  %v13049_v29 = vld [vmem:[%s20027_s3 + $0xb64] sm:$0xf] }
 0x3b5   :  { %6000 = vmatpush.bf16.msrb.mxu3 %v11252_v5  ;;  %v10844_v52 = vor.u32 %v12958_v28, %v10841_v34  ;;  %v12954_v5 = vld [vmem:[%s20027_s3 + $0x86c] sm:$0xf]  ;;  %v11201_v28 = vld [vmem:[%s20027_s3 + $0xb70] sm:$0xf0]  ;;  %v10952_v34 = vor.u32 %v12988_v56, %v10951_v40  ;;  %v5168_v56 = vpop.f32.mrf.mxu2 }
 0x3b6   :  { %v10828_v50 = vor.u32 %v12954_v5, %v10825_v9  ;;  %v11185_v40 = vld [vmem:[%s20027_s3 + $0xb50] sm:$0xf0] }
 0x3b8   :  { %6028 = vmatpush.bf16.msra.mxu1 %v11000_v17  ;;  %6070 = vmatpush.bf16.msrb.mxu0 %v10876_v32  ;;  %v13053_v17 = vld [vmem:[%s20027_s3 + $0xb84] sm:$0xf]  ;;  %v11217_v32 = vld [vmem:[%s20027_s3 + $0xb90] sm:$0xf0] }
 0x3b9   :  { %6001 = vmatpush.bf16.msrb.mxu3 %v11236_v54  ;;  %v11220_v25 = vor.u32 %v13053_v17, %v11217_v32  ;;  %v10935_v54 = vld [vmem:[%s20027_s3 + $0x948] sm:$0xf]  ;;  %v11204_v32 = vor.u32 %v13049_v29, %v11201_v28  ;;  %v13041_v28 = vld [vmem:[%s20027_s3 + $0xb24] sm:$0xf] }
 0x3bc   :  { %6029 = vmatpush.bf16.msra.mxu1 %v10984_v57  ;;  %6071 = vmatpush.bf16.msrb.mxu0 %v10860_v51  ;;  %v5153_v57 = vadd.f32 %v5152_v2, %v5139_v43  ;;  %v5141_v51 = vadd.f32 %v5140_v27, %v4371_v6  ;;  %v12984_v2 = vld [vmem:[%s20027_s3 + $0x954] sm:$0xf0]  ;;  %v12950_v6 = vld [vmem:[%s20027_s3 + $0x84c] sm:$0xf]  ;;  %v10809_v43 = vld [vmem:[%s20027_s3 + $0x858] sm:$0xf0] }
 0x3bd   :  { %6002 = vmatpush.bf16.msrb.mxu3 %v11220_v25  ;;  %v10936_v5 = vor.u32 %v12984_v2, %v10935_v54  ;;  %v10812_v9 = vor.u32 %v12950_v6, %v10809_v43  ;;  %v12980_v25 = vld [vmem:[%s20027_s3 + $0x934] sm:$0xf0]  ;;  %v10903_v6 = vld [vmem:[%s20027_s3 + $0x908] sm:$0xf] }
 0x3be   :  { %v5167_v27 = vadd.f32 %v5166_v24, %v5153_v57  ;;  %v10919_v24 = vld [vmem:[%s20027_s3 + $0x928] sm:$0xf]  ;;  %v12946_v57 = vld [vmem:[%s20027_s3 + $0x82c] sm:$0xf] }
 0x3bf   :  { %v10920_v54 = vor.u32 %v12980_v25, %v10919_v24  ;;  %v13036_v24 = vld [vmem:[%s20027_s3 + $0xaf4] sm:$0xf0]  ;;  %v13037_v25 = vld [vmem:[%s20027_s3 + $0xb04] sm:$0xf] }
 0x3c0   :  { %6030 = vmatpush.bf16.msra.mxu1 %v10968_v36  ;;  %6072 = vmatpush.bf16.msrb.mxu0 %v10844_v52  ;;  %v5155_v36 = vadd.f32 %v5154_v13, %v5141_v51  ;;  %v13045_v52 = vld [vmem:[%s20027_s3 + $0xb44] sm:$0xf]  ;;  %v10793_v51 = vld [vmem:[%s20027_s3 + $0x838] sm:$0xf0] }
 0x3c1   :  { %6003 = vmatpush.bf16.msrb.mxu3 %v11204_v32  ;;  %v10796_v2 = vor.u32 %v12946_v57, %v10793_v51  ;;  %v12942_v32 = vld [vmem:[%s20027_s3 + $0x80c] sm:$0xf]  ;;  %v11153_v57 = vld [vmem:[%s20027_s3 + $0xb10] sm:$0xf0] }
 0x3c2   :  { %v5169_v29 = vadd.f32 %v5168_v56, %v5155_v36  ;;  %v11143_v36 = vld [vmem:[%s20027_s3 + $0xae8] sm:$0xf]  ;;  %v11156_v31 = vor.u32 %v13037_v25, %v11153_v57 }
 0x3c3   :  { %5979 = vmatmul.bf16.vlgmr.msrb.gmra.mxu1 %v17938_v30 }
 0x3c4   :  { %v5180_v17 = vpop.f32.mrf.mxu3  ;;  %6031 = vmatpush.bf16.msra.mxu1 %v10952_v34  ;;  %6073 = vmatpush.bf16.msrb.mxu0 %v10828_v50  ;;  %v11188_v50 = vor.u32 %v13045_v52, %v11185_v40  ;;  %v11169_v34 = vld [vmem:[%s20027_s3 + $0xb30] sm:$0xf0]  ;;  %v5222_v25 = vpop.f32.mrf.mxu2 }
 0x3c5   :  { %v5181_v13 = vadd.f32 %v5180_v17, %v5167_v27  ;;  %v12976_v17 = vld [vmem:[%s20027_s3 + $0x914] sm:$0xf0]  ;;  %v10777_v27 = vld [vmem:[%s20027_s3 + $0x818] sm:$0xf0]  ;;  %v11172_v52 = vor.u32 %v13041_v28, %v11169_v34  ;;  %v11144_v34 = vor.u32 %v13036_v24, %v11143_v36  ;;  %v11095_v24 = vld [vmem:[%s20027_s3 + $0xa88] sm:$0xf] }
 0x3c6   :  { %6004 = vmatpush.bf16.msrb.mxu3 %v11188_v50  ;;  %v10904_v50 = vor.u32 %v12976_v17, %v10903_v6  ;;  %v5194_v6 = vpop.f32.mrf.mxu0  ;;  %v10985_v36 = vld [vmem:[%s20027_s3 + $0x9b8] sm:$0xf0] }
 0x3c7   :  { %v5243_v40 = vmax.f32 %v5181_v13, 0.0  ;;  %v10780_v13 = vor.u32 %v12942_v32, %v10777_v27  ;;  %v12994_v27 = vld [vmem:[%s20027_s3 + $0x9ac] sm:$0xf] }
 0x3c8   :  { %6032 = vmatpush.bf16.msra.mxu1 %v10936_v5  ;;  %6074 = vmatpush.bf16.msrb.mxu0 %v10812_v9  ;;  %v13002_v5 = vld [vmem:[%s20027_s3 + $0x9ec] sm:$0xf]  ;;  %v11017_v9 = vld [vmem:[%s20027_s3 + $0x9f8] sm:$0xf0] }
 0x3ca   :  { %6005 = vmatpush.bf16.msrb.mxu3 %v11172_v52  ;;  %v11111_v52 = vld [vmem:[%s20027_s3 + $0xaa8] sm:$0xf] }
 0x3cc   :  { %v5182_v43 = vpop.f32.mrf.mxu3  ;;  %6033 = vmatpush.bf16.msra.mxu1 %v10920_v54  ;;  %6075 = vmatpush.bf16.msrb.mxu0 %v10796_v2  ;;  %v11127_v54 = vld [vmem:[%s20027_s3 + $0xac8] sm:$0xf]  ;;  %v13032_v2 = vld [vmem:[%s20027_s3 + $0xad4] sm:$0xf0] }
 0x3cd   :  { %v5183_v56 = vadd.f32 %v5182_v43, %v5169_v29  ;;  %v11020_v29 = vor.u32 %v13002_v5, %v11017_v9  ;;  %v12998_v43 = vld [vmem:[%s20027_s3 + $0x9cc] sm:$0xf]  ;;  %v11128_v32 = vor.u32 %v13032_v2, %v11127_v54  ;;  %v10988_v5 = vor.u32 %v12994_v27, %v10985_v36  ;;  %v13020_v54 = vld [vmem:[%s20027_s3 + $0xa74] sm:$0xf0] }
 0x3ce   :  { %v11004_v17 = vor.u32 %v12998_v43, %v11001_v10  ;;  %6006 = vmatpush.bf16.msrb.mxu3 %v11156_v31  ;;  %v13028_v10 = vld [vmem:[%s20027_s3 + $0xab4] sm:$0xf0]  ;;  %v12990_v31 = vld [vmem:[%s20027_s3 + $0x98c] sm:$0xf]  ;;  %v11079_v43 = vld [vmem:[%s20027_s3 + $0xa68] sm:$0xf] }
 0x3cf   :  { %v5247_v51 = vmax.f32 %v5183_v56, 0.0  ;;  %v4372_v56 = vperm.slane %v17688_v46, 3  ;;  %v11112_v9 = vor.u32 %v13028_v10, %v11111_v52  ;;  %v13024_v46 = vld [vmem:[%s20027_s3 + $0xa94] sm:$0xf0]  ;;  %v11080_v36 = vor.u32 %v13020_v54, %v11079_v43  ;;  %v12982_v52 = vld [vmem:[%s20027_s3 + $0x94c] sm:$0xf] }
 0x3d0   :  { %6034 = vmatpush.bf16.msra.mxu1 %v10904_v50  ;;  %6076 = vmatpush.bf16.msrb.mxu0 %v10780_v13  ;;  %v5196_v50 = vpop.f32.mrf.mxu0  ;;  %v11096_v13 = vor.u32 %v13024_v46, %v11095_v24  ;;  %v10937_v10 = vld [vmem:[%s20027_s3 + $0x958] sm:$0xf0]  ;;  %v12978_v46 = vld [vmem:[%s20027_s3 + $0x92c] sm:$0xf]  ;;  %v11031_v54 = vld [vmem:[%s20027_s3 + $0xa08] sm:$0xf] }
 0x3d1   :  { %v18079_v28 = vpack.c.bf16 %v5247_v51, %v5243_v40  ;;  %v5208_v40 = vpop.f32.mrf.mxu1  ;;  %v5195_v57 = vadd.f32 %v5194_v6, %v4372_v56  ;;  %v5197_v6 = vadd.f32 %v5196_v50, %v4372_v56 }
 0x3d3   :  { %5937 = vmatmul.bf16.vlgmr.msra.gmra.mxu2 %v18079_v28  ;;  %6077 = vmatmul.bf16.vlgmr.msrb.gmra.mxu0 %v17786_v41  ;;  %v10969_v41 = vld [vmem:[%s20027_s3 + $0x998] sm:$0xf0]  ;;  %v5209_v2 = vadd.f32 %v5208_v40, %v5195_v57  ;;  %v13016_v40 = vld [vmem:[%s20027_s3 + $0xa54] sm:$0xf0] }
 0x3d4   :  { %6083 = vmatpush.bf16.msrb.mxu1 %v11020_v29  ;;  %6041 = vmatpush.bf16.msra.mxu2 %v11144_v34  ;;  %v10972_v51 = vor.u32 %v12990_v31, %v10969_v41  ;;  %v12986_v29 = vld [vmem:[%s20027_s3 + $0x96c] sm:$0xf]  ;;  %v10953_v34 = vld [vmem:[%s20027_s3 + $0x978] sm:$0xf0]  ;;  %v10940_v31 = vor.u32 %v12982_v52, %v10937_v10  ;;  %v5224_v41 = vpop.f32.mrf.mxu2 }
 0x3d5   :  { %6035 = vmatmul.bf16.vlgmr.msra.gmra.mxu1 %v17938_v30  ;;  %v5223_v56 = vadd.f32 %v5222_v25, %v5209_v2  ;;  %v10921_v57 = vld [vmem:[%s20027_s3 + $0x938] sm:$0xf0]  ;;  %v11047_v25 = vld [vmem:[%s20027_s3 + $0xa28] sm:$0xf]  ;;  %v12974_v2 = vld [vmem:[%s20027_s3 + $0x90c] sm:$0xf] }
 0x3d6   :  { %v13034_v52 = vld [vmem:[%s20027_s3 + $0xaec] sm:$0xf]  ;;  %v11145_v10 = vld [vmem:[%s20027_s3 + $0xaf8] sm:$0xf0] }
 0x3d8   :  { %6084 = vmatpush.bf16.msrb.mxu1 %v11004_v17  ;;  %6042 = vmatpush.bf16.msra.mxu2 %v11128_v32  ;;  %v10956_v17 = vor.u32 %v12986_v29, %v10953_v34  ;;  %v10924_v29 = vor.u32 %v12978_v46, %v10921_v57  ;;  %v11255_v46 = vld [vmem:[%s20027_s3 + $0xbc8] sm:$0xf]  ;;  %v13064_v57 = vld [vmem:[%s20027_s3 + $0xbd4] sm:$0xf0] }
 0x3d9   :  { %v5210_v32 = vpop.f32.mrf.mxu1 }
 0x3dc   :  { %6085 = vmatpush.bf16.msrb.mxu1 %v10988_v5  ;;  %6043 = vmatpush.bf16.msra.mxu2 %v11112_v9  ;;  %v11063_v5 = vld [vmem:[%s20027_s3 + $0xa48] sm:$0xf]  ;;  %v5211_v9 = vadd.f32 %v5210_v32, %v5197_v6  ;;  %v10905_v6 = vld [vmem:[%s20027_s3 + $0x918] sm:$0xf0]  ;;  %v13008_v32 = vld [vmem:[%s20027_s3 + $0xa14] sm:$0xf0] }
 0x3dd   :  { %v11064_v24 = vor.u32 %v13016_v40, %v11063_v5 }
 0x3de   :  { %v5225_v50 = vadd.f32 %v5224_v41, %v5211_v9  ;;  %v11032_v9 = vor.u32 %v13008_v32, %v11031_v54  ;;  %v11113_v54 = vld [vmem:[%s20027_s3 + $0xab8] sm:$0xf0]  ;;  %v13022_v32 = vld [vmem:[%s20027_s3 + $0xa8c] sm:$0xf] }
 0x3e0   :  { %6086 = vmatpush.bf16.msrb.mxu1 %v10972_v51  ;;  %6044 = vmatpush.bf16.msra.mxu2 %v11096_v13  ;;  %v13012_v51 = vld [vmem:[%s20027_s3 + $0xa34] sm:$0xf0] }
 0x3e1   :  { %v11048_v43 = vor.u32 %v13012_v51, %v11047_v25  ;;  %v13030_v25 = vld [vmem:[%s20027_s3 + $0xacc] sm:$0xf]  ;;  %v11129_v51 = vld [vmem:[%s20027_s3 + $0xad8] sm:$0xf0] }
 0x3e3   :  { %5993 = vmatmul.bf16.vlgmr.msrb.gmra.mxu2 %v18079_v28 }
 0x3e4   :  { %v5236_v27 = vpop.f32.mrf.mxu3  ;;  %6087 = vmatpush.bf16.msrb.mxu1 %v10956_v17  ;;  %6045 = vmatpush.bf16.msra.mxu2 %v11080_v36  ;;  %v13068_v36 = vld [vmem:[%s20027_s3 + $0xbf4] sm:$0xf0] }
 0x3e5   :  { %v5237_v13 = vadd.f32 %v5236_v27, %v5223_v56  ;;  %v11271_v27 = vld [vmem:[%s20027_s3 + $0xbe8] sm:$0xf]  ;;  %v10908_v56 = vor.u32 %v12974_v2, %v10905_v6 }
 0x3e7   :  { %v5244_v5 = vmax.f32 %v5237_v13, 0.0  ;;  %v11132_v13 = vor.u32 %v13030_v25, %v11129_v51  ;;  %v11065_v25 = vld [vmem:[%s20027_s3 + $0xa58] sm:$0xf0] }
 0x3e8   :  { %6088 = vmatpush.bf16.msrb.mxu1 %v10940_v31  ;;  %6046 = vmatpush.bf16.msra.mxu2 %v11064_v24  ;;  %v11272_v31 = vor.u32 %v13068_v36, %v11271_v27  ;;  %v11148_v24 = vor.u32 %v13034_v52, %v11145_v10  ;;  %v11097_v27 = vld [vmem:[%s20027_s3 + $0xa98] sm:$0xf0]  ;;  %v11207_v10 = vld [vmem:[%s20027_s3 + $0xb68] sm:$0xf] }
 0x3e9   :  { %v11100_v52 = vor.u32 %v13022_v32, %v11097_v27  ;;  %v11159_v27 = vld [vmem:[%s20027_s3 + $0xb08] sm:$0xf] }
 0x3ec   :  { %v5238_v34 = vpop.f32.mrf.mxu3  ;;  %6089 = vmatpush.bf16.msrb.mxu1 %v10924_v29  ;;  %6047 = vmatpush.bf16.msra.mxu2 %v11048_v43  ;;  %v11239_v29 = vld [vmem:[%s20027_s3 + $0xba8] sm:$0xf]  ;;  %v13026_v43 = vld [vmem:[%s20027_s3 + $0xaac] sm:$0xf] }
 0x3ed   :  { %v5239_v17 = vadd.f32 %v5238_v34, %v5225_v50  ;;  %v11256_v50 = vor.u32 %v13064_v57, %v11255_v46  ;;  %v13060_v34 = vld [vmem:[%s20027_s3 + $0xbb4] sm:$0xf0]  ;;  %v11116_v6 = vor.u32 %v13026_v43, %v11113_v54  ;;  %v13014_v57 = vld [vmem:[%s20027_s3 + $0xa4c] sm:$0xf] }
 0x3ee   :  { %v11240_v2 = vor.u32 %v13060_v34, %v11239_v29  ;;  %v13048_v46 = vld [vmem:[%s20027_s3 + $0xb54] sm:$0xf0]  ;;  %v13099_v29 = vld [vmem:[%s20025_s1 + $0x3ec] sm:$0xf0]  ;;  %v11068_v34 = vor.u32 %v13014_v57, %v11065_v25  ;;  %v13066_v57 = vld [vmem:[%s20027_s3 + $0xbec] sm:$0xf] }
 0x3ef   :  { %v5248_v40 = vmax.f32 %v5239_v17, 0.0  ;;  %v11223_v17 = vld [vmem:[%s20027_s3 + $0xb88] sm:$0xf]  ;;  %v13044_v43 = vld [vmem:[%s20027_s3 + $0xb34] sm:$0xf0] }
 0x3f0   :  { %6090 = vmatpush.bf16.msrb.mxu1 %v10908_v56  ;;  %6048 = vmatpush.bf16.msra.mxu2 %v11032_v9  ;;  %v11081_v56 = vld [vmem:[%s20027_s3 + $0xa78] sm:$0xf0] }
 0x3f1   :  { %v18182_v41 = vpack.c.bf16 %v5248_v40, %v5244_v5  ;;  %v13052_v5 = vld [vmem:[%s20027_s3 + $0xb74] sm:$0xf0]  ;;  %v13018_v40 = vld [vmem:[%s20027_s3 + $0xa6c] sm:$0xf]  ;;  %v11273_v25 = vld [vmem:[%s20027_s3 + $0xbf8] sm:$0xf0] }
 0x3f2   :  { %v11208_v9 = vor.u32 %v13052_v5, %v11207_v10  ;;  %v11375_v10 = vld [vmem:[%s20025_s1 + $0x330] sm:$0xf] }
 0x3f3   :  { %5951 = vmatmul.bf16.vlgmr.msra.gmra.mxu3 %v18182_v41  ;;  %6091 = vmatmul.bf16.vlgmr.msrb.gmra.mxu1 %v17938_v30  ;;  %v13056_v30 = vld [vmem:[%s20027_s3 + $0xb94] sm:$0xf0]  ;;  %v13095_v5 = vld [vmem:[%s20025_s1 + $0x36c] sm:$0xf0] }
 0x3f4   :  { %6055 = vmatpush.bf16.msra.mxu3 %v11272_v31  ;;  %6097 = vmatpush.bf16.msrb.mxu2 %v11148_v24  ;;  %v11224_v36 = vor.u32 %v13056_v30, %v11223_v17  ;;  %v11084_v31 = vor.u32 %v13018_v40, %v11081_v56  ;;  %v11191_v24 = vld [vmem:[%s20027_s3 + $0xb48] sm:$0xf]  ;;  %v13010_v17 = vld [vmem:[%s20027_s3 + $0xa2c] sm:$0xf]  ;;  %v11049_v30 = vld [vmem:[%s20027_s3 + $0xa38] sm:$0xf0] }
 0x3f5   :  { %6049 = vmatmul.bf16.vlgmr.msra.gmra.mxu2 %v18079_v28  ;;  %v11192_v51 = vor.u32 %v13048_v46, %v11191_v24  ;;  %v11052_v40 = vor.u32 %v13010_v17, %v11049_v30  ;;  %v13006_v56 = vld [vmem:[%s20027_s3 + $0xa0c] sm:$0xf]  ;;  %v13127_v24 = vld [vmem:[%s20025_s1 + $0x76c] sm:$0xf0]  ;;  %v11033_v46 = vld [vmem:[%s20027_s3 + $0xa18] sm:$0xf0] }
 0x3f6   :  { %v11257_v30 = vld [vmem:[%s20027_s3 + $0xbd8] sm:$0xf0] }
 0x3f8   :  { %6056 = vmatpush.bf16.msra.mxu3 %v11256_v50  ;;  %6098 = vmatpush.bf16.msrb.mxu2 %v11132_v13  ;;  %v11175_v50 = vld [vmem:[%s20027_s3 + $0xb28] sm:$0xf]  ;;  %v11391_v13 = vld [vmem:[%s20025_s1 + $0x3b0] sm:$0xf] }
 0x3f9   :  { %v11392_v54 = vor.u32 %v13099_v29, %v11391_v13  ;;  %v13163_v13 = vld [vmem:[%s20025_s1 + $0xbec] sm:$0xf0] }
 0x3fb   :  { %7047 = vmatpush.bf16.msra.mxu0 %v11392_v54  ;;  %v11036_v54 = vor.u32 %v13006_v56, %v11033_v46  ;;  %v13087_v56 = vld [vmem:[%s20025_s1 + $0x26c] sm:$0xf0] }
 0x3fc   :  { %6057 = vmatpush.bf16.msra.mxu3 %v11240_v2  ;;  %6099 = vmatpush.bf16.msrb.mxu2 %v11116_v6  ;;  %v11519_v2 = vld [vmem:[%s20025_s1 + $0x7b0] sm:$0xf] }
 0x3fd   :  { %v13131_v6 = vld [vmem:[%s20025_s1 + $0x7ec] sm:$0xf0] }
 0x3fe   :  { %v11520_v32 = vor.u32 %v13131_v6, %v11519_v2  ;;  %v11276_v2 = vor.u32 %v13066_v57, %v11273_v25  ;;  %v13062_v6 = vld [vmem:[%s20027_s3 + $0xbcc] sm:$0xf]  ;;  %v11615_v25 = vld [vmem:[%s20025_s1 + $0xab0] sm:$0xf] }
 0x400   :  { %6058 = vmatpush.bf16.msra.mxu3 %v11224_v36  ;;  %6100 = vmatpush.bf16.msrb.mxu2 %v11100_v52  ;;  %v11176_v36 = vor.u32 %v13044_v43, %v11175_v50  ;;  %v13040_v52 = vld [vmem:[%s20027_s3 + $0xb14] sm:$0xf0]  ;;  %v11647_v50 = vld [vmem:[%s20025_s1 + $0xbb0] sm:$0xf] }
 0x401   :  { %7061 = vmatpush.bf16.msra.mxu1 %v11520_v32  ;;  %v11160_v29 = vor.u32 %v13040_v52, %v11159_v27  ;;  %v13091_v43 = vld [vmem:[%s20025_s1 + $0x2ec] sm:$0xf0]  ;;  %v11648_v32 = vor.u32 %v13163_v13, %v11647_v50 }
 0x402   :  { %v11487_v27 = vld [vmem:[%s20025_s1 + $0x6b0] sm:$0xf] }
 0x403   :  { %6007 = vmatmul.bf16.vlgmr.msrb.gmra.mxu3 %v18182_v41  ;;  %v11631_v52 = vld [vmem:[%s20025_s1 + $0xb30] sm:$0xf] }
 0x404   :  { %6059 = vmatpush.bf16.msra.mxu3 %v11208_v9  ;;  %6101 = vmatpush.bf16.msrb.mxu2 %v11084_v31  ;;  %v11376_v9 = vor.u32 %v13095_v5, %v11375_v10  ;;  %v11503_v31 = vld [vmem:[%s20025_s1 + $0x730] sm:$0xf] }
 0x405   :  { %v13159_v10 = vld [vmem:[%s20025_s1 + $0xb6c] sm:$0xf0] }
 0x406   :  { %7048 = vmatpush.bf16.msra.mxu0 %v11376_v9  ;;  %v11260_v9 = vor.u32 %v13062_v6, %v11257_v30  ;;  %v11632_v57 = vor.u32 %v13159_v10, %v11631_v52  ;;  %v13119_v50 = vld [vmem:[%s20025_s1 + $0x66c] sm:$0xf0]  ;;  %v13054_v6 = vld [vmem:[%s20027_s3 + $0xb8c] sm:$0xf] }
 0x407   :  { %v13155_v13 = vld [vmem:[%s20025_s1 + $0xaec] sm:$0xf0] }
 0x408   :  { %6060 = vmatpush.bf16.msra.mxu3 %v11192_v51  ;;  %6102 = vmatpush.bf16.msrb.mxu2 %v11068_v34  ;;  %v11504_v51 = vor.u32 %v13127_v24, %v11503_v31  ;;  %v11359_v34 = vld [vmem:[%s20025_s1 + $0x2b0] sm:$0xf]  ;;  %v13058_v31 = vld [vmem:[%s20027_s3 + $0xbac] sm:$0xf]  ;;  %v11241_v24 = vld [vmem:[%s20027_s3 + $0xbb8] sm:$0xf0]  ;;  %v11616_v30 = vor.u32 %v13155_v13, %v11615_v25 }
 0x409   :  { %v11360_v17 = vor.u32 %v13091_v43, %v11359_v34  ;;  %v11327_v34 = vld [vmem:[%s20025_s1 + $0x1b0] sm:$0xf] }
 0x40a   :  { %7062 = vmatpush.bf16.msra.mxu1 %v11504_v51  ;;  %v11471_v51 = vld [vmem:[%s20025_s1 + $0x630] sm:$0xf] }
 0x40b   :  { %7049 = vmatpush.bf16.msra.mxu0 %v11360_v17  ;;  %v13083_v43 = vld [vmem:[%s20025_s1 + $0x1ec] sm:$0xf0]  ;;  %v11225_v17 = vld [vmem:[%s20027_s3 + $0xb98] sm:$0xf0] }
 0x40c   :  { %6061 = vmatpush.bf16.msra.mxu3 %v11176_v36  ;;  %6103 = vmatpush.bf16.msrb.mxu2 %v11052_v40  ;;  %v13123_v36 = vld [vmem:[%s20025_s1 + $0x6ec] sm:$0xf0] }
 0x40d   :  { %v11488_v5 = vor.u32 %v13123_v36, %v11487_v27  ;;  %v11343_v40 = vld [vmem:[%s20025_s1 + $0x230] sm:$0xf] }
 0x40e   :  { %v11344_v46 = vor.u32 %v13087_v56, %v11343_v40  ;;  %v11599_v27 = vld [vmem:[%s20025_s1 + $0xa30] sm:$0xf]  ;;  %v11228_v40 = vor.u32 %v13054_v6, %v11225_v17  ;;  %v13050_v56 = vld [vmem:[%s20027_s3 + $0xb6c] sm:$0xf] }
 0x40f   :  { %7063 = vmatpush.bf16.msra.mxu1 %v11488_v5  ;;  %v13151_v36 = vld [vmem:[%s20025_s1 + $0xa6c] sm:$0xf0] }
 0x410   :  { %6062 = vmatpush.bf16.msra.mxu3 %v11160_v29  ;;  %6104 = vmatpush.bf16.msrb.mxu2 %v11036_v54  ;;  %v11472_v29 = vor.u32 %v13119_v50, %v11471_v51  ;;  %v11328_v54 = vor.u32 %v13083_v43, %v11327_v34  ;;  %v11311_v10 = vld [vmem:[%s20025_s1 + $0x130] sm:$0xf] }
 0x411   :  { %7050 = vmatpush.bf16.msra.mxu0 %v11344_v46  ;;  %v13079_v5 = vld [vmem:[%s20025_s1 + $0x16c] sm:$0xf0] }
 0x412   :  { %v11583_v46 = vld [vmem:[%s20025_s1 + $0x9b0] sm:$0xf] }
 0x413   :  { %6063 = vmatmul.bf16.vlgmr.msra.gmra.mxu3 %v18182_v41  ;;  %6105 = vmatmul.bf16.vlgmr.msrb.gmra.mxu2 %v18079_v28  ;;  %v13115_v28 = vld [vmem:[%s20025_s1 + $0x5ec] sm:$0xf0] }
 0x414   :  { %6111 = vmatpush.bf16.msrb.mxu3 %v11276_v2  ;;  %7075 = vmatpush.bf16.msra.mxu2 %v11648_v32  ;;  %v11244_v2 = vor.u32 %v13058_v31, %v11241_v24  ;;  %v11455_v32 = vld [vmem:[%s20025_s1 + $0x5b0] sm:$0xf]  ;;  %v11312_v31 = vor.u32 %v13079_v5, %v11311_v10  ;;  %v11600_v24 = vor.u32 %v13151_v36, %v11599_v27  ;;  %v13042_v36 = vld [vmem:[%s20027_s3 + $0xb2c] sm:$0xf] }
 0x415   :  { %7064 = vmatpush.bf16.msra.mxu1 %v11472_v29  ;;  %7051 = vmatpush.bf16.msra.mxu0 %v11328_v54  ;;  %v11456_v52 = vor.u32 %v13115_v28, %v11455_v32  ;;  %v13111_v25 = vld [vmem:[%s20025_s1 + $0x56c] sm:$0xf0]  ;;  %v13046_v54 = vld [vmem:[%s20027_s3 + $0xb4c] sm:$0xf] }
 0x416   :  { %v13147_v51 = vld [vmem:[%s20025_s1 + $0x9ec] sm:$0xf0] }
 0x417   :  { %v11295_v13 = vld [vmem:[%s20025_s1 + $0xb0] sm:$0xf]  ;;  %v11584_v6 = vor.u32 %v13147_v51, %v11583_v46  ;;  %v13129_v51 = vld [vmem:[%s20025_s1 + $0x7b4] sm:$0xf] }
 0x418   :  { %6112 = vmatpush.bf16.msrb.mxu3 %v11260_v9  ;;  %7076 = vmatpush.bf16.msra.mxu2 %v11632_v57  ;;  %v11209_v9 = vld [vmem:[%s20027_s3 + $0xb78] sm:$0xf0]  ;;  %v11439_v57 = vld [vmem:[%s20025_s1 + $0x530] sm:$0xf] }
 0x419   :  { %7065 = vmatpush.bf16.msra.mxu1 %v11456_v52  ;;  %7052 = vmatpush.bf16.msra.mxu0 %v11312_v31  ;;  %v11440_v50 = vor.u32 %v13111_v25, %v11439_v57  ;;  %v13075_v29 = vld [vmem:[%s20025_s1 + $0xec] sm:$0xf0]  ;;  %v11212_v43 = vor.u32 %v13050_v56, %v11209_v9  ;;  %v13097_v9 = vld [vmem:[%s20025_s1 + $0x3b4] sm:$0xf] }
 0x41a   :  { %v11296_v34 = vor.u32 %v13075_v29, %v11295_v13  ;;  %v11423_v17 = vld [vmem:[%s20025_s1 + $0x4b0] sm:$0xf]  ;;  %v11393_v31 = vld [vmem:[%s20025_s1 + $0x3f0] sm:$0xf0] }
 0x41b   :  { %v11567_v32 = vld [vmem:[%s20025_s1 + $0x930] sm:$0xf]  ;;  %v11396_v46 = vor.u32 %v13097_v9, %v11393_v31  ;;  %v11649_v9 = vld [vmem:[%s20025_s1 + $0xbf0] sm:$0xf0] }
 0x41c   :  { %6113 = vmatpush.bf16.msrb.mxu3 %v11244_v2  ;;  %7077 = vmatpush.bf16.msra.mxu2 %v11616_v30  ;;  %v11193_v2 = vld [vmem:[%s20027_s3 + $0xb58] sm:$0xf0]  ;;  %v13107_v30 = vld [vmem:[%s20025_s1 + $0x4ec] sm:$0xf0] }
 0x41d   :  { %7066 = vmatpush.bf16.msra.mxu1 %v11440_v50  ;;  %v13143_v28 = vld [vmem:[%s20025_s1 + $0x96c] sm:$0xf0]  ;;  %7053 = vmatpush.bf16.msra.mxu0 %v11296_v34  ;;  %v11424_v27 = vor.u32 %v13107_v30, %v11423_v17  ;;  %v11196_v5 = vor.u32 %v13046_v54, %v11193_v2  ;;  %v11521_v34 = vld [vmem:[%s20025_s1 + $0x7f0] sm:$0xf0] }
 0x41e   :  { %v11279_v52 = vld [vmem:[%s20025_s1 + $0x30] sm:$0xf]  ;;  %v11524_v54 = vor.u32 %v13129_v51, %v11521_v34  ;;  %v13093_v17 = vld [vmem:[%s20025_s1 + $0x334] sm:$0xf] }
 0x41f   :  { %v13071_v10 = vld [vmem:[%s20025_s1 + $0x6c] sm:$0xf0]  ;;  %v11377_v30 = vld [vmem:[%s20025_s1 + $0x370] sm:$0xf0] }
 0x420   :  { %6114 = vmatpush.bf16.msrb.mxu3 %v11228_v40  ;;  %7078 = vmatpush.bf16.msra.mxu2 %v11600_v24  ;;  %v11177_v40 = vld [vmem:[%s20027_s3 + $0xb38] sm:$0xf0]  ;;  %v11280_v56 = vor.u32 %v13071_v10, %v11279_v52  ;;  %v11568_v24 = vor.u32 %v13143_v28, %v11567_v32  ;;  %v11407_v57 = vld [vmem:[%s20025_s1 + $0x430] sm:$0xf]  ;;  %v11380_v52 = vor.u32 %v13093_v17, %v11377_v30  ;;  %v11633_v17 = vld [vmem:[%s20025_s1 + $0xb70] sm:$0xf0] }
 0x421   :  { %7067 = vmatpush.bf16.msra.mxu1 %v11424_v27  ;;  %v13103_v25 = vld [vmem:[%s20025_s1 + $0x46c] sm:$0xf0]  ;;  %v11180_v2 = vor.u32 %v13042_v36, %v11177_v40  ;;  %v11505_v40 = vld [vmem:[%s20025_s1 + $0x770] sm:$0xf0] }
 0x422   :  { %v11551_v50 = vld [vmem:[%s20025_s1 + $0x8b0] sm:$0xf]  ;;  %7054 = vmatpush.bf16.msra.mxu0 %v11280_v56  ;;  %v11408_v29 = vor.u32 %v13103_v25, %v11407_v57  ;;  %v13161_v56 = vld [vmem:[%s20025_s1 + $0xbb4] sm:$0xf] }
 0x423   :  { %v13139_v13 = vld [vmem:[%s20025_s1 + $0x8ec] sm:$0xf0]  ;;  %v11361_v57 = vld [vmem:[%s20025_s1 + $0x2f0] sm:$0xf0]  ;;  %v11652_v34 = vor.u32 %v13161_v56, %v11649_v9 }
 0x424   :  { %6115 = vmatpush.bf16.msrb.mxu3 %v11212_v43  ;;  %7079 = vmatpush.bf16.msra.mxu2 %v11584_v6  ;;  %v13038_v43 = vld [vmem:[%s20027_s3 + $0xb0c] sm:$0xf]  ;;  %v11161_v6 = vld [vmem:[%s20027_s3 + $0xb18] sm:$0xf0]  ;;  %v11775_v32 = vld [vmem:[%s20025_s1 + $0xfb0] sm:$0xf]  ;;  %v11552_v27 = vor.u32 %v13139_v13, %v11551_v50 }
 0x425   :  { %v13195_v28 = vld [vmem:[%s20025_s1 + $0xfec] sm:$0xf0]  ;;  %7068 = vmatpush.bf16.msra.mxu1 %v11408_v29  ;;  %7055 = vmatmul.bf16.vlgmr.msra.gmra.mxu0 %v13647_v59  ;;  %v13117_v56 = vld [vmem:[%s20025_s1 + $0x634] sm:$0xf] }
 0x426   :  { %7103 = vmatpush.bf16.msrb.mxu0 %v11396_v46  ;;  %v11535_v36 = vld [vmem:[%s20025_s1 + $0x830] sm:$0xf]  ;;  %v13089_v46 = vld [vmem:[%s20025_s1 + $0x2b4] sm:$0xf]  ;;  %v11776_v25 = vor.u32 %v13195_v28, %v11775_v32 }
 0x427   :  { %v13135_v10 = vld [vmem:[%s20025_s1 + $0x86c] sm:$0xf0]  ;;  %v11364_v13 = vor.u32 %v13089_v46, %v11361_v57  ;;  %v13085_v32 = vld [vmem:[%s20025_s1 + $0x234] sm:$0xf] }
 0x428   :  { %6116 = vmatpush.bf16.msrb.mxu3 %v11196_v5  ;;  %7080 = vmatpush.bf16.msra.mxu2 %v11568_v24  ;;  %v13125_v5 = vld [vmem:[%s20025_s1 + $0x734] sm:$0xf]  ;;  %v11164_v24 = vor.u32 %v13038_v43, %v11161_v6  ;;  %v11759_v51 = vld [vmem:[%s20025_s1 + $0xf30] sm:$0xf]  ;;  %v11536_v50 = vor.u32 %v13135_v10, %v11535_v36 }
 0x429   :  { %7117 = vmatpush.bf16.msrb.mxu1 %v11524_v54  ;;  %v11508_v31 = vor.u32 %v13125_v5, %v11505_v40  ;;  %v13191_v29 = vld [vmem:[%s20025_s1 + $0xf6c] sm:$0xf0]  ;;  %v13121_v43 = vld [vmem:[%s20025_s1 + $0x6b4] sm:$0xf] }
 0x42a   :  { %7104 = vmatpush.bf16.msrb.mxu0 %v11380_v52  ;;  %7069 = vmatmul.bf16.vlgmr.msra.gmra.mxu1 %v13657_v0  ;;  %v11489_v54 = vld [vmem:[%s20025_s1 + $0x6f0] sm:$0xf0]  ;;  %v11743_v36 = vld [vmem:[%s20025_s1 + $0xeb0] sm:$0xf] }
 0x42b   :  { %v13157_v6 = vld [vmem:[%s20025_s1 + $0xb34] sm:$0xf]  ;;  %v11492_v30 = vor.u32 %v13121_v43, %v11489_v54  ;;  %v13187_v52 = vld [vmem:[%s20025_s1 + $0xeec] sm:$0xf0] }
 0x42c   :  { %6117 = vmatpush.bf16.msrb.mxu3 %v11180_v2  ;;  %7081 = vmatpush.bf16.msra.mxu2 %v11552_v27  ;;  %v5910_v2 = vpop.f32.mrf.mxu0  ;;  %v11345_v28 = vld [vmem:[%s20025_s1 + $0x270] sm:$0xf0]  ;;  %v11760_v27 = vor.u32 %v13191_v29, %v11759_v51  ;;  %v11636_v5 = vor.u32 %v13157_v6, %v11633_v17  ;;  %v11744_v51 = vor.u32 %v13187_v52, %v11743_v36  ;;  %v11711_v36 = vld [vmem:[%s20025_s1 + $0xdb0] sm:$0xf] }
 0x42d   :  { %7118 = vmatpush.bf16.msrb.mxu1 %v11508_v31  ;;  %v11348_v10 = vor.u32 %v13085_v32, %v11345_v28  ;;  %v13153_v40 = vld [vmem:[%s20025_s1 + $0xab4] sm:$0xf] }
 0x42e   :  { %7105 = vmatpush.bf16.msrb.mxu0 %v11364_v13  ;;  %v11473_v9 = vld [vmem:[%s20025_s1 + $0x670] sm:$0xf0] }
 0x42f   :  { %v11617_v31 = vld [vmem:[%s20025_s1 + $0xaf0] sm:$0xf0] }
 0x430   :  { %6118 = vmatpush.bf16.msrb.mxu3 %v11164_v24  ;;  %7082 = vmatpush.bf16.msra.mxu2 %v11536_v50  ;;  %v11476_v24 = vor.u32 %v13117_v56, %v11473_v9  ;;  %v13081_v46 = vld [vmem:[%s20025_s1 + $0x1b4] sm:$0xf]  ;;  %v13183_v50 = vld [vmem:[%s20025_s1 + $0xe6c] sm:$0xf0]  ;;  %v11620_v13 = vor.u32 %v13153_v40, %v11617_v31  ;;  %v5924_v28 = vpop.f32.mrf.mxu1 }
 0x431   :  { %7119 = vmatpush.bf16.msrb.mxu1 %v11492_v30  ;;  %v11329_v57 = vld [vmem:[%s20025_s1 + $0x1f0] sm:$0xf0] }
 0x432   :  { %7106 = vmatpush.bf16.msrb.mxu0 %v11348_v10  ;;  %v13113_v29 = vld [vmem:[%s20025_s1 + $0x5b4] sm:$0xf]  ;;  %v18587_v10 = vadd.f32 %v5924_v28, %v5910_v2 }
 0x433   :  { %6119 = vmatmul.bf16.vlgmr.msrb.gmra.mxu3 %v18182_v41  ;;  %7083 = vmatmul.bf16.vlgmr.msra.gmra.mxu2 %v13636_v55  ;;  %v11727_v41 = vld [vmem:[%s20025_s1 + $0xe30] sm:$0xf]  ;;  %v13149_v43 = vld [vmem:[%s20025_s1 + $0xa34] sm:$0xf] }
 0x434   :  { %7089 = vmatpush.bf16.msra.mxu3 %v11776_v25  ;;  %7131 = vmatpush.bf16.msrb.mxu2 %v11652_v34  ;;  %v11332_v25 = vor.u32 %v13081_v46, %v11329_v57  ;;  %v11457_v34 = vld [vmem:[%s20025_s1 + $0x5f0] sm:$0xf0]  ;;  %v5912_v32 = vpop.f32.mrf.mxu0 }
 0x435   :  { %7120 = vmatpush.bf16.msrb.mxu1 %v11476_v24  ;;  %v11601_v54 = vld [vmem:[%s20025_s1 + $0xa70] sm:$0xf0]  ;;  %v11460_v6 = vor.u32 %v13113_v29, %v11457_v34 }
 0x436   :  { %7107 = vmatpush.bf16.msrb.mxu0 %v11332_v25  ;;  %v13077_v17 = vld [vmem:[%s20025_s1 + $0x134] sm:$0xf]  ;;  %v11604_v40 = vor.u32 %v13149_v43, %v11601_v54 }
 0x437   :  { %v11313_v30 = vld [vmem:[%s20025_s1 + $0x170] sm:$0xf0] }
 0x438   :  { %7090 = vmatpush.bf16.msra.mxu3 %v11760_v27  ;;  %7132 = vmatpush.bf16.msrb.mxu2 %v11636_v5  ;;  %v11728_v27 = vor.u32 %v13183_v50, %v11727_v41  ;;  %v11316_v52 = vor.u32 %v13077_v17, %v11313_v30  ;;  %v13179_v5 = vld [vmem:[%s20025_s1 + $0xdec] sm:$0xf0]  ;;  %v13109_v56 = vld [vmem:[%s20025_s1 + $0x534] sm:$0xf] }
 0x439   :  { %7121 = vmatpush.bf16.msrb.mxu1 %v11460_v6  ;;  %v11441_v9 = vld [vmem:[%s20025_s1 + $0x570] sm:$0xf0]  ;;  %v11712_v25 = vor.u32 %v13179_v5, %v11711_v36  ;;  %v13175_v50 = vld [vmem:[%s20025_s1 + $0xd6c] sm:$0xf0] }
 0x43a   :  { %v13145_v2 = vld [vmem:[%s20025_s1 + $0x9b4] sm:$0xf]  ;;  %7108 = vmatpush.bf16.msrb.mxu0 %v11316_v52  ;;  %v11444_v24 = vor.u32 %v13109_v56, %v11441_v9  ;;  %v11679_v17 = vld [vmem:[%s20025_s1 + $0xcb0] sm:$0xf]  ;;  %v13100_v56 = vld [vmem:[%s20025_s1 + $0x3f4] sm:$0xf0] }
 0x43b   :  { %v11585_v31 = vld [vmem:[%s20025_s1 + $0x9f0] sm:$0xf0]  ;;  %v13171_v52 = vld [vmem:[%s20025_s1 + $0xcec] sm:$0xf0] }
 0x43c   :  { %7091 = vmatpush.bf16.msra.mxu3 %v11744_v51  ;;  %7133 = vmatpush.bf16.msrb.mxu2 %v11620_v13  ;;  %v13073_v46 = vld [vmem:[%s20025_s1 + $0xb4] sm:$0xf]  ;;  %v11695_v51 = vld [vmem:[%s20025_s1 + $0xd30] sm:$0xf]  ;;  %v11588_v13 = vor.u32 %v13145_v2, %v11585_v31 }
 0x43d   :  { %v11297_v57 = vld [vmem:[%s20025_s1 + $0xf0] sm:$0xf0]  ;;  %7122 = vmatpush.bf16.msrb.mxu1 %v11444_v24  ;;  %v11696_v36 = vor.u32 %v13175_v50, %v11695_v51  ;;  %v13132_v50 = vld [vmem:[%s20025_s1 + $0x7f4] sm:$0xf0] }
 0x43e   :  { %v11300_v41 = vor.u32 %v13073_v46, %v11297_v57  ;;  %v13105_v29 = vld [vmem:[%s20025_s1 + $0x4b4] sm:$0xf] }
 0x43f   :  { %v11425_v34 = vld [vmem:[%s20025_s1 + $0x4f0] sm:$0xf0] }
 0x440   :  { %7092 = vmatpush.bf16.msra.mxu3 %v11728_v27  ;;  %7134 = vmatpush.bf16.msrb.mxu2 %v11604_v40  ;;  %v13141_v43 = vld [vmem:[%s20025_s1 + $0x934] sm:$0xf]  ;;  %v11428_v6 = vor.u32 %v13105_v29, %v11425_v34  ;;  %v5926_v27 = vpop.f32.mrf.mxu1  ;;  %v11399_v40 = vld [vmem:[%s20025_s1 + $0x3b8] sm:$0xf]  ;;  %v11680_v34 = vor.u32 %v13171_v52, %v11679_v17 }
 0x441   :  { %v11569_v54 = vld [vmem:[%s20025_s1 + $0x970] sm:$0xf0]  ;;  %7109 = vmatpush.bf16.msrb.mxu0 %v11300_v41  ;;  %v18646_v9 = vadd.f32 %v5926_v27, %v5912_v32  ;;  %v11400_v24 = vor.u32 %v13100_v56, %v11399_v40  ;;  %v11527_v41 = vld [vmem:[%s20025_s1 + $0x7b8] sm:$0xf] }
 0x442   :  { %v13069_v30 = vld [vmem:[%s20025_s1 + $0x34] sm:$0xf]  ;;  %v11572_v2 = vor.u32 %v13141_v43, %v11569_v54  ;;  %7123 = vmatpush.bf16.msrb.mxu1 %v11428_v6  ;;  %v11528_v29 = vor.u32 %v13132_v50, %v11527_v41  ;;  %v13167_v43 = vld [vmem:[%s20025_s1 + $0xc6c] sm:$0xf0]  ;;  %v11383_v54 = vld [vmem:[%s20025_s1 + $0x338] sm:$0xf] }
 0x443   :  { %v11281_v28 = vld [vmem:[%s20025_s1 + $0x70] sm:$0xf0]  ;;  %v13096_v6 = vld [vmem:[%s20025_s1 + $0x374] sm:$0xf0] }
 0x444   :  { %7093 = vmatpush.bf16.msra.mxu3 %v11712_v25  ;;  %v11284_v5 = vor.u32 %v13069_v30, %v11281_v28  ;;  %7135 = vmatpush.bf16.msrb.mxu2 %v11588_v13  ;;  %v13137_v31 = vld [vmem:[%s20025_s1 + $0x8b4] sm:$0xf]  ;;  %v5966_v25 = vpop.f32.mrf.mxu0  ;;  %v11663_v13 = vld [vmem:[%s20025_s1 + $0xc30] sm:$0xf]  ;;  %v11384_v17 = vor.u32 %v13096_v6, %v11383_v54  ;;  %v11511_v27 = vld [vmem:[%s20025_s1 + $0x738] sm:$0xf] }
 0x445   :  { %v13101_v46 = vld [vmem:[%s20025_s1 + $0x434] sm:$0xf]  ;;  %v11495_v54 = vld [vmem:[%s20025_s1 + $0x6b8] sm:$0xf] }
 0x446   :  { %v11409_v57 = vld [vmem:[%s20025_s1 + $0x470] sm:$0xf0]  ;;  %7110 = vmatpush.bf16.msrb.mxu0 %v11284_v5  ;;  %v11639_v6 = vld [vmem:[%s20025_s1 + $0xb38] sm:$0xf] }
 0x447   :  { %v11553_v32 = vld [vmem:[%s20025_s1 + $0x8f0] sm:$0xf0]  ;;  %v11412_v51 = vor.u32 %v13101_v46, %v11409_v57  ;;  %v11664_v46 = vor.u32 %v13167_v43, %v11663_v13  ;;  %v11367_v57 = vld [vmem:[%s20025_s1 + $0x2b8] sm:$0xf] }
 0x448   :  { %7094 = vmatpush.bf16.msra.mxu3 %v11696_v36  ;;  %v13193_v30 = vld [vmem:[%s20025_s1 + $0xfb4] sm:$0xf]  ;;  %7136 = vmatpush.bf16.msrb.mxu2 %v11572_v2  ;;  %v11556_v28 = vor.u32 %v13137_v31, %v11553_v32  ;;  %v13128_v36 = vld [vmem:[%s20025_s1 + $0x774] sm:$0xf0] }
 0x449   :  { %7124 = vmatpush.bf16.msrb.mxu1 %v11412_v51  ;;  %v11777_v52 = vld [vmem:[%s20025_s1 + $0xff0] sm:$0xf0]  ;;  %v11512_v56 = vor.u32 %v13128_v36, %v11511_v27  ;;  %7111 = vmatmul.bf16.vlgmr.msrb.gmra.mxu0 %v13647_v59  ;;  %v11655_v2 = vld [vmem:[%s20025_s1 + $0xbb8] sm:$0xf] }
 0x44a   :  { %7159 = vmatpush.bf16.msra.mxu0 %v11400_v24  ;;  %v13133_v5 = vld [vmem:[%s20025_s1 + $0x834] sm:$0xf]  ;;  %v13164_v31 = vld [vmem:[%s20025_s1 + $0xbf4] sm:$0xf0]  ;;  %v5980_v24 = vpop.f32.mrf.mxu1  ;;  %v11780_v41 = vor.u32 %v13193_v30, %v11777_v52 }
 0x44b   :  { %v11537_v40 = vld [vmem:[%s20025_s1 + $0x870] sm:$0xf0]  ;;  %v13092_v32 = vld [vmem:[%s20025_s1 + $0x2f4] sm:$0xf0]  ;;  %v18710_v51 = vadd.f32 %v5980_v24, %v5966_v25  ;;  %v11656_v43 = vor.u32 %v13164_v31, %v11655_v2 }
 0x44c   :  { %7095 = vmatpush.bf16.msra.mxu3 %v11680_v34  ;;  %7125 = vmatmul.bf16.vlgmr.msrb.gmra.mxu1 %v13657_v0  ;;  %v13189_v50 = vld [vmem:[%s20025_s1 + $0xf34] sm:$0xf]  ;;  %v11368_v13 = vor.u32 %v13092_v32, %v11367_v57  ;;  %v13124_v25 = vld [vmem:[%s20025_s1 + $0x6f4] sm:$0xf0] }
 0x44d   :  { %7173 = vmatpush.bf16.msra.mxu1 %v11528_v29  ;;  %7137 = vmatpush.bf16.msrb.mxu2 %v11556_v28  ;;  %v11540_v29 = vor.u32 %v13133_v5, %v11537_v40  ;;  %v11761_v34 = vld [vmem:[%s20025_s1 + $0xf70] sm:$0xf0]  ;;  %v13160_v30 = vld [vmem:[%s20025_s1 + $0xb74] sm:$0xf0]  ;;  %v11496_v28 = vor.u32 %v13124_v25, %v11495_v54 }
 0x44e   :  { %7160 = vmatpush.bf16.msra.mxu0 %v11384_v17  ;;  %v5968_v17 = vpop.f32.mrf.mxu0  ;;  %v11351_v27 = vld [vmem:[%s20025_s1 + $0x238] sm:$0xf]  ;;  %v11764_v52 = vor.u32 %v13189_v50, %v11761_v34  ;;  %v13185_v5 = vld [vmem:[%s20025_s1 + $0xeb4] sm:$0xf]  ;;  %v11640_v2 = vor.u32 %v13160_v30, %v11639_v6 }
 0x44f   :  { %v13088_v36 = vld [vmem:[%s20025_s1 + $0x274] sm:$0xf0]  ;;  %v11745_v40 = vld [vmem:[%s20025_s1 + $0xef0] sm:$0xf0] }
 0x450   :  { %7096 = vmatpush.bf16.msra.mxu3 %v11664_v46  ;;  %v11623_v31 = vld [vmem:[%s20025_s1 + $0xab8] sm:$0xf]  ;;  %v13181_v54 = vld [vmem:[%s20025_s1 + $0xe34] sm:$0xf] }
 0x451   :  { %7174 = vmatpush.bf16.msra.mxu1 %v11512_v56  ;;  %7138 = vmatpush.bf16.msrb.mxu2 %v11540_v29  ;;  %v11352_v56 = vor.u32 %v13088_v36, %v11351_v27  ;;  %v11479_v24 = vld [vmem:[%s20025_s1 + $0x638] sm:$0xf]  ;;  %v11729_v25 = vld [vmem:[%s20025_s1 + $0xe70] sm:$0xf0] }
 0x452   :  { %7161 = vmatpush.bf16.msra.mxu0 %v11368_v13  ;;  %v13120_v46 = vld [vmem:[%s20025_s1 + $0x674] sm:$0xf0]  ;;  %v5982_v29 = vpop.f32.mrf.mxu1 }
 0x453   :  { %7097 = vmatmul.bf16.vlgmr.msra.gmra.mxu3 %v13649_v60  ;;  %v13156_v57 = vld [vmem:[%s20025_s1 + $0xaf4] sm:$0xf0]  ;;  %v11480_v32 = vor.u32 %v13120_v46, %v11479_v24  ;;  %v18762_v34 = vadd.f32 %v5982_v29, %v5968_v17  ;;  %v11713_v24 = vld [vmem:[%s20025_s1 + $0xdf0] sm:$0xf0] }
 0x454   :  { %7145 = vmatpush.bf16.msrb.mxu3 %v11780_v41  ;;  %v11335_v41 = vld [vmem:[%s20025_s1 + $0x1b8] sm:$0xf]  ;;  %7139 = vmatmul.bf16.vlgmr.msrb.gmra.mxu2 %v13636_v55  ;;  %v11624_v6 = vor.u32 %v13156_v57, %v11623_v31 }
 0x455   :  { %7187 = vmatpush.bf16.msra.mxu2 %v11656_v43  ;;  %7175 = vmatpush.bf16.msra.mxu1 %v11496_v28  ;;  %v13084_v50 = vld [vmem:[%s20025_s1 + $0x1f4] sm:$0xf0]  ;;  %v11748_v43 = vor.u32 %v13185_v5, %v11745_v40  ;;  %v11732_v40 = vor.u32 %v13181_v54, %v11729_v25 }
 0x456   :  { %7162 = vmatpush.bf16.msra.mxu0 %v11352_v56  ;;  %v11336_v13 = vor.u32 %v13084_v50, %v11335_v41  ;;  %v11463_v30 = vld [vmem:[%s20025_s1 + $0x5b8] sm:$0xf]  ;;  %v13177_v56 = vld [vmem:[%s20025_s1 + $0xdb4] sm:$0xf]  ;;  %v6022_v31 = vpop.f32.mrf.mxu0 }
 0x457   :  { %v13116_v28 = vld [vmem:[%s20025_s1 + $0x5f4] sm:$0xf0] }
 0x458   :  { %7146 = vmatpush.bf16.msrb.mxu3 %v11764_v52  ;;  %v11607_v17 = vld [vmem:[%s20025_s1 + $0xa38] sm:$0xf]  ;;  %v11464_v36 = vor.u32 %v13116_v28, %v11463_v30  ;;  %v13173_v30 = vld [vmem:[%s20025_s1 + $0xd34] sm:$0xf] }
 0x459   :  { %7188 = vmatpush.bf16.msra.mxu2 %v11640_v2  ;;  %7176 = vmatpush.bf16.msra.mxu1 %v11480_v32  ;;  %v13152_v27 = vld [vmem:[%s20025_s1 + $0xa74] sm:$0xf0] }
 0x45a   :  { %7163 = vmatpush.bf16.msra.mxu0 %v11336_v13  ;;  %v11319_v52 = vld [vmem:[%s20025_s1 + $0x138] sm:$0xf]  ;;  %v11608_v46 = vor.u32 %v13152_v27, %v11607_v17  ;;  %v6036_v13 = vpop.f32.mrf.mxu1  ;;  %v11697_v17 = vld [vmem:[%s20025_s1 + $0xd70] sm:$0xf0] }
 0x45b   :  { %v13080_v5 = vld [vmem:[%s20025_s1 + $0x174] sm:$0xf0]  ;;  %v18812_v25 = vadd.f32 %v6036_v13, %v6022_v31  ;;  %v13169_v31 = vld [vmem:[%s20025_s1 + $0xcb4] sm:$0xf]  ;;  %v11401_v13 = vld [vmem:[%s20025_s1 + $0x3f8] sm:$0xf0] }
 0x45c   :  { %7147 = vmatpush.bf16.msrb.mxu3 %v11748_v43  ;;  %v11320_v2 = vor.u32 %v13080_v5, %v11319_v52  ;;  %v11447_v57 = vld [vmem:[%s20025_s1 + $0x538] sm:$0xf] }
 0x45d   :  { %7189 = vmatpush.bf16.msra.mxu2 %v11624_v6  ;;  %7177 = vmatpush.bf16.msra.mxu1 %v11464_v36  ;;  %v13112_v32 = vld [vmem:[%s20025_s1 + $0x574] sm:$0xf0]  ;;  %v11716_v6 = vor.u32 %v13177_v56, %v11713_v24 }
 0x45e   :  { %v11591_v41 = vld [vmem:[%s20025_s1 + $0x9b8] sm:$0xf]  ;;  %7164 = vmatpush.bf16.msra.mxu0 %v11320_v2  ;;  %v11448_v29 = vor.u32 %v13112_v32, %v11447_v57  ;;  %v5938_v2 = vpop.f32.mrf.mxu2  ;;  %v11700_v32 = vor.u32 %v13173_v30, %v11697_v17 }
 0x45f   :  { %v13148_v50 = vld [vmem:[%s20025_s1 + $0x9f4] sm:$0xf0]  ;;  %v18842_v57 = vadd.f32 %v5938_v2, %v18587_v10 }
 0x460   :  { %v11303_v43 = vld [vmem:[%s20025_s1 + $0xb8] sm:$0xf]  ;;  %7148 = vmatpush.bf16.msrb.mxu3 %v11732_v40  ;;  %v11592_v27 = vor.u32 %v13148_v50, %v11591_v41  ;;  %v11681_v41 = vld [vmem:[%s20025_s1 + $0xcf0] sm:$0xf0] }
 0x461   :  { %v13076_v54 = vld [vmem:[%s20025_s1 + $0xf4] sm:$0xf0]  ;;  %7190 = vmatpush.bf16.msra.mxu2 %v11608_v46  ;;  %7178 = vmatpush.bf16.msra.mxu1 %v11448_v29  ;;  %v13098_v29 = vld [vmem:[%s20025_s1 + $0x3bc] sm:$0xf] }
 0x462   :  { %v11304_v28 = vor.u32 %v13076_v54, %v11303_v43  ;;  %v11431_v36 = vld [vmem:[%s20025_s1 + $0x4b8] sm:$0xf]  ;;  %v11404_v54 = vor.u32 %v13098_v29, %v11401_v13  ;;  %v11385_v29 = vld [vmem:[%s20025_s1 + $0x378] sm:$0xf0] }
 0x463   :  { %v13108_v52 = vld [vmem:[%s20025_s1 + $0x4f4] sm:$0xf0] }
 0x464   :  { %v11575_v5 = vld [vmem:[%s20025_s1 + $0x938] sm:$0xf]  ;;  %7165 = vmatpush.bf16.msra.mxu0 %v11304_v28  ;;  %v11432_v56 = vor.u32 %v13108_v52, %v11431_v36  ;;  %7149 = vmatpush.bf16.msrb.mxu3 %v11716_v6  ;;  %v11529_v36 = vld [vmem:[%s20025_s1 + $0x7f8] sm:$0xf0]  ;;  %v6024_v52 = vpop.f32.mrf.mxu0 }
 0x465   :  { %v13144_v40 = vld [vmem:[%s20025_s1 + $0x974] sm:$0xf0]  ;;  %7191 = vmatpush.bf16.msra.mxu2 %v11592_v27  ;;  %v13130_v27 = vld [vmem:[%s20025_s1 + $0x7bc] sm:$0xf] }
 0x466   :  { %v11287_v24 = vld [vmem:[%s20025_s1 + $0x38] sm:$0xf]  ;;  %v11576_v43 = vor.u32 %v13144_v40, %v11575_v5  ;;  %7179 = vmatpush.bf16.msra.mxu1 %v11432_v56  ;;  %v6038_v5 = vpop.f32.mrf.mxu1  ;;  %v13165_v40 = vld [vmem:[%s20025_s1 + $0xc34] sm:$0xf]  ;;  %v11532_v56 = vor.u32 %v13130_v27, %v11529_v36 }
 0x467   :  { %v13072_v46 = vld [vmem:[%s20025_s1 + $0x74] sm:$0xf0]  ;;  %v18874_v2 = vadd.f32 %v6038_v5, %v6024_v52  ;;  %v13090_v5 = vld [vmem:[%s20025_s1 + $0x2bc] sm:$0xf] }
 0x468   :  { %v11288_v50 = vor.u32 %v13072_v46, %v11287_v24  ;;  %v11559_v10 = vld [vmem:[%s20025_s1 + $0x8b8] sm:$0xf]  ;;  %7150 = vmatpush.bf16.msrb.mxu3 %v11700_v32  ;;  %v11684_v24 = vor.u32 %v13169_v31, %v11681_v41  ;;  %v11665_v46 = vld [vmem:[%s20025_s1 + $0xc70] sm:$0xf0] }
 0x469   :  { %v11415_v6 = vld [vmem:[%s20025_s1 + $0x438] sm:$0xf]  ;;  %7192 = vmatpush.bf16.msra.mxu2 %v11576_v43  ;;  %v11513_v43 = vld [vmem:[%s20025_s1 + $0x778] sm:$0xf0]  ;;  %v11668_v52 = vor.u32 %v13165_v40, %v11665_v46 }
 0x46a   :  { %v13104_v30 = vld [vmem:[%s20025_s1 + $0x474] sm:$0xf0]  ;;  %7166 = vmatpush.bf16.msra.mxu0 %v11288_v50  ;;  %v13094_v50 = vld [vmem:[%s20025_s1 + $0x33c] sm:$0xf] }
 0x46b   :  { %v13140_v28 = vld [vmem:[%s20025_s1 + $0x8f4] sm:$0xf0]  ;;  %v11416_v17 = vor.u32 %v13104_v30, %v11415_v6  ;;  %v13126_v30 = vld [vmem:[%s20025_s1 + $0x73c] sm:$0xf] }
 0x46c   :  { %v11783_v13 = vld [vmem:[%s20025_s1 + $0xfb8] sm:$0xf]  ;;  %v11560_v32 = vor.u32 %v13140_v28, %v11559_v10  ;;  %v5940_v10 = vpop.f32.mrf.mxu2  ;;  %v13162_v28 = vld [vmem:[%s20025_s1 + $0xbbc] sm:$0xf]  ;;  %v11516_v27 = vor.u32 %v13126_v30, %v11513_v43  ;;  %7151 = vmatpush.bf16.msrb.mxu3 %v11684_v24 }
 0x46d   :  { %v13196_v31 = vld [vmem:[%s20025_s1 + $0xff4] sm:$0xf0]  ;;  %7180 = vmatpush.bf16.msra.mxu1 %v11416_v17  ;;  %7167 = vmatmul.bf16.vlgmr.msra.gmra.mxu0 %v13647_v59  ;;  %v11657_v17 = vld [vmem:[%s20025_s1 + $0xbf8] sm:$0xf0]  ;;  %v18911_v36 = vadd.f32 %v5940_v10, %v18646_v9 }
 0x46e   :  { %7215 = vmatpush.bf16.msrb.mxu0 %v11404_v54  ;;  %v11543_v41 = vld [vmem:[%s20025_s1 + $0x838] sm:$0xf]  ;;  %v11388_v54 = vor.u32 %v13094_v50, %v11385_v29  ;;  %v11784_v50 = vor.u32 %v13196_v31, %v11783_v13  ;;  %7193 = vmatpush.bf16.msra.mxu2 %v11560_v32  ;;  %v11660_v24 = vor.u32 %v13162_v28, %v11657_v17  ;;  %v13122_v46 = vld [vmem:[%s20025_s1 + $0x6bc] sm:$0xf] }
 0x46f   :  { %v13136_v6 = vld [vmem:[%s20025_s1 + $0x874] sm:$0xf0]  ;;  %v11497_v13 = vld [vmem:[%s20025_s1 + $0x6f8] sm:$0xf0] }
 0x470   :  { %7181 = vmatmul.bf16.vlgmr.msra.gmra.mxu1 %v13657_v0  ;;  %v11767_v29 = vld [vmem:[%s20025_s1 + $0xf38] sm:$0xf]  ;;  %v11544_v9 = vor.u32 %v13136_v6, %v11543_v41  ;;  %v13158_v31 = vld [vmem:[%s20025_s1 + $0xb3c] sm:$0xf]  ;;  %v11500_v41 = vor.u32 %v13122_v46, %v11497_v13  ;;  %7152 = vmatpush.bf16.msrb.mxu3 %v11668_v52 }
 0x471   :  { %7229 = vmatpush.bf16.msrb.mxu1 %v11532_v56  ;;  %v11369_v56 = vld [vmem:[%s20025_s1 + $0x2f8] sm:$0xf0]  ;;  %v13192_v40 = vld [vmem:[%s20025_s1 + $0xf74] sm:$0xf0] }
 0x472   :  { %7216 = vmatpush.bf16.msrb.mxu0 %v11388_v54  ;;  %v11372_v54 = vor.u32 %v13090_v5, %v11369_v56  ;;  %v11641_v32 = vld [vmem:[%s20025_s1 + $0xb78] sm:$0xf0]  ;;  %v11768_v43 = vor.u32 %v13192_v40, %v11767_v29  ;;  %v11751_v10 = vld [vmem:[%s20025_s1 + $0xeb8] sm:$0xf]  ;;  %7194 = vmatpush.bf16.msra.mxu2 %v11544_v9 }
 0x473   :  { %v13086_v6 = vld [vmem:[%s20025_s1 + $0x23c] sm:$0xf]  ;;  %v13188_v28 = vld [vmem:[%s20025_s1 + $0xef4] sm:$0xf0]  ;;  %7153 = vmatmul.bf16.vlgmr.msrb.gmra.mxu3 %v13649_v60 }
 0x474   :  { %v11353_v30 = vld [vmem:[%s20025_s1 + $0x278] sm:$0xf0]  ;;  %7201 = vmatpush.bf16.msra.mxu3 %v11784_v50  ;;  %v5994_v50 = vpop.f32.mrf.mxu2  ;;  %v11752_v13 = vor.u32 %v13188_v28, %v11751_v10 }
 0x475   :  { %7230 = vmatpush.bf16.msrb.mxu1 %v11516_v27  ;;  %v11356_v17 = vor.u32 %v13086_v6, %v11353_v30  ;;  %v11644_v27 = vor.u32 %v13158_v31, %v11641_v32  ;;  %v13154_v52 = vld [vmem:[%s20025_s1 + $0xabc] sm:$0xf]  ;;  %7195 = vmatmul.bf16.vlgmr.msra.gmra.mxu2 %v13636_v55  ;;  %v11735_v31 = vld [vmem:[%s20025_s1 + $0xe38] sm:$0xf] }
 0x476   :  { %7217 = vmatpush.bf16.msrb.mxu0 %v11372_v54  ;;  %7243 = vmatpush.bf16.msrb.mxu2 %v11660_v24  ;;  %v13118_v5 = vld [vmem:[%s20025_s1 + $0x63c] sm:$0xf]  ;;  %v18970_v24 = vadd.f32 %v5994_v50, %v18710_v51  ;;  %v13184_v32 = vld [vmem:[%s20025_s1 + $0xe74] sm:$0xf0]  ;;  %v6078_v50 = vpop.f32.mrf.mxu0 }
 0x477   :  { %v11481_v56 = vld [vmem:[%s20025_s1 + $0x678] sm:$0xf0] }
 0x478   :  { %v11625_v29 = vld [vmem:[%s20025_s1 + $0xaf8] sm:$0xf0]  ;;  %v11484_v9 = vor.u32 %v13118_v5, %v11481_v56  ;;  %7202 = vmatpush.bf16.msra.mxu3 %v11768_v43  ;;  %v13180_v5 = vld [vmem:[%s20025_s1 + $0xdf4] sm:$0xf0] }
 0x479   :  { %7231 = vmatpush.bf16.msrb.mxu1 %v11500_v41  ;;  %v13082_v54 = vld [vmem:[%s20025_s1 + $0x1bc] sm:$0xf]  ;;  %v11628_v41 = vor.u32 %v13154_v52, %v11625_v29  ;;  %v11719_v52 = vld [vmem:[%s20025_s1 + $0xdb8] sm:$0xf] }
 0x47a   :  { %7218 = vmatpush.bf16.msrb.mxu0 %v11356_v17  ;;  %v11337_v40 = vld [vmem:[%s20025_s1 + $0x1f8] sm:$0xf0]  ;;  %7244 = vmatpush.bf16.msrb.mxu2 %v11644_v27  ;;  %v11736_v27 = vor.u32 %v13184_v32, %v11735_v31 }
 0x47b   :  { %v11340_v46 = vor.u32 %v13082_v54, %v11337_v40  ;;  %v13114_v51 = vld [vmem:[%s20025_s1 + $0x5bc] sm:$0xf] }
 0x47c   :  { %v11465_v6 = vld [vmem:[%s20025_s1 + $0x5f8] sm:$0xf0]  ;;  %7203 = vmatpush.bf16.msra.mxu3 %v11752_v13 }
 0x47d   :  { %7232 = vmatpush.bf16.msrb.mxu1 %v11484_v9  ;;  %v13150_v30 = vld [vmem:[%s20025_s1 + $0xa3c] sm:$0xf]  ;;  %v11468_v10 = vor.u32 %v13114_v51, %v11465_v6  ;;  %v6092_v6 = vpop.f32.mrf.mxu1 }
 0x47e   :  { %v11609_v43 = vld [vmem:[%s20025_s1 + $0xa78] sm:$0xf0]  ;;  %7219 = vmatpush.bf16.msrb.mxu0 %v11340_v46  ;;  %7245 = vmatpush.bf16.msrb.mxu2 %v11628_v41  ;;  %v5996_v46 = vpop.f32.mrf.mxu2 }
 0x47f   :  { %v13078_v28 = vld [vmem:[%s20025_s1 + $0x13c] sm:$0xf]  ;;  %v11612_v29 = vor.u32 %v13150_v30, %v11609_v43  ;;  %v19022_v51 = vadd.f32 %v5996_v46, %v18762_v34  ;;  %v19024_v43 = vadd.f32 %v6092_v6, %v6078_v50 }
 0x480   :  { %v11321_v17 = vld [vmem:[%s20025_s1 + $0x178] sm:$0xf0]  ;;  %7204 = vmatpush.bf16.msra.mxu3 %v11736_v27 }
 0x481   :  { %v11324_v56 = vor.u32 %v13078_v28, %v11321_v17  ;;  %v13146_v9 = vld [vmem:[%s20025_s1 + $0x9bc] sm:$0xf]  ;;  %7233 = vmatpush.bf16.msrb.mxu1 %v11468_v10  ;;  %v11720_v10 = vor.u32 %v13180_v5, %v11719_v52  ;;  %v11703_v28 = vld [vmem:[%s20025_s1 + $0xd38] sm:$0xf]  ;;  %v5952_v52 = vpop.f32.mrf.mxu3 }
 0x482   :  { %v13110_v54 = vld [vmem:[%s20025_s1 + $0x53c] sm:$0xf]  ;;  %v13176_v17 = vld [vmem:[%s20025_s1 + $0xd74] sm:$0xf0]  ;;  %7246 = vmatpush.bf16.msrb.mxu2 %v11612_v29 }
 0x483   :  { %v11449_v40 = vld [vmem:[%s20025_s1 + $0x578] sm:$0xf0]  ;;  %7220 = vmatpush.bf16.msrb.mxu0 %v11324_v56  ;;  %v11704_v46 = vor.u32 %v13176_v17, %v11703_v28 }
 0x484   :  { %v11593_v13 = vld [vmem:[%s20025_s1 + $0x9f8] sm:$0xf0]  ;;  %v11452_v31 = vor.u32 %v13110_v54, %v11449_v40  ;;  %7205 = vmatpush.bf16.msra.mxu3 %v11720_v10 }
 0x485   :  { %v13074_v32 = vld [vmem:[%s20025_s1 + $0xbc] sm:$0xf]  ;;  %v11596_v56 = vor.u32 %v13146_v9, %v11593_v13  ;;  %v5953_v9 = vadd.f32 %v5952_v52, %v18842_v57  ;;  %v11687_v13 = vld [vmem:[%s20025_s1 + $0xcb8] sm:$0xf] }
 0x486   :  { %v11305_v41 = vld [vmem:[%s20025_s1 + $0xf8] sm:$0xf0]  ;;  %7234 = vmatpush.bf16.msrb.mxu1 %v11452_v31  ;;  %v13172_v57 = vld [vmem:[%s20025_s1 + $0xcf4] sm:$0xf0]  ;;  %v6050_v10 = vpop.f32.mrf.mxu2 }
 0x487   :  { %v11308_v30 = vor.u32 %v13074_v32, %v11305_v41  ;;  %v13106_v34 = vld [vmem:[%s20025_s1 + $0x4bc] sm:$0xf]  ;;  %v19055_v32 = vadd.f32 %v5953_v9, %v17397_v16  ;;  %7247 = vmatpush.bf16.msrb.mxu2 %v11596_v56  ;;  %v6080_v56 = vpop.f32.mrf.mxu0 }
 0x488   :  { %v11433_v27 = vld [vmem:[%s20025_s1 + $0x4f8] sm:$0xf0]  ;;  %7206 = vmatpush.bf16.msra.mxu3 %v11704_v46 }
 0x489   :  { %v13142_v5 = vld [vmem:[%s20025_s1 + $0x93c] sm:$0xf]  ;;  %7221 = vmatpush.bf16.msrb.mxu0 %v11308_v30  ;;  %v11436_v29 = vor.u32 %v13106_v34, %v11433_v27  ;;  %v19073_v34 = vadd.f32 %v6050_v10, %v18812_v25  ;;  %v6094_v27 = vpop.f32.mrf.mxu1 }
 0x48a   :  { %v11577_v50 = vld [vmem:[%s20025_s1 + $0x978] sm:$0xf0]  ;;  %v19075_v52 = vadd.f32 %v6094_v27, %v6080_v56  ;;  %v13223_v56 = vld [vmem:[%s20027_s3 + $0xccc] sm:$0xf0] }
 0x48b   :  { %v13070_v54 = vld [vmem:[%s20025_s1 + $0x3c] sm:$0xf]  ;;  %v11580_v41 = vor.u32 %v13142_v5, %v11577_v50  ;;  %7235 = vmatpush.bf16.msrb.mxu1 %v11436_v29  ;;  %v11688_v5 = vor.u32 %v13172_v57, %v11687_v13  ;;  %v11671_v50 = vld [vmem:[%s20025_s1 + $0xc38] sm:$0xf] }
 0x48c   :  { %v11289_v40 = vld [vmem:[%s20025_s1 + $0x78] sm:$0xf0]  ;;  %v13168_v29 = vld [vmem:[%s20025_s1 + $0xc74] sm:$0xf0] }
 0x48d   :  { %v11292_v31 = vor.u32 %v13070_v54, %v11289_v40  ;;  %v13102_v6 = vld [vmem:[%s20025_s1 + $0x43c] sm:$0xf]  ;;  %7248 = vmatpush.bf16.msrb.mxu2 %v11580_v41  ;;  %v5954_v54 = vpop.f32.mrf.mxu3  ;;  %7207 = vmatpush.bf16.msra.mxu3 %v11688_v5  ;;  %v11672_v57 = vor.u32 %v13168_v29, %v11671_v50 }
 0x48e   :  { %v11417_v30 = vld [vmem:[%s20025_s1 + $0x478] sm:$0xf0] }
 0x48f   :  { %v13138_v16 = vld [vmem:[%s20025_s1 + $0x8bc] sm:$0xf]  ;;  %7222 = vmatpush.bf16.msrb.mxu0 %v11292_v31  ;;  %v11420_v17 = vor.u32 %v13102_v6, %v11417_v30  ;;  %v19097_v31 = vadd.f32 %v5954_v54, %v18911_v36  ;;  %v6052_v30 = vpop.f32.mrf.mxu2  ;;  %v11903_v36 = vld [vmem:[%s20027_s3 + $0xce0] sm:$0xf]  ;;  %v13219_v54 = vld [vmem:[%s20027_s3 + $0xcac] sm:$0xf0] }
 0x490   :  { %v11561_v28 = vld [vmem:[%s20025_s1 + $0x8f8] sm:$0xf0] }
 0x491   :  { %v13194_v9 = vld [vmem:[%s20025_s1 + $0xfbc] sm:$0xf]  ;;  %v11564_v25 = vor.u32 %v13138_v16, %v11561_v28  ;;  %7236 = vmatpush.bf16.msrb.mxu1 %v11420_v17  ;;  %7208 = vmatpush.bf16.msra.mxu3 %v11672_v57  ;;  %v11887_v17 = vld [vmem:[%s20027_s3 + $0xcc0] sm:$0xf] }
 0x492   :  { %v11785_v40 = vld [vmem:[%s20025_s1 + $0xff8] sm:$0xf0]  ;;  %7223 = vmatmul.bf16.vlgmr.msrb.gmra.mxu0 %v13647_v59  ;;  %v19107_v59 = vadd.f32 %v6052_v30, %v18874_v2  ;;  %v11888_v29 = vor.u32 %v13223_v56, %v11887_v17  ;;  %v11839_v56 = vld [vmem:[%s20027_s3 + $0xc60] sm:$0xf] }
 0x493   :  { %v13134_v46 = vld [vmem:[%s20025_s1 + $0x83c] sm:$0xf]  ;;  %v11788_v41 = vor.u32 %v13194_v9, %v11785_v40  ;;  %7249 = vmatpush.bf16.msrb.mxu2 %v11564_v25  ;;  %v11871_v25 = vld [vmem:[%s20027_s3 + $0xca0] sm:$0xf] }
 0x494   :  { %v11545_v13 = vld [vmem:[%s20025_s1 + $0x878] sm:$0xf0]  ;;  %7237 = vmatmul.bf16.vlgmr.msrb.gmra.mxu1 %v13657_v0  ;;  %v13227_v0 = vld [vmem:[%s20027_s3 + $0xcec] sm:$0xf0]  ;;  %7209 = vmatmul.bf16.vlgmr.msra.gmra.mxu3 %v13649_v60  ;;  %v11872_v57 = vor.u32 %v13219_v54, %v11871_v25 }
 0x495   :  { %v11548_v6 = vor.u32 %v13134_v46, %v11545_v13  ;;  %v13190_v10 = vld [vmem:[%s20025_s1 + $0xf3c] sm:$0xf]  ;;  %v11904_v28 = vor.u32 %v13227_v0, %v11903_v36  ;;  %7257 = vmatpush.bf16.msrb.mxu3 %v11788_v41  ;;  %v6008_v27 = vpop.f32.mrf.mxu3  ;;  %v11855_v41 = vld [vmem:[%s20027_s3 + $0xc80] sm:$0xf]  ;;  %v13207_v25 = vld [vmem:[%s20027_s3 + $0xc4c] sm:$0xf0] }
 0x496   :  { %v11769_v16 = vld [vmem:[%s20025_s1 + $0xf78] sm:$0xf0]  ;;  %v6009_v9 = vadd.f32 %v6008_v27, %v18970_v24 }
 0x497   :  { %v11772_v2 = vor.u32 %v13190_v10, %v11769_v16  ;;  %7250 = vmatpush.bf16.msrb.mxu2 %v11548_v6  ;;  %v13186_v5 = vld [vmem:[%s20025_s1 + $0xebc] sm:$0xf]  ;;  %7931 = vmatpush.bf16.msra.mxu0 %v11904_v28  ;;  %v6106_v54 = vpop.f32.mrf.mxu2 }
 0x498   :  { %v11753_v50 = vld [vmem:[%s20025_s1 + $0xef8] sm:$0xf0]  ;;  %v19137_v40 = vadd.f32 %v6009_v9, %v17476_v47  ;;  %v11823_v9 = vld [vmem:[%s20027_s3 + $0xc40] sm:$0xf] }
 0x499   :  { %7258 = vmatpush.bf16.msrb.mxu3 %v11772_v2  ;;  %v11756_v46 = vor.u32 %v13186_v5, %v11753_v50  ;;  %v13182_v24 = vld [vmem:[%s20025_s1 + $0xe3c] sm:$0xf] }
 0x49a   :  { %7251 = vmatmul.bf16.vlgmr.msrb.gmra.mxu2 %v13636_v55  ;;  %v11737_v13 = vld [vmem:[%s20025_s1 + $0xe78] sm:$0xf0]  ;;  %v13215_v55 = vld [vmem:[%s20027_s3 + $0xc8c] sm:$0xf0] }
 0x49b   :  { %7932 = vmatpush.bf16.msra.mxu0 %v11888_v29  ;;  %v11740_v47 = vor.u32 %v13182_v24, %v11737_v13  ;;  %v13178_v30 = vld [vmem:[%s20025_s1 + $0xdbc] sm:$0xf]  ;;  %v11856_v16 = vor.u32 %v13215_v55, %v11855_v41  ;;  %v11824_v24 = vor.u32 %v13207_v25, %v11823_v9  ;;  %v19186_v13 = vadd.f32 %v6106_v54, %v19024_v43  ;;  %v13255_v9 = vld [vmem:[%s20027_s3 + $0xdcc] sm:$0xf0]  ;;  %v13221_v25 = vld [vmem:[%s20027_s3 + $0xcc4] sm:$0xf] }
 0x49c   :  { %v11721_v10 = vld [vmem:[%s20025_s1 + $0xdf8] sm:$0xf0]  ;;  %v11889_v54 = vld [vmem:[%s20027_s3 + $0xcd0] sm:$0xf0] }
 0x49d   :  { %7259 = vmatpush.bf16.msrb.mxu3 %v11756_v46  ;;  %v6010_v6 = vpop.f32.mrf.mxu3  ;;  %v11724_v0 = vor.u32 %v13178_v30, %v11721_v10  ;;  %v13174_v28 = vld [vmem:[%s20025_s1 + $0xd3c] sm:$0xf]  ;;  %v11791_v10 = vld [vmem:[%s20027_s3 + $0xc00] sm:$0xf] }
 0x49e   :  { %v19158_v36 = vadd.f32 %v6010_v6, %v19022_v51  ;;  %v11705_v17 = vld [vmem:[%s20025_s1 + $0xd78] sm:$0xf0]  ;;  %v13211_v51 = vld [vmem:[%s20027_s3 + $0xc6c] sm:$0xf0] }
 0x49f   :  { %7933 = vmatpush.bf16.msra.mxu0 %v11872_v57  ;;  %v11840_v2 = vor.u32 %v13211_v51, %v11839_v56  ;;  %v11708_v27 = vor.u32 %v13174_v28, %v11705_v17  ;;  %v13170_v5 = vld [vmem:[%s20025_s1 + $0xcbc] sm:$0xf]  ;;  %v6108_v28 = vpop.f32.mrf.mxu2  ;;  %v13259_v51 = vld [vmem:[%s20027_s3 + $0xdec] sm:$0xf0] }
 0x4a0   :  { %v11689_v29 = vld [vmem:[%s20025_s1 + $0xcf8] sm:$0xf0] }
 0x4a1   :  { %7260 = vmatpush.bf16.msrb.mxu3 %v11740_v47  ;;  %v11692_v41 = vor.u32 %v13170_v5, %v11689_v29  ;;  %v13166_v55 = vld [vmem:[%s20025_s1 + $0xc3c] sm:$0xf]  ;;  %v6109_v5 = vadd.f32 %v6108_v28, %v19075_v52  ;;  %v13243_v28 = vld [vmem:[%s20027_s3 + $0xd6c] sm:$0xf0] }
 0x4a2   :  { %v11673_v47 = vld [vmem:[%s20025_s1 + $0xc78] sm:$0xf0] }
 0x4a3   :  { %7934 = vmatpush.bf16.msra.mxu0 %v11856_v16  ;;  %v11676_v6 = vor.u32 %v13166_v55, %v11673_v47  ;;  %v13199_v16 = vld [vmem:[%s20027_s3 + $0xc0c] sm:$0xf0]  ;;  %v13217_v55 = vld [vmem:[%s20027_s3 + $0xca4] sm:$0xf]  ;;  %v11873_v47 = vld [vmem:[%s20027_s3 + $0xcb0] sm:$0xf0] }
 0x4a4   :  { %v11792_v56 = vor.u32 %v13199_v16, %v11791_v10 }
 0x4a5   :  { %7261 = vmatpush.bf16.msrb.mxu3 %v11724_v0  ;;  %v6064_v50 = vpop.f32.mrf.mxu3  ;;  %v12031_v0 = vld [vmem:[%s20027_s3 + $0xde0] sm:$0xf] }
 0x4a6   :  { %v6065_v46 = vadd.f32 %v6064_v50, %v19073_v34  ;;  %v11807_v34 = vld [vmem:[%s20027_s3 + $0xc20] sm:$0xf]  ;;  %v12032_v50 = vor.u32 %v13259_v51, %v12031_v0 }
 0x4a7   :  { %7935 = vmatpush.bf16.msra.mxu0 %v11840_v2  ;;  %v13225_v2 = vld [vmem:[%s20027_s3 + $0xce4] sm:$0xf]  ;;  %v11967_v0 = vld [vmem:[%s20027_s3 + $0xd60] sm:$0xf] }
 0x4a8   :  { %v19189_v57 = vadd.f32 %v6065_v46, %v17532_v8  ;;  %v13203_v8 = vld [vmem:[%s20027_s3 + $0xc2c] sm:$0xf0]  ;;  %7945 = vmatpush.bf16.msra.mxu1 %v12032_v50  ;;  %v11892_v46 = vor.u32 %v13221_v25, %v11889_v54  ;;  %v11968_v51 = vor.u32 %v13243_v28, %v11967_v0 }
 0x4a9   :  { %7262 = vmatpush.bf16.msrb.mxu3 %v11708_v27  ;;  %v11808_v43 = vor.u32 %v13203_v8, %v11807_v34  ;;  %v11905_v27 = vld [vmem:[%s20027_s3 + $0xcf0] sm:$0xf0]  ;;  %v11876_v8 = vor.u32 %v13217_v55, %v11873_v47  ;;  %v13201_v55 = vld [vmem:[%s20027_s3 + $0xc24] sm:$0xf]  ;;  %v13291_v0 = vld [vmem:[%s20027_s3 + $0xeec] sm:$0xf0] }
 0x4aa   :  { %v11908_v29 = vor.u32 %v13225_v2, %v11905_v27  ;;  %v11841_v2 = vld [vmem:[%s20027_s3 + $0xc70] sm:$0xf0] }
 0x4ab   :  { %7936 = vmatpush.bf16.msra.mxu0 %v11824_v24  ;;  %v11999_v24 = vld [vmem:[%s20027_s3 + $0xda0] sm:$0xf] }
 0x4ad   :  { %7263 = vmatpush.bf16.msrb.mxu3 %v11692_v41  ;;  %v6066_v30 = vpop.f32.mrf.mxu3  ;;  %v13251_v41 = vld [vmem:[%s20027_s3 + $0xdac] sm:$0xf0] }
 0x4ae   :  { %v19213_v17 = vadd.f32 %v6066_v30, %v19107_v59  ;;  %v12015_v59 = vld [vmem:[%s20027_s3 + $0xdc0] sm:$0xf]  ;;  %v12000_v34 = vor.u32 %v13251_v41, %v11999_v24  ;;  %v11857_v30 = vld [vmem:[%s20027_s3 + $0xc90] sm:$0xf0] }
 0x4af   :  { %7937 = vmatpush.bf16.msra.mxu0 %v11808_v43  ;;  %v12016_v52 = vor.u32 %v13255_v9, %v12015_v59  ;;  %v11983_v43 = vld [vmem:[%s20027_s3 + $0xd80] sm:$0xf]  ;;  %v13239_v59 = vld [vmem:[%s20027_s3 + $0xd4c] sm:$0xf0]  ;;  %v13205_v9 = vld [vmem:[%s20027_s3 + $0xc44] sm:$0xf] }
 0x4b0   :  { %v11935_v41 = vld [vmem:[%s20027_s3 + $0xd20] sm:$0xf] }
 0x4b1   :  { %7264 = vmatpush.bf16.msrb.mxu3 %v11676_v6  ;;  %7946 = vmatpush.bf16.msra.mxu1 %v12016_v52  ;;  %v13213_v6 = vld [vmem:[%s20027_s3 + $0xc84] sm:$0xf]  ;;  %v11825_v52 = vld [vmem:[%s20027_s3 + $0xc50] sm:$0xf0] }
 0x4b2   :  { %v11860_v16 = vor.u32 %v13213_v6, %v11857_v30  ;;  %v13231_v6 = vld [vmem:[%s20027_s3 + $0xd0c] sm:$0xf0]  ;;  %v13197_v30 = vld [vmem:[%s20027_s3 + $0xc04] sm:$0xf] }
 0x4b3   :  { %7938 = vmatpush.bf16.msra.mxu0 %v11792_v56  ;;  %v13209_v56 = vld [vmem:[%s20027_s3 + $0xc64] sm:$0xf] }
 0x4b4   :  { %7265 = vmatmul.bf16.vlgmr.msrb.gmra.mxu3 %v13649_v60  ;;  %v13247_v60 = vld [vmem:[%s20027_s3 + $0xd8c] sm:$0xf0]  ;;  %v11844_v27 = vor.u32 %v13209_v56, %v11841_v2  ;;  %v12033_v2 = vld [vmem:[%s20027_s3 + $0xdf0] sm:$0xf0] }
 0x4b5   :  { %7947 = vmatpush.bf16.msra.mxu1 %v12000_v34  ;;  %v11984_v10 = vor.u32 %v13247_v60, %v11983_v43  ;;  %v11919_v60 = vld [vmem:[%s20027_s3 + $0xd00] sm:$0xf] }
 0x4b6   :  { %v6120_v50 = vpop.f32.mrf.mxu3 }
 0x4b7   :  { %7987 = vmatpush.bf16.msrb.mxu0 %v11908_v29  ;;  %v11951_v29 = vld [vmem:[%s20027_s3 + $0xd40] sm:$0xf]  ;;  %v6121_v25 = vadd.f32 %v6120_v50, %v19186_v13  ;;  %v13235_v13 = vld [vmem:[%s20027_s3 + $0xd2c] sm:$0xf0]  ;;  %v7056_v50 = vpop.f32.mrf.mxu0 }
 0x4b8   :  { %v11952_v54 = vor.u32 %v13239_v59, %v11951_v29  ;;  %v11936_v47 = vor.u32 %v13235_v13, %v11935_v41  ;;  %v12143_v29 = vld [vmem:[%s20027_s3 + $0xec0] sm:$0xf]  ;;  %v13287_v59 = vld [vmem:[%s20027_s3 + $0xecc] sm:$0xf0]  ;;  %v7070_v13 = vpop.f32.mrf.mxu1 }
 0x4b9   :  { %7948 = vmatpush.bf16.msra.mxu1 %v11984_v10  ;;  %v19288_v24 = vadd.f32 %v6121_v25, %v17632_v12  ;;  %v11809_v12 = vld [vmem:[%s20027_s3 + $0xc30] sm:$0xf0]  ;;  %v11920_v10 = vor.u32 %v13231_v6, %v11919_v60  ;;  %v19340_v25 = vld [vmem:[%s20026_s2 + $0xc] sm:$0xf] }
 0x4ba   :  { %v11812_v34 = vor.u32 %v13201_v55, %v11809_v12  ;;  %v6399_v41 = vperm.slane %v19340_v25, 0  ;;  %v12127_v55 = vld [vmem:[%s20027_s3 + $0xea0] sm:$0xf] }
 0x4bb   :  { %7988 = vmatpush.bf16.msrb.mxu0 %v11892_v46  ;;  %v11828_v46 = vor.u32 %v13205_v9, %v11825_v52  ;;  %v13253_v9 = vld [vmem:[%s20027_s3 + $0xdc4] sm:$0xf]  ;;  %v12017_v52 = vld [vmem:[%s20027_s3 + $0xdd0] sm:$0xf0] }
 0x4bc   :  { %v7057_v6 = vadd.f32 %v7056_v50, %v6399_v41  ;;  %v12095_v50 = vld [vmem:[%s20027_s3 + $0xe60] sm:$0xf] }
 0x4bd   :  { %7949 = vmatpush.bf16.msra.mxu1 %v11968_v51  ;;  %v13257_v51 = vld [vmem:[%s20027_s3 + $0xde4] sm:$0xf] }
 0x4bf   :  { %7989 = vmatpush.bf16.msrb.mxu0 %v11876_v8  ;;  %v6122_v8 = vpop.f32.mrf.mxu3 }
 0x4c0   :  { %v19302_v43 = vadd.f32 %v6122_v8, %v6109_v5  ;;  %v12159_v5 = vld [vmem:[%s20027_s3 + $0xee0] sm:$0xf]  ;;  %v12001_v8 = vld [vmem:[%s20027_s3 + $0xdb0] sm:$0xf0] }
 0x4c1   :  { %7950 = vmatpush.bf16.msra.mxu1 %v11952_v54  ;;  %v12160_v56 = vor.u32 %v13291_v0, %v12159_v5  ;;  %v12144_v54 = vor.u32 %v13287_v59, %v12143_v29  ;;  %v13245_v5 = vld [vmem:[%s20027_s3 + $0xd84] sm:$0xf]  ;;  %v13275_v29 = vld [vmem:[%s20027_s3 + $0xe6c] sm:$0xf0] }
 0x4c2   :  { %v13241_v59 = vld [vmem:[%s20027_s3 + $0xd64] sm:$0xf] }
 0x4c3   :  { %7990 = vmatpush.bf16.msrb.mxu0 %v11860_v16  ;;  %v11793_v16 = vld [vmem:[%s20027_s3 + $0xc10] sm:$0xf0]  ;;  %7959 = vmatpush.bf16.msra.mxu2 %v12160_v56  ;;  %v7058_v56 = vpop.f32.mrf.mxu0 }
 0x4c4   :  { %v11796_v28 = vor.u32 %v13197_v30, %v11793_v16  ;;  %v7084_v30 = vpop.f32.mrf.mxu2  ;;  %v13279_v16 = vld [vmem:[%s20027_s3 + $0xe8c] sm:$0xf0] }
 0x4c5   :  { %7951 = vmatpush.bf16.msra.mxu1 %v11936_v47  ;;  %v13283_v47 = vld [vmem:[%s20027_s3 + $0xeac] sm:$0xf0] }
 0x4c6   :  { %v12128_v12 = vor.u32 %v13283_v47, %v12127_v55  ;;  %v12079_v55 = vld [vmem:[%s20027_s3 + $0xe40] sm:$0xf]  ;;  %v13271_v47 = vld [vmem:[%s20027_s3 + $0xe4c] sm:$0xf0] }
 0x4c7   :  { %7991 = vmatpush.bf16.msrb.mxu0 %v11844_v27  ;;  %v12036_v27 = vor.u32 %v13257_v51, %v12033_v2  ;;  %7960 = vmatpush.bf16.msra.mxu2 %v12144_v54  ;;  %v7071_v2 = vadd.f32 %v7070_v13, %v7057_v6  ;;  %v12096_v54 = vor.u32 %v13275_v29, %v12095_v50  ;;  %v11911_v29 = vld [vmem:[%s20027_s3 + $0xce8] sm:$0xf] }
 0x4c9   :  { %7952 = vmatpush.bf16.msra.mxu1 %v11920_v10  ;;  %v12111_v10 = vld [vmem:[%s20027_s3 + $0xe80] sm:$0xf] }
 0x4ca   :  { %v12112_v0 = vor.u32 %v13279_v16, %v12111_v10 }
 0x4cb   :  { %7992 = vmatpush.bf16.msrb.mxu0 %v11828_v46  ;;  %v12020_v46 = vor.u32 %v13253_v9, %v12017_v52  ;;  %7961 = vmatpush.bf16.msra.mxu2 %v12128_v12  ;;  %v7072_v9 = vpop.f32.mrf.mxu1  ;;  %v11969_v52 = vld [vmem:[%s20027_s3 + $0xd70] sm:$0xf0]  ;;  %v13237_v12 = vld [vmem:[%s20027_s3 + $0xd44] sm:$0xf] }
 0x4cc   :  { %v7086_v6 = vpop.f32.mrf.mxu2 }
 0x4cd   :  { %8001 = vmatpush.bf16.msrb.mxu1 %v12036_v27  ;;  %v7059_v27 = vadd.f32 %v7058_v56, %v6399_v41  ;;  %v7085_v41 = vadd.f32 %v7084_v30, %v7071_v2 }
 0x4cf   :  { %7993 = vmatpush.bf16.msrb.mxu0 %v11812_v34  ;;  %v13249_v34 = vld [vmem:[%s20027_s3 + $0xda4] sm:$0xf]  ;;  %7962 = vmatpush.bf16.msra.mxu2 %v12112_v0  ;;  %v13267_v0 = vld [vmem:[%s20027_s3 + $0xe2c] sm:$0xf0] }
 0x4d0   :  { %v12004_v60 = vor.u32 %v13249_v34, %v12001_v8  ;;  %v7073_v34 = vadd.f32 %v7072_v9, %v7059_v27  ;;  %v12080_v8 = vor.u32 %v13271_v47, %v12079_v55 }
 0x4d1   :  { %8002 = vmatpush.bf16.msrb.mxu1 %v12020_v46  ;;  %v11972_v46 = vor.u32 %v13241_v59, %v11969_v52  ;;  %v13228_v59 = vld [vmem:[%s20027_s3 + $0xcf4] sm:$0xf0]  ;;  %v13263_v52 = vld [vmem:[%s20027_s3 + $0xe0c] sm:$0xf0] }
 0x4d2   :  { %v7087_v16 = vadd.f32 %v7086_v6, %v7073_v34  ;;  %v13323_v34 = vld [vmem:[%s20027_s3 + $0xfec] sm:$0xf0]  ;;  %v13289_v6 = vld [vmem:[%s20027_s3 + $0xee4] sm:$0xf] }
 0x4d3   :  { %7994 = vmatpush.bf16.msrb.mxu0 %v11796_v28  ;;  %v11985_v28 = vld [vmem:[%s20027_s3 + $0xd90] sm:$0xf0]  ;;  %7963 = vmatpush.bf16.msra.mxu2 %v12096_v54  ;;  %v12047_v54 = vld [vmem:[%s20027_s3 + $0xe00] sm:$0xf] }
 0x4d4   :  { %v11988_v51 = vor.u32 %v13245_v5, %v11985_v28  ;;  %v12063_v5 = vld [vmem:[%s20027_s3 + $0xe20] sm:$0xf]  ;;  %v13233_v28 = vld [vmem:[%s20027_s3 + $0xd24] sm:$0xf] }
 0x4d5   :  { %8003 = vmatpush.bf16.msrb.mxu1 %v12004_v60  ;;  %v11953_v60 = vld [vmem:[%s20027_s3 + $0xd50] sm:$0xf0]  ;;  %v12064_v56 = vor.u32 %v13267_v0, %v12063_v5  ;;  %v13224_v5 = vld [vmem:[%s20027_s3 + $0xcd4] sm:$0xf0]  ;;  %v7112_v0 = vpop.f32.mrf.mxu0 }
 0x4d6   :  { %v7098_v13 = vpop.f32.mrf.mxu3  ;;  %v11956_v30 = vor.u32 %v13237_v12, %v11953_v60  ;;  %v12287_v12 = vld [vmem:[%s20027_s3 + $0xfe0] sm:$0xf] }
 0x4d7   :  { %v7099_v10 = vadd.f32 %v7098_v13, %v7085_v41  ;;  %7964 = vmatpush.bf16.msra.mxu2 %v12080_v8  ;;  %v12048_v41 = vor.u32 %v13263_v52, %v12047_v54  ;;  %v11921_v13 = vld [vmem:[%s20027_s3 + $0xd10] sm:$0xf0]  ;;  %v11912_v8 = vor.u32 %v13228_v59, %v11911_v29  ;;  %v12288_v60 = vor.u32 %v13323_v34, %v12287_v12  ;;  %v13220_v52 = vld [vmem:[%s20027_s3 + $0xcb4] sm:$0xf0] }
 0x4d8   :  { %v6400_v59 = vperm.slane %v19340_v25, 1  ;;  %v12129_v12 = vld [vmem:[%s20027_s3 + $0xeb0] sm:$0xf0] }
 0x4d9   :  { %8004 = vmatpush.bf16.msrb.mxu1 %v11988_v51  ;;  %v11937_v51 = vld [vmem:[%s20027_s3 + $0xd30] sm:$0xf0]  ;;  %v7271_v27 = vmax.f32 %v7099_v10, 0.0  ;;  %7973 = vmatpush.bf16.msra.mxu3 %v12288_v60  ;;  %v11863_v60 = vld [vmem:[%s20027_s3 + $0xc88] sm:$0xf] }
 0x4da   :  { %v11940_v2 = vor.u32 %v13233_v28, %v11937_v51  ;;  %v13319_v51 = vld [vmem:[%s20027_s3 + $0xfcc] sm:$0xf0] }
 0x4db   :  { %7965 = vmatpush.bf16.msra.mxu2 %v12064_v56  ;;  %v12271_v56 = vld [vmem:[%s20027_s3 + $0xfc0] sm:$0xf] }
 0x4dd   :  { %8005 = vmatpush.bf16.msrb.mxu1 %v11972_v46  ;;  %v13229_v46 = vld [vmem:[%s20027_s3 + $0xd04] sm:$0xf] }
 0x4de   :  { %v7100_v50 = vpop.f32.mrf.mxu3  ;;  %v11924_v47 = vor.u32 %v13229_v46, %v11921_v13  ;;  %v7126_v46 = vpop.f32.mrf.mxu1  ;;  %v13315_v13 = vld [vmem:[%s20027_s3 + $0xfac] sm:$0xf0] }
 0x4df   :  { %v7101_v9 = vadd.f32 %v7100_v50, %v7087_v16  ;;  %7966 = vmatpush.bf16.msra.mxu2 %v12048_v41  ;;  %v11895_v16 = vld [vmem:[%s20027_s3 + $0xcc8] sm:$0xf]  ;;  %v12145_v50 = vld [vmem:[%s20027_s3 + $0xed0] sm:$0xf0]  ;;  %v12255_v41 = vld [vmem:[%s20027_s3 + $0xfa0] sm:$0xf] }
 0x4e0   :  { %v11896_v29 = vor.u32 %v13224_v5, %v11895_v16  ;;  %v7140_v16 = vpop.f32.mrf.mxu2  ;;  %v12239_v5 = vld [vmem:[%s20027_s3 + $0xf80] sm:$0xf] }
 0x4e1   :  { %8006 = vmatpush.bf16.msrb.mxu1 %v11956_v30  ;;  %v7275_v55 = vmax.f32 %v7101_v9, 0.0  ;;  %v12161_v30 = vld [vmem:[%s20027_s3 + $0xef0] sm:$0xf0]  ;;  %v11879_v9 = vld [vmem:[%s20027_s3 + $0xca8] sm:$0xf] }
 0x4e2   :  { %v12164_v28 = vor.u32 %v13289_v6, %v12161_v30  ;;  %v13216_v6 = vld [vmem:[%s20027_s3 + $0xc94] sm:$0xf0]  ;;  %v7113_v30 = vadd.f32 %v7112_v0, %v6400_v59  ;;  %v7114_v0 = vpop.f32.mrf.mxu0 }
 0x4e3   :  { %v19436_v10 = vpack.c.bf16 %v7275_v55, %v7271_v27  ;;  %v12272_v27 = vor.u32 %v13319_v51, %v12271_v56  ;;  %v12256_v55 = vor.u32 %v13315_v13, %v12255_v41  ;;  %v13277_v56 = vld [vmem:[%s20027_s3 + $0xe84] sm:$0xf]  ;;  %v12223_v41 = vld [vmem:[%s20027_s3 + $0xf60] sm:$0xf]  ;;  %v13307_v13 = vld [vmem:[%s20027_s3 + $0xf6c] sm:$0xf0] }
 0x4e4   :  { %8015 = vmatpush.bf16.msrb.mxu2 %v12164_v28  ;;  %v13311_v28 = vld [vmem:[%s20027_s3 + $0xf8c] sm:$0xf0] }
 0x4e5   :  { %8007 = vmatpush.bf16.msrb.mxu1 %v11940_v2  ;;  %v13285_v2 = vld [vmem:[%s20027_s3 + $0xec4] sm:$0xf]  ;;  %7939 = vmatmul.bf16.vlgmr.msra.gmra.mxu0 %v19436_v10  ;;  %v12240_v51 = vor.u32 %v13311_v28, %v12239_v5  ;;  %v12207_v5 = vld [vmem:[%s20027_s3 + $0xf40] sm:$0xf]  ;;  %v13303_v28 = vld [vmem:[%s20027_s3 + $0xf4c] sm:$0xf0] }
 0x4e6   :  { %8043 = vmatpush.bf16.msra.mxu0 %v11912_v8  ;;  %v12148_v54 = vor.u32 %v13285_v2, %v12145_v50  ;;  %7974 = vmatpush.bf16.msra.mxu3 %v12272_v27  ;;  %v11880_v8 = vor.u32 %v13220_v52, %v11879_v9  ;;  %v12113_v2 = vld [vmem:[%s20027_s3 + $0xe90] sm:$0xf0]  ;;  %v11864_v50 = vor.u32 %v13216_v6, %v11863_v60  ;;  %v11847_v9 = vld [vmem:[%s20027_s3 + $0xc68] sm:$0xf] }
 0x4e7   :  { %v12116_v27 = vor.u32 %v13277_v56, %v12113_v2  ;;  %v7115_v52 = vadd.f32 %v7114_v0, %v6400_v59  ;;  %v12097_v59 = vld [vmem:[%s20027_s3 + $0xe70] sm:$0xf0]  ;;  %v13269_v56 = vld [vmem:[%s20027_s3 + $0xe44] sm:$0xf]  ;;  %v12208_v2 = vor.u32 %v13303_v28, %v12207_v5  ;;  %v13226_v28 = vld [vmem:[%s20027_s3 + $0xcec] sm:$0xf] }
 0x4e8   :  { %8016 = vmatpush.bf16.msrb.mxu2 %v12148_v54  ;;  %v13212_v54 = vld [vmem:[%s20027_s3 + $0xc74] sm:$0xf0]  ;;  %v7142_v0 = vpop.f32.mrf.mxu2 }
 0x4e9   :  { %8008 = vmatpush.bf16.msrb.mxu1 %v11924_v47  ;;  %v13281_v47 = vld [vmem:[%s20027_s3 + $0xea4] sm:$0xf] }
 0x4ea   :  { %v12132_v34 = vor.u32 %v13281_v47, %v12129_v12  ;;  %8044 = vmatpush.bf16.msra.mxu0 %v11896_v29  ;;  %7975 = vmatpush.bf16.msra.mxu3 %v12256_v55  ;;  %v7127_v29 = vadd.f32 %v7126_v46, %v7113_v30  ;;  %v13273_v46 = vld [vmem:[%s20027_s3 + $0xe64] sm:$0xf]  ;;  %v7128_v55 = vpop.f32.mrf.mxu1  ;;  %v12224_v47 = vor.u32 %v13307_v13, %v12223_v41  ;;  %v12191_v41 = vld [vmem:[%s20027_s3 + $0xf20] sm:$0xf]  ;;  %v13299_v13 = vld [vmem:[%s20027_s3 + $0xf2c] sm:$0xf0] }
 0x4eb   :  { %v11848_v12 = vor.u32 %v13212_v54, %v11847_v9  ;;  %v12100_v60 = vor.u32 %v13273_v46, %v12097_v59  ;;  %v11815_v9 = vld [vmem:[%s20027_s3 + $0xc28] sm:$0xf]  ;;  %v13204_v54 = vld [vmem:[%s20027_s3 + $0xc34] sm:$0xf0]  ;;  %v13265_v46 = vld [vmem:[%s20027_s3 + $0xe24] sm:$0xf] }
 0x4ec   :  { %8017 = vmatpush.bf16.msrb.mxu2 %v12132_v34  ;;  %v11831_v34 = vld [vmem:[%s20027_s3 + $0xc48] sm:$0xf]  ;;  %v7141_v6 = vadd.f32 %v7140_v16, %v7127_v29  ;;  %v12081_v16 = vld [vmem:[%s20027_s3 + $0xe50] sm:$0xf0] }
 0x4ed   :  { %v12065_v59 = vld [vmem:[%s20027_s3 + $0xe30] sm:$0xf0] }
 0x4ee   :  { %8045 = vmatpush.bf16.msra.mxu0 %v11880_v8  ;;  %7976 = vmatpush.bf16.msra.mxu3 %v12240_v51  ;;  %v13208_v8 = vld [vmem:[%s20027_s3 + $0xc54] sm:$0xf0]  ;;  %v7129_v51 = vadd.f32 %v7128_v55, %v7115_v52  ;;  %v11799_v55 = vld [vmem:[%s20027_s3 + $0xc08] sm:$0xf] }
 0x4f0   :  { %8018 = vmatpush.bf16.msrb.mxu2 %v12116_v27  ;;  %v12084_v27 = vor.u32 %v13269_v56, %v12081_v16  ;;  %v7143_v52 = vadd.f32 %v7142_v0, %v7129_v51  ;;  %v11913_v56 = vld [vmem:[%s20027_s3 + $0xcf8] sm:$0xf0]  ;;  %v13295_v16 = vld [vmem:[%s20027_s3 + $0xf0c] sm:$0xf0]  ;;  %v13261_v0 = vld [vmem:[%s20027_s3 + $0xe04] sm:$0xf] }
 0x4f2   :  { %8046 = vmatpush.bf16.msra.mxu0 %v11864_v50  ;;  %7977 = vmatpush.bf16.msra.mxu3 %v12224_v47  ;;  %v11832_v50 = vor.u32 %v13208_v8, %v11831_v34  ;;  %v12192_v47 = vor.u32 %v13299_v13, %v12191_v41  ;;  %v13200_v34 = vld [vmem:[%s20027_s3 + $0xc14] sm:$0xf0]  ;;  %v12039_v8 = vld [vmem:[%s20027_s3 + $0xde8] sm:$0xf]  ;;  %v11916_v41 = vor.u32 %v13226_v28, %v11913_v56 }
 0x4f3   :  { %v12023_v13 = vld [vmem:[%s20027_s3 + $0xdc8] sm:$0xf] }
 0x4f4   :  { %8019 = vmatpush.bf16.msrb.mxu2 %v12100_v60  ;;  %v13260_v60 = vld [vmem:[%s20027_s3 + $0xdf4] sm:$0xf0]  ;;  %v12007_v56 = vld [vmem:[%s20027_s3 + $0xda8] sm:$0xf] }
 0x4f5   :  { %7995 = vmatmul.bf16.vlgmr.msrb.gmra.mxu0 %v19436_v10 }
 0x4f6   :  { %v7154_v30 = vpop.f32.mrf.mxu3  ;;  %8047 = vmatpush.bf16.msra.mxu0 %v11848_v12  ;;  %7978 = vmatpush.bf16.msra.mxu3 %v12208_v2  ;;  %v11816_v12 = vor.u32 %v13204_v54, %v11815_v9  ;;  %v12175_v2 = vld [vmem:[%s20027_s3 + $0xf00] sm:$0xf]  ;;  %v11800_v9 = vor.u32 %v13200_v34, %v11799_v55  ;;  %v13256_v55 = vld [vmem:[%s20027_s3 + $0xdd4] sm:$0xf0]  ;;  %v11897_v34 = vld [vmem:[%s20027_s3 + $0xcd8] sm:$0xf0] }
 0x4f7   :  { %v7155_v29 = vadd.f32 %v7154_v30, %v7141_v6  ;;  %v12068_v6 = vor.u32 %v13265_v46, %v12065_v59  ;;  %v13321_v46 = vld [vmem:[%s20027_s3 + $0xfe4] sm:$0xf] }
 0x4f8   :  { %8020 = vmatpush.bf16.msrb.mxu2 %v12084_v27  ;;  %v12176_v27 = vor.u32 %v13295_v16, %v12175_v2  ;;  %v13218_v2 = vld [vmem:[%s20027_s3 + $0xcac] sm:$0xf]  ;;  %v11881_v16 = vld [vmem:[%s20027_s3 + $0xcb8] sm:$0xf0] }
 0x4f9   :  { %v7272_v30 = vmax.f32 %v7155_v29, 0.0 }
 0x4fa   :  { %8048 = vmatpush.bf16.msra.mxu0 %v11832_v50  ;;  %7979 = vmatpush.bf16.msra.mxu3 %v12192_v47  ;;  %v12049_v50 = vld [vmem:[%s20027_s3 + $0xe10] sm:$0xf0] }
 0x4fb   :  { %v12052_v54 = vor.u32 %v13261_v0, %v12049_v50  ;;  %v12289_v47 = vld [vmem:[%s20027_s3 + $0xff0] sm:$0xf0]  ;;  %v7182_v0 = vpop.f32.mrf.mxu1  ;;  %v6401_v50 = vperm.slane %v19340_v25, 2 }
 0x4fc   :  { %8021 = vmatpush.bf16.msrb.mxu2 %v12068_v6  ;;  %v13317_v6 = vld [vmem:[%s20027_s3 + $0xfc4] sm:$0xf] }
 0x4fe   :  { %v7156_v5 = vpop.f32.mrf.mxu3  ;;  %8049 = vmatpush.bf16.msra.mxu0 %v11816_v12  ;;  %v13222_v12 = vld [vmem:[%s20027_s3 + $0xccc] sm:$0xf]  ;;  %7980 = vmatpush.bf16.msra.mxu3 %v12176_v27 }
 0x4ff   :  { %v7157_v51 = vadd.f32 %v7156_v5, %v7143_v52  ;;  %v12040_v52 = vor.u32 %v13260_v60, %v12039_v8  ;;  %v7168_v8 = vpop.f32.mrf.mxu0  ;;  %v12292_v60 = vor.u32 %v13321_v46, %v12289_v47  ;;  %v12024_v5 = vor.u32 %v13256_v55, %v12023_v13  ;;  %v7196_v13 = vpop.f32.mrf.mxu2  ;;  %v13248_v46 = vld [vmem:[%s20027_s3 + $0xd94] sm:$0xf0]  ;;  %v13214_v47 = vld [vmem:[%s20027_s3 + $0xc8c] sm:$0xf]  ;;  %v11865_v55 = vld [vmem:[%s20027_s3 + $0xc98] sm:$0xf0] }
 0x500   :  { %8022 = vmatpush.bf16.msrb.mxu2 %v12052_v54  ;;  %v11900_v28 = vor.u32 %v13222_v12, %v11897_v34  ;;  %v7169_v34 = vadd.f32 %v7168_v8, %v6401_v50  ;;  %v13244_v8 = vld [vmem:[%s20027_s3 + $0xd74] sm:$0xf0] }
 0x501   :  { %v7276_v29 = vmax.f32 %v7157_v51, 0.0  ;;  %v13252_v51 = vld [vmem:[%s20027_s3 + $0xdb4] sm:$0xf0] }
 0x502   :  { %8050 = vmatpush.bf16.msra.mxu0 %v11800_v9  ;;  %8029 = vmatpush.bf16.msrb.mxu3 %v12292_v60  ;;  %v12257_v9 = vld [vmem:[%s20027_s3 + $0xfb0] sm:$0xf0]  ;;  %v12008_v54 = vor.u32 %v13252_v51, %v12007_v56  ;;  %v13309_v60 = vld [vmem:[%s20027_s3 + $0xf84] sm:$0xf]  ;;  %v11975_v56 = vld [vmem:[%s20027_s3 + $0xd68] sm:$0xf] }
 0x503   :  { %v19588_v59 = vpack.c.bf16 %v7276_v29, %v7272_v30  ;;  %v12273_v30 = vld [vmem:[%s20027_s3 + $0xfd0] sm:$0xf0]  ;;  %v13313_v29 = vld [vmem:[%s20027_s3 + $0xfa4] sm:$0xf]  ;;  %v13210_v51 = vld [vmem:[%s20027_s3 + $0xc6c] sm:$0xf] }
 0x504   :  { %v12276_v27 = vor.u32 %v13317_v6, %v12273_v30  ;;  %v12260_v12 = vor.u32 %v13313_v29, %v12257_v9  ;;  %v12241_v6 = vld [vmem:[%s20027_s3 + $0xf90] sm:$0xf0]  ;;  %v7184_v9 = vpop.f32.mrf.mxu1 }
 0x505   :  { %7953 = vmatmul.bf16.vlgmr.msra.gmra.mxu1 %v19588_v59  ;;  %8051 = vmatmul.bf16.vlgmr.msra.gmra.mxu0 %v19436_v10 }
 0x506   :  { %8057 = vmatpush.bf16.msra.mxu1 %v12040_v52  ;;  %8099 = vmatpush.bf16.msrb.mxu0 %v11916_v41  ;;  %v11884_v52 = vor.u32 %v13218_v2, %v11881_v16  ;;  %v11991_v41 = vld [vmem:[%s20027_s3 + $0xd88] sm:$0xf]  ;;  %v11849_v2 = vld [vmem:[%s20027_s3 + $0xc78] sm:$0xf0]  ;;  %v12244_v16 = vor.u32 %v13309_v60, %v12241_v6 }
 0x507   :  { %8030 = vmatpush.bf16.msrb.mxu3 %v12276_v27  ;;  %v7170_v30 = vpop.f32.mrf.mxu0  ;;  %v7183_v27 = vadd.f32 %v7182_v0, %v7169_v34  ;;  %v13240_v0 = vld [vmem:[%s20027_s3 + $0xd54] sm:$0xf0] }
 0x508   :  { %v7171_v29 = vadd.f32 %v7170_v30, %v6401_v50  ;;  %v13206_v50 = vld [vmem:[%s20027_s3 + $0xc4c] sm:$0xf]  ;;  %v13301_v30 = vld [vmem:[%s20027_s3 + $0xf44] sm:$0xf] }
 0x509   :  { %v7197_v60 = vadd.f32 %v7196_v13, %v7183_v27  ;;  %v11943_v13 = vld [vmem:[%s20027_s3 + $0xd28] sm:$0xf] }
 0x50a   :  { %8058 = vmatpush.bf16.msra.mxu1 %v12024_v5  ;;  %8100 = vmatpush.bf16.msrb.mxu0 %v11900_v28  ;;  %v11992_v5 = vor.u32 %v13248_v46, %v11991_v41  ;;  %v11868_v28 = vor.u32 %v13214_v47, %v11865_v55  ;;  %v11976_v41 = vor.u32 %v13244_v8, %v11975_v56  ;;  %v11959_v47 = vld [vmem:[%s20027_s3 + $0xd48] sm:$0xf] }
 0x50b   :  { %8031 = vmatpush.bf16.msrb.mxu3 %v12260_v12  ;;  %v11852_v46 = vor.u32 %v13210_v51, %v11849_v2  ;;  %v11833_v12 = vld [vmem:[%s20027_s3 + $0xc58] sm:$0xf0]  ;;  %v7185_v6 = vadd.f32 %v7184_v9, %v7171_v29  ;;  %v11960_v56 = vor.u32 %v13240_v0, %v11959_v47  ;;  %v13236_v51 = vld [vmem:[%s20027_s3 + $0xd34] sm:$0xf0]  ;;  %v13202_v2 = vld [vmem:[%s20027_s3 + $0xc2c] sm:$0xf] }
 0x50c   :  { %v11836_v8 = vor.u32 %v13206_v50, %v11833_v12  ;;  %v11927_v47 = vld [vmem:[%s20027_s3 + $0xd08] sm:$0xf]  ;;  %v13198_v50 = vld [vmem:[%s20027_s3 + $0xc0c] sm:$0xf]  ;;  %v11801_v12 = vld [vmem:[%s20027_s3 + $0xc18] sm:$0xf0] }
 0x50e   :  { %8059 = vmatpush.bf16.msra.mxu1 %v12008_v54  ;;  %8101 = vmatpush.bf16.msrb.mxu0 %v11884_v52  ;;  %v13305_v54 = vld [vmem:[%s20027_s3 + $0xf64] sm:$0xf]  ;;  %v12225_v52 = vld [vmem:[%s20027_s3 + $0xf70] sm:$0xf0] }
 0x50f   :  { %8032 = vmatpush.bf16.msrb.mxu3 %v12244_v16  ;;  %v12228_v34 = vor.u32 %v13305_v54, %v12225_v52  ;;  %v11817_v16 = vld [vmem:[%s20027_s3 + $0xc38] sm:$0xf0]  ;;  %v13297_v54 = vld [vmem:[%s20027_s3 + $0xf24] sm:$0xf]  ;;  %v12193_v52 = vld [vmem:[%s20027_s3 + $0xf30] sm:$0xf0] }
 0x512   :  { %8060 = vmatpush.bf16.msra.mxu1 %v11992_v5  ;;  %8102 = vmatpush.bf16.msrb.mxu0 %v11868_v28  ;;  %v12209_v5 = vld [vmem:[%s20027_s3 + $0xf50] sm:$0xf0]  ;;  %v7198_v28 = vpop.f32.mrf.mxu2 }
 0x513   :  { %8033 = vmatpush.bf16.msrb.mxu3 %v12228_v34  ;;  %v12212_v27 = vor.u32 %v13301_v30, %v12209_v5  ;;  %v7199_v9 = vadd.f32 %v7198_v28, %v7185_v6  ;;  %v12167_v34 = vld [vmem:[%s20027_s3 + $0xee8] sm:$0xf]  ;;  %v13258_v5 = vld [vmem:[%s20027_s3 + $0xdec] sm:$0xf]  ;;  %v12041_v28 = vld [vmem:[%s20027_s3 + $0xdf8] sm:$0xf0] }
 0x515   :  { %8009 = vmatmul.bf16.vlgmr.msrb.gmra.mxu1 %v19588_v59 }
 0x516   :  { %8061 = vmatpush.bf16.msra.mxu1 %v11976_v41  ;;  %8103 = vmatpush.bf16.msrb.mxu0 %v11852_v46  ;;  %v11944_v41 = vor.u32 %v13236_v51, %v11943_v13  ;;  %v11820_v46 = vor.u32 %v13202_v2, %v11817_v16  ;;  %v12177_v13 = vld [vmem:[%s20027_s3 + $0xf10] sm:$0xf0]  ;;  %v11804_v16 = vor.u32 %v13198_v50, %v11801_v12  ;;  %v13250_v12 = vld [vmem:[%s20027_s3 + $0xdac] sm:$0xf] }
 0x517   :  { %v7210_v55 = vpop.f32.mrf.mxu3  ;;  %8034 = vmatpush.bf16.msrb.mxu3 %v12212_v27  ;;  %v12044_v27 = vor.u32 %v13258_v5, %v12041_v28  ;;  %v6402_v5 = vperm.slane %v19340_v25, 3  ;;  %v13280_v25 = vld [vmem:[%s20027_s3 + $0xe94] sm:$0xf0] }
 0x518   :  { %v7211_v29 = vadd.f32 %v7210_v55, %v7197_v60  ;;  %v13232_v55 = vld [vmem:[%s20027_s3 + $0xd14] sm:$0xf0]  ;;  %v12196_v60 = vor.u32 %v13297_v54, %v12193_v52  ;;  %v13254_v54 = vld [vmem:[%s20027_s3 + $0xdcc] sm:$0xf]  ;;  %v12025_v52 = vld [vmem:[%s20027_s3 + $0xdd8] sm:$0xf0] }
 0x519   :  { %v11928_v2 = vor.u32 %v13232_v55, %v11927_v47  ;;  %v7224_v47 = vpop.f32.mrf.mxu0  ;;  %v12028_v55 = vor.u32 %v13254_v54, %v12025_v52  ;;  %v13242_v54 = vld [vmem:[%s20027_s3 + $0xd6c] sm:$0xf]  ;;  %v11977_v52 = vld [vmem:[%s20027_s3 + $0xd78] sm:$0xf0] }
 0x51a   :  { %8062 = vmatpush.bf16.msra.mxu1 %v11960_v56  ;;  %8104 = vmatpush.bf16.msrb.mxu0 %v11836_v8  ;;  %v7273_v6 = vmax.f32 %v7211_v29, 0.0  ;;  %v13292_v56 = vld [vmem:[%s20027_s3 + $0xef4] sm:$0xf0]  ;;  %v13293_v8 = vld [vmem:[%s20027_s3 + $0xf04] sm:$0xf] }
 0x51b   :  { %8035 = vmatpush.bf16.msrb.mxu3 %v12196_v60  ;;  %v12135_v60 = vld [vmem:[%s20027_s3 + $0xea8] sm:$0xf] }
 0x51e   :  { %8063 = vmatpush.bf16.msra.mxu1 %v11944_v41  ;;  %8105 = vmatpush.bf16.msrb.mxu0 %v11820_v46  ;;  %v12151_v41 = vld [vmem:[%s20027_s3 + $0xec8] sm:$0xf]  ;;  %v13288_v46 = vld [vmem:[%s20027_s3 + $0xed4] sm:$0xf0] }
 0x51f   :  { %v7212_v0 = vpop.f32.mrf.mxu3  ;;  %v12152_v50 = vor.u32 %v13288_v46, %v12151_v41  ;;  %v13276_v41 = vld [vmem:[%s20027_s3 + $0xe74] sm:$0xf0] }
 0x520   :  { %v7213_v30 = vadd.f32 %v7212_v0, %v7199_v9  ;;  %v12168_v9 = vor.u32 %v13292_v56, %v12167_v34  ;;  %v12180_v0 = vor.u32 %v13293_v8, %v12177_v13  ;;  %v12009_v34 = vld [vmem:[%s20027_s3 + $0xdb8] sm:$0xf0]  ;;  %v12119_v13 = vld [vmem:[%s20027_s3 + $0xe88] sm:$0xf] }
 0x521   :  { %v12012_v28 = vor.u32 %v13250_v12, %v12009_v34  ;;  %v11993_v8 = vld [vmem:[%s20027_s3 + $0xd98] sm:$0xf0] }
 0x522   :  { %v7277_v51 = vmax.f32 %v7213_v30, 0.0  ;;  %8064 = vmatpush.bf16.msra.mxu1 %v11928_v2  ;;  %8106 = vmatpush.bf16.msrb.mxu0 %v11804_v16  ;;  %v7238_v30 = vpop.f32.mrf.mxu1  ;;  %v7225_v2 = vadd.f32 %v7224_v47, %v6402_v5 }
 0x523   :  { %8036 = vmatpush.bf16.msrb.mxu3 %v12180_v0  ;;  %v12103_v0 = vld [vmem:[%s20027_s3 + $0xe68] sm:$0xf] }
 0x524   :  { %v19729_v29 = vpack.c.bf16 %v7277_v51, %v7273_v6  ;;  %v13284_v6 = vld [vmem:[%s20027_s3 + $0xeb4] sm:$0xf0]  ;;  %v7252_v51 = vpop.f32.mrf.mxu2  ;;  %v7239_v46 = vadd.f32 %v7238_v30, %v7225_v2  ;;  %v12104_v34 = vor.u32 %v13276_v41, %v12103_v0  ;;  %v11945_v2 = vld [vmem:[%s20027_s3 + $0xd38] sm:$0xf0]  ;;  %v12055_v41 = vld [vmem:[%s20027_s3 + $0xe08] sm:$0xf] }
 0x525   :  { %8107 = vmatmul.bf16.vlgmr.msrb.gmra.mxu0 %v19436_v10  ;;  %8065 = vmatmul.bf16.vlgmr.msra.gmra.mxu1 %v19588_v59  ;;  %v12136_v56 = vor.u32 %v13284_v6, %v12135_v60  ;;  %v13246_v10 = vld [vmem:[%s20027_s3 + $0xd8c] sm:$0xf]  ;;  %v11961_v6 = vld [vmem:[%s20027_s3 + $0xd58] sm:$0xf0]  ;;  %v13272_v30 = vld [vmem:[%s20027_s3 + $0xe54] sm:$0xf0] }
 0x526   :  { %7967 = vmatmul.bf16.vlgmr.msra.gmra.mxu2 %v19729_v29  ;;  %8113 = vmatpush.bf16.msrb.mxu1 %v12044_v27  ;;  %v11996_v16 = vor.u32 %v13246_v10, %v11993_v8  ;;  %v7226_v27 = vpop.f32.mrf.mxu0  ;;  %v13238_v60 = vld [vmem:[%s20027_s3 + $0xd4c] sm:$0xf] }
 0x527   :  { %8071 = vmatpush.bf16.msra.mxu2 %v12168_v9  ;;  %v12120_v9 = vor.u32 %v13280_v25, %v12119_v13  ;;  %v7227_v47 = vadd.f32 %v7226_v27, %v6402_v5  ;;  %v7253_v5 = vadd.f32 %v7252_v51, %v7239_v46  ;;  %v11964_v10 = vor.u32 %v13238_v60, %v11961_v6  ;;  %v13234_v25 = vld [vmem:[%s20027_s3 + $0xd2c] sm:$0xf]  ;;  %v12071_v51 = vld [vmem:[%s20027_s3 + $0xe28] sm:$0xf]  ;;  %v12169_v6 = vld [vmem:[%s20027_s3 + $0xef8] sm:$0xf0] }
 0x528   :  { %v13230_v46 = vld [vmem:[%s20027_s3 + $0xd0c] sm:$0xf] }
 0x529   :  { %v13290_v60 = vld [vmem:[%s20027_s3 + $0xeec] sm:$0xf] }
 0x52a   :  { %8114 = vmatpush.bf16.msrb.mxu1 %v12028_v55  ;;  %v11980_v55 = vor.u32 %v13242_v54, %v11977_v52  ;;  %v11948_v54 = vor.u32 %v13234_v25, %v11945_v2  ;;  %v12279_v25 = vld [vmem:[%s20027_s3 + $0xfc8] sm:$0xf]  ;;  %v13320_v2 = vld [vmem:[%s20027_s3 + $0xfd4] sm:$0xf0] }
 0x52b   :  { %8072 = vmatpush.bf16.msra.mxu2 %v12152_v50  ;;  %v7240_v50 = vpop.f32.mrf.mxu1 }
 0x52c   :  { %v7254_v8 = vpop.f32.mrf.mxu2 }
 0x52e   :  { %8115 = vmatpush.bf16.msrb.mxu1 %v12012_v28  ;;  %v12087_v28 = vld [vmem:[%s20027_s3 + $0xe48] sm:$0xf] }
 0x52f   :  { %8073 = vmatpush.bf16.msra.mxu2 %v12136_v56  ;;  %v7241_v56 = vadd.f32 %v7240_v50, %v7227_v47  ;;  %v12088_v13 = vor.u32 %v13272_v30, %v12087_v28  ;;  %v11929_v47 = vld [vmem:[%s20027_s3 + $0xd18] sm:$0xf0]  ;;  %v13264_v50 = vld [vmem:[%s20027_s3 + $0xe14] sm:$0xf0] }
 0x531   :  { %v7255_v27 = vadd.f32 %v7254_v8, %v7241_v56  ;;  %v12056_v56 = vor.u32 %v13264_v50, %v12055_v41  ;;  %v12137_v41 = vld [vmem:[%s20027_s3 + $0xeb8] sm:$0xf0]  ;;  %v13278_v50 = vld [vmem:[%s20027_s3 + $0xe8c] sm:$0xf] }
 0x532   :  { %8116 = vmatpush.bf16.msrb.mxu1 %v11996_v16  ;;  %v13268_v16 = vld [vmem:[%s20027_s3 + $0xe34] sm:$0xf0] }
 0x533   :  { %8074 = vmatpush.bf16.msra.mxu2 %v12120_v9  ;;  %v12072_v0 = vor.u32 %v13268_v16, %v12071_v51  ;;  %v13286_v51 = vld [vmem:[%s20027_s3 + $0xecc] sm:$0xf]  ;;  %v12153_v16 = vld [vmem:[%s20027_s3 + $0xed8] sm:$0xf0] }
 0x536   :  { %8023 = vmatmul.bf16.vlgmr.msrb.gmra.mxu2 %v19729_v29  ;;  %8117 = vmatpush.bf16.msrb.mxu1 %v11980_v55 }
 0x537   :  { %v7266_v12 = vpop.f32.mrf.mxu3  ;;  %8075 = vmatpush.bf16.msra.mxu2 %v12104_v34  ;;  %v13324_v34 = vld [vmem:[%s20027_s3 + $0xff4] sm:$0xf0] }
 0x538   :  { %v7267_v9 = vadd.f32 %v7266_v12, %v7253_v5  ;;  %v12295_v12 = vld [vmem:[%s20027_s3 + $0xfe8] sm:$0xf]  ;;  %v11932_v5 = vor.u32 %v13230_v46, %v11929_v47 }
 0x53a   :  { %8118 = vmatpush.bf16.msrb.mxu1 %v11964_v10  ;;  %v7274_v28 = vmax.f32 %v7267_v9, 0.0  ;;  %v12296_v10 = vor.u32 %v13324_v34, %v12295_v12  ;;  %v12156_v9 = vor.u32 %v13286_v51, %v12153_v16  ;;  %v12121_v12 = vld [vmem:[%s20027_s3 + $0xe98] sm:$0xf0] }
 0x53b   :  { %8076 = vmatpush.bf16.msra.mxu2 %v12088_v13  ;;  %v12172_v13 = vor.u32 %v13290_v60, %v12169_v6  ;;  %v12124_v60 = vor.u32 %v13278_v50, %v12121_v12  ;;  %v12231_v6 = vld [vmem:[%s20027_s3 + $0xf68] sm:$0xf]  ;;  %v12089_v51 = vld [vmem:[%s20027_s3 + $0xe58] sm:$0xf0]  ;;  %v13322_v12 = vld [vmem:[%s20027_s3 + $0xfec] sm:$0xf] }
 0x53c   :  { %v12057_v50 = vld [vmem:[%s20027_s3 + $0xe18] sm:$0xf0] }
 0x53e   :  { %8119 = vmatpush.bf16.msrb.mxu1 %v11948_v54  ;;  %v12263_v54 = vld [vmem:[%s20027_s3 + $0xfa8] sm:$0xf] }
 0x53f   :  { %v7268_v52 = vpop.f32.mrf.mxu3  ;;  %8077 = vmatpush.bf16.msra.mxu2 %v12072_v0  ;;  %v13282_v0 = vld [vmem:[%s20027_s3 + $0xeac] sm:$0xf] }
 0x540   :  { %v7269_v55 = vadd.f32 %v7268_v52, %v7255_v27  ;;  %v12280_v27 = vor.u32 %v13320_v2, %v12279_v25  ;;  %v13316_v52 = vld [vmem:[%s20027_s3 + $0xfb4] sm:$0xf0]  ;;  %v12140_v47 = vor.u32 %v13282_v0, %v12137_v41  ;;  %v13270_v2 = vld [vmem:[%s20027_s3 + $0xe4c] sm:$0xf]  ;;  %v12073_v0 = vld [vmem:[%s20027_s3 + $0xe38] sm:$0xf0] }
 0x541   :  { %v12264_v46 = vor.u32 %v13316_v52, %v12263_v54  ;;  %v13304_v25 = vld [vmem:[%s20027_s3 + $0xf54] sm:$0xf0]  ;;  %v13266_v52 = vld [vmem:[%s20027_s3 + $0xe2c] sm:$0xf] }
 0x542   :  { %v7278_v30 = vmax.f32 %v7269_v55, 0.0  ;;  %8120 = vmatpush.bf16.msrb.mxu1 %v11932_v5  ;;  %v12247_v55 = vld [vmem:[%s20027_s3 + $0xf88] sm:$0xf]  ;;  %v12105_v5 = vld [vmem:[%s20027_s3 + $0xe78] sm:$0xf0] }
 0x543   :  { %8078 = vmatpush.bf16.msra.mxu2 %v12056_v56  ;;  %v13300_v54 = vld [vmem:[%s20027_s3 + $0xf34] sm:$0xf0] }
 0x544   :  { %v19832_v8 = vpack.c.bf16 %v7278_v30, %v7274_v28  ;;  %v13308_v28 = vld [vmem:[%s20027_s3 + $0xf74] sm:$0xf0]  ;;  %v13274_v30 = vld [vmem:[%s20027_s3 + $0xe6c] sm:$0xf] }
 0x545   :  { %8121 = vmatmul.bf16.vlgmr.msrb.gmra.mxu1 %v19588_v59  ;;  %v13312_v59 = vld [vmem:[%s20027_s3 + $0xf94] sm:$0xf0]  ;;  %v12232_v56 = vor.u32 %v13308_v28, %v12231_v6 }
 0x546   :  { %7981 = vmatmul.bf16.vlgmr.msra.gmra.mxu3 %v19832_v8  ;;  %8079 = vmatmul.bf16.vlgmr.msra.gmra.mxu2 %v19729_v29  ;;  %v12248_v34 = vor.u32 %v13312_v59, %v12247_v55  ;;  %v13296_v55 = vld [vmem:[%s20027_s3 + $0xf14] sm:$0xf0]  ;;  %v13262_v59 = vld [vmem:[%s20027_s3 + $0xe0c] sm:$0xf] }
 0x547   :  { %8085 = vmatpush.bf16.msra.mxu3 %v12296_v10  ;;  %8127 = vmatpush.bf16.msrb.mxu2 %v12172_v13  ;;  %v12108_v10 = vor.u32 %v13274_v30, %v12105_v5  ;;  %v12215_v13 = vld [vmem:[%s20027_s3 + $0xf48] sm:$0xf]  ;;  %v12060_v6 = vor.u32 %v13262_v59, %v12057_v50  ;;  %v13318_v30 = vld [vmem:[%s20027_s3 + $0xfcc] sm:$0xf]  ;;  %v12281_v5 = vld [vmem:[%s20027_s3 + $0xfd8] sm:$0xf0] }
 0x548   :  { %v12216_v16 = vor.u32 %v13304_v25, %v12215_v13  ;;  %v12265_v13 = vld [vmem:[%s20027_s3 + $0xfb8] sm:$0xf0] }
 0x549   :  { %v12185_v59 = vld [vmem:[%s20027_s3 + $0xf18] sm:$0xf0] }
 0x54b   :  { %8086 = vmatpush.bf16.msra.mxu3 %v12280_v27  ;;  %8128 = vmatpush.bf16.msrb.mxu2 %v12156_v9  ;;  %v12092_v27 = vor.u32 %v13270_v2, %v12089_v51  ;;  %v12199_v9 = vld [vmem:[%s20027_s3 + $0xf28] sm:$0xf]  ;;  %v13310_v2 = vld [vmem:[%s20027_s3 + $0xf8c] sm:$0xf]  ;;  %v12249_v51 = vld [vmem:[%s20027_s3 + $0xf98] sm:$0xf0] }
 0x54c   :  { %v12200_v41 = vor.u32 %v13300_v54, %v12199_v9  ;;  %v13302_v54 = vld [vmem:[%s20027_s3 + $0xf4c] sm:$0xf] }
 0x54f   :  { %8087 = vmatpush.bf16.msra.mxu3 %v12264_v46  ;;  %8129 = vmatpush.bf16.msrb.mxu2 %v12140_v47  ;;  %v12076_v46 = vor.u32 %v13266_v52, %v12073_v0  ;;  %v12183_v47 = vld [vmem:[%s20027_s3 + $0xf08] sm:$0xf]  ;;  %v12217_v52 = vld [vmem:[%s20027_s3 + $0xf58] sm:$0xf0] }
 0x550   :  { %v12220_v0 = vor.u32 %v13302_v54, %v12217_v52 }
 0x553   :  { %8088 = vmatpush.bf16.msra.mxu3 %v12248_v34  ;;  %8130 = vmatpush.bf16.msrb.mxu2 %v12124_v60  ;;  %v12297_v34 = vld [vmem:[%s20027_s3 + $0xff8] sm:$0xf0]  ;;  %v12184_v60 = vor.u32 %v13296_v55, %v12183_v47  ;;  %v13294_v55 = vld [vmem:[%s20027_s3 + $0xf0c] sm:$0xf] }
 0x554   :  { %v12300_v28 = vor.u32 %v13322_v12, %v12297_v34  ;;  %v12188_v50 = vor.u32 %v13294_v55, %v12185_v59  ;;  %v3953_v55 = vadd.f32 %v17095_v35, %v17074_v18 }
 0x556   :  { %8037 = vmatmul.bf16.vlgmr.msrb.gmra.mxu3 %v19832_v8 }
 0x557   :  { %8089 = vmatpush.bf16.msra.mxu3 %v12232_v56  ;;  %8131 = vmatpush.bf16.msrb.mxu2 %v12108_v10  ;;  %v12284_v56 = vor.u32 %v13318_v30, %v12281_v5  ;;  %v13314_v10 = vld [vmem:[%s20027_s3 + $0xfac] sm:$0xf]  ;;  %v1867_v5 = vadd.f32 %v15311_v58, %v15270_v37  ;;  %v20038_v37 = vperm.slane %v17335_v48, 0 }
 0x558   :  { %v12268_v25 = vor.u32 %v13314_v10, %v12265_v13  ;;  %v3897_v13 = vadd.f32 %v16969_v63, %v16928_v20 }
 0x559   :  { %v1881_v10 = vadd.f32 %v15577_v21, %v1867_v5 }
 0x55b   :  { %8090 = vmatpush.bf16.msra.mxu3 %v12216_v16  ;;  %8132 = vmatpush.bf16.msrb.mxu2 %v12092_v27  ;;  %v12252_v16 = vor.u32 %v13310_v2, %v12249_v51  ;;  %v13306_v27 = vld [vmem:[%s20027_s3 + $0xf6c] sm:$0xf]  ;;  %v1895_v51 = vadd.f32 %v15772_v14, %v1881_v10 }
 0x55d   :  { %v2069_v58 = vadd.f32 %v1895_v51, %v20038_v37  ;;  %v4009_v51 = vadd.f32 %v17302_v39, %v17300_v38 }
 0x55f   :  { %8091 = vmatpush.bf16.msra.mxu3 %v12200_v41  ;;  %8133 = vmatpush.bf16.msrb.mxu2 %v12076_v46  ;;  %v13298_v41 = vld [vmem:[%s20027_s3 + $0xf2c] sm:$0xf]  ;;  %v12201_v46 = vld [vmem:[%s20027_s3 + $0xf38] sm:$0xf0] }
 0x560   :  { %v12204_v47 = vor.u32 %v13298_v41, %v12201_v46 }
 0x562   :  { %v7940_v34 = vpop.f32.mrf.mxu0 }
 0x563   :  { %8092 = vmatpush.bf16.msra.mxu3 %v12184_v60  ;;  %8134 = vmatpush.bf16.msrb.mxu2 %v12060_v6 }
 0x566   :  { %8093 = vmatmul.bf16.vlgmr.msra.gmra.mxu3 %v19832_v8  ;;  %8135 = vmatmul.bf16.vlgmr.msrb.gmra.mxu2 %v19729_v29  ;;  %v12233_v29 = vld [vmem:[%s20027_s3 + $0xf78] sm:$0xf0]  ;;  %s13354_s3 = smov [#allocation3]  }
 0x567   :  { %8141 = vmatpush.bf16.msrb.mxu3 %v12300_v28  ;;  %v12236_v9 = vor.u32 %v13306_v27, %v12233_v29  ;;  %s8191_s26 = sshll.u32 %s13354_s3, 4  ;;  %s8192_s26 = int_to_ptr.vmem [resolvable:$true] %s8191_s26 }
 0x56a   :  { %v7942_v28 = vpop.f32.mrf.mxu0 }
 0x56b   :  { %8142 = vmatpush.bf16.msrb.mxu3 %v12284_v56 }
 0x56f   :  { %8143 = vmatpush.bf16.msrb.mxu3 %v12268_v25 }
 0x572   :  { %v7996_v54 = vpop.f32.mrf.mxu0 }
 0x573   :  { %8144 = vmatpush.bf16.msrb.mxu3 %v12252_v16 }
 0x577   :  { %8145 = vmatpush.bf16.msrb.mxu3 %v12236_v9 }
 0x57a   :  { %v7998_v59 = vpop.f32.mrf.mxu0 }
 0x57b   :  { %8146 = vmatpush.bf16.msrb.mxu3 %v12220_v0 }
 0x57f   :  { %8147 = vmatpush.bf16.msrb.mxu3 %v12204_v47 }
 0x582   :  { %v7954_v12 = vpop.f32.mrf.mxu1 }
 0x583   :  { %8148 = vmatpush.bf16.msrb.mxu3 %v12188_v50  ;;  %v7955_v56 = vadd.f32 %v7954_v12, %v7940_v34 }
 0x586   :  { %8149 = vmatmul.bf16.vlgmr.msrb.gmra.mxu3 %v19832_v8  ;;  %v3911_v8 = vadd.f32 %v17236_v33, %v3897_v13 }
 0x588   :  { %v3925_v27 = vadd.f32 %v17426_v44, %v3911_v8  ;;  %v1923_v44 = vadd.f32 %v15436_v3, %v15419_v53  ;;  %v20039_v3 = vperm.slane %v17335_v48, 1 }
 0x58a   :  { %v7956_v6 = vpop.f32.mrf.mxu1  ;;  %v4099_v20 = vadd.f32 %v3925_v27, %v2069_v58  ;;  %v1937_v47 = vadd.f32 %v15689_v23, %v1923_v44 }
 0x58b   :  { %v7957_v21 = vadd.f32 %v7956_v6, %v7942_v28 }
 0x58c   :  { %v6129_v14 = vadd.f32 %v19097_v31, %v4099_v20  ;;  %v3967_v31 = vadd.f32 %v17352_v22, %v3953_v55 }
 0x58e   :  { %v3981_v28 = vadd.f32 %v17490_v15, %v3967_v31  ;;  %v1979_v15 = vadd.f32 %v15643_v62, %v15641_v61 }
 0x592   :  { %v8010_v9 = vpop.f32.mrf.mxu1 }
 0x593   :  { %v8011_v46 = vadd.f32 %v8010_v9, %v7996_v54  ;;  %v20040_v54 = vperm.slane %v17335_v48, 2 }
 0x5a9   :  { %v7968_v60 = vpop.f32.mrf.mxu2 }
 0x5aa   :  { %v7969_v25 = vadd.f32 %v7968_v60, %v7955_v56  ;;  %v1951_v60 = vadd.f32 %v15830_v49, %v1937_v47  ;;  %v8052_v49 = vpop.f32.mrf.mxu0  ;;  %v20042_v47 = vld [vmem:[#allocation6_spill] sm:$0xff] }
 0x5b1   :  { %v7970_v30 = vpop.f32.mrf.mxu2 }
 0x5b2   :  { %v7971_v63 = vadd.f32 %v7970_v30, %v7957_v21  ;;  %v2070_v30 = vadd.f32 %v1951_v60, %v20039_v3  ;;  %v8054_v61 = vpop.f32.mrf.mxu0 }
 0x5b4   :  { %v4100_v5 = vadd.f32 %v3981_v28, %v2070_v30 }
 0x5b6   :  { %v6130_v10 = vadd.f32 %v19158_v36, %v4100_v5  ;;  %v4023_v36 = vadd.f32 %v17498_v4, %v4009_v51 }
 0x5b8   :  { %v4037_v37 = vadd.f32 %v17601_v11, %v4023_v36 }
 0x5b9   :  { %v8024_v52 = vpop.f32.mrf.mxu2 }
 0x5ba   :  { %v8025_v50 = vadd.f32 %v8024_v52, %v8011_v46 }
 0x5c1   :  { %v8026_v12 = vpop.f32.mrf.mxu2 }
 0x5c9   :  { %v7982_v2 = vpop.f32.mrf.mxu3 }
 0x5ca   :  { %v7983_v16 = vadd.f32 %v7982_v2, %v7969_v25  ;;  %v8080_v25 = vpop.f32.mrf.mxu2 }
 0x5cc   :  { %v8155_v29 = vadd.f32 %v7983_v16, %v19055_v32  ;;  %v8012_v32 = vpop.f32.mrf.mxu1 }
 0x5cd   :  { %v8013_v23 = vadd.f32 %v8012_v32, %v7998_v59 }
 0x5ce   :  { %8179 = vst [vmem:[#allocation3] sm:$0xff] %v8155_v29 }
 0x5cf   :  { %v8027_v18 = vadd.f32 %v8026_v12, %v8013_v23 }
 0x5d1   :  { %v7984_v0 = vpop.f32.mrf.mxu3 }
 0x5d2   :  { %v7985_v41 = vadd.f32 %v7984_v0, %v7971_v63  ;;  %v8082_v62 = vpop.f32.mrf.mxu2  ;;  %v8108_v0 = vpop.f32.mrf.mxu0 }
 0x5d4   :  { %v8159_v33 = vadd.f32 %v7985_v41, %v6129_v14  ;;  %v8066_v35 = vpop.f32.mrf.mxu1 }
 0x5d5   :  { %v8067_v2 = vadd.f32 %v8066_v35, %v8052_v49 }
 0x5d6   :  { %8183 = vst [vmem:[#allocation3 + $0x20] sm:$0xff] %v8159_v33  ;;  %v20041_v33 = vld [vmem:[#allocation7_spill] sm:$0xff] }
 0x5d7   :  { %v8081_v8 = vadd.f32 %v8080_v25, %v8067_v2  ;;  %v4065_v44 = vadd.f32 %v20041_v33, %v17634_v42 }
 0x5d9   :  { %v8038_v34 = vpop.f32.mrf.mxu3 }
 0x5da   :  { %v8039_v6 = vadd.f32 %v8038_v34, %v8025_v50  ;;  %v20044_v34 = vld [vmem:[#allocation9_spill] sm:$0xff] }
 0x5dc   :  { %v8156_v53 = vadd.f32 %v8039_v6, %v19137_v40  ;;  %v1993_v40 = vadd.f32 %v15828_v45, %v1979_v15  ;;  %v8068_v9 = vpop.f32.mrf.mxu1  ;;  %v8110_v6 = vpop.f32.mrf.mxu0 }
 0x5dd   :  { %v8069_v21 = vadd.f32 %v8068_v9, %v8054_v61 }
 0x5de   :  { %8180 = vst [vmem:[#allocation3 + $0x8] sm:$0xff] %v8156_v53  ;;  %v2007_v27 = vadd.f32 %v15935_v1, %v1993_v40 }
 0x5df   :  { %v8083_v39 = vadd.f32 %v8082_v62, %v8069_v21 }
 0x5e0   :  { %v2071_v45 = vadd.f32 %v2007_v27, %v20040_v54 }
 0x5e1   :  { %v8040_v56 = vpop.f32.mrf.mxu3 }
 0x5e2   :  { %v8041_v13 = vadd.f32 %v8040_v56, %v8027_v18  ;;  %v4101_v38 = vadd.f32 %v4037_v37, %v2071_v45 }
 0x5e4   :  { %v8160_v22 = vadd.f32 %v8041_v13, %v6130_v10  ;;  %v6131_v1 = vadd.f32 %v19213_v17, %v4101_v38  ;;  %v8122_v63 = vpop.f32.mrf.mxu1  ;;  %v20043_v17 = vld [vmem:[#allocation8_spill] sm:$0xff] }
 0x5e5   :  { %v8123_v14 = vadd.f32 %v8122_v63, %v8108_v0  ;;  %v4079_v59 = vadd.f32 %v20043_v17, %v4065_v44 }
 0x5e6   :  { %8184 = vst [vmem:[#allocation3 + $0x28] sm:$0xff] %v8160_v22 }
 0x5e7   :  { %v4093_v60 = vadd.f32 %v20044_v34, %v4079_v59 }
 0x5e9   :  { %v8094_v16 = vpop.f32.mrf.mxu3  ;;  %v8136_v11 = vpop.f32.mrf.mxu2 }
 0x5ea   :  { %v8095_v29 = vadd.f32 %v8094_v16, %v8081_v8  ;;  %v8137_v46 = vadd.f32 %v8136_v11, %v8123_v14 }
 0x5ec   :  { %v8157_v58 = vadd.f32 %v8095_v29, %v19189_v57  ;;  %v2035_v57 = vadd.f32 %v15987_v26, %v15973_v19  ;;  %v8124_v12 = vpop.f32.mrf.mxu1  ;;  %v20045_v26 = vperm.slane %v17335_v48, 3 }
 0x5ed   :  { %v8125_v28 = vadd.f32 %v8124_v12, %v8110_v6 }
 0x5ee   :  { %8181 = vst [vmem:[#allocation3 + $0x10] sm:$0xff] %v8157_v58  ;;  %v2049_v41 = vadd.f32 %v16004_v7, %v2035_v57 }
 0x5f0   :  { %v2063_v55 = vadd.f32 %v20042_v47, %v2049_v41 }
 0x5f1   :  { %v8096_v52 = vpop.f32.mrf.mxu3  ;;  %v8138_v19 = vpop.f32.mrf.mxu2 }
 0x5f2   :  { %v8097_v20 = vadd.f32 %v8096_v52, %v8083_v39  ;;  %v2072_v7 = vadd.f32 %v2063_v55, %v20045_v26  ;;  %v8139_v53 = vadd.f32 %v8138_v19, %v8125_v28 }
 0x5f4   :  { %v8161_v4 = vadd.f32 %v8097_v20, %v6131_v1  ;;  %v4102_v42 = vadd.f32 %v4093_v60, %v2072_v7 }
 0x5f6   :  { %8185 = vst [vmem:[#allocation3 + $0x30] sm:$0xff] %v8161_v4  ;;  %v6132_v30 = vadd.f32 %v19302_v43, %v4102_v42 }
 0x609   :  { %v8150_v32 = vpop.f32.mrf.mxu3 }
 0x60a   :  { %v8151_v50 = vadd.f32 %v8150_v32, %v8137_v46 }
 0x60c   :  { %v8158_v31 = vadd.f32 %v8151_v50, %v19288_v24 }
 0x60e   :  { %8182 = vst [vmem:[#allocation3 + $0x18] sm:$0xff] %v8158_v31 }
 0x611   :  { %v8152_v3 = vpop.f32.mrf.mxu3 }
 0x612   :  { %v8153_v23 = vadd.f32 %v8152_v3, %v8139_v53 }
 0x614   :  { %v8162_v24 = vadd.f32 %v8153_v23, %v6132_v30 }
 0x616   :  { %8186 = vst [vmem:[#allocation3 + $0x38] sm:$0xff] %v8162_v24 }
 0x617   :  { %8199 = dma.vmem_to_hbm [thread:$0]  %s8192_s26, 1024, %s8194_s29, [#allocation4], %s13355_s30, %s13355_s30, %s13356_s6  }
 0x618   :  { %13352 = dma.done.wait [#allocation4], 1024  }
 0x619   :  { %13353 = vsyncadd [#allocation4], 4294966272 }
 0x61a   :  { %8204 = vsyncpa [#allocation4], 1 }

</bundles_post_ra>
